<compile_context>
chip_gen: v6e
topology: v6e:2x2x1
jax: 0.10.0
libtpu: 0.0.40
codegen_flags: <defaults>
</compile_context>

<pallas_src>
import math

import jax
import jax.numpy as jnp
from jax.experimental import pallas as pl
from jax.experimental.pallas import tpu as pltpu

LANE = 128          # conv output channels padded to one full lane tile
TILE_M_CONV1 = 512  # conv1 has M = 400*batch -> bigger tiles amortize overhead
TILE_M_SMALL = 256  # conv2/conv3/MLP: smaller M -> finer grid for 2-TC v7x

_VMEM_LIMIT = None


def _vmem_limit_bytes():
    """Scoped-VMEM budget: half of physical, clamped to [32 MiB, 64 MiB]."""
    global _VMEM_LIMIT
    if _VMEM_LIMIT is None:
        try:
            cap = int(pltpu.get_tpu_info().vmem_capacity_bytes)
        except Exception:
            cap = 64 * 1024 * 1024
        _VMEM_LIMIT = max(32 * 1024 * 1024, min(cap // 2, 64 * 1024 * 1024))
    return _VMEM_LIMIT


def _elu(x):
    # ELU(alpha=1): x if x>0 else exp(x)-1.  min() keeps the unselected branch
    # finite; exp lowers to the EUP (its bundle slot is otherwise idle here).
    return jnp.where(x > 0.0, x, jnp.exp(jnp.minimum(x, 0.0)) - 1.0)


# ----------------------------------------------------------------------------
# Kernel 1: conv-as-matmul   out = ELU(x @ w + b)
#   x,w bf16 -> f32 MXU accumulation -> f32 bias + ELU -> bf16 lane-dense store
# ----------------------------------------------------------------------------
def _conv_mm_kernel(x_ref, w_ref, b_ref, o_ref):
    acc = jnp.dot(x_ref[...], w_ref[...], preferred_element_type=jnp.float32)
    o_ref[...] = _elu(acc + b_ref[...]).astype(o_ref.dtype)


def conv_matmul(x, w, b, *, tile_m):
    """x:(M,K) bf16 patches (K unpadded), w:(K,128) bf16, b:(1,128) f32."""
    M, K = x.shape
    K2, N = w.shape
    assert K == K2 and b.shape == (1, N)
    block_m = M if M <= tile_m else tile_m
    grid_m = pl.cdiv(M, block_m)
    cost = pl.CostEstimate(
        flops=2 * M * K * N,
        transcendentals=M * N,
        bytes_accessed=M * K * 2 + K * N * 2 + N * 4 + M * N * 2,
    )
    return pl.pallas_call(
        _conv_mm_kernel,
        out_shape=jax.ShapeDtypeStruct((M, N), jnp.bfloat16),
        grid=(grid_m,),
        in_specs=[
            pl.BlockSpec((block_m, K), lambda i: (i, 0)),
            pl.BlockSpec((K, N), lambda i: (0, 0)),       # resident weights
            pl.BlockSpec((1, N), lambda i: (0, 0)),       # resident bias
        ],
        out_specs=pl.BlockSpec((block_m, N), lambda i: (i, 0)),
        compiler_params=pltpu.CompilerParams(
            dimension_semantics=("parallel",),
            vmem_limit_bytes=_vmem_limit_bytes()),
        cost_estimate=cost,
    )(x, w, b)


# ----------------------------------------------------------------------------
# Kernel 2: fused FC tail   out = ELU(ELU(x@w1+b1)@w2+b2) @ w3 + b3
#   (one launch; w1/w2/w3 resident in VMEM; intermediates never hit HBM)
# ----------------------------------------------------------------------------
def _mlp_kernel(x_ref, w1_ref, b1_ref, w2_ref, b2_ref, w3_ref, b3_ref, o_ref):
    h = jnp.dot(x_ref[...], w1_ref[...], preferred_element_type=jnp.float32)
    h = _elu(h + b1_ref[...])
    h = jnp.dot(h.astype(w2_ref.dtype), w2_ref[...],
                preferred_element_type=jnp.float32)
    h = _elu(h + b2_ref[...])
    h = jnp.dot(h.astype(w3_ref.dtype), w3_ref[...],
                preferred_element_type=jnp.float32)
    o_ref[...] = (h + b3_ref[...]).astype(o_ref.dtype)


def fused_mlp(x, w1, b1, w2, b2, w3, b3, *, tile_m=TILE_M_SMALL):
    M, K = x.shape
    N1, N2, N3 = w1.shape[1], w2.shape[1], w3.shape[1]
    block_m = M if M <= tile_m else tile_m
    grid_m = pl.cdiv(M, block_m)
    cost = pl.CostEstimate(
        flops=2 * M * (K * N1 + N1 * N2 + N2 * N3),
        transcendentals=M * (N1 + N2),
        bytes_accessed=(M * K * 2 + (K * N1 + N1 * N2 + N2 * N3) * 2
                        + (N1 + N2 + N3) * 4 + M * N3 * 4),
    )
    return pl.pallas_call(
        _mlp_kernel,
        out_shape=jax.ShapeDtypeStruct((M, N3), jnp.float32),
        grid=(grid_m,),
        in_specs=[
            pl.BlockSpec((block_m, K), lambda i: (i, 0)),
            pl.BlockSpec((K, N1), lambda i: (0, 0)),
            pl.BlockSpec((1, N1), lambda i: (0, 0)),
            pl.BlockSpec((N1, N2), lambda i: (0, 0)),
            pl.BlockSpec((1, N2), lambda i: (0, 0)),
            pl.BlockSpec((N2, N3), lambda i: (0, 0)),
            pl.BlockSpec((1, N3), lambda i: (0, 0)),
        ],
        out_specs=pl.BlockSpec((block_m, N3), lambda i: (i, 0)),
        compiler_params=pltpu.CompilerParams(
            dimension_semantics=("parallel",),
            vmem_limit_bytes=_vmem_limit_bytes()),
        cost_estimate=cost,
    )(x, w1, b1, w2, b2, w3, b3)


# ----------------------------------------------------------------------------
# im2col patch extraction (XLA glue, no transposes: column order is (kh,kw,c))
# ----------------------------------------------------------------------------
def _patches(x, kh, kw, stride):
    n, h, w, c = x.shape
    oh = (h - kh) // stride + 1
    ow = (w - kw) // stride + 1
    cols = []
    for i in range(kh):
        for j in range(kw):
            cols.append(x[:, i:i + stride * oh:stride,
                           j:j + stride * ow:stride, :])
    p = jnp.stack(cols, axis=3)                       # (n, oh, ow, kh*kw, c)
    return p.reshape(n * oh * ow, kh * kw * c), oh, ow


# ----------------------------------------------------------------------------
# Deterministic parameter init (orthogonal, gain sqrt(2), PyTorch layouts)
# ----------------------------------------------------------------------------
def _orthogonal(key, shape, gain):
    rows = shape[0]
    cols = int(math.prod(shape[1:]))
    a = jax.random.normal(key, (max(rows, cols), min(rows, cols)), jnp.float32)
    q, r = jnp.linalg.qr(a)
    q = q * jnp.where(jnp.diagonal(r) >= 0.0, 1.0, -1.0)
    if rows < cols:
        q = q.T
    return (gain * q[:rows, :cols]).reshape(shape)


def _bias(key, fan_in, n):
    bound = 1.0 / math.sqrt(fan_in)
    return jax.random.uniform(key, (n,), jnp.float32, -bound, bound)


def init_params(key, input_shape):
    c_in, h, w = input_shape
    fc_size = (h // 12) * (w // 12)
    gain = 2.0 ** 0.5
    keys = jax.random.split(key, 12)
    return {
        "c1_w": _orthogonal(keys[0], (32, c_in, 8, 8), gain),
        "c1_b": _bias(keys[1], c_in * 8 * 8, 32),
        "c2_w": _orthogonal(keys[2], (64, 32, 4, 4), gain),
        "c2_b": _bias(keys[3], 32 * 4 * 4, 64),
        "c3_w": _orthogonal(keys[4], (64, 64, 3, 3), gain),
        "c3_b": _bias(keys[5], 64 * 3 * 3, 64),
        "l1_w": _orthogonal(keys[6], (512, 64 * fc_size), gain),
        "l1_b": _bias(keys[7], 64 * fc_size, 512),
        "l2_w": _orthogonal(keys[8], (512, 512), gain),
        "l2_b": _bias(keys[9], 512, 512),
        "l3_w": _orthogonal(keys[10], (512, 512), gain),
        "l3_b": _bias(keys[11], 512, 512),
    }


# ----------------------------------------------------------------------------
# One-time weight preparation: fold layout permutations into the parameters.
#   * conv w -> (kh,kw,cin,cout) with cout zero-padded to 128 (lane-dense
#     output), cin kept UNPADDED (no zero K streamed through the MXU).
#   * l1 columns reordered from PyTorch NCHW-flatten (c,h,w) to (h,w,c).
# ----------------------------------------------------------------------------
def _conv_out_hw(h, w):
    h1, w1 = (h - 8) // 4 + 1, (w - 8) // 4 + 1
    h2, w2 = (h1 - 4) // 2 + 1, (w1 - 4) // 2 + 1
    return (h1, w1), (h2, w2), (h2 - 2, w2 - 2)


def prepare_params(params, input_shape):
    c_in, h, w = input_shape
    _, _, (h3, w3) = _conv_out_hw(h, w)

    def conv_w(w_pt):
        c_out, c_in_, kh, kw = w_pt.shape
        wt = jnp.transpose(w_pt, (2, 3, 1, 0))        # (kh, kw, cin, cout)
        wt = jnp.pad(wt, ((0, 0), (0, 0), (0, 0), (0, LANE - c_out)))
        return wt.reshape(kh * kw * c_in_, LANE).astype(jnp.bfloat16)

    def conv_b(b_pt):
        return jnp.pad(b_pt, (0, LANE - b_pt.shape[0])
                       ).reshape(1, LANE).astype(jnp.float32)

    l1 = params["l1_w"].reshape(512, 64, h3, w3)
    l1 = jnp.transpose(l1, (2, 3, 1, 0))              # (h, w, c, out)
    l1 = l1.reshape(h3 * w3 * 64, 512).astype(jnp.bfloat16)

    return {
        "c1_w": conv_w(params["c1_w"]),
        "c1_b": conv_b(params["c1_b"]),
        "c2_w": conv_w(params["c2_w"]),
        "c2_b": conv_b(params["c2_b"]),
        "c3_w": conv_w(params["c3_w"]),
        "c3_b": conv_b(params["c3_b"]),
        "l1_w": l1,
        "l1_b": params["l1_b"].reshape(1, 512).astype(jnp.float32),
        "l2_w": params["l2_w"].T.astype(jnp.bfloat16),
        "l2_b": params["l2_b"].reshape(1, 512).astype(jnp.float32),
        "l3_w": params["l3_w"].T.astype(jnp.bfloat16),
        "l3_b": params["l3_b"].reshape(1, 512).astype(jnp.float32),
    }


# ----------------------------------------------------------------------------
# Forward pass (action is accepted but unused, matching the PyTorch module).
# bf16 activations / weights, f32 accumulation: expect ~1e-2 relative
# deviation vs the f32 PyTorch reference (acceptable for RL).
# ----------------------------------------------------------------------------
@jax.jit
def forward(prepped, state, action):
    del action  # unused, as in Model.forward
    n = state.shape[0]
    x = jnp.transpose(state, (0, 2, 3, 1)).astype(jnp.bfloat16)  # NCHW -> NHWC

    # conv1: K = 8*8*c_in (unpadded), output padded to 128 lanes.
    p, oh, ow = _patches(x, 8, 8, 4)
    x = conv_matmul(p, prepped["c1_w"], prepped["c1_b"], tile_m=TILE_M_CONV1)
    x = x[:, :32].reshape(n, oh, ow, 32)          # drop padded channels -> K=512

    # conv2
    p, oh, ow = _patches(x, 4, 4, 2)
    x = conv_matmul(p, prepped["c2_w"], prepped["c2_b"], tile_m=TILE_M_SMALL)
    x = x[:, :64].reshape(n, oh, ow, 64)          # -> K=576 for conv3

    # conv3
    p, oh, ow = _patches(x, 3, 3, 1)
    x = conv_matmul(p, prepped["c3_w"], prepped["c3_b"], tile_m=TILE_M_SMALL)
    feats = x[:, :64].reshape(n, oh * ow * 64)    # NHWC flatten matches l1_w

    # Pad batch to a multiple of 8 (full sublanes) before the fused FC tail.
    pad = (-n) % 8
    if pad:
        feats = jnp.pad(feats, ((0, pad), (0, 0)))
    out = fused_mlp(feats, prepped["l1_w"], prepped["l1_b"],
                    prepped["l2_w"], prepped["l2_b"],
                    prepped["l3_w"], prepped["l3_b"])
    return out[:n]


if __name__ == "__main__":
    # 84x84 is the smallest spatial size where fc_size = (H//12)*(W//12)
    # matches the conv-stack output (7x7 -> 64*49 = 3136 features).
    input_shape = (4, 84, 84)
    batch = 2
    outputs_count = 7  # unused by the forward pass, as in the PyTorch module

    key = jax.random.PRNGKey(0)
    pkey, skey, akey = jax.random.split(key, 3)
    params = init_params(pkey, input_shape)
    prepped = prepare_params(params, input_shape)
    state = jax.random.normal(skey, (batch,) + input_shape, dtype=jnp.float32)
    action = jax.random.normal(akey, (batch, outputs_count), dtype=jnp.float32)

    out = forward(prepped, state, action)
    out = jax.block_until_ready(out)
    assert out.shape == (batch, 512), out.shape
    assert bool(jnp.all(jnp.isfinite(out)))
    print("KERNEL_OK")
</pallas_src>

<mosaic_0001>
module attributes {stable_mosaic.version = 11 : i64} {
  func.func @_conv_mm_kernel(%arg0: i32, %arg1: memref<512x256xbf16, #tpu.memory_space<vmem>>, %arg2: memref<256x128xbf16, #tpu.memory_space<vmem>>, %arg3: memref<1x128xf32, #tpu.memory_space<vmem>>, %arg4: memref<512x128xbf16, #tpu.memory_space<vmem>>) attributes {dimension_semantics = [#tpu.dimension_semantics<parallel>], iteration_bounds = array<i64: 2>, scalar_prefetch = 0 : i64, scratch_operands = 0 : i64, tpu.core_type = #tpu.core_type<tc>, window_params = [{transform_indices = @transform_0, window_bounds = array<i64: 512, 256>}, {pipeline_mode = #tpu.pipeline_mode<synchronous>, transform_indices = @transform_1, window_bounds = array<i64: 256, 128>}, {pipeline_mode = #tpu.pipeline_mode<synchronous>, transform_indices = @transform_2, window_bounds = array<i64: 1, 128>}, {transform_indices = @transform_3, window_bounds = array<i64: 512, 128>}]} {
    %c0 = arith.constant 0 : index
    %c0_0 = arith.constant 0 : index
    %0 = vector.load %arg1[%c0, %c0_0] : memref<512x256xbf16, #tpu.memory_space<vmem>>, vector<512x256xbf16>
    %c0_1 = arith.constant 0 : index
    %c0_2 = arith.constant 0 : index
    %1 = vector.load %arg2[%c0_1, %c0_2] : memref<256x128xbf16, #tpu.memory_space<vmem>>, vector<256x128xbf16>
    %cst = arith.constant dense<0.000000e+00> : vector<512x128xf32>
    %2 = tpu.matmul %0, %1, %cst {dimension_numbers = #tpu.dot_dimension_numbers<[1], [0], [0], [1], [0, 0, 1, 1], [], []>} : vector<512x256xbf16>, vector<256x128xbf16>, vector<512x128xf32> -> vector<512x128xf32>
    %c0_3 = arith.constant 0 : index
    %c0_4 = arith.constant 0 : index
    %3 = vector.load %arg3[%c0_3, %c0_4] : memref<1x128xf32, #tpu.memory_space<vmem>>, vector<1x128xf32>
    %4 = vector.broadcast %3 : vector<1x128xf32> to vector<512x128xf32>
    %5 = arith.addf %2, %4 : vector<512x128xf32>
    %cst_5 = arith.constant 0.000000e+00 : f32
    %6 = vector.broadcast %cst_5 : f32 to vector<512x128xf32>
    %7 = arith.cmpf ogt, %5, %6 : vector<512x128xf32>
    %cst_6 = arith.constant 0.000000e+00 : f32
    %8 = vector.broadcast %cst_6 : f32 to vector<512x128xf32>
    %9 = arith.minimumf %5, %8 : vector<512x128xf32>
    %10 = math.exp %9 : vector<512x128xf32>
    %cst_7 = arith.constant 1.000000e+00 : f32
    %11 = vector.broadcast %cst_7 : f32 to vector<512x128xf32>
    %12 = arith.subf %10, %11 : vector<512x128xf32>
    %13 = arith.select %7, %5, %12 : vector<512x128xi1>, vector<512x128xf32>
    %14 = arith.truncf %13 : vector<512x128xf32> to vector<512x128xbf16>
    %c0_8 = arith.constant 0 : index
    %c0_9 = arith.constant 0 : index
    %15 = vector.load %arg4[%c0_8, %c0_9] : memref<512x128xbf16, #tpu.memory_space<vmem>>, vector<512x128xbf16>
    tpu.vector_store %arg4[%c0_8, %c0_9], %14 {strides = array<i32>} : memref<512x128xbf16, #tpu.memory_space<vmem>>, vector<512x128xbf16>,
    return
  }
  func.func @transform_0(%arg0: i32) -> (i32, i32) {
    %c0_i32 = arith.constant 0 : i32
    %c0_i32_0 = arith.constant 0 : i32
    return %arg0, %c0_i32 : i32, i32
  }
  func.func @transform_1(%arg0: i32) -> (i32, i32) {
    %c0_i32 = arith.constant 0 : i32
    %c0_i32_0 = arith.constant 0 : i32
    %c0_i32_1 = arith.constant 0 : i32
    return %c0_i32, %c0_i32_0 : i32, i32
  }
  func.func @transform_2(%arg0: i32) -> (i32, i32) {
    %c0_i32 = arith.constant 0 : i32
    %c0_i32_0 = arith.constant 0 : i32
    %c0_i32_1 = arith.constant 0 : i32
    return %c0_i32, %c0_i32_0 : i32, i32
  }
  func.func @transform_3(%arg0: i32) -> (i32, i32) {
    %c0_i32 = arith.constant 0 : i32
    %c0_i32_0 = arith.constant 0 : i32
    return %arg0, %c0_i32 : i32, i32
  }
}

module attributes {stable_mosaic.version = 11 : i64} {
  func.func @_conv_mm_kernel(%arg0: i32, %arg1: memref<162x512xbf16, #tpu.memory_space<vmem>>, %arg2: memref<512x128xbf16, #tpu.memory_space<vmem>>, %arg3: memref<1x128xf32, #tpu.memory_space<vmem>>, %arg4: memref<162x128xbf16, #tpu.memory_space<vmem>>) attributes {dimension_semantics = [#tpu.dimension_semantics<parallel>], iteration_bounds = array<i64: 1>, scalar_prefetch = 0 : i64, scratch_operands = 0 : i64, tpu.core_type = #tpu.core_type<tc>, window_params = [{transform_indices = @transform_0, window_bounds = array<i64: 162, 512>}, {pipeline_mode = #tpu.pipeline_mode<synchronous>, transform_indices = @transform_1, window_bounds = array<i64: 512, 128>}, {pipeline_mode = #tpu.pipeline_mode<synchronous>, transform_indices = @transform_2, window_bounds = array<i64: 1, 128>}, {transform_indices = @transform_3, window_bounds = array<i64: 162, 128>}]} {
    %c0 = arith.constant 0 : index
    %c0_0 = arith.constant 0 : index
    %0 = vector.load %arg1[%c0, %c0_0] : memref<162x512xbf16, #tpu.memory_space<vmem>>, vector<162x512xbf16>
    %c0_1 = arith.constant 0 : index
    %c0_2 = arith.constant 0 : index
    %1 = vector.load %arg2[%c0_1, %c0_2] : memref<512x128xbf16, #tpu.memory_space<vmem>>, vector<512x128xbf16>
    %cst = arith.constant dense<0.000000e+00> : vector<162x128xf32>
    %2 = tpu.matmul %0, %1, %cst {dimension_numbers = #tpu.dot_dimension_numbers<[1], [0], [0], [1], [0, 0, 1, 1], [], []>} : vector<162x512xbf16>, vector<512x128xbf16>, vector<162x128xf32> -> vector<162x128xf32>
    %c0_3 = arith.constant 0 : index
    %c0_4 = arith.constant 0 : index
    %3 = vector.load %arg3[%c0_3, %c0_4] : memref<1x128xf32, #tpu.memory_space<vmem>>, vector<1x128xf32>
    %4 = vector.broadcast %3 : vector<1x128xf32> to vector<162x128xf32>
    %5 = arith.addf %2, %4 : vector<162x128xf32>
    %cst_5 = arith.constant 0.000000e+00 : f32
    %6 = vector.broadcast %cst_5 : f32 to vector<162x128xf32>
    %7 = arith.cmpf ogt, %5, %6 : vector<162x128xf32>
    %cst_6 = arith.constant 0.000000e+00 : f32
    %8 = vector.broadcast %cst_6 : f32 to vector<162x128xf32>
    %9 = arith.minimumf %5, %8 : vector<162x128xf32>
    %10 = math.exp %9 : vector<162x128xf32>
    %cst_7 = arith.constant 1.000000e+00 : f32
    %11 = vector.broadcast %cst_7 : f32 to vector<162x128xf32>
    %12 = arith.subf %10, %11 : vector<162x128xf32>
    %13 = arith.select %7, %5, %12 : vector<162x128xi1>, vector<162x128xf32>
    %14 = arith.truncf %13 : vector<162x128xf32> to vector<162x128xbf16>
    %c0_8 = arith.constant 0 : index
    %c0_9 = arith.constant 0 : index
    %15 = vector.load %arg4[%c0_8, %c0_9] : memref<162x128xbf16, #tpu.memory_space<vmem>>, vector<162x128xbf16>
    tpu.vector_store %arg4[%c0_8, %c0_9], %14 {strides = array<i32>} : memref<162x128xbf16, #tpu.memory_space<vmem>>, vector<162x128xbf16>,
    return
  }
  func.func @transform_0(%arg0: i32) -> (i32, i32) {
    %c0_i32 = arith.constant 0 : i32
    %c0_i32_0 = arith.constant 0 : i32
    return %arg0, %c0_i32 : i32, i32
  }
  func.func @transform_1(%arg0: i32) -> (i32, i32) {
    %c0_i32 = arith.constant 0 : i32
    %c0_i32_0 = arith.constant 0 : i32
    %c0_i32_1 = arith.constant 0 : i32
    return %c0_i32, %c0_i32_0 : i32, i32
  }
  func.func @transform_2(%arg0: i32) -> (i32, i32) {
    %c0_i32 = arith.constant 0 : i32
    %c0_i32_0 = arith.constant 0 : i32
    %c0_i32_1 = arith.constant 0 : i32
    return %c0_i32, %c0_i32_0 : i32, i32
  }
  func.func @transform_3(%arg0: i32) -> (i32, i32) {
    %c0_i32 = arith.constant 0 : i32
    %c0_i32_0 = arith.constant 0 : i32
    return %arg0, %c0_i32 : i32, i32
  }
}

module attributes {stable_mosaic.version = 11 : i64} {
  func.func @_conv_mm_kernel(%arg0: i32, %arg1: memref<98x576xbf16, #tpu.memory_space<vmem>>, %arg2: memref<576x128xbf16, #tpu.memory_space<vmem>>, %arg3: memref<1x128xf32, #tpu.memory_space<vmem>>, %arg4: memref<98x128xbf16, #tpu.memory_space<vmem>>) attributes {dimension_semantics = [#tpu.dimension_semantics<parallel>], iteration_bounds = array<i64: 1>, scalar_prefetch = 0 : i64, scratch_operands = 0 : i64, tpu.core_type = #tpu.core_type<tc>, window_params = [{transform_indices = @transform_0, window_bounds = array<i64: 98, 576>}, {pipeline_mode = #tpu.pipeline_mode<synchronous>, transform_indices = @transform_1, window_bounds = array<i64: 576, 128>}, {pipeline_mode = #tpu.pipeline_mode<synchronous>, transform_indices = @transform_2, window_bounds = array<i64: 1, 128>}, {transform_indices = @transform_3, window_bounds = array<i64: 98, 128>}]} {
    %c0 = arith.constant 0 : index
    %c0_0 = arith.constant 0 : index
    %0 = vector.load %arg1[%c0, %c0_0] : memref<98x576xbf16, #tpu.memory_space<vmem>>, vector<98x576xbf16>
    %c0_1 = arith.constant 0 : index
    %c0_2 = arith.constant 0 : index
    %1 = vector.load %arg2[%c0_1, %c0_2] : memref<576x128xbf16, #tpu.memory_space<vmem>>, vector<576x128xbf16>
    %cst = arith.constant dense<0.000000e+00> : vector<98x128xf32>
    %2 = tpu.matmul %0, %1, %cst {dimension_numbers = #tpu.dot_dimension_numbers<[1], [0], [0], [1], [0, 0, 1, 1], [], []>} : vector<98x576xbf16>, vector<576x128xbf16>, vector<98x128xf32> -> vector<98x128xf32>
    %c0_3 = arith.constant 0 : index
    %c0_4 = arith.constant 0 : index
    %3 = vector.load %arg3[%c0_3, %c0_4] : memref<1x128xf32, #tpu.memory_space<vmem>>, vector<1x128xf32>
    %4 = vector.broadcast %3 : vector<1x128xf32> to vector<98x128xf32>
    %5 = arith.addf %2, %4 : vector<98x128xf32>
    %cst_5 = arith.constant 0.000000e+00 : f32
    %6 = vector.broadcast %cst_5 : f32 to vector<98x128xf32>
    %7 = arith.cmpf ogt, %5, %6 : vector<98x128xf32>
    %cst_6 = arith.constant 0.000000e+00 : f32
    %8 = vector.broadcast %cst_6 : f32 to vector<98x128xf32>
    %9 = arith.minimumf %5, %8 : vector<98x128xf32>
    %10 = math.exp %9 : vector<98x128xf32>
    %cst_7 = arith.constant 1.000000e+00 : f32
    %11 = vector.broadcast %cst_7 : f32 to vector<98x128xf32>
    %12 = arith.subf %10, %11 : vector<98x128xf32>
    %13 = arith.select %7, %5, %12 : vector<98x128xi1>, vector<98x128xf32>
    %14 = arith.truncf %13 : vector<98x128xf32> to vector<98x128xbf16>
    %c0_8 = arith.constant 0 : index
    %c0_9 = arith.constant 0 : index
    %15 = vector.load %arg4[%c0_8, %c0_9] : memref<98x128xbf16, #tpu.memory_space<vmem>>, vector<98x128xbf16>
    tpu.vector_store %arg4[%c0_8, %c0_9], %14 {strides = array<i32>} : memref<98x128xbf16, #tpu.memory_space<vmem>>, vector<98x128xbf16>,
    return
  }
  func.func @transform_0(%arg0: i32) -> (i32, i32) {
    %c0_i32 = arith.constant 0 : i32
    %c0_i32_0 = arith.constant 0 : i32
    return %arg0, %c0_i32 : i32, i32
  }
  func.func @transform_1(%arg0: i32) -> (i32, i32) {
    %c0_i32 = arith.constant 0 : i32
    %c0_i32_0 = arith.constant 0 : i32
    %c0_i32_1 = arith.constant 0 : i32
    return %c0_i32, %c0_i32_0 : i32, i32
  }
  func.func @transform_2(%arg0: i32) -> (i32, i32) {
    %c0_i32 = arith.constant 0 : i32
    %c0_i32_0 = arith.constant 0 : i32
    %c0_i32_1 = arith.constant 0 : i32
    return %c0_i32, %c0_i32_0 : i32, i32
  }
  func.func @transform_3(%arg0: i32) -> (i32, i32) {
    %c0_i32 = arith.constant 0 : i32
    %c0_i32_0 = arith.constant 0 : i32
    return %arg0, %c0_i32 : i32, i32
  }
}

module attributes {stable_mosaic.version = 11 : i64} {
  func.func @_mlp_kernel(%arg0: i32, %arg1: memref<8x3136xbf16, #tpu.memory_space<vmem>>, %arg2: memref<3136x512xbf16, #tpu.memory_space<vmem>>, %arg3: memref<1x512xf32, #tpu.memory_space<vmem>>, %arg4: memref<512x512xbf16, #tpu.memory_space<vmem>>, %arg5: memref<1x512xf32, #tpu.memory_space<vmem>>, %arg6: memref<512x512xbf16, #tpu.memory_space<vmem>>, %arg7: memref<1x512xf32, #tpu.memory_space<vmem>>, %arg8: memref<8x512xf32, #tpu.memory_space<vmem>>) attributes {dimension_semantics = [#tpu.dimension_semantics<parallel>], iteration_bounds = array<i64: 1>, scalar_prefetch = 0 : i64, scratch_operands = 0 : i64, tpu.core_type = #tpu.core_type<tc>, window_params = [{transform_indices = @transform_0, window_bounds = array<i64: 8, 3136>}, {pipeline_mode = #tpu.pipeline_mode<synchronous>, transform_indices = @transform_1, window_bounds = array<i64: 3136, 512>}, {pipeline_mode = #tpu.pipeline_mode<synchronous>, transform_indices = @transform_2, window_bounds = array<i64: 1, 512>}, {pipeline_mode = #tpu.pipeline_mode<synchronous>, transform_indices = @transform_3, window_bounds = array<i64: 512, 512>}, {pipeline_mode = #tpu.pipeline_mode<synchronous>, transform_indices = @transform_4, window_bounds = array<i64: 1, 512>}, {pipeline_mode = #tpu.pipeline_mode<synchronous>, transform_indices = @transform_5, window_bounds = array<i64: 512, 512>}, {pipeline_mode = #tpu.pipeline_mode<synchronous>, transform_indices = @transform_6, window_bounds = array<i64: 1, 512>}, {transform_indices = @transform_7, window_bounds = array<i64: 8, 512>}]} {
    %c0 = arith.constant 0 : index
    %c0_0 = arith.constant 0 : index
    %0 = vector.load %arg1[%c0, %c0_0] : memref<8x3136xbf16, #tpu.memory_space<vmem>>, vector<8x3136xbf16>
    %c0_1 = arith.constant 0 : index
    %c0_2 = arith.constant 0 : index
    %1 = vector.load %arg2[%c0_1, %c0_2] : memref<3136x512xbf16, #tpu.memory_space<vmem>>, vector<3136x512xbf16>
    %cst = arith.constant dense<0.000000e+00> : vector<8x512xf32>
    %2 = tpu.matmul %0, %1, %cst {dimension_numbers = #tpu.dot_dimension_numbers<[1], [0], [0], [1], [0, 0, 1, 1], [], []>} : vector<8x3136xbf16>, vector<3136x512xbf16>, vector<8x512xf32> -> vector<8x512xf32>
    %c0_3 = arith.constant 0 : index
    %c0_4 = arith.constant 0 : index
    %3 = vector.load %arg3[%c0_3, %c0_4] : memref<1x512xf32, #tpu.memory_space<vmem>>, vector<1x512xf32>
    %4 = vector.broadcast %3 : vector<1x512xf32> to vector<8x512xf32>
    %5 = arith.addf %2, %4 : vector<8x512xf32>
    %cst_5 = arith.constant 0.000000e+00 : f32
    %6 = vector.broadcast %cst_5 : f32 to vector<8x512xf32>
    %7 = arith.cmpf ogt, %5, %6 : vector<8x512xf32>
    %cst_6 = arith.constant 0.000000e+00 : f32
    %8 = vector.broadcast %cst_6 : f32 to vector<8x512xf32>
    %9 = arith.minimumf %5, %8 : vector<8x512xf32>
    %10 = math.exp %9 : vector<8x512xf32>
    %cst_7 = arith.constant 1.000000e+00 : f32
    %11 = vector.broadcast %cst_7 : f32 to vector<8x512xf32>
    %12 = arith.subf %10, %11 : vector<8x512xf32>
    %13 = arith.select %7, %5, %12 : vector<8x512xi1>, vector<8x512xf32>
    %14 = arith.truncf %13 : vector<8x512xf32> to vector<8x512xbf16>
    %c0_8 = arith.constant 0 : index
    %c0_9 = arith.constant 0 : index
    %15 = vector.load %arg4[%c0_8, %c0_9] : memref<512x512xbf16, #tpu.memory_space<vmem>>, vector<512x512xbf16>
    %cst_10 = arith.constant dense<0.000000e+00> : vector<8x512xf32>
    %16 = tpu.matmul %14, %15, %cst_10 {dimension_numbers = #tpu.dot_dimension_numbers<[1], [0], [0], [1], [0, 0, 1, 1], [], []>} : vector<8x512xbf16>, vector<512x512xbf16>, vector<8x512xf32> -> vector<8x512xf32>
    %c0_11 = arith.constant 0 : index
    %c0_12 = arith.constant 0 : index
    %17 = vector.load %arg5[%c0_11, %c0_12] : memref<1x512xf32, #tpu.memory_space<vmem>>, vector<1x512xf32>
    %18 = vector.broadcast %17 : vector<1x512xf32> to vector<8x512xf32>
    %19 = arith.addf %16, %18 : vector<8x512xf32>
    %cst_13 = arith.constant 0.000000e+00 : f32
    %20 = vector.broadcast %cst_13 : f32 to vector<8x512xf32>
    %21 = arith.cmpf ogt, %19, %20 : vector<8x512xf32>
    %cst_14 = arith.constant 0.000000e+00 : f32
    %22 = vector.broadcast %cst_14 : f32 to vector<8x512xf32>
    %23 = arith.minimumf %19, %22 : vector<8x512xf32>
    %24 = math.exp %23 : vector<8x512xf32>
    %cst_15 = arith.constant 1.000000e+00 : f32
    %25 = vector.broadcast %cst_15 : f32 to vector<8x512xf32>
    %26 = arith.subf %24, %25 : vector<8x512xf32>
    %27 = arith.select %21, %19, %26 : vector<8x512xi1>, vector<8x512xf32>
    %28 = arith.truncf %27 : vector<8x512xf32> to vector<8x512xbf16>
    %c0_16 = arith.constant 0 : index
    %c0_17 = arith.constant 0 : index
    %29 = vector.load %arg6[%c0_16, %c0_17] : memref<512x512xbf16, #tpu.memory_space<vmem>>, vector<512x512xbf16>
    %cst_18 = arith.constant dense<0.000000e+00> : vector<8x512xf32>
    %30 = tpu.matmul %28, %29, %cst_18 {dimension_numbers = #tpu.dot_dimension_numbers<[1], [0], [0], [1], [0, 0, 1, 1], [], []>} : vector<8x512xbf16>, vector<512x512xbf16>, vector<8x512xf32> -> vector<8x512xf32>
    %c0_19 = arith.constant 0 : index
    %c0_20 = arith.constant 0 : index
    %31 = vector.load %arg7[%c0_19, %c0_20] : memref<1x512xf32, #tpu.memory_space<vmem>>, vector<1x512xf32>
    %32 = vector.broadcast %31 : vector<1x512xf32> to vector<8x512xf32>
    %33 = arith.addf %30, %32 : vector<8x512xf32>
    %c0_21 = arith.constant 0 : index
    %c0_22 = arith.constant 0 : index
    %34 = vector.load %arg8[%c0_21, %c0_22] : memref<8x512xf32, #tpu.memory_space<vmem>>, vector<8x512xf32>
    tpu.vector_store %arg8[%c0_21, %c0_22], %33 {strides = array<i32>} : memref<8x512xf32, #tpu.memory_space<vmem>>, vector<8x512xf32>,
    return
  }
  func.func @transform_0(%arg0: i32) -> (i32, i32) {
    %c0_i32 = arith.constant 0 : i32
    %c0_i32_0 = arith.constant 0 : i32
    return %arg0, %c0_i32 : i32, i32
  }
  func.func @transform_1(%arg0: i32) -> (i32, i32) {
    %c0_i32 = arith.constant 0 : i32
    %c0_i32_0 = arith.constant 0 : i32
    %c0_i32_1 = arith.constant 0 : i32
    return %c0_i32, %c0_i32_0 : i32, i32
  }
  func.func @transform_2(%arg0: i32) -> (i32, i32) {
    %c0_i32 = arith.constant 0 : i32
    %c0_i32_0 = arith.constant 0 : i32
    %c0_i32_1 = arith.constant 0 : i32
    return %c0_i32, %c0_i32_0 : i32, i32
  }
  func.func @transform_3(%arg0: i32) -> (i32, i32) {
    %c0_i32 = arith.constant 0 : i32
    %c0_i32_0 = arith.constant 0 : i32
    %c0_i32_1 = arith.constant 0 : i32
    return %c0_i32, %c0_i32_0 : i32, i32
  }
  func.func @transform_4(%arg0: i32) -> (i32, i32) {
    %c0_i32 = arith.constant 0 : i32
    %c0_i32_0 = arith.constant 0 : i32
    %c0_i32_1 = arith.constant 0 : i32
    return %c0_i32, %c0_i32_0 : i32, i32
  }
  func.func @transform_5(%arg0: i32) -> (i32, i32) {
    %c0_i32 = arith.constant 0 : i32
    %c0_i32_0 = arith.constant 0 : i32
    %c0_i32_1 = arith.constant 0 : i32
    return %c0_i32, %c0_i32_0 : i32, i32
  }
  func.func @transform_6(%arg0: i32) -> (i32, i32) {
    %c0_i32 = arith.constant 0 : i32
    %c0_i32_0 = arith.constant 0 : i32
    %c0_i32_1 = arith.constant 0 : i32
    return %c0_i32, %c0_i32_0 : i32, i32
  }
  func.func @transform_7(%arg0: i32) -> (i32, i32) {
    %c0_i32 = arith.constant 0 : i32
    %c0_i32_0 = arith.constant 0 : i32
    return %arg0, %c0_i32 : i32, i32
  }
}

</mosaic_0001>

<bundles_post_ra>
// kernel: forward.4
= control target key start
LH: loop header
LB: loop body
LE: loop exit
PB: predicated region body
PF: predicated region fallthrough
CT: control target
= control target key end

     0   :  { %s3145_s12 = smov 0   ;;  %s3147_s13 = smov 0   ;;  %s4033_s0 = inlined_call_operand.vmem [shape: bf16[800,256], index: 0, kind: input, shape index: {}]   ;;  %s4034_s1 = inlined_call_operand.vmem [shape: bf16[256,128], index: 1, kind: input, shape index: {}]   ;;  %s4035_s2 = inlined_call_operand.vmem [shape: f32[1,128], index: 2, kind: input, shape index: {}]   ;;  %s4036_s3 = inlined_call_operand.vmem [shape: bf16[800,128], index: 3, kind: output, shape index: {}]  }
   0x1   :  { %s3149_s14 = smov 0  }
   0x2 LB: > { %s3158_s15 = sadd.s32 4294967295, %s3090_s14   ;;  %s3160_s16 = sadd.s32 1, %s3090_s14   ;;  %s3090_s14 = sphi %s3149_s14, %s4043_s14   ;;  %s3086_s13 = sphi %s3147_s13, %s4042_s13   ;;  %s3082_s12 = sphi %s3145_s12, %s4041_s12  }
   0x3   : > { %s85_s17 = ssub.s32 %s3090_s14, %s3160_s16  ;;  %s88_s18 = sadd.s32 1, %s3086_s13 }
   0x4   : > { %p86_p0 = scmp.eq.s32.totalorder %s85_s17, 0  ;;  %p98_p1 = scmp.ne.s32.totalorder %s3086_s13, %s3082_s12 }
   0x5   : > { %p99_p2 = scmp.eq.s32.totalorder %s3158_s15, 1  ;;  %p2184_p3 = scmp.ge.s32.totalorder %s3090_s14, 1 }
   0x6   : > { %s3168_s19 = scalar_select %p86_p0, %s3086_s13, %s88_s18  }
   0x7   : > { %p3170_p4 = por %p99_p2, %p98_p1  ;;  %p149_p5 = scmp.lt.s32.totalorder %s3090_s14, 3 }
   0x9   : > { %p150_p6 = pnand %p2184_p3, %p149_p5 }
   0xa   : > { %s3180_s23 = sshll.u32 (!%p150_p6), %s3158_s15, 6 }
   0xb   : > { %153 = sbr.rel (%p150_p6) target bundleno = 506 (0x1fa), region = 32  ;;  %p184_p7 = scmp.lt.s32.totalorder (!%p150_p6), %s3180_s23, 99 }
  0x10   : > { %v2795_v0 = vld [vmem:[%s4034_s1 + $0x38] sm:$0xff]   ;;  %v3124_v1 = vmov 0   ;;  %v2796_v2 = vld [vmem:[%s4034_s1 + $0x30] sm:$0xff]   ;;  %v2797_v3 = vld [vmem:[%s4034_s1 + $0x28] sm:$0xff]   ;;  %s185_s28 = scalar_select %p184_p7, %s3180_s23, 99 }
  0x11   : > { %720 = vmatprep.subr.bf16.mxu0 %v3124_v1  ;;  %2674 = vmatprep.subr.bf16.mxu1 %v3124_v1  ;;  %v2798_v4 = vld [vmem:[%s4034_s1 + $0x20] sm:$0xff]   ;;  %v2799_v5 = vld [vmem:[%s4034_s1 + $0x18] sm:$0xff]   ;;  %v2800_v7 = vld [vmem:[%s4034_s1 + $0x10] sm:$0xff]   ;;  %s1721_s25 = ssub.s32 (%p3170_p4), 100, %s3180_s23  ;;  %s2480_s26 = sshll.u32 (%p3170_p4), %s3158_s15, 8 }
  0x12   : > { %721 = vmatpush1.bf16.msra.mxu0 %v2795_v0  ;;  %2690 = vmatpush1.bf16.msra.mxu1 %v2795_v0  ;;  %s2415_s4 = sshll.u32 %s185_s28, 3  ;;  %v2801_v9 = vld [vmem:[%s4034_s1 + $0x8] sm:$0xff]   ;;  %v2802_v10 = vld [vmem:[%s4034_s1] sm:$0xff]   ;;  %v2803_v11 = vld [vmem:[%s4034_s1 + $0x78] sm:$0xff]   ;;  %p1722_p8 = scmp.lt.s32.totalorder (%p3170_p4), %s1721_s25, 64 }
  0x13   : > { %722 = vmatprep.subr.bf16.mxu0 %v3124_v1  ;;  %2675 = vmatprep.subr.bf16.mxu1 %v3124_v1  ;;  %s3205_s9 = scalar_lea.vmem %s4033_s0, %s2415_s4  ;;  %v2804_v12 = vld [vmem:[%s4034_s1 + $0x70] sm:$0xff]   ;;  %v2805_v13 = vld [vmem:[%s4034_s1 + $0x68] sm:$0xff]   ;;  %v2806_v14 = vld [vmem:[%s4034_s1 + $0x60] sm:$0xff]   ;;  %s3841_s29 = scalar_lea.vmem (%p3170_p4), %s4036_s3, %s2480_s26  }
  0x14   : > { %v2813_v6 = vld [vmem:[%s3205_s9 + $0x4] ss:$8 sps:$4 sm:$0xff]   ;;  %v2807_v15 = vld [vmem:[%s4034_s1 + $0x58] sm:$0xff]   ;;  %v2808_v16 = vld [vmem:[%s4034_s1 + $0x50] sm:$0xff]  }
  0x15   : > { %v2816_v8 = vld [vmem:[%s3205_s9 + $0x104] ss:$8 sps:$4 sm:$0xff]   ;;  %752 = vmatprep.mubr.bf16.mxu0 %v2813_v6  ;;  %v2811_v19 = vld [vmem:[%s3205_s9] ss:$8 sps:$4 sm:$0xff]   ;;  %v2817_v21 = vld [vmem:[%s3205_s9 + $0x14] ss:$8 sps:$4 sm:$0xff]  }
  0x16   : > { %723 = vmatpush1.bf16.msra.mxu0 %v2796_v2  ;;  %2691 = vmatpush1.bf16.msra.mxu1 %v2796_v2  ;;  %v2809_v17 = vld [vmem:[%s4034_s1 + $0x48] sm:$0xff]   ;;  %v2810_v18 = vld [vmem:[%s4034_s1 + $0x40] sm:$0xff]   ;;  %v2819_v22 = vld [vmem:[%s3205_s9 + $0x114] ss:$8 sps:$4 sm:$0xff]  }
  0x17   : > { %724 = vmatprep.subr.bf16.mxu0 %v3124_v1  ;;  %2676 = vmatprep.subr.bf16.mxu1 %v3124_v1  ;;  %v2814_v20 = vld [vmem:[%s3205_s9 + $0x100] ss:$8 sps:$4 sm:$0xff]   ;;  %v2821_v23 = vld [vmem:[%s3205_s9 + $0x10] ss:$8 sps:$4 sm:$0xff]   ;;  %v2823_v25 = vld [vmem:[%s3205_s9 + $0x24] ss:$8 sps:$4 sm:$0xff]  }
  0x18   : > { %880 = vmatprep.mubr.bf16.mxu1 %v2816_v8  ;;  %v2822_v24 = vld [vmem:[%s3205_s9 + $0x110] ss:$8 sps:$4 sm:$0xff]   ;;  %v2825_v26 = vld [vmem:[%s3205_s9 + $0x124] ss:$8 sps:$4 sm:$0xff]   ;;  %v2827_v27 = vld [vmem:[%s3205_s9 + $0x20] ss:$8 sps:$4 sm:$0xff]  }
  0x19   : > { %v2828_v28 = vld [vmem:[%s3205_s9 + $0x120] ss:$8 sps:$4 sm:$0xff]   ;;  %v2829_v29 = vld [vmem:[%s3205_s9 + $0x34] ss:$8 sps:$4 sm:$0xff]   ;;  %v2833_v31 = vld [vmem:[%s3205_s9 + $0x30] ss:$8 sps:$4 sm:$0xff]  }
  0x1a   : > { %725 = vmatpush1.bf16.msra.mxu0 %v2797_v3  ;;  %2692 = vmatpush1.bf16.msra.mxu1 %v2797_v3  ;;  %v2831_v30 = vld [vmem:[%s3205_s9 + $0x134] ss:$8 sps:$4 sm:$0xff]   ;;  %v2834_v32 = vld [vmem:[%s3205_s9 + $0x130] ss:$8 sps:$4 sm:$0xff]   ;;  %v2835_v33 = vld [vmem:[%s3205_s9 + $0x44] ss:$8 sps:$4 sm:$0xff]  }
  0x1b   : > { %726 = vmatprep.subr.bf16.mxu0 %v3124_v1  ;;  %2677 = vmatprep.subr.bf16.mxu1 %v3124_v1  ;;  %v2837_v34 = vld [vmem:[%s3205_s9 + $0x144] ss:$8 sps:$4 sm:$0xff]   ;;  %v2839_v35 = vld [vmem:[%s3205_s9 + $0x40] ss:$8 sps:$4 sm:$0xff]   ;;  %v2841_v37 = vld [vmem:[%s3205_s9 + $0x54] ss:$8 sps:$4 sm:$0xff]  }
  0x1c   : > { %v2840_v36 = vld [vmem:[%s3205_s9 + $0x140] ss:$8 sps:$4 sm:$0xff]   ;;  %v2843_v38 = vld [vmem:[%s3205_s9 + $0x154] ss:$8 sps:$4 sm:$0xff]   ;;  %v2845_v39 = vld [vmem:[%s3205_s9 + $0x50] ss:$8 sps:$4 sm:$0xff]  }
  0x1d   : > { %v2846_v40 = vld [vmem:[%s3205_s9 + $0x150] ss:$8 sps:$4 sm:$0xff]   ;;  %v2847_v41 = vld [vmem:[%s3205_s9 + $0x64] ss:$8 sps:$4 sm:$0xff]   ;;  %v2851_v43 = vld [vmem:[%s3205_s9 + $0x60] ss:$8 sps:$4 sm:$0xff]  }
  0x1e   : > { %727 = vmatpush1.bf16.msra.mxu0 %v2798_v4  ;;  %2693 = vmatpush1.bf16.msra.mxu1 %v2798_v4  ;;  %v2849_v42 = vld [vmem:[%s3205_s9 + $0x164] ss:$8 sps:$4 sm:$0xff]   ;;  %v2852_v44 = vld [vmem:[%s3205_s9 + $0x160] ss:$8 sps:$4 sm:$0xff]   ;;  %v2853_v45 = vld [vmem:[%s3205_s9 + $0x74] ss:$8 sps:$4 sm:$0xff]  }
  0x1f   : > { %728 = vmatprep.subr.bf16.mxu0 %v3124_v1  ;;  %2678 = vmatprep.subr.bf16.mxu1 %v3124_v1  ;;  %v2855_v46 = vld [vmem:[%s3205_s9 + $0x174] ss:$8 sps:$4 sm:$0xff]   ;;  %v2857_v47 = vld [vmem:[%s3205_s9 + $0x70] ss:$8 sps:$4 sm:$0xff]   ;;  %v2859_v49 = vld [vmem:[%s3205_s9 + $0x84] ss:$8 sps:$4 sm:$0xff]  }
  0x20   : > { %v2858_v48 = vld [vmem:[%s3205_s9 + $0x170] ss:$8 sps:$4 sm:$0xff]   ;;  %v2861_v50 = vld [vmem:[%s3205_s9 + $0x184] ss:$8 sps:$4 sm:$0xff]   ;;  %v2863_v51 = vld [vmem:[%s3205_s9 + $0x80] ss:$8 sps:$4 sm:$0xff]  }
  0x21   : > { %v2864_v52 = vld [vmem:[%s3205_s9 + $0x180] ss:$8 sps:$4 sm:$0xff]   ;;  %v2865_v53 = vld [vmem:[%s3205_s9 + $0x94] ss:$8 sps:$4 sm:$0xff]   ;;  %v2869_v55 = vld [vmem:[%s3205_s9 + $0x90] ss:$8 sps:$4 sm:$0xff]  }
  0x22   : > { %729 = vmatpush1.bf16.msra.mxu0 %v2799_v5  ;;  %2694 = vmatpush1.bf16.msra.mxu1 %v2799_v5  ;;  %v2867_v54 = vld [vmem:[%s3205_s9 + $0x194] ss:$8 sps:$4 sm:$0xff]   ;;  %v2870_v56 = vld [vmem:[%s3205_s9 + $0x190] ss:$8 sps:$4 sm:$0xff]   ;;  %v2871_v57 = vld [vmem:[%s3205_s9 + $0xa4] ss:$8 sps:$4 sm:$0xff]  }
  0x23   : > { %730 = vmatprep.subr.bf16.mxu0 %v3124_v1  ;;  %2679 = vmatprep.subr.bf16.mxu1 %v3124_v1  ;;  %v2873_v58 = vld [vmem:[%s3205_s9 + $0x1a4] ss:$8 sps:$4 sm:$0xff]   ;;  %v2875_v59 = vld [vmem:[%s3205_s9 + $0xa0] ss:$8 sps:$4 sm:$0xff]   ;;  %v2877_v61 = vld [vmem:[%s3205_s9 + $0xb4] ss:$8 sps:$4 sm:$0xff]  }
  0x24   : > { %v2876_v60 = vld [vmem:[%s3205_s9 + $0x1a0] ss:$8 sps:$4 sm:$0xff]   ;;  %v2879_v62 = vld [vmem:[%s3205_s9 + $0x1b4] ss:$8 sps:$4 sm:$0xff]   ;;  %v2881_v63 = vld [vmem:[%s3205_s9 + $0xb0] ss:$8 sps:$4 sm:$0xff]  }
  0x25   : > { %v2882_v0 = vld [vmem:[%s3205_s9 + $0x1b0] ss:$8 sps:$4 sm:$0xff]   ;;  %v2885_v2 = vld [vmem:[%s3205_s9 + $0x1c4] ss:$8 sps:$4 sm:$0xff]   ;;  %v2887_v3 = vld [vmem:[%s3205_s9 + $0xc0] ss:$8 sps:$4 sm:$0xff]  }
  0x26   : > { %731 = vmatpush1.bf16.msra.mxu0 %v2800_v7  ;;  %2695 = vmatpush1.bf16.msra.mxu1 %v2800_v7  ;;  %v2888_v4 = vld [vmem:[%s3205_s9 + $0x1c0] ss:$8 sps:$4 sm:$0xff]   ;;  %v2889_v5 = vld [vmem:[%s3205_s9 + $0xd4] ss:$8 sps:$4 sm:$0xff]   ;;  %v2893_v7 = vld [vmem:[%s3205_s9 + $0xd0] ss:$8 sps:$4 sm:$0xff]  }
  0x27   : > { %732 = vmatprep.subr.bf16.mxu0 %v3124_v1  ;;  %2680 = vmatprep.subr.bf16.mxu1 %v3124_v1  ;;  %v2891_v6 = vld [vmem:[%s3205_s9 + $0x1d4] ss:$8 sps:$4 sm:$0xff]   ;;  %v2894_v8 = vld [vmem:[%s3205_s9 + $0x1d0] ss:$8 sps:$4 sm:$0xff]  }
  0x2a   : > { %733 = vmatpush1.bf16.msra.mxu0 %v2801_v9  ;;  %2696 = vmatpush1.bf16.msra.mxu1 %v2801_v9  ;;  %v2895_v9 = vld [vmem:[%s3205_s9 + $0xe4] ss:$8 sps:$4 sm:$0xff]  }
  0x2b   : > { %734 = vmatprep.subr.bf16.mxu0 %v3124_v1  ;;  %2681 = vmatprep.subr.bf16.mxu1 %v3124_v1 }
  0x2e   : > { %735 = vmatpush1.bf16.msra.mxu0 %v2802_v10  ;;  %2697 = vmatpush1.bf16.msra.mxu1 %v2802_v10  ;;  %v2897_v10 = vld [vmem:[%s3205_s9 + $0x1e4] ss:$8 sps:$4 sm:$0xff]  }
  0x2f   : > { %736 = vmatprep.subr.bf16.mxu0 %v3124_v1  ;;  %2682 = vmatprep.subr.bf16.mxu1 %v3124_v1 }
  0x32   : > { %737 = vmatpush2.bf16.msra.mxu0 %v2803_v11  ;;  %2698 = vmatpush2.bf16.msra.mxu1 %v2803_v11  ;;  %v2899_v11 = vld [vmem:[%s3205_s9 + $0xe0] ss:$8 sps:$4 sm:$0xff]  }
  0x33   : > { %738 = vmatprep.subr.bf16.mxu0 %v3124_v1  ;;  %2683 = vmatprep.subr.bf16.mxu1 %v3124_v1 }
  0x36   : > { %739 = vmatpush2.bf16.msra.mxu0 %v2804_v12  ;;  %2699 = vmatpush2.bf16.msra.mxu1 %v2804_v12  ;;  %v2900_v12 = vld [vmem:[%s3205_s9 + $0x1e0] ss:$8 sps:$4 sm:$0xff]  }
  0x37   : > { %740 = vmatprep.subr.bf16.mxu0 %v3124_v1  ;;  %2684 = vmatprep.subr.bf16.mxu1 %v3124_v1 }
  0x3a   : > { %741 = vmatpush2.bf16.msra.mxu0 %v2805_v13  ;;  %2700 = vmatpush2.bf16.msra.mxu1 %v2805_v13  ;;  %v2901_v13 = vld [vmem:[%s3205_s9 + $0xf4] ss:$8 sps:$4 sm:$0xff]  }
  0x3b   : > { %742 = vmatprep.subr.bf16.mxu0 %v3124_v1  ;;  %2685 = vmatprep.subr.bf16.mxu1 %v3124_v1 }
  0x3e   : > { %743 = vmatpush2.bf16.msra.mxu0 %v2806_v14  ;;  %2701 = vmatpush2.bf16.msra.mxu1 %v2806_v14  ;;  %v2903_v14 = vld [vmem:[%s3205_s9 + $0x1f4] ss:$8 sps:$4 sm:$0xff]  }
  0x3f   : > { %744 = vmatprep.subr.bf16.mxu0 %v3124_v1  ;;  %2686 = vmatprep.subr.bf16.mxu1 %v3124_v1 }
  0x42   : > { %745 = vmatpush2.bf16.msra.mxu0 %v2807_v15  ;;  %2702 = vmatpush2.bf16.msra.mxu1 %v2807_v15  ;;  %v2905_v15 = vld [vmem:[%s3205_s9 + $0xf0] ss:$8 sps:$4 sm:$0xff]  }
  0x43   : > { %746 = vmatprep.subr.bf16.mxu0 %v3124_v1  ;;  %2687 = vmatprep.subr.bf16.mxu1 %v3124_v1 }
  0x46   : > { %747 = vmatpush2.bf16.msra.mxu0 %v2808_v16  ;;  %2703 = vmatpush2.bf16.msra.mxu1 %v2808_v16  ;;  %v2906_v16 = vld [vmem:[%s3205_s9 + $0x1f0] ss:$8 sps:$4 sm:$0xff]  }
  0x47   : > { %748 = vmatprep.subr.bf16.mxu0 %v3124_v1  ;;  %2688 = vmatprep.subr.bf16.mxu1 %v3124_v1 }
  0x4a   : > { %749 = vmatpush2.bf16.msra.mxu0 %v2809_v17  ;;  %2704 = vmatpush2.bf16.msra.mxu1 %v2809_v17  ;;  %v3331_v17 = vld [vmem:[%s4035_s2] ss:$0 sm:$0xff] }
  0x4b   : > { %750 = vmatprep.subr.bf16.mxu0 %v3124_v1  ;;  %2689 = vmatprep.subr.bf16.mxu1 %v3124_v1  ;;  %v2883_v1 = vld [vmem:[%s3205_s9 + $0xc4] ss:$8 sps:$4 sm:$0xff]   ;;  %s175_s9 = sand.u32 1, %s3082_s12  }
  0x4c   : > { %s3383_s12 = sshll.u32 %s175_s9, 8 }
  0x4d   : > { %s3405_s21 = scalar_lea.vmem [#allocation2], %s3383_s12  }
  0x4e   : > { %751 = vmatpush2.bf16.msra.mxu0 %v2810_v18  ;;  %2705 = vmatpush2.bf16.msra.mxu1 %v2810_v18 }
  0x51   : > { %753 = vmatmul.mubr.bf16.vlgmr.msra.gmra.mxu0 %v2811_v19  ;;  %881 = vmatmul.mubr.bf16.vlgmr.msra.gmra.mxu1 %v2814_v20 }
  0x52   : > { %760 = vmatprep.mubr.bf16.mxu0 %v2817_v21  ;;  %888 = vmatprep.mubr.bf16.mxu1 %v2819_v22 }
  0x59   : > { %761 = vmatmul.mubr.bf16.gmra.mxu0 %v2821_v23  ;;  %889 = vmatmul.mubr.bf16.gmra.mxu1 %v2822_v24 }
  0x5a   : > { %768 = vmatprep.mubr.bf16.mxu0 %v2823_v25  ;;  %896 = vmatprep.mubr.bf16.mxu1 %v2825_v26 }
  0x61   : > { %769 = vmatmul.mubr.bf16.gmra.mxu0 %v2827_v27  ;;  %897 = vmatmul.mubr.bf16.gmra.mxu1 %v2828_v28 }
  0x62   : > { %776 = vmatprep.mubr.bf16.mxu0 %v2829_v29  ;;  %904 = vmatprep.mubr.bf16.mxu1 %v2831_v30 }
  0x69   : > { %777 = vmatmul.mubr.bf16.gmra.mxu0 %v2833_v31  ;;  %905 = vmatmul.mubr.bf16.gmra.mxu1 %v2834_v32 }
  0x6a   : > { %784 = vmatprep.mubr.bf16.mxu0 %v2835_v33  ;;  %912 = vmatprep.mubr.bf16.mxu1 %v2837_v34 }
  0x71   : > { %785 = vmatmul.mubr.bf16.gmra.mxu0 %v2839_v35  ;;  %913 = vmatmul.mubr.bf16.gmra.mxu1 %v2840_v36 }
  0x72   : > { %792 = vmatprep.mubr.bf16.mxu0 %v2841_v37  ;;  %920 = vmatprep.mubr.bf16.mxu1 %v2843_v38 }
  0x79   : > { %793 = vmatmul.mubr.bf16.gmra.mxu0 %v2845_v39  ;;  %921 = vmatmul.mubr.bf16.gmra.mxu1 %v2846_v40 }
  0x7a   : > { %800 = vmatprep.mubr.bf16.mxu0 %v2847_v41  ;;  %928 = vmatprep.mubr.bf16.mxu1 %v2849_v42 }
  0x81   : > { %801 = vmatmul.mubr.bf16.gmra.mxu0 %v2851_v43  ;;  %929 = vmatmul.mubr.bf16.gmra.mxu1 %v2852_v44 }
  0x82   : > { %808 = vmatprep.mubr.bf16.mxu0 %v2853_v45  ;;  %936 = vmatprep.mubr.bf16.mxu1 %v2855_v46 }
  0x89   : > { %809 = vmatmul.mubr.bf16.gmra.mxu0 %v2857_v47  ;;  %937 = vmatmul.mubr.bf16.gmra.mxu1 %v2858_v48 }
  0x8a   : > { %816 = vmatprep.mubr.bf16.mxu0 %v2859_v49  ;;  %944 = vmatprep.mubr.bf16.mxu1 %v2861_v50 }
  0x91   : > { %817 = vmatmul.mubr.bf16.gmra.mxu0 %v2863_v51  ;;  %945 = vmatmul.mubr.bf16.gmra.mxu1 %v2864_v52 }
  0x92   : > { %824 = vmatprep.mubr.bf16.mxu0 %v2865_v53  ;;  %952 = vmatprep.mubr.bf16.mxu1 %v2867_v54 }
  0x99   : > { %825 = vmatmul.mubr.bf16.gmra.mxu0 %v2869_v55  ;;  %953 = vmatmul.mubr.bf16.gmra.mxu1 %v2870_v56 }
  0x9a   : > { %832 = vmatprep.mubr.bf16.mxu0 %v2871_v57  ;;  %960 = vmatprep.mubr.bf16.mxu1 %v2873_v58 }
  0xa1   : > { %833 = vmatmul.mubr.bf16.gmra.mxu0 %v2875_v59  ;;  %961 = vmatmul.mubr.bf16.gmra.mxu1 %v2876_v60 }
  0xa2   : > { %840 = vmatprep.mubr.bf16.mxu0 %v2877_v61  ;;  %968 = vmatprep.mubr.bf16.mxu1 %v2879_v62 }
  0xa9   : > { %841 = vmatmul.mubr.bf16.gmra.mxu0 %v2881_v63  ;;  %969 = vmatmul.mubr.bf16.gmra.mxu1 %v2882_v0 }
  0xaa   : > { %848 = vmatprep.mubr.bf16.mxu0 %v2883_v1  ;;  %976 = vmatprep.mubr.bf16.mxu1 %v2885_v2 }
  0xb1   : > { %849 = vmatmul.mubr.bf16.gmra.mxu0 %v2887_v3  ;;  %977 = vmatmul.mubr.bf16.gmra.mxu1 %v2888_v4 }
  0xb2   : > { %856 = vmatprep.mubr.bf16.mxu0 %v2889_v5  ;;  %984 = vmatprep.mubr.bf16.mxu1 %v2891_v6 }
  0xb9   : > { %857 = vmatmul.mubr.bf16.gmra.mxu0 %v2893_v7  ;;  %985 = vmatmul.mubr.bf16.gmra.mxu1 %v2894_v8 }
  0xba   : > { %864 = vmatprep.mubr.bf16.mxu0 %v2895_v9  ;;  %992 = vmatprep.mubr.bf16.mxu1 %v2897_v10 }
  0xc1   : > { %865 = vmatmul.mubr.bf16.gmra.mxu0 %v2899_v11  ;;  %993 = vmatmul.mubr.bf16.gmra.mxu1 %v2900_v12 }
  0xc2   : > { %872 = vmatprep.mubr.bf16.mxu0 %v2901_v13  ;;  %1000 = vmatprep.mubr.bf16.mxu1 %v2903_v14 }
  0xc9   : > { %873 = vmatmul.mubr.bf16.gmra.mxu0 %v2905_v15  ;;  %1001 = vmatmul.mubr.bf16.gmra.mxu1 %v2906_v16 }
 0x111   : > { %v754_v18 = vpop.f32.mrf.mxu0  ;;  %v882_v19 = vpop.f32.mrf.mxu1 }
 0x112   : > { %v3334_v20 = vadd.f32 %v3331_v17, %v754_v18  ;;  %v3337_v21 = vadd.f32 %v3331_v17, %v882_v19 }
 0x113   : > { %v756_v22 = vpop.f32.mrf.mxu0  ;;  %v884_v23 = vpop.f32.mrf.mxu1 }
 0x114   : > { %v1073_v24 = vmin.f32 %v3334_v20, 0.0  ;;  %v1105_v25 = vmin.f32 %v3337_v21, 0.0  ;;  %vm1009_vm0 = vcmp.gt.f32.partialorder %v3334_v20, 0.0  ;;  %vm1041_vm1 = vcmp.gt.f32.partialorder %v3337_v21, 0.0 }
 0x115   : > { %v757_v26 = vpop.f32.mrf.mxu0  ;;  %v885_v27 = vpop.f32.mrf.mxu1 }
 0x116   : > { %v1137_v28 = vmul.f32 1.442695, %v1073_v24  ;;  %v1201_v29 = vmul.f32 1.442695, %v1105_v25  ;;  %v3342_v30 = vadd.f32 %v3331_v17, %v757_v26  ;;  %v3345_v31 = vadd.f32 %v3331_v17, %v885_v27 }
 0x117   : > { %v759_v32 = vpop.f32.mrf.mxu0  ;;  %v887_v33 = vpop.f32.mrf.mxu1 }
 0x118   : > { %2907 = vpow2.f32 %v1137_v28  ;;  %v1074_v34 = vmin.f32 %v3342_v30, 0.0  ;;  %v1106_v35 = vmin.f32 %v3345_v31, 0.0  ;;  %vm1010_vm2 = vcmp.gt.f32.partialorder %v3342_v30, 0.0 }
 0x119   : > { %2909 = vpow2.f32 %v1201_v29  ;;  %v762_v36 = vpop.f32.mrf.mxu0  ;;  %v890_v37 = vpop.f32.mrf.mxu1  ;;  %vm1042_vm3 = vcmp.gt.f32.partialorder %v3345_v31, 0.0 }
 0x11a   : > { %v1139_v38 = vmul.f32 1.442695, %v1074_v34  ;;  %v3350_v39 = vadd.f32 %v3331_v17, %v762_v36  ;;  %v3353_v40 = vadd.f32 %v3331_v17, %v890_v37  ;;  %v1203_v41 = vmul.f32 1.442695, %v1106_v35 }
 0x11b   : > { %v764_v42 = vpop.f32.mrf.mxu0  ;;  %v892_v43 = vpop.f32.mrf.mxu1 }
 0x11c   : > { %2911 = vpow2.f32 %v1139_v38  ;;  %v1075_v44 = vmin.f32 %v3350_v39, 0.0  ;;  %v1107_v45 = vmin.f32 %v3353_v40, 0.0  ;;  %vm1011_vm4 = vcmp.gt.f32.partialorder %v3350_v39, 0.0 }
 0x11d   : > { %2913 = vpow2.f32 %v1203_v41  ;;  %v765_v46 = vpop.f32.mrf.mxu0  ;;  %v893_v47 = vpop.f32.mrf.mxu1  ;;  %vm1043_vm5 = vcmp.gt.f32.partialorder %v3353_v40, 0.0 }
 0x11e   : > { %v1141_v48 = vmul.f32 1.442695, %v1075_v44  ;;  %v3358_v49 = vadd.f32 %v3331_v17, %v765_v46  ;;  %v3361_v50 = vadd.f32 %v3331_v17, %v893_v47  ;;  %v1205_v51 = vmul.f32 1.442695, %v1107_v45 }
 0x11f   : > { %v767_v52 = vpop.f32.mrf.mxu0  ;;  %v895_v53 = vpop.f32.mrf.mxu1 }
 0x120   : > { %2915 = vpow2.f32 %v1141_v48  ;;  %v1076_v54 = vmin.f32 %v3358_v49, 0.0  ;;  %v1108_v55 = vmin.f32 %v3361_v50, 0.0  ;;  %vm1012_vm6 = vcmp.gt.f32.partialorder %v3358_v49, 0.0 }
 0x121   : > { %2917 = vpow2.f32 %v1205_v51  ;;  %v770_v56 = vpop.f32.mrf.mxu0  ;;  %v898_v57 = vpop.f32.mrf.mxu1  ;;  %vm1044_vm7 = vcmp.gt.f32.partialorder %v3361_v50, 0.0 }
 0x122   : > { %v1143_v58 = vmul.f32 1.442695, %v1076_v54  ;;  %v3366_v59 = vadd.f32 %v3331_v17, %v770_v56  ;;  %v3369_v60 = vadd.f32 %v3331_v17, %v898_v57  ;;  %v1207_v61 = vmul.f32 1.442695, %v1108_v55 }
 0x123   : > { %v772_v62 = vpop.f32.mrf.mxu0  ;;  %v900_v63 = vpop.f32.mrf.mxu1 }
 0x124   : > { %2919 = vpow2.f32 %v1143_v58  ;;  %v1077_v0 = vmin.f32 %v3366_v59, 0.0  ;;  %v1109_v2 = vmin.f32 %v3369_v60, 0.0  ;;  %vm1013_vm8 = vcmp.gt.f32.partialorder %v3366_v59, 0.0 }
 0x125   : > { %v2908_v1 = vpop.eup %2907  ;;  %2921 = vpow2.f32 %v1207_v61  ;;  %v773_v3 = vpop.f32.mrf.mxu0  ;;  %vm1045_vm9 = vcmp.gt.f32.partialorder %v3369_v60, 0.0 }
 0x126   : > { %v901_v4 = vpop.f32.mrf.mxu1  ;;  %v2910_v5 = vpop.eup %2909  ;;  %v1145_v6 = vmul.f32 1.442695, %v1077_v0  ;;  %v3375_v7 = vadd.f32 %v3331_v17, %v773_v3  ;;  %v1209_v9 = vmul.f32 1.442695, %v1109_v2  ;;  %v2270_v12 = vadd.f32 -1.0, %v2908_v1 }
 0x127   : > { %v3378_v8 = vadd.f32 %v3331_v17, %v901_v4  ;;  %v775_v10 = vpop.f32.mrf.mxu0  ;;  %v2302_v15 = vadd.f32 -1.0, %v2910_v5 }
 0x128   : > { %v903_v11 = vpop.f32.mrf.mxu1  ;;  %2923 = vpow2.f32 %v1145_v6  ;;  %v1078_v13 = vmin.f32 %v3375_v7, 0.0  ;;  %v1329_v33 = vsel %vm1009_vm0, %v3334_v20, %v2270_v12  ;;  %vm1014_vm10 = vcmp.gt.f32.partialorder %v3375_v7, 0.0 }
 0x129   : > { %v2912_v14 = vpop.eup %2911  ;;  %2925 = vpow2.f32 %v1209_v9  ;;  %v1110_v16 = vmin.f32 %v3378_v8, 0.0  ;;  %v778_v18 = vpop.f32.mrf.mxu0  ;;  %v1361_v37 = vsel %vm1041_vm1, %v3337_v21, %v2302_v15  ;;  %vm1046_vm11 = vcmp.gt.f32.partialorder %v3378_v8, 0.0 }
 0x12a   : > { %v906_v19 = vpop.f32.mrf.mxu1  ;;  %v2914_v22 = vpop.eup %2913  ;;  %v2271_v23 = vadd.f32 -1.0, %v2912_v14  ;;  %v1147_v24 = vmul.f32 1.442695, %v1078_v13  ;;  %v3387_v25 = vadd.f32 %v3331_v17, %v778_v18 }
 0x12b   : > { %v3390_v26 = vadd.f32 %v3331_v17, %v906_v19  ;;  %v2303_v27 = vadd.f32 -1.0, %v2914_v22  ;;  %v1211_v28 = vmul.f32 1.442695, %v1110_v16  ;;  %v780_v29 = vpop.f32.mrf.mxu0 }
 0x12c   : > { %v908_v32 = vpop.f32.mrf.mxu1  ;;  %v1330_v34 = vsel %vm1010_vm2, %v3342_v30, %v2271_v23  ;;  %2927 = vpow2.f32 %v1147_v24  ;;  %v1079_v35 = vmin.f32 %v3387_v25, 0.0  ;;  %vm1015_vm12 = vcmp.gt.f32.partialorder %v3387_v25, 0.0 }
 0x12d   : > { %v2916_v36 = vpop.eup %2915  ;;  %v2486_v38 = vpack.c.bf16 %v1330_v34, %v1329_v33  ;;  %v1362_v41 = vsel %vm1042_vm3, %v3345_v31, %v2303_v27  ;;  %2929 = vpow2.f32 %v1211_v28  ;;  %v781_v42 = vpop.f32.mrf.mxu0  ;;  %v1111_v20 = vmin.f32 %v3390_v26, 0.0 }
 0x12e   : > { %v909_v43 = vpop.f32.mrf.mxu1  ;;  %v2918_v44 = vpop.eup %2917  ;;  %v2566_v45 = vpack.c.bf16 %v1362_v41, %v1361_v37  ;;  %v1149_v46 = vmul.f32 1.442695, %v1079_v35  ;;  %v3409_v30 = vadd.f32 %v3331_v17, %v781_v42  ;;  %v2272_v48 = vadd.f32 -1.0, %v2916_v36 }
 0x12f   : > { %2487 = vst [vmem:[%s3405_s21] sm:$0xff] %v2486_v38   ;;  %v3412_v21 = vadd.f32 %v3331_v17, %v909_v43  ;;  %v783_v31 = vpop.f32.mrf.mxu0  ;;  %v1213_v51 = vmul.f32 1.442695, %v1111_v20  ;;  %v2304_v53 = vadd.f32 -1.0, %v2918_v44  ;;  %vm1047_vm13 = vcmp.gt.f32.partialorder %v3390_v26, 0.0 }
 0x130   : > { %v911_v47 = vpop.f32.mrf.mxu1  ;;  %2658 = vst [vmem:[%s3405_s21 + $0x80] sm:$0xff] %v2566_v45   ;;  %2931 = vpow2.f32 %v1149_v46  ;;  %v1080_v54 = vmin.f32 %v3409_v30, 0.0  ;;  %v1331_v4 = vsel %vm1011_vm4, %v3350_v39, %v2272_v48  ;;  %vm1016_vm14 = vcmp.gt.f32.partialorder %v3409_v30, 0.0 }
 0x131   : > { %v2920_v52 = vpop.eup %2919  ;;  %v786_v55 = vpop.f32.mrf.mxu0  ;;  %2933 = vpow2.f32 %v1213_v51  ;;  %v1112_v61 = vmin.f32 %v3412_v21, 0.0  ;;  %v1363_v11 = vsel %vm1043_vm5, %v3353_v40, %v2304_v53  ;;  %vm1048_vm15 = vcmp.gt.f32.partialorder %v3412_v21, 0.0 }
 0x132   : > { %v914_v56 = vpop.f32.mrf.mxu1  ;;  %v2922_v57 = vpop.eup %2921  ;;  %v2273_v58 = vadd.f32 -1.0, %v2920_v52  ;;  %v3421_v62 = vadd.f32 %v3331_v17, %v786_v55  ;;  %v1151_v0 = vmul.f32 1.442695, %v1080_v54 }
 0x133   : > { %v2305_v63 = vadd.f32 -1.0, %v2922_v57  ;;  %v3425_v1 = vadd.f32 %v3331_v17, %v914_v56  ;;  %v788_v2 = vpop.f32.mrf.mxu0  ;;  %v1215_v6 = vmul.f32 1.442695, %v1112_v61 }
 0x134   : > { %v916_v3 = vpop.f32.mrf.mxu1  ;;  %v1332_v5 = vsel %vm1012_vm6, %v3358_v49, %v2273_v58  ;;  %v1081_v9 = vmin.f32 %v3421_v62, 0.0  ;;  %2935 = vpow2.f32 %v1151_v0  ;;  %vm1017_vm0 = vcmp.gt.f32.partialorder %v3421_v62, 0.0 }
 0x135   : > { %v2924_v10 = vpop.eup %2923  ;;  %v2491_v12 = vpack.c.bf16 %v1332_v5, %v1331_v4  ;;  %v1364_v13 = vsel %vm1044_vm7, %v3361_v50, %v2305_v63  ;;  %v789_v14 = vpop.f32.mrf.mxu0  ;;  %2937 = vpow2.f32 %v1215_v6  ;;  %v1113_v49 = vmin.f32 %v3425_v1, 0.0 }
 0x136   : > { %v917_v15 = vpop.f32.mrf.mxu1  ;;  %v2926_v39 = vpop.eup %2925  ;;  %v2571_v16 = vpack.c.bf16 %v1364_v13, %v1363_v11  ;;  %v1153_v18 = vmul.f32 1.442695, %v1081_v9  ;;  %v3441_v19 = vadd.f32 %v3331_v17, %v789_v14  ;;  %v2274_v50 = vadd.f32 -1.0, %v2924_v10 }
 0x137   : > { %2643 = vst [vmem:[%s3405_s21 + $0x8] sm:$0xff] %v2491_v12   ;;  %v3444_v22 = vadd.f32 %v3331_v17, %v917_v15  ;;  %v791_v40 = vpop.f32.mrf.mxu0  ;;  %v2306_v27 = vadd.f32 -1.0, %v2926_v39  ;;  %v1217_v28 = vmul.f32 1.442695, %v1113_v49  ;;  %vm1049_vm1 = vcmp.gt.f32.partialorder %v3425_v1, 0.0 }
 0x138   : > { %v919_v23 = vpop.f32.mrf.mxu1  ;;  %2659 = vst [vmem:[%s3405_s21 + $0x88] sm:$0xff] %v2571_v16   ;;  %2939 = vpow2.f32 %v1153_v18  ;;  %v1082_v29 = vmin.f32 %v3441_v19, 0.0  ;;  %v1333_v45 = vsel %vm1013_vm8, %v3366_v59, %v2274_v50  ;;  %vm1018_vm2 = vcmp.gt.f32.partialorder %v3441_v19, 0.0 }
 0x139   : > { %v2928_v24 = vpop.eup %2927  ;;  %v794_v32 = vpop.f32.mrf.mxu0  ;;  %v1114_v36 = vmin.f32 %v3444_v22, 0.0  ;;  %2941 = vpow2.f32 %v1217_v28  ;;  %v1365_v47 = vsel %vm1045_vm9, %v3369_v60, %v2306_v27  ;;  %vm1050_vm3 = vcmp.gt.f32.partialorder %v3444_v22, 0.0 }
 0x13a   : > { %v922_v33 = vpop.f32.mrf.mxu1  ;;  %v2930_v34 = vpop.eup %2929  ;;  %v2275_v35 = vadd.f32 -1.0, %v2928_v24  ;;  %v3454_v37 = vadd.f32 %v3331_v17, %v794_v32  ;;  %v1155_v41 = vmul.f32 1.442695, %v1082_v29 }
 0x13b   : > { %v2307_v38 = vadd.f32 -1.0, %v2930_v34  ;;  %v3457_v42 = vadd.f32 %v3331_v17, %v922_v33  ;;  %v796_v43 = vpop.f32.mrf.mxu0  ;;  %v1219_v20 = vmul.f32 1.442695, %v1114_v36 }
 0x13c   : > { %v924_v44 = vpop.f32.mrf.mxu1  ;;  %v1334_v46 = vsel %vm1014_vm10, %v3375_v7, %v2275_v35  ;;  %v1083_v31 = vmin.f32 %v3454_v37, 0.0  ;;  %2943 = vpow2.f32 %v1155_v41  ;;  %vm1019_vm4 = vcmp.gt.f32.partialorder %v3454_v37, 0.0 }
 0x13d   : > { %v2496_v48 = vpack.c.bf16 %v1334_v46, %v1333_v45  ;;  %v1366_v51 = vsel %vm1046_vm11, %v3378_v8, %v2307_v38  ;;  %v797_v52 = vpop.f32.mrf.mxu0  ;;  %v2932_v54 = vpop.eup %2931  ;;  %2945 = vpow2.f32 %v1219_v20  ;;  %v1115_v7 = vmin.f32 %v3457_v42, 0.0 }
 0x13e   : > { %v925_v53 = vpop.f32.mrf.mxu1  ;;  %v2576_v59 = vpack.c.bf16 %v1366_v51, %v1365_v47  ;;  %v1157_v55 = vmul.f32 1.442695, %v1083_v31  ;;  %v2934_v56 = vpop.eup %2933  ;;  %v3473_v57 = vadd.f32 %v3331_v17, %v797_v52  ;;  %v2276_v8 = vadd.f32 -1.0, %v2932_v54 }
 0x13f   : > { %2644 = vst [vmem:[%s3405_s21 + $0x10] sm:$0xff] %v2496_v48   ;;  %v3476_v60 = vadd.f32 %v3331_v17, %v925_v53  ;;  %v799_v58 = vpop.f32.mrf.mxu0  ;;  %v1221_v63 = vmul.f32 1.442695, %v1115_v7  ;;  %v2308_v5 = vadd.f32 -1.0, %v2934_v56  ;;  %vm1051_vm5 = vcmp.gt.f32.partialorder %v3457_v42, 0.0 }
 0x140   : > { %v927_v61 = vpop.f32.mrf.mxu1  ;;  %2660 = vst [vmem:[%s3405_s21 + $0x90] sm:$0xff] %v2576_v59   ;;  %2947 = vpow2.f32 %v1157_v55  ;;  %v1084_v0 = vmin.f32 %v3473_v57, 0.0  ;;  %v1335_v49 = vsel %vm1015_vm12, %v3387_v25, %v2276_v8  ;;  %vm1020_vm6 = vcmp.gt.f32.partialorder %v3473_v57, 0.0 }
 0x141   : > { %v802_v2 = vpop.f32.mrf.mxu0  ;;  %v2936_v4 = vpop.eup %2935  ;;  %v1116_v6 = vmin.f32 %v3476_v60, 0.0  ;;  %2949 = vpow2.f32 %v1221_v63  ;;  %v1367_v28 = vsel %vm1047_vm13, %v3390_v26, %v2308_v5  ;;  %vm1052_vm7 = vcmp.gt.f32.partialorder %v3476_v60, 0.0 }
 0x142   : > { %v930_v3 = vpop.f32.mrf.mxu1  ;;  %v3484_v9 = vadd.f32 %v3331_v17, %v802_v2  ;;  %v2938_v11 = vpop.eup %2937  ;;  %v2277_v12 = vadd.f32 -1.0, %v2936_v4  ;;  %v1159_v13 = vmul.f32 1.442695, %v1084_v0 }
 0x143   : > { %v3487_v10 = vadd.f32 %v3331_v17, %v930_v3  ;;  %v804_v14 = vpop.f32.mrf.mxu0  ;;  %v2309_v39 = vadd.f32 -1.0, %v2938_v11  ;;  %v1223_v16 = vmul.f32 1.442695, %v1116_v6 }
 0x144   : > { %v932_v15 = vpop.f32.mrf.mxu1  ;;  %v1085_v18 = vmin.f32 %v3484_v9, 0.0  ;;  %v1336_v40 = vsel %vm1016_vm14, %v3409_v30, %v2277_v12  ;;  %2951 = vpow2.f32 %v1159_v13  ;;  %vm1021_vm8 = vcmp.gt.f32.partialorder %v3484_v9, 0.0 }
 0x145   : > { %v1117_v23 = vmin.f32 %v3487_v10, 0.0  ;;  %v805_v50 = vpop.f32.mrf.mxu0  ;;  %v2940_v27 = vpop.eup %2939  ;;  %v2501_v29 = vpack.c.bf16 %v1336_v40, %v1335_v49  ;;  %v1368_v32 = vsel %vm1048_vm15, %v3412_v21, %v2309_v39  ;;  %2953 = vpow2.f32 %v1223_v16 }
 0x146   : > { %v933_v24 = vpop.f32.mrf.mxu1  ;;  %v2581_v33 = vpack.c.bf16 %v1368_v32, %v1367_v28  ;;  %v1161_v25 = vmul.f32 1.442695, %v1085_v18  ;;  %v3502_v30 = vadd.f32 %v3331_v17, %v805_v50  ;;  %v2942_v38 = vpop.eup %2941  ;;  %v2278_v26 = vadd.f32 -1.0, %v2940_v27 }
 0x147   : > { %v1225_v34 = vmul.f32 1.442695, %v1117_v23  ;;  %v807_v35 = vpop.f32.mrf.mxu0  ;;  %2645 = vst [vmem:[%s3405_s21 + $0x18] sm:$0xff] %v2501_v29   ;;  %v3507_v41 = vadd.f32 %v3331_v17, %v933_v24  ;;  %v2310_v46 = vadd.f32 -1.0, %v2942_v38  ;;  %vm1053_vm9 = vcmp.gt.f32.partialorder %v3487_v10, 0.0 }
 0x148   : > { %v935_v36 = vpop.f32.mrf.mxu1  ;;  %2661 = vst [vmem:[%s3405_s21 + $0x98] sm:$0xff] %v2581_v33   ;;  %2955 = vpow2.f32 %v1161_v25  ;;  %v1086_v21 = vmin.f32 %v3502_v30, 0.0  ;;  %v1337_v58 = vsel %vm1017_vm0, %v3421_v62, %v2278_v26  ;;  %vm1022_vm10 = vcmp.gt.f32.partialorder %v3502_v30, 0.0 }
 0x149   : > { %v810_v43 = vpop.f32.mrf.mxu0  ;;  %v2944_v45 = vpop.eup %2943  ;;  %2957 = vpow2.f32 %v1225_v34  ;;  %v1118_v20 = vmin.f32 %v3507_v41, 0.0  ;;  %v1369_v2 = vsel %vm1049_vm1, %v3425_v1, %v2310_v46  ;;  %vm1054_vm11 = vcmp.gt.f32.partialorder %v3507_v41, 0.0 }
 0x14a   : > { %v938_v44 = vpop.f32.mrf.mxu1  ;;  %v3514_v31 = vadd.f32 %v3331_v17, %v810_v43  ;;  %v2946_v47 = vpop.eup %2945  ;;  %v2279_v48 = vadd.f32 -1.0, %v2944_v45  ;;  %v1163_v51 = vmul.f32 1.442695, %v1086_v21 }
 0x14b   : > { %v3518_v52 = vadd.f32 %v3331_v17, %v938_v44  ;;  %v812_v53 = vpop.f32.mrf.mxu0  ;;  %v2311_v59 = vadd.f32 -1.0, %v2946_v47  ;;  %v1227_v55 = vmul.f32 1.442695, %v1118_v20 }
 0x14c   : > { %v940_v54 = vpop.f32.mrf.mxu1  ;;  %v1087_v56 = vmin.f32 %v3514_v31, 0.0  ;;  %v1338_v61 = vsel %vm1018_vm2, %v3441_v19, %v2279_v48  ;;  %2959 = vpow2.f32 %v1163_v51  ;;  %vm1023_vm12 = vcmp.gt.f32.partialorder %v3514_v31, 0.0 }
 0x14d   : > { %v2948_v7 = vpop.eup %2947  ;;  %v1119_v8 = vmin.f32 %v3518_v52, 0.0  ;;  %v813_v63 = vpop.f32.mrf.mxu0  ;;  %v2506_v3 = vpack.c.bf16 %v1338_v61, %v1337_v58  ;;  %v1370_v4 = vsel %vm1050_vm3, %v3444_v22, %v2311_v59  ;;  %2961 = vpow2.f32 %v1227_v55 }
 0x14e   : > { %v941_v0 = vpop.f32.mrf.mxu1  ;;  %v2586_v5 = vpack.c.bf16 %v1370_v4, %v1369_v2  ;;  %v1165_v6 = vmul.f32 1.442695, %v1087_v56  ;;  %v3532_v19 = vadd.f32 %v3331_v17, %v813_v63  ;;  %v2950_v13 = vpop.eup %2949  ;;  %v2280_v14 = vadd.f32 -1.0, %v2948_v7 }
 0x14f   : > { %v1229_v62 = vmul.f32 1.442695, %v1119_v8  ;;  %v815_v11 = vpop.f32.mrf.mxu0  ;;  %2646 = vst [vmem:[%s3405_s21 + $0x20] sm:$0xff] %v2506_v3   ;;  %v3537_v15 = vadd.f32 %v3331_v17, %v941_v0  ;;  %v2312_v1 = vadd.f32 -1.0, %v2950_v13  ;;  %vm1055_vm13 = vcmp.gt.f32.partialorder %v3518_v52, 0.0 }
 0x150   : > { %v943_v12 = vpop.f32.mrf.mxu1  ;;  %2662 = vst [vmem:[%s3405_s21 + $0xa0] sm:$0xff] %v2586_v5   ;;  %2963 = vpow2.f32 %v1165_v6  ;;  %v1088_v22 = vmin.f32 %v3532_v19, 0.0  ;;  %v1339_v32 = vsel %vm1019_vm4, %v3454_v37, %v2280_v14  ;;  %vm1024_vm14 = vcmp.gt.f32.partialorder %v3532_v19, 0.0 }
 0x151   : > { %v818_v39 = vpop.f32.mrf.mxu0  ;;  %v2952_v18 = vpop.eup %2951  ;;  %2965 = vpow2.f32 %v1229_v62  ;;  %v1120_v49 = vmin.f32 %v3537_v15, 0.0  ;;  %v1371_v35 = vsel %vm1051_vm5, %v3457_v42, %v2312_v1  ;;  %vm1056_vm15 = vcmp.gt.f32.partialorder %v3537_v15, 0.0 }
 0x152   : > { %v946_v16 = vpop.f32.mrf.mxu1  ;;  %v3545_v40 = vadd.f32 %v3331_v17, %v818_v39  ;;  %v2954_v23 = vpop.eup %2953  ;;  %v2281_v50 = vadd.f32 -1.0, %v2952_v18  ;;  %v1167_v24 = vmul.f32 1.442695, %v1088_v22 }
 0x153   : > { %v3549_v27 = vadd.f32 %v3331_v17, %v946_v16  ;;  %v820_v28 = vpop.f32.mrf.mxu0  ;;  %v2313_v33 = vadd.f32 -1.0, %v2954_v23  ;;  %v1231_v25 = vmul.f32 1.442695, %v1120_v49 }
 0x154   : > { %v948_v29 = vpop.f32.mrf.mxu1  ;;  %v1089_v34 = vmin.f32 %v3545_v40, 0.0  ;;  %v1340_v36 = vsel %vm1020_vm6, %v3473_v57, %v2281_v50  ;;  %2967 = vpow2.f32 %v1167_v24  ;;  %vm1025_vm0 = vcmp.gt.f32.partialorder %v3545_v40, 0.0 }
 0x155   : > { %v1121_v38 = vmin.f32 %v3549_v27, 0.0  ;;  %v821_v26 = vpop.f32.mrf.mxu0  ;;  %v2956_v37 = vpop.eup %2955  ;;  %v2511_v43 = vpack.c.bf16 %v1340_v36, %v1339_v32  ;;  %v1372_v44 = vsel %vm1052_vm7, %v3476_v60, %v2313_v33  ;;  %2969 = vpow2.f32 %v1231_v25 }
 0x156   : > { %v949_v21 = vpop.f32.mrf.mxu1  ;;  %v1169_v45 = vmul.f32 1.442695, %v1089_v34  ;;  %v2958_v42 = vpop.eup %2957  ;;  %v2591_v46 = vpack.c.bf16 %v1372_v44, %v1371_v35  ;;  %v3566_v57 = vadd.f32 %v3331_v17, %v821_v26  ;;  %v2282_v51 = vadd.f32 -1.0, %v2956_v37 }
 0x157   : > { %v1233_v20 = vmul.f32 1.442695, %v1121_v38  ;;  %v823_v47 = vpop.f32.mrf.mxu0  ;;  %2647 = vst [vmem:[%s3405_s21 + $0x28] sm:$0xff] %v2511_v43   ;;  %v3571_v53 = vadd.f32 %v3331_v17, %v949_v21  ;;  %v2314_v60 = vadd.f32 -1.0, %v2958_v42  ;;  %vm1057_vm1 = vcmp.gt.f32.partialorder %v3549_v27, 0.0 }
 0x158   : > { %v951_v48 = vpop.f32.mrf.mxu1  ;;  %2663 = vst [vmem:[%s3405_s21 + $0xa8] sm:$0xff] %v2591_v46   ;;  %2971 = vpow2.f32 %v1169_v45  ;;  %v1090_v54 = vmin.f32 %v3566_v57, 0.0  ;;  %v1341_v4 = vsel %vm1021_vm8, %v3484_v9, %v2282_v51  ;;  %vm1026_vm2 = vcmp.gt.f32.partialorder %v3566_v57, 0.0 }
 0x159   : > { %v826_v59 = vpop.f32.mrf.mxu0  ;;  %v2960_v56 = vpop.eup %2959  ;;  %2973 = vpow2.f32 %v1233_v20  ;;  %v1122_v7 = vmin.f32 %v3571_v53, 0.0  ;;  %v1373_v11 = vsel %vm1053_vm9, %v3487_v10, %v2314_v60  ;;  %vm1058_vm3 = vcmp.gt.f32.partialorder %v3571_v53, 0.0 }
 0x15a   : > { %v954_v55 = vpop.f32.mrf.mxu1  ;;  %v3579_v58 = vadd.f32 %v3331_v17, %v826_v59  ;;  %v2962_v61 = vpop.eup %2961  ;;  %v2283_v8 = vadd.f32 -1.0, %v2960_v56  ;;  %v1171_v63 = vmul.f32 1.442695, %v1090_v54 }
 0x15b   : > { %v3583_v0 = vadd.f32 %v3331_v17, %v954_v55  ;;  %v828_v2 = vpop.f32.mrf.mxu0  ;;  %v2315_v5 = vadd.f32 -1.0, %v2962_v61  ;;  %v1235_v6 = vmul.f32 1.442695, %v1122_v7 }
 0x15c   : > { %v956_v3 = vpop.f32.mrf.mxu1  ;;  %v1091_v62 = vmin.f32 %v3579_v58, 0.0  ;;  %v1342_v12 = vsel %vm1022_vm10, %v3502_v30, %v2283_v8  ;;  %2975 = vpow2.f32 %v1171_v63  ;;  %vm1027_vm4 = vcmp.gt.f32.partialorder %v3579_v58, 0.0 }
 0x15d   : > { %v1123_v13 = vmin.f32 %v3583_v0, 0.0  ;;  %v829_v14 = vpop.f32.mrf.mxu0  ;;  %v2964_v9 = vpop.eup %2963  ;;  %v2516_v22 = vpack.c.bf16 %v1342_v12, %v1341_v4  ;;  %v1374_v39 = vsel %vm1054_vm11, %v3507_v41, %v2315_v5  ;;  %2977 = vpow2.f32 %v1235_v6 }
 0x15e   : > { %v957_v1 = vpop.f32.mrf.mxu1  ;;  %v1173_v16 = vmul.f32 1.442695, %v1091_v62  ;;  %v2966_v10 = vpop.eup %2965  ;;  %v2596_v18 = vpack.c.bf16 %v1374_v39, %v1373_v11  ;;  %v3600_v30 = vadd.f32 %v3331_v17, %v829_v14  ;;  %v2284_v28 = vadd.f32 -1.0, %v2964_v9 }
 0x15f   : > { %v1237_v49 = vmul.f32 1.442695, %v1123_v13  ;;  %v831_v23 = vpop.f32.mrf.mxu0  ;;  %2648 = vst [vmem:[%s3405_s21 + $0x30] sm:$0xff] %v2516_v22   ;;  %v3604_v24 = vadd.f32 %v3331_v17, %v957_v1  ;;  %v2316_v25 = vadd.f32 -1.0, %v2966_v10  ;;  %vm1059_vm5 = vcmp.gt.f32.partialorder %v3583_v0, 0.0 }
 0x160   : > { %v959_v50 = vpop.f32.mrf.mxu1  ;;  %2979 = vpow2.f32 %v1173_v16  ;;  %2664 = vst [vmem:[%s3405_s21 + $0xb0] sm:$0xff] %v2596_v18   ;;  %v1092_v41 = vmin.f32 %v3600_v30, 0.0  ;;  %v1343_v46 = vsel %vm1023_vm12, %v3514_v31, %v2284_v28  ;;  %vm1028_vm6 = vcmp.gt.f32.partialorder %v3600_v30, 0.0 }
 0x161   : > { %2981 = vpow2.f32 %v1237_v49  ;;  %v834_v29 = vpop.f32.mrf.mxu0  ;;  %v2968_v33 = vpop.eup %2967  ;;  %v1124_v34 = vmin.f32 %v3604_v24, 0.0  ;;  %v1375_v54 = vsel %vm1055_vm13, %v3518_v52, %v2316_v25  ;;  %vm1060_vm7 = vcmp.gt.f32.partialorder %v3604_v24, 0.0 }
 0x162   : > { %v962_v32 = vpop.f32.mrf.mxu1  ;;  %v3612_v35 = vadd.f32 %v3331_v17, %v834_v29  ;;  %v2970_v36 = vpop.eup %2969  ;;  %v2285_v38 = vadd.f32 -1.0, %v2968_v33  ;;  %v1175_v26 = vmul.f32 1.442695, %v1092_v41 }
 0x163   : > { %v3616_v21 = vadd.f32 %v3331_v17, %v962_v32  ;;  %v836_v37 = vpop.f32.mrf.mxu0  ;;  %v2317_v44 = vadd.f32 -1.0, %v2970_v36  ;;  %v1239_v45 = vmul.f32 1.442695, %v1124_v34 }
 0x164   : > { %v964_v43 = vpop.f32.mrf.mxu1  ;;  %v1093_v42 = vmin.f32 %v3612_v35, 0.0  ;;  %v1344_v20 = vsel %vm1024_vm14, %v3532_v19, %v2285_v38  ;;  %2983 = vpow2.f32 %v1175_v26  ;;  %vm1029_vm8 = vcmp.gt.f32.partialorder %v3612_v35, 0.0 }
 0x165   : > { %v1125_v47 = vmin.f32 %v3616_v21, 0.0  ;;  %v837_v48 = vpop.f32.mrf.mxu0  ;;  %v2972_v60 = vpop.eup %2971  ;;  %v2521_v59 = vpack.c.bf16 %v1344_v20, %v1343_v46  ;;  %v1376_v55 = vsel %vm1056_vm15, %v3537_v15, %v2317_v44  ;;  %2985 = vpow2.f32 %v1239_v45 }
 0x166   : > { %v965_v51 = vpop.f32.mrf.mxu1  ;;  %v2974_v56 = vpop.eup %2973  ;;  %v2601_v31 = vpack.c.bf16 %v1376_v55, %v1375_v54  ;;  %v1177_v7 = vmul.f32 1.442695, %v1093_v42  ;;  %v3631_v63 = vadd.f32 %v3331_v17, %v837_v48  ;;  %v2286_v52 = vadd.f32 -1.0, %v2972_v60 }
 0x167   : > { %v1241_v19 = vmul.f32 1.442695, %v1125_v47  ;;  %v839_v61 = vpop.f32.mrf.mxu0  ;;  %2649 = vst [vmem:[%s3405_s21 + $0x38] sm:$0xff] %v2521_v59   ;;  %v3634_v2 = vadd.f32 %v3331_v17, %v965_v51  ;;  %v2318_v5 = vadd.f32 -1.0, %v2974_v56  ;;  %vm1061_vm9 = vcmp.gt.f32.partialorder %v3616_v21, 0.0 }
 0x168   : > { %v967_v8 = vpop.f32.mrf.mxu1  ;;  %2665 = vst [vmem:[%s3405_s21 + $0xb8] sm:$0xff] %v2601_v31   ;;  %2987 = vpow2.f32 %v1177_v7  ;;  %v1094_v6 = vmin.f32 %v3631_v63, 0.0  ;;  %v1345_v10 = vsel %vm1025_vm0, %v3545_v40, %v2286_v52  ;;  %vm1030_vm10 = vcmp.gt.f32.partialorder %v3631_v63, 0.0 }
 0x169   : > { %v842_v15 = vpop.f32.mrf.mxu0  ;;  %v2976_v4 = vpop.eup %2975  ;;  %2989 = vpow2.f32 %v1241_v19  ;;  %v1126_v12 = vmin.f32 %v3634_v2, 0.0  ;;  %v1377_v29 = vsel %vm1057_vm1, %v3549_v27, %v2318_v5  ;;  %vm1062_vm11 = vcmp.gt.f32.partialorder %v3634_v2, 0.0 }
 0x16a   : > { %v970_v3 = vpop.f32.mrf.mxu1  ;;  %v2978_v62 = vpop.eup %2977  ;;  %v2287_v11 = vadd.f32 -1.0, %v2976_v4  ;;  %v3643_v13 = vadd.f32 %v3331_v17, %v842_v15  ;;  %v1179_v22 = vmul.f32 1.442695, %v1094_v6 }
 0x16b   : > { %v844_v14 = vpop.f32.mrf.mxu0  ;;  %v2319_v9 = vadd.f32 -1.0, %v2978_v62  ;;  %v3647_v39 = vadd.f32 %v3331_v17, %v970_v3  ;;  %v1243_v49 = vmul.f32 1.442695, %v1126_v12 }
 0x16c   : > { %v972_v1 = vpop.f32.mrf.mxu1  ;;  %v1346_v18 = vsel %vm1026_vm2, %v3566_v57, %v2287_v11  ;;  %v1095_v23 = vmin.f32 %v3643_v13, 0.0  ;;  %2991 = vpow2.f32 %v1179_v22  ;;  %vm1031_vm12 = vcmp.gt.f32.partialorder %v3643_v13, 0.0 }
 0x16d   : > { %v2980_v16 = vpop.eup %2979  ;;  %v845_v50 = vpop.f32.mrf.mxu0  ;;  %v2526_v32 = vpack.c.bf16 %v1346_v18, %v1345_v10  ;;  %v1378_v33 = vsel %vm1058_vm3, %v3571_v53, %v2319_v9  ;;  %2993 = vpow2.f32 %v1243_v49  ;;  %v1127_v38 = vmin.f32 %v3647_v39, 0.0  ;;  %v3709_v49 = vld [vmem:[%s4035_s2] ss:$0 sm:$0xff] }
 0x16e   : > { %v973_v28 = vpop.f32.mrf.mxu1  ;;  %v2982_v41 = vpop.eup %2981  ;;  %v2606_v40 = vpack.c.bf16 %v1378_v33, %v1377_v29  ;;  %v1181_v25 = vmul.f32 1.442695, %v1095_v23  ;;  %v2288_v36 = vadd.f32 -1.0, %v2980_v16  ;;  %v3664_v26 = vadd.f32 %v3331_v17, %v845_v50 }
 0x16f   : > { %v847_v34 = vpop.f32.mrf.mxu0  ;;  %2650 = vst [vmem:[%s3405_s21 + $0x40] sm:$0xff] %v2526_v32   ;;  %v2320_v27 = vadd.f32 -1.0, %v2982_v41  ;;  %v3669_v53 = vadd.f32 %v3331_v17, %v973_v28  ;;  %v1245_v45 = vmul.f32 1.442695, %v1127_v38  ;;  %vm1063_vm13 = vcmp.gt.f32.partialorder %v3647_v39, 0.0 }
 0x170   : > { %v975_v57 = vpop.f32.mrf.mxu1  ;;  %2666 = vst [vmem:[%s3405_s21 + $0xc0] sm:$0xff] %v2606_v40   ;;  %2995 = vpow2.f32 %v1181_v25  ;;  %v1096_v42 = vmin.f32 %v3664_v26, 0.0  ;;  %v1347_v59 = vsel %vm1027_vm4, %v3579_v58, %v2288_v36  ;;  %vm1032_vm14 = vcmp.gt.f32.partialorder %v3664_v26, 0.0 }
 0x171   : > { %v850_v37 = vpop.f32.mrf.mxu0  ;;  %v2984_v44 = vpop.eup %2983  ;;  %v1128_v48 = vmin.f32 %v3669_v53, 0.0  ;;  %2997 = vpow2.f32 %v1245_v45  ;;  %v1379_v31 = vsel %vm1059_vm5, %v3583_v0, %v2320_v27  ;;  %vm1064_vm15 = vcmp.gt.f32.partialorder %v3669_v53, 0.0 }
 0x172   : > { %v978_v43 = vpop.f32.mrf.mxu1  ;;  %v3674_v46 = vadd.f32 %v3331_v17, %v850_v37  ;;  %v2986_v20 = vpop.eup %2985  ;;  %v2289_v47 = vadd.f32 -1.0, %v2984_v44  ;;  %v1183_v56 = vmul.f32 1.442695, %v1096_v42 }
 0x173   : > { %v3679_v51 = vadd.f32 %v3331_v17, %v978_v43  ;;  %v852_v60 = vpop.f32.mrf.mxu0  ;;  %v2321_v55 = vadd.f32 -1.0, %v2986_v20  ;;  %v1247_v19 = vmul.f32 1.442695, %v1128_v48 }
 0x174   : > { %v980_v54 = vpop.f32.mrf.mxu1  ;;  %v1348_v7 = vsel %vm1028_vm6, %v3600_v30, %v2289_v47  ;;  %v1097_v61 = vmin.f32 %v3674_v46, 0.0  ;;  %2999 = vpow2.f32 %v1183_v56  ;;  %vm1033_vm0 = vcmp.gt.f32.partialorder %v3674_v46, 0.0 }
 0x175   : > { %v853_v8 = vpop.f32.mrf.mxu0  ;;  %v2531_v15 = vpack.c.bf16 %v1348_v7, %v1347_v59  ;;  %v1380_v58 = vsel %vm1060_vm7, %v3604_v24, %v2321_v55  ;;  %v1129_v3 = vmin.f32 %v3679_v51, 0.0  ;;  %v2988_v0 = vpop.eup %2987  ;;  %3001 = vpow2.f32 %v1247_v19 }
 0x176   : > { %v981_v52 = vpop.f32.mrf.mxu1  ;;  %v2611_v4 = vpack.c.bf16 %v1380_v58, %v1379_v31  ;;  %v1185_v5 = vmul.f32 1.442695, %v1097_v61  ;;  %v2990_v62 = vpop.eup %2989  ;;  %v3697_v12 = vadd.f32 %v3331_v17, %v853_v8  ;;  %v2290_v9 = vadd.f32 -1.0, %v2988_v0 }
 0x177   : > { %v855_v30 = vpop.f32.mrf.mxu0  ;;  %2651 = vst [vmem:[%s3405_s21 + $0x48] sm:$0xff] %v2531_v15   ;;  %v1249_v11 = vmul.f32 1.442695, %v1129_v3  ;;  %v3700_v14 = vadd.f32 %v3331_v17, %v981_v52  ;;  %v2322_v10 = vadd.f32 -1.0, %v2990_v62  ;;  %vm1065_vm1 = vcmp.gt.f32.partialorder %v3679_v51, 0.0 }
 0x178   : > { %v983_v6 = vpop.f32.mrf.mxu1  ;;  %2667 = vst [vmem:[%s3405_s21 + $0xc8] sm:$0xff] %v2611_v4   ;;  %3003 = vpow2.f32 %v1185_v5  ;;  %v1098_v22 = vmin.f32 %v3697_v12, 0.0  ;;  %v1349_v38 = vsel %vm1029_vm8, %v3612_v35, %v2290_v9  ;;  %vm1034_vm2 = vcmp.gt.f32.partialorder %v3697_v12, 0.0 }
 0x179   : > { %v858_v24 = vpop.f32.mrf.mxu0  ;;  %3005 = vpow2.f32 %v1249_v11  ;;  %v2992_v16 = vpop.eup %2991  ;;  %v1130_v18 = vmin.f32 %v3700_v14, 0.0  ;;  %v1381_v43 = vsel %vm1061_vm9, %v3616_v21, %v2322_v10  ;;  %vm1066_vm3 = vcmp.gt.f32.partialorder %v3700_v14, 0.0 }
 0x17a   : > { %v986_v1 = vpop.f32.mrf.mxu1  ;;  %v3712_v17 = vadd.f32 %v3709_v49, %v858_v24  ;;  %v2994_v41 = vpop.eup %2993  ;;  %v2291_v29 = vadd.f32 -1.0, %v2992_v16  ;;  %v1187_v32 = vmul.f32 1.442695, %v1098_v22 }
 0x17b   : > { %v3715_v23 = vadd.f32 %v3709_v49, %v986_v1  ;;  %v860_v50 = vpop.f32.mrf.mxu0  ;;  %v2323_v33 = vadd.f32 -1.0, %v2994_v41  ;;  %v1251_v40 = vmul.f32 1.442695, %v1130_v18 }
 0x17c   : > { %v988_v28 = vpop.f32.mrf.mxu1  ;;  %v1099_v25 = vmin.f32 %v3712_v17, 0.0  ;;  %v1350_v27 = vsel %vm1030_vm10, %v3631_v63, %v2291_v29  ;;  %3007 = vpow2.f32 %v1187_v32  ;;  %vm1035_vm4 = vcmp.gt.f32.partialorder %v3712_v17, 0.0 }
 0x17d   : > { %v861_v34 = vpop.f32.mrf.mxu0  ;;  %v2996_v36 = vpop.eup %2995  ;;  %v1131_v37 = vmin.f32 %v3715_v23, 0.0  ;;  %v2536_v44 = vpack.c.bf16 %v1350_v27, %v1349_v38  ;;  %v1382_v45 = vsel %vm1062_vm11, %v3634_v2, %v2323_v33  ;;  %3009 = vpow2.f32 %v1251_v40 }
 0x17e   : > { %v989_v57 = vpop.f32.mrf.mxu1  ;;  %v2616_v47 = vpack.c.bf16 %v1382_v45, %v1381_v43  ;;  %v1189_v48 = vmul.f32 1.442695, %v1099_v25  ;;  %v3729_v54 = vadd.f32 %v3709_v49, %v861_v34  ;;  %v2998_v35 = vpop.eup %2997  ;;  %v2292_v63 = vadd.f32 -1.0, %v2996_v36 }
 0x17f   : > { %v863_v42 = vpop.f32.mrf.mxu0  ;;  %v1253_v60 = vmul.f32 1.442695, %v1131_v37  ;;  %2652 = vst [vmem:[%s3405_s21 + $0x50] sm:$0xff] %v2536_v44   ;;  %v3734_v21 = vadd.f32 %v3709_v49, %v989_v57  ;;  %v2324_v2 = vadd.f32 -1.0, %v2998_v35  ;;  %vm1067_vm6 = vcmp.gt.f32.partialorder %v3715_v23, 0.0 }
 0x180   : > { %v991_v20 = vpop.f32.mrf.mxu1  ;;  %2668 = vst [vmem:[%s3405_s21 + $0xd0] sm:$0xff] %v2616_v47   ;;  %3011 = vpow2.f32 %v1189_v48  ;;  %v1100_v56 = vmin.f32 %v3729_v54, 0.0  ;;  %v1351_v0 = vsel %vm1031_vm12, %v3643_v13, %v2292_v63  ;;  %vm1036_vm5 = vcmp.gt.f32.partialorder %v3729_v54, 0.0 }
 0x181   : > { %v866_v59 = vpop.f32.mrf.mxu0  ;;  %v3000_v31 = vpop.eup %2999  ;;  %3013 = vpow2.f32 %v1253_v60  ;;  %v1132_v7 = vmin.f32 %v3734_v21, 0.0  ;;  %v1383_v24 = vsel %vm1063_vm13, %v3647_v39, %v2324_v2  ;;  %vm1068_vm7 = vcmp.gt.f32.partialorder %v3734_v21, 0.0 }
 0x182   : > { %v994_v55 = vpop.f32.mrf.mxu1  ;;  %v3742_v19 = vadd.f32 %v3709_v49, %v866_v59  ;;  %v3002_v52 = vpop.eup %3001  ;;  %v2293_v15 = vadd.f32 -1.0, %v3000_v31  ;;  %v1191_v58 = vmul.f32 1.442695, %v1100_v56 }
 0x183   : > { %v868_v61 = vpop.f32.mrf.mxu0  ;;  %v3746_v3 = vadd.f32 %v3709_v49, %v994_v55  ;;  %v2325_v4 = vadd.f32 -1.0, %v3002_v52  ;;  %v1255_v5 = vmul.f32 1.442695, %v1132_v7 }
 0x184   : > { %v996_v8 = vpop.f32.mrf.mxu1  ;;  %v1101_v30 = vmin.f32 %v3742_v19, 0.0  ;;  %v1352_v1 = vsel %vm1032_vm14, %v3664_v26, %v2293_v15  ;;  %3015 = vpow2.f32 %v1191_v58  ;;  %vm1037_vm8 = vcmp.gt.f32.partialorder %v3742_v19, 0.0 }
 0x185   : > { %v869_v6 = vpop.f32.mrf.mxu0  ;;  %v3004_v11 = vpop.eup %3003  ;;  %v1133_v9 = vmin.f32 %v3746_v3, 0.0  ;;  %v2541_v22 = vpack.c.bf16 %v1352_v1, %v1351_v0  ;;  %v1384_v16 = vsel %vm1064_vm15, %v3669_v53, %v2325_v4  ;;  %3017 = vpow2.f32 %v1255_v5 }
 0x186   : > { %v997_v62 = vpop.f32.mrf.mxu1  ;;  %v3006_v13 = vpop.eup %3005  ;;  %v2294_v10 = vadd.f32 -1.0, %v3004_v11  ;;  %v2621_v28 = vpack.c.bf16 %v1384_v16, %v1383_v24  ;;  %v1193_v39 = vmul.f32 1.442695, %v1101_v30  ;;  %v3765_v29 = vadd.f32 %v3709_v49, %v869_v6 }
 0x187   : > { %v871_v18 = vpop.f32.mrf.mxu0  ;;  %v1257_v41 = vmul.f32 1.442695, %v1133_v9  ;;  %2653 = vst [vmem:[%s3405_s21 + $0x58] sm:$0xff] %v2541_v22   ;;  %v2326_v26 = vadd.f32 -1.0, %v3006_v13  ;;  %v3768_v32 = vadd.f32 %v3709_v49, %v997_v62  ;;  %vm1069_vm10 = vcmp.gt.f32.partialorder %v3746_v3, 0.0 }
 0x188   : > { %v999_v50 = vpop.f32.mrf.mxu1  ;;  %2669 = vst [vmem:[%s3405_s21 + $0xd8] sm:$0xff] %v2621_v28   ;;  %v1353_v57 = vsel %vm1033_vm0, %v3674_v46, %v2294_v10  ;;  %3019 = vpow2.f32 %v1193_v39  ;;  %v1102_v36 = vmin.f32 %v3765_v29, 0.0  ;;  %vm1038_vm9 = vcmp.gt.f32.partialorder %v3765_v29, 0.0 }
 0x189   : > { %v874_v33 = vpop.f32.mrf.mxu0  ;;  %v3008_v34 = vpop.eup %3007  ;;  %3021 = vpow2.f32 %v1257_v41  ;;  %v1134_v44 = vmin.f32 %v3768_v32, 0.0  ;;  %v1385_v42 = vsel %vm1065_vm1, %v3679_v51, %v2326_v26  ;;  %vm1070_vm11 = vcmp.gt.f32.partialorder %v3768_v32, 0.0 }
 0x18a   : > { %v1002_v40 = vpop.f32.mrf.mxu1  ;;  %v3774_v53 = vadd.f32 %v3709_v49, %v874_v33  ;;  %v3010_v37 = vpop.eup %3009  ;;  %v2295_v43 = vadd.f32 -1.0, %v3008_v34  ;;  %v1195_v46 = vmul.f32 1.442695, %v1102_v36 }
 0x18b   : > { %v3777_v25 = vadd.f32 %v3709_v49, %v1002_v40  ;;  %v876_v38 = vpop.f32.mrf.mxu0  ;;  %v2327_v20 = vadd.f32 -1.0, %v3010_v37  ;;  %v1259_v63 = vmul.f32 1.442695, %v1134_v44 }
 0x18c   : > { %v1004_v27 = vpop.f32.mrf.mxu1  ;;  %v1103_v45 = vmin.f32 %v3774_v53, 0.0  ;;  %v1354_v35 = vsel %vm1034_vm2, %v3697_v12, %v2295_v43  ;;  %3023 = vpow2.f32 %v1195_v46  ;;  %vm1039_vm12 = vcmp.gt.f32.partialorder %v3774_v53, 0.0 }
 0x18d   : > { %v1135_v47 = vmin.f32 %v3777_v25, 0.0  ;;  %v877_v48 = vpop.f32.mrf.mxu0  ;;  %v3012_v2 = vpop.eup %3011  ;;  %v2546_v56 = vpack.c.bf16 %v1354_v35, %v1353_v57  ;;  %v1386_v51 = vsel %vm1066_vm3, %v3700_v14, %v2327_v20  ;;  %3025 = vpow2.f32 %v1259_v63 }
 0x18e   : > { %v1005_v60 = vpop.f32.mrf.mxu1  ;;  %v1197_v59 = vmul.f32 1.442695, %v1103_v45  ;;  %v3792_v55 = vadd.f32 %v3709_v49, %v877_v48  ;;  %v3014_v8 = vpop.eup %3013  ;;  %v2626_v52 = vpack.c.bf16 %v1386_v51, %v1385_v42  ;;  %v2296_v58 = vadd.f32 -1.0, %v3012_v2 }
 0x18f   : > { %v1261_v31 = vmul.f32 1.442695, %v1135_v47  ;;  %v879_v7 = vpop.f32.mrf.mxu0  ;;  %2654 = vst [vmem:[%s3405_s21 + $0x60] sm:$0xff] %v2546_v56   ;;  %v3800_v15 = vadd.f32 %v3709_v49, %v1005_v60  ;;  %v2328_v4 = vadd.f32 -1.0, %v3014_v8  ;;  %vm1071_vm14 = vcmp.gt.f32.partialorder %v3777_v25, 0.0 }
 0x190   : > { %v1007_v61 = vpop.f32.mrf.mxu1  ;;  %3027 = vpow2.f32 %v1197_v59  ;;  %v1104_v12 = vmin.f32 %v3792_v55, 0.0  ;;  %2670 = vst [vmem:[%s3405_s21 + $0xe0] sm:$0xff] %v2626_v52   ;;  %v1355_v11 = vsel %vm1035_vm4, %v3712_v17, %v2296_v58  ;;  %vm1040_vm13 = vcmp.gt.f32.partialorder %v3792_v55, 0.0 }
 0x191   : > { %v3016_v0 = vpop.eup %3015  ;;  %3029 = vpow2.f32 %v1261_v31  ;;  %v1136_v5 = vmin.f32 %v3800_v15, 0.0  ;;  %v1387_v1 = vsel %vm1067_vm6, %v3715_v23, %v2328_v4  ;;  %vm1072_vm15 = vcmp.gt.f32.partialorder %v3800_v15, 0.0 }
 0x192   : > { %v1199_v14 = vmul.f32 1.442695, %v1104_v12  ;;  %v3018_v30 = vpop.eup %3017  ;;  %v2297_v6 = vadd.f32 -1.0, %v3016_v0 }
 0x193   : > { %v2329_v62 = vadd.f32 -1.0, %v3018_v30  ;;  %v1263_v49 = vmul.f32 1.442695, %v1136_v5 }
 0x194   : > { %3031 = vpow2.f32 %v1199_v14  ;;  %v1356_v24 = vsel %vm1036_vm5, %v3729_v54, %v2297_v6 }
 0x195   : > { %v2551_v9 = vpack.c.bf16 %v1356_v24, %v1355_v11  ;;  %v1388_v13 = vsel %vm1068_vm7, %v3734_v21, %v2329_v62  ;;  %3033 = vpow2.f32 %v1263_v49  ;;  %v3020_v22 = vpop.eup %3019 }
 0x196   : > { %v2631_v16 = vpack.c.bf16 %v1388_v13, %v1387_v1  ;;  %v3022_v10 = vpop.eup %3021  ;;  %v2298_v18 = vadd.f32 -1.0, %v3020_v22 }
 0x197   : > { %2655 = vst [vmem:[%s3405_s21 + $0x68] sm:$0xff] %v2551_v9   ;;  %v2330_v17 = vadd.f32 -1.0, %v3022_v10 }
 0x198   : > { %2671 = vst [vmem:[%s3405_s21 + $0xe8] sm:$0xff] %v2631_v16   ;;  %v1357_v21 = vsel %vm1037_vm8, %v3742_v19, %v2298_v18 }
 0x199   : > { %v3024_v50 = vpop.eup %3023  ;;  %v1389_v33 = vsel %vm1069_vm10, %v3746_v3, %v2330_v17 }
 0x19a   : > { %v3026_v28 = vpop.eup %3025  ;;  %v2299_v39 = vadd.f32 -1.0, %v3024_v50 }
 0x19b   : > { %v2331_v23 = vadd.f32 -1.0, %v3026_v28 }
 0x19c   : > { %v1358_v41 = vsel %vm1038_vm9, %v3765_v29, %v2299_v39 }
 0x19d   : > { %v3028_v54 = vpop.eup %3027  ;;  %v2556_v40 = vpack.c.bf16 %v1358_v41, %v1357_v21  ;;  %v1390_v34 = vsel %vm1070_vm11, %v3768_v32, %v2331_v23 }
 0x19e   : > { %v3030_v26 = vpop.eup %3029  ;;  %v2636_v57 = vpack.c.bf16 %v1390_v34, %v1389_v33  ;;  %v2300_v36 = vadd.f32 -1.0, %v3028_v54 }
 0x19f   : > { %2656 = vst [vmem:[%s3405_s21 + $0x70] sm:$0xff] %v2556_v40   ;;  %v2332_v19 = vadd.f32 -1.0, %v3030_v26 }
 0x1a0   : > { %2672 = vst [vmem:[%s3405_s21 + $0xf0] sm:$0xff] %v2636_v57   ;;  %v1359_v29 = vsel %vm1039_vm12, %v3774_v53, %v2300_v36 }
 0x1a1   : > { %v3032_v38 = vpop.eup %3031  ;;  %v1391_v44 = vsel %vm1071_vm14, %v3777_v25, %v2332_v19 }
 0x1a2   : > { %v2301_v27 = vadd.f32 -1.0, %v3032_v38  ;;  %v3034_v37 = vpop.eup %3033 }
 0x1a3   : > { %v2333_v43 = vadd.f32 -1.0, %v3034_v37 }
 0x1a4   : > { %v1360_v3 = vsel %vm1040_vm13, %v3792_v55, %v2301_v27  ;;  %1719 = sbr.rel (!%p3170_p4) target bundleno = 506 (0x1fa), region = 36 }
 0x1a5   : > { %v2561_v32 = vpack.c.bf16 %v1360_v3, %v1359_v29  ;;  %v1392_v45 = vsel %vm1072_vm15, %v3800_v15, %v2333_v43 }
 0x1a6   : > { %v2641_v42 = vpack.c.bf16 %v1392_v45, %v1391_v44 }
 0x1a7   : > { %2657 = vst [vmem:[%s3405_s21 + $0x78] sm:$0xff] %v2561_v32  }
 0x1a8   : > { %2673 = vst [vmem:[%s3405_s21 + $0xf8] sm:$0xff] %v2641_v42  }
 0x1a9   : > { %s4045_s25 = smov (!%p1722_p8, %s1721_s25), 64 }
 0x1aa   : > { %s2400_s30 = sshll.u32 %s4045_s25, 6 }
 0x1ab   : > { %p2403_p9 = scmp.eq.s32.totalorder %s2400_s30, 0 }
 0x1ac   : > { %s3847_s4 = sshrl.u32 (!%p2403_p9), %s4045_s25, 6 }
 0x1ad   : > { %1730 = sbr.rel (%p2403_p9) target bundleno = 506 (0x1fa), region = 40  ;;  %p2404_p10 = scmp.le.s32.totalorder (!%p2403_p9), %s3847_s4, 0 }
 0x1b2   : > { %2137 = sbr.rel (%p2404_p10) target bundleno = 489 (0x1e9), region = 112  ;;  %s4038_s15 = smov (!%p2404_p10), %s3841_s29 }
 0x1b3   : > { %s4039_s20 = smov (!%p2404_p10), %s3405_s21  ;;  %s3856_s23 = smov (!%p2404_p10), 0  }
 0x1b4   : > { %s3858_s5 = smov (!%p2404_p10), 0  }
 0x1b7 LB: >> { %v1747_v53 = vld [vmem:[%s3098_s20] sm:$0xf]  ;;  %v1749_v25 = vld [vmem:[%s3098_s20 + $0x4] sm:$0xf]  ;;  %v1751_v20 = vld [vmem:[%s3098_s20 + $0x8] sm:$0xf]  ;;  %s3106_s5 = sphi %s3858_s5, %s1741_s5   ;;  %s3102_s23 = sphi %s3856_s23, %s4040_s23   ;;  %s3098_s20 = sphi %s4039_s20, %s1880_s20   ;;  %s3094_s15 = sphi %s4038_s15, %s1881_s15  }
 0x1b8   : >> { %1748 = vst [vmem:[%s3094_s15] sm:$0xf] %v1747_v53  ;;  %1750 = vst [vmem:[%s3094_s15 + $0x4] sm:$0xf] %v1749_v25  ;;  %v1753_v46 = vld [vmem:[%s3098_s20 + $0xc] sm:$0xf]  ;;  %s1875_s6 = sadd.s32 1, %s3102_s23 }
 0x1b9   : >> { %1752 = vst [vmem:[%s3094_s15 + $0x8] sm:$0xf] %v1751_v20  ;;  %v1755_v47 = vld [vmem:[%s3098_s20 + $0x10] sm:$0xf]  ;;  %v1757_v48 = vld [vmem:[%s3098_s20 + $0x14] sm:$0xf]  ;;  %p1876_p11 = scmp.ge.s32.totalorder %s1875_s6, %s3847_s4 }
 0x1ba   : >> { %1754 = vst [vmem:[%s3094_s15 + $0xc] sm:$0xf] %v1753_v46  ;;  %1756 = vst [vmem:[%s3094_s15 + $0x10] sm:$0xf] %v1755_v47  ;;  %v1759_v60 = vld [vmem:[%s3098_s20 + $0x18] sm:$0xf] }
 0x1bb   : >> { %1758 = vst [vmem:[%s3094_s15 + $0x14] sm:$0xf] %v1757_v48  ;;  %v1761_v35 = vld [vmem:[%s3098_s20 + $0x1c] sm:$0xf]  ;;  %v1763_v63 = vld [vmem:[%s3098_s20 + $0x20] sm:$0xf] }
 0x1bc   : >> { %1760 = vst [vmem:[%s3094_s15 + $0x18] sm:$0xf] %v1759_v60  ;;  %1762 = vst [vmem:[%s3094_s15 + $0x1c] sm:$0xf] %v1761_v35  ;;  %v1765_v59 = vld [vmem:[%s3098_s20 + $0x24] sm:$0xf] }
 0x1bd   : >> { %1764 = vst [vmem:[%s3094_s15 + $0x20] sm:$0xf] %v1763_v63  ;;  %v1767_v55 = vld [vmem:[%s3098_s20 + $0x28] sm:$0xf]  ;;  %v1769_v2 = vld [vmem:[%s3098_s20 + $0x2c] sm:$0xf] }
 0x1be   : >> { %1766 = vst [vmem:[%s3094_s15 + $0x24] sm:$0xf] %v1765_v59  ;;  %1768 = vst [vmem:[%s3094_s15 + $0x28] sm:$0xf] %v1767_v55  ;;  %v1771_v56 = vld [vmem:[%s3098_s20 + $0x30] sm:$0xf] }
 0x1bf   : >> { %1770 = vst [vmem:[%s3094_s15 + $0x2c] sm:$0xf] %v1769_v2  ;;  %v1773_v51 = vld [vmem:[%s3098_s20 + $0x34] sm:$0xf]  ;;  %v1775_v31 = vld [vmem:[%s3098_s20 + $0x38] sm:$0xf] }
 0x1c0   : >> { %1772 = vst [vmem:[%s3094_s15 + $0x30] sm:$0xf] %v1771_v56  ;;  %1774 = vst [vmem:[%s3094_s15 + $0x34] sm:$0xf] %v1773_v51  ;;  %v1777_v7 = vld [vmem:[%s3098_s20 + $0x3c] sm:$0xf] }
 0x1c1   : >> { %1776 = vst [vmem:[%s3094_s15 + $0x38] sm:$0xf] %v1775_v31  ;;  %v1779_v61 = vld [vmem:[%s3098_s20 + $0x40] sm:$0xf]  ;;  %v1781_v8 = vld [vmem:[%s3098_s20 + $0x44] sm:$0xf] }
 0x1c2   : >> { %1778 = vst [vmem:[%s3094_s15 + $0x3c] sm:$0xf] %v1777_v7  ;;  %1780 = vst [vmem:[%s3094_s15 + $0x40] sm:$0xf] %v1779_v61  ;;  %v1783_v52 = vld [vmem:[%s3098_s20 + $0x48] sm:$0xf] }
 0x1c3   : >> { %1782 = vst [vmem:[%s3094_s15 + $0x44] sm:$0xf] %v1781_v8  ;;  %v1785_v12 = vld [vmem:[%s3098_s20 + $0x4c] sm:$0xf]  ;;  %v1787_v15 = vld [vmem:[%s3098_s20 + $0x50] sm:$0xf] }
 0x1c4   : >> { %1784 = vst [vmem:[%s3094_s15 + $0x48] sm:$0xf] %v1783_v52  ;;  %1786 = vst [vmem:[%s3094_s15 + $0x4c] sm:$0xf] %v1785_v12  ;;  %v1789_v58 = vld [vmem:[%s3098_s20 + $0x54] sm:$0xf] }
 0x1c5   : >> { %1788 = vst [vmem:[%s3094_s15 + $0x50] sm:$0xf] %v1787_v15  ;;  %v1791_v0 = vld [vmem:[%s3098_s20 + $0x58] sm:$0xf]  ;;  %v1793_v4 = vld [vmem:[%s3098_s20 + $0x5c] sm:$0xf] }
 0x1c6   : >> { %1790 = vst [vmem:[%s3094_s15 + $0x54] sm:$0xf] %v1789_v58  ;;  %1792 = vst [vmem:[%s3094_s15 + $0x58] sm:$0xf] %v1791_v0  ;;  %v1795_v14 = vld [vmem:[%s3098_s20 + $0x60] sm:$0xf] }
 0x1c7   : >> { %1794 = vst [vmem:[%s3094_s15 + $0x5c] sm:$0xf] %v1793_v4  ;;  %v1797_v5 = vld [vmem:[%s3098_s20 + $0x64] sm:$0xf]  ;;  %v1799_v30 = vld [vmem:[%s3098_s20 + $0x68] sm:$0xf] }
 0x1c8   : >> { %1796 = vst [vmem:[%s3094_s15 + $0x60] sm:$0xf] %v1795_v14  ;;  %1798 = vst [vmem:[%s3094_s15 + $0x64] sm:$0xf] %v1797_v5  ;;  %v1801_v6 = vld [vmem:[%s3098_s20 + $0x6c] sm:$0xf] }
 0x1c9   : >> { %1800 = vst [vmem:[%s3094_s15 + $0x68] sm:$0xf] %v1799_v30  ;;  %v1803_v62 = vld [vmem:[%s3098_s20 + $0x70] sm:$0xf]  ;;  %v1805_v49 = vld [vmem:[%s3098_s20 + $0x74] sm:$0xf] }
 0x1ca   : >> { %1802 = vst [vmem:[%s3094_s15 + $0x6c] sm:$0xf] %v1801_v6  ;;  %1804 = vst [vmem:[%s3094_s15 + $0x70] sm:$0xf] %v1803_v62  ;;  %v1807_v11 = vld [vmem:[%s3098_s20 + $0x78] sm:$0xf] }
 0x1cb   : >> { %1806 = vst [vmem:[%s3094_s15 + $0x74] sm:$0xf] %v1805_v49  ;;  %v1809_v24 = vld [vmem:[%s3098_s20 + $0x7c] sm:$0xf]  ;;  %v1811_v1 = vld [vmem:[%s3098_s20 + $0x80] sm:$0xf] }
 0x1cc   : >> { %1808 = vst [vmem:[%s3094_s15 + $0x78] sm:$0xf] %v1807_v11  ;;  %1810 = vst [vmem:[%s3094_s15 + $0x7c] sm:$0xf] %v1809_v24  ;;  %v1813_v9 = vld [vmem:[%s3098_s20 + $0x84] sm:$0xf] }
 0x1cd   : >> { %1812 = vst [vmem:[%s3094_s15 + $0x80] sm:$0xf] %v1811_v1  ;;  %v1815_v13 = vld [vmem:[%s3098_s20 + $0x88] sm:$0xf]  ;;  %v1817_v22 = vld [vmem:[%s3098_s20 + $0x8c] sm:$0xf] }
 0x1ce   : >> { %1814 = vst [vmem:[%s3094_s15 + $0x84] sm:$0xf] %v1813_v9  ;;  %1816 = vst [vmem:[%s3094_s15 + $0x88] sm:$0xf] %v1815_v13  ;;  %v1819_v16 = vld [vmem:[%s3098_s20 + $0x90] sm:$0xf] }
 0x1cf   : >> { %1818 = vst [vmem:[%s3094_s15 + $0x8c] sm:$0xf] %v1817_v22  ;;  %v1821_v10 = vld [vmem:[%s3098_s20 + $0x94] sm:$0xf]  ;;  %v1823_v18 = vld [vmem:[%s3098_s20 + $0x98] sm:$0xf] }
 0x1d0   : >> { %1820 = vst [vmem:[%s3094_s15 + $0x90] sm:$0xf] %v1819_v16  ;;  %1822 = vst [vmem:[%s3094_s15 + $0x94] sm:$0xf] %v1821_v10  ;;  %v1825_v50 = vld [vmem:[%s3098_s20 + $0x9c] sm:$0xf] }
 0x1d1   : >> { %1824 = vst [vmem:[%s3094_s15 + $0x98] sm:$0xf] %v1823_v18  ;;  %v1827_v17 = vld [vmem:[%s3098_s20 + $0xa0] sm:$0xf]  ;;  %v1829_v28 = vld [vmem:[%s3098_s20 + $0xa4] sm:$0xf] }
 0x1d2   : >> { %1826 = vst [vmem:[%s3094_s15 + $0x9c] sm:$0xf] %v1825_v50  ;;  %1828 = vst [vmem:[%s3094_s15 + $0xa0] sm:$0xf] %v1827_v17  ;;  %v1831_v39 = vld [vmem:[%s3098_s20 + $0xa8] sm:$0xf] }
 0x1d3   : >> { %1830 = vst [vmem:[%s3094_s15 + $0xa4] sm:$0xf] %v1829_v28  ;;  %v1833_v54 = vld [vmem:[%s3098_s20 + $0xac] sm:$0xf]  ;;  %v1835_v23 = vld [vmem:[%s3098_s20 + $0xb0] sm:$0xf] }
 0x1d4   : >> { %1832 = vst [vmem:[%s3094_s15 + $0xa8] sm:$0xf] %v1831_v39  ;;  %1834 = vst [vmem:[%s3094_s15 + $0xac] sm:$0xf] %v1833_v54  ;;  %v1837_v21 = vld [vmem:[%s3098_s20 + $0xb4] sm:$0xf] }
 0x1d5   : >> { %1836 = vst [vmem:[%s3094_s15 + $0xb0] sm:$0xf] %v1835_v23  ;;  %v1839_v41 = vld [vmem:[%s3098_s20 + $0xb8] sm:$0xf]  ;;  %v1841_v26 = vld [vmem:[%s3098_s20 + $0xbc] sm:$0xf] }
 0x1d6   : >> { %1838 = vst [vmem:[%s3094_s15 + $0xb4] sm:$0xf] %v1837_v21  ;;  %1840 = vst [vmem:[%s3094_s15 + $0xb8] sm:$0xf] %v1839_v41  ;;  %v1843_v33 = vld [vmem:[%s3098_s20 + $0xc0] sm:$0xf] }
 0x1d7   : >> { %1842 = vst [vmem:[%s3094_s15 + $0xbc] sm:$0xf] %v1841_v26  ;;  %v1845_v40 = vld [vmem:[%s3098_s20 + $0xc4] sm:$0xf]  ;;  %v1847_v34 = vld [vmem:[%s3098_s20 + $0xc8] sm:$0xf] }
 0x1d8   : >> { %1844 = vst [vmem:[%s3094_s15 + $0xc0] sm:$0xf] %v1843_v33  ;;  %1846 = vst [vmem:[%s3094_s15 + $0xc4] sm:$0xf] %v1845_v40  ;;  %v1849_v57 = vld [vmem:[%s3098_s20 + $0xcc] sm:$0xf] }
 0x1d9   : >> { %1848 = vst [vmem:[%s3094_s15 + $0xc8] sm:$0xf] %v1847_v34  ;;  %v1851_v36 = vld [vmem:[%s3098_s20 + $0xd0] sm:$0xf]  ;;  %v1853_v38 = vld [vmem:[%s3098_s20 + $0xd4] sm:$0xf] }
 0x1da   : >> { %1850 = vst [vmem:[%s3094_s15 + $0xcc] sm:$0xf] %v1849_v57  ;;  %1852 = vst [vmem:[%s3094_s15 + $0xd0] sm:$0xf] %v1851_v36  ;;  %v1855_v19 = vld [vmem:[%s3098_s20 + $0xd8] sm:$0xf] }
 0x1db   : >> { %1854 = vst [vmem:[%s3094_s15 + $0xd4] sm:$0xf] %v1853_v38  ;;  %v1857_v27 = vld [vmem:[%s3098_s20 + $0xdc] sm:$0xf]  ;;  %v1859_v37 = vld [vmem:[%s3098_s20 + $0xe0] sm:$0xf] }
 0x1dc   : >> { %1856 = vst [vmem:[%s3094_s15 + $0xd8] sm:$0xf] %v1855_v19  ;;  %1858 = vst [vmem:[%s3094_s15 + $0xdc] sm:$0xf] %v1857_v27  ;;  %v1861_v29 = vld [vmem:[%s3098_s20 + $0xe4] sm:$0xf] }
 0x1dd   : >> { %1860 = vst [vmem:[%s3094_s15 + $0xe0] sm:$0xf] %v1859_v37  ;;  %v1863_v3 = vld [vmem:[%s3098_s20 + $0xe8] sm:$0xf]  ;;  %v1865_v43 = vld [vmem:[%s3098_s20 + $0xec] sm:$0xf] }
 0x1de   : >> { %1862 = vst [vmem:[%s3094_s15 + $0xe4] sm:$0xf] %v1861_v29  ;;  %1864 = vst [vmem:[%s3094_s15 + $0xe8] sm:$0xf] %v1863_v3  ;;  %v1867_v32 = vld [vmem:[%s3098_s20 + $0xf0] sm:$0xf] }
 0x1df   : >> { %1866 = vst [vmem:[%s3094_s15 + $0xec] sm:$0xf] %v1865_v43  ;;  %v1869_v44 = vld [vmem:[%s3098_s20 + $0xf4] sm:$0xf]  ;;  %v1871_v45 = vld [vmem:[%s3098_s20 + $0xf8] sm:$0xf] }
 0x1e0   : >> { %1868 = vst [vmem:[%s3094_s15 + $0xf0] sm:$0xf] %v1867_v32  ;;  %1870 = vst [vmem:[%s3094_s15 + $0xf4] sm:$0xf] %v1869_v44  ;;  %v1873_v42 = vld [vmem:[%s3098_s20 + $0xfc] sm:$0xf] }
 0x1e1   : >> { %1872 = vst [vmem:[%s3094_s15 + $0xf8] sm:$0xf] %v1871_v45  ;;  %1874 = vst [vmem:[%s3094_s15 + $0xfc] sm:$0xf] %v1873_v42  ;;  %s4047_s6 = smov (%p1876_p11, %s1875_s6), 0  ;;  %s1741_s5 = sadd.s32 1, %s3106_s5  }
 0x1e2   : >> { %s2405_s7 = sshll.u32 %s4047_s6, 8  ;;  %p1740_p12 = scmp.ge.s32.totalorder %s1741_s5, %s3847_s4 }
 0x1e3   : >> { %s1880_s20 = scalar_lea.vmem %s3405_s21, %s2405_s7 [#allocation2]   ;;  %s1881_s15 = scalar_lea.vmem %s3841_s29, %s2405_s7  }
 0x1e4   : >> { %s4040_s23 = smov %s4047_s6  ;;  %1743 = sbr.rel (!%p1740_p12) target bundleno = 439 (0x1b7), region = 118 }
 0x1e9 PF: > { %s4015_s8 = sand.u32 63, %s4045_s25   ;;  %s2481_s10 = sshll.u32 %s3847_s4, 8 }
 0x1ea   : > { %s1886_s11 = scalar_lea.vmem %s3405_s21, %s2481_s10 [#allocation2]   ;;  %s1888_s14 = scalar_lea.vmem %s3841_s29, %s2481_s10  }
 0x1eb   : > { %p2410_p13 = scmp.le.s32.totalorder %s4015_s8, 0 }
 0x1ec   : > { %s3108_s17 = smov (!%p2410_p13), %s1888_s14   ;;  %s3112_s18 = smov (!%p2410_p13), %s1886_s11  }
 0x1ed   : > { %2151 = sbr.rel (%p2410_p13) target bundleno = 506 (0x1fa), region = 123  ;;  %s3116_s9 = smov (!%p2410_p13), 0  }
 0x1ee   : > { %s3120_s12 = smov (!%p2410_p13), 0  }
 0x1f2 LB: >> { %v1898_v53 = vld [vmem:[%s3114_s18] sm:$0xf]  ;;  %s1900_s22 = sadd.s32 1, %s3118_s9  ;;  %s1892_s12 = sadd.s32 1, %s3122_s12   ;;  %s3122_s12 = sphi %s3120_s12, %s1892_s12   ;;  %s3118_s9 = sphi %s3116_s9, %s3117_s9   ;;  %s3114_s18 = sphi %s3112_s18, %s1905_s18   ;;  %s3110_s17 = sphi %s3108_s17, %s1906_s17  }
 0x1f3   : >> { %1899 = vst [vmem:[%s3110_s17] sm:$0xf] %v1898_v53  ;;  %p1901_p0 = scmp.ge.s32.totalorder %s1900_s22, %s4015_s8  ;;  %p1891_p1 = scmp.ge.s32.totalorder %s1892_s12, %s4015_s8 }
 0x1f5   : >> { %s4049_s22 = smov (%p1901_p0, %s1900_s22), 0  ;;  %1894 = sbr.rel (!%p1891_p1) target bundleno = 498 (0x1f2), region = 129 }
 0x1f6   : >> { %s2411_s21 = sshll.u32 %s4049_s22, 2  ;;  %s3117_s9 = smov %s4049_s22  }
 0x1f7   : >> { %s1905_s18 = scalar_lea.vmem %s1886_s11, %s2411_s21 [#allocation2]   ;;  %s1906_s17 = scalar_lea.vmem %s1888_s14, %s2411_s21  }
 0x1fa PF: > { %p10_p2 = scmp.ge.s32.totalorder %s3160_s16, 4   ;;  %s4041_s12 = smov %s3086_s13 }
 0x1fb   : > { %s4042_s13 = smov %s3168_s19  ;;  %s4043_s14 = smov %s3160_s16 }
 0x1fc   :  { %12 = sbr.rel (!%p10_p2) target bundleno = 2 (0x2), region = 140 }

// kernel: forward.5
= control target key start
LH: loop header
LB: loop body
LE: loop exit
PB: predicated region body
PF: predicated region fallthrough
CT: control target
= control target key end

     0   :  { %s1902_s1 = inlined_call_operand.vmem [shape: bf16[512,128], index: 1, kind: input, shape index: {}]   ;;  %s1903_s0 = inlined_call_operand.vmem [shape: bf16[162,512], index: 0, kind: input, shape index: {}]   ;;  %s1904_s2 = inlined_call_operand.vmem [shape: f32[1,128], index: 2, kind: input, shape index: {}]   ;;  %s1905_s3 = inlined_call_operand.vmem [shape: bf16[162,128], index: 3, kind: output, shape index: {}]  }
   0x1   :  { %v1373_v0 = vld [vmem:[%s1902_s1 + $0x78] sm:$0xff]   ;;  %v1377_v4 = vld [vmem:[%s1902_s1 + $0x70] sm:$0xff]   ;;  %v1381_v8 = vld [vmem:[%s1902_s1 + $0x68] sm:$0xff]  }
   0x2   :  { %v1374_v1 = vld [vmem:[%s1902_s1 + $0xf8] sm:$0xff]   ;;  %1209 = vmatprep.subr.bf16.mxu0 %v1373_v0  ;;  %v1378_v5 = vld [vmem:[%s1902_s1 + $0xf0] sm:$0xff]   ;;  %v1382_v9 = vld [vmem:[%s1902_s1 + $0xe8] sm:$0xff]  }
   0x3   :  { %v1375_v2 = vld [vmem:[%s1902_s1 + $0x38] sm:$0xff]   ;;  %1291 = vmatprep.subr.bf16.mxu1 %v1374_v1  ;;  %v1379_v6 = vld [vmem:[%s1902_s1 + $0x30] sm:$0xff]   ;;  %v1383_v10 = vld [vmem:[%s1902_s1 + $0x28] sm:$0xff]  }
   0x4   :  { %v1376_v3 = vld [vmem:[%s1902_s1 + $0xb8] sm:$0xff]   ;;  %1210 = vmatpush3.bf16.msra.mxu0 %v1375_v2  ;;  %v1380_v7 = vld [vmem:[%s1902_s1 + $0xb0] sm:$0xff]   ;;  %v1384_v11 = vld [vmem:[%s1902_s1 + $0xa8] sm:$0xff]  }
   0x5   :  { %1292 = vmatpush3.bf16.msra.mxu1 %v1376_v3  ;;  %1211 = vmatprep.subr.bf16.mxu0 %v1377_v4  ;;  %v1385_v12 = vld [vmem:[%s1902_s1 + $0x60] sm:$0xff]   ;;  %v1389_v16 = vld [vmem:[%s1902_s1 + $0x58] sm:$0xff]   ;;  %v1393_v20 = vld [vmem:[%s1902_s1 + $0x50] sm:$0xff]  }
   0x6   :  { %1293 = vmatprep.subr.bf16.mxu1 %v1378_v5  ;;  %v1386_v13 = vld [vmem:[%s1902_s1 + $0xe0] sm:$0xff]   ;;  %v1390_v17 = vld [vmem:[%s1902_s1 + $0xd8] sm:$0xff]   ;;  %v1394_v21 = vld [vmem:[%s1902_s1 + $0xd0] sm:$0xff]  }
   0x7   :  { %v1387_v14 = vld [vmem:[%s1902_s1 + $0x20] sm:$0xff]   ;;  %v1391_v18 = vld [vmem:[%s1902_s1 + $0x18] sm:$0xff]   ;;  %v1395_v22 = vld [vmem:[%s1902_s1 + $0x10] sm:$0xff]  }
   0x8   :  { %1212 = vmatpush3.bf16.msra.mxu0 %v1379_v6  ;;  %v1388_v15 = vld [vmem:[%s1902_s1 + $0xa0] sm:$0xff]   ;;  %v1392_v19 = vld [vmem:[%s1902_s1 + $0x98] sm:$0xff]   ;;  %v1396_v23 = vld [vmem:[%s1902_s1 + $0x90] sm:$0xff]  }
   0x9   :  { %1294 = vmatpush3.bf16.msra.mxu1 %v1380_v7  ;;  %1213 = vmatprep.subr.bf16.mxu0 %v1381_v8  ;;  %v1397_v24 = vld [vmem:[%s1902_s1 + $0x48] sm:$0xff]   ;;  %v1401_v28 = vld [vmem:[%s1902_s1 + $0x40] sm:$0xff]  }
   0xa   :  { %1295 = vmatprep.subr.bf16.mxu1 %v1382_v9  ;;  %v1398_v25 = vld [vmem:[%s1902_s1 + $0xc8] sm:$0xff]   ;;  %v1402_v29 = vld [vmem:[%s1902_s1 + $0xc0] sm:$0xff]  }
   0xb   :  { %v1399_v26 = vld [vmem:[%s1902_s1 + $0x8] sm:$0xff]   ;;  %v1403_v30 = vld [vmem:[%s1902_s1] sm:$0xff]  }
   0xc   :  { %1214 = vmatpush3.bf16.msra.mxu0 %v1383_v10  ;;  %v1400_v27 = vld [vmem:[%s1902_s1 + $0x88] sm:$0xff]   ;;  %v1404_v31 = vld [vmem:[%s1902_s1 + $0x80] sm:$0xff]  }
   0xd   :  { %1296 = vmatpush3.bf16.msra.mxu1 %v1384_v11  ;;  %1215 = vmatprep.subr.bf16.mxu0 %v1385_v12  ;;  %v1405_v32 = vld [vmem:[%s1903_s0] ss:$16 sps:$4 sm:$0xff]   ;;  %v1407_v33 = vld [vmem:[%s1903_s0 + $0x4] ss:$16 sps:$4 sm:$0xff]   ;;  %v1408_v34 = vld [vmem:[%s1903_s0 + $0x8] ss:$16 sps:$4 sm:$0xff]  }
   0xe   :  { %1297 = vmatprep.subr.bf16.mxu1 %v1386_v13  ;;  %v1410_v35 = vld [vmem:[%s1903_s0 + $0xc] ss:$16 sps:$4 sm:$0xff]   ;;  %566 = vmatprep.mubr.bf16.mxu0 %v1407_v33  ;;  %v1411_v36 = vld [vmem:[%s1903_s0 + $0x24] ss:$16 sps:$4 sm:$0xff]   ;;  %v1415_v38 = vld [vmem:[%s1903_s0 + $0x20] ss:$16 sps:$4 sm:$0xff]  }
   0xf   :  { %686 = vmatprep.mubr.bf16.mxu1 %v1410_v35  ;;  %v1413_v37 = vld [vmem:[%s1903_s0 + $0x2c] ss:$16 sps:$4 sm:$0xff]   ;;  %v1416_v39 = vld [vmem:[%s1903_s0 + $0x28] ss:$16 sps:$4 sm:$0xff]   ;;  %v1417_v40 = vld [vmem:[%s1903_s0 + $0x44] ss:$16 sps:$4 sm:$0xff]  }
  0x10   :  { %1216 = vmatpush3.bf16.msra.mxu0 %v1387_v14  ;;  %v1419_v41 = vld [vmem:[%s1903_s0 + $0x4c] ss:$16 sps:$4 sm:$0xff]   ;;  %v1421_v42 = vld [vmem:[%s1903_s0 + $0x40] ss:$16 sps:$4 sm:$0xff]   ;;  %v1422_v43 = vld [vmem:[%s1903_s0 + $0x48] ss:$16 sps:$4 sm:$0xff]  }
  0x11   :  { %1298 = vmatpush3.bf16.msra.mxu1 %v1388_v15  ;;  %1217 = vmatprep.subr.bf16.mxu0 %v1389_v16  ;;  %v1423_v44 = vld [vmem:[%s1903_s0 + $0x64] ss:$16 sps:$4 sm:$0xff]   ;;  %v1425_v45 = vld [vmem:[%s1903_s0 + $0x6c] ss:$16 sps:$4 sm:$0xff]   ;;  %v1427_v46 = vld [vmem:[%s1903_s0 + $0x60] ss:$16 sps:$4 sm:$0xff]  }
  0x12   :  { %1299 = vmatprep.subr.bf16.mxu1 %v1390_v17  ;;  %v1428_v47 = vld [vmem:[%s1903_s0 + $0x68] ss:$16 sps:$4 sm:$0xff]   ;;  %v1429_v48 = vld [vmem:[%s1903_s0 + $0x84] ss:$16 sps:$4 sm:$0xff]   ;;  %v1431_v49 = vld [vmem:[%s1903_s0 + $0x8c] ss:$16 sps:$4 sm:$0xff]  }
  0x13   :  { %v1433_v50 = vld [vmem:[%s1903_s0 + $0x80] ss:$16 sps:$4 sm:$0xff]   ;;  %v1434_v51 = vld [vmem:[%s1903_s0 + $0x88] ss:$16 sps:$4 sm:$0xff]   ;;  %v1435_v52 = vld [vmem:[%s1903_s0 + $0xa4] ss:$16 sps:$4 sm:$0xff]  }
  0x14   :  { %1218 = vmatpush3.bf16.msra.mxu0 %v1391_v18  ;;  %v1437_v53 = vld [vmem:[%s1903_s0 + $0xac] ss:$16 sps:$4 sm:$0xff]   ;;  %v1439_v54 = vld [vmem:[%s1903_s0 + $0xa0] ss:$16 sps:$4 sm:$0xff]   ;;  %v1440_v55 = vld [vmem:[%s1903_s0 + $0xa8] ss:$16 sps:$4 sm:$0xff]  }
  0x15   :  { %1300 = vmatpush3.bf16.msra.mxu1 %v1392_v19  ;;  %1219 = vmatprep.subr.bf16.mxu0 %v1393_v20  ;;  %v1441_v56 = vld [vmem:[%s1903_s0 + $0xc4] ss:$16 sps:$4 sm:$0xff]   ;;  %v1443_v57 = vld [vmem:[%s1903_s0 + $0xcc] ss:$16 sps:$4 sm:$0xff]   ;;  %v1445_v58 = vld [vmem:[%s1903_s0 + $0xc0] ss:$16 sps:$4 sm:$0xff]  }
  0x16   :  { %1301 = vmatprep.subr.bf16.mxu1 %v1394_v21  ;;  %v1446_v59 = vld [vmem:[%s1903_s0 + $0xc8] ss:$16 sps:$4 sm:$0xff]   ;;  %v1447_v60 = vld [vmem:[%s1903_s0 + $0xe4] ss:$16 sps:$4 sm:$0xff]   ;;  %v1449_v61 = vld [vmem:[%s1903_s0 + $0xec] ss:$16 sps:$4 sm:$0xff]  }
  0x17   :  { %v1451_v62 = vld [vmem:[%s1903_s0 + $0xe0] ss:$16 sps:$4 sm:$0xff]   ;;  %v1452_v63 = vld [vmem:[%s1903_s0 + $0xe8] ss:$16 sps:$4 sm:$0xff]   ;;  %v1453_v0 = vld [vmem:[%s1903_s0 + $0x104] ss:$16 sps:$4 sm:$0xff]  }
  0x18   :  { %1220 = vmatpush3.bf16.msra.mxu0 %v1395_v22  ;;  %v1455_v1 = vld [vmem:[%s1903_s0 + $0x10c] ss:$16 sps:$4 sm:$0xff]   ;;  %v1457_v2 = vld [vmem:[%s1903_s0 + $0x100] ss:$16 sps:$4 sm:$0xff]   ;;  %v1458_v3 = vld [vmem:[%s1903_s0 + $0x108] ss:$16 sps:$4 sm:$0xff]  }
  0x19   :  { %1302 = vmatpush3.bf16.msra.mxu1 %v1396_v23  ;;  %1221 = vmatprep.subr.bf16.mxu0 %v1397_v24  ;;  %v1459_v4 = vld [vmem:[%s1903_s0 + $0x124] ss:$16 sps:$4 sm:$0xff]   ;;  %v1461_v5 = vld [vmem:[%s1903_s0 + $0x12c] ss:$16 sps:$4 sm:$0xff]   ;;  %v1463_v8 = vld [vmem:[%s1903_s0 + $0x120] ss:$16 sps:$4 sm:$0xff]  }
  0x1a   :  { %1303 = vmatprep.subr.bf16.mxu1 %v1398_v25  ;;  %v55_v6 = vld [vmem:[%s1903_s0 + $0x140] sm:$0x11]  ;;  %v56_v7 = vld [vmem:[%s1903_s0 + $0x148] sm:$0x11] }
  0x1b   :  { %v1464_v9 = vld [vmem:[%s1903_s0 + $0x128] ss:$16 sps:$4 sm:$0xff]   ;;  %v1052_v10 = vcombine.high %v55_v6, %v55_v6  ;;  %v1054_v11 = vcombine.high %v56_v7, %v56_v7  ;;  %v1051_v12 = vcombine.low %v55_v6, %v55_v6  ;;  %v1053_v13 = vcombine.low %v56_v7, %v56_v7  ;;  %v1756_v16 = vld [vmem:[%s1904_s2] ss:$0 sm:$0xff] }
  0x1c   :  { %1222 = vmatpush3.bf16.msra.mxu0 %v1399_v26 }
  0x1d   :  { %1304 = vmatpush3.bf16.msra.mxu1 %v1400_v27  ;;  %1223 = vmatprep.subr.bf16.mxu0 %v1401_v28 }
  0x1e   :  { %1305 = vmatprep.subr.bf16.mxu1 %v1402_v29 }
  0x20   :  { %1224 = vmatpush3.bf16.msra.mxu0 %v1403_v30 }
  0x21   :  { %1306 = vmatpush3.bf16.msra.mxu1 %v1404_v31 }
  0x23   :  { %567 = vmatmul.mubr.bf16.vlgmr.msra.gmra.mxu0 %v1405_v32 }
  0x24   :  { %687 = vmatmul.mubr.bf16.vlgmr.msra.gmra.mxu1 %v1408_v34  ;;  %574 = vmatprep.mubr.bf16.mxu0 %v1411_v36 }
  0x25   :  { %694 = vmatprep.mubr.bf16.mxu1 %v1413_v37 }
  0x2b   :  { %575 = vmatmul.mubr.bf16.gmra.mxu0 %v1415_v38 }
  0x2c   :  { %695 = vmatmul.mubr.bf16.gmra.mxu1 %v1416_v39  ;;  %582 = vmatprep.mubr.bf16.mxu0 %v1417_v40 }
  0x2d   :  { %702 = vmatprep.mubr.bf16.mxu1 %v1419_v41 }
  0x33   :  { %583 = vmatmul.mubr.bf16.gmra.mxu0 %v1421_v42 }
  0x34   :  { %703 = vmatmul.mubr.bf16.gmra.mxu1 %v1422_v43  ;;  %590 = vmatprep.mubr.bf16.mxu0 %v1423_v44 }
  0x35   :  { %710 = vmatprep.mubr.bf16.mxu1 %v1425_v45 }
  0x3b   :  { %591 = vmatmul.mubr.bf16.gmra.mxu0 %v1427_v46 }
  0x3c   :  { %711 = vmatmul.mubr.bf16.gmra.mxu1 %v1428_v47  ;;  %598 = vmatprep.mubr.bf16.mxu0 %v1429_v48 }
  0x3d   :  { %718 = vmatprep.mubr.bf16.mxu1 %v1431_v49 }
  0x43   :  { %599 = vmatmul.mubr.bf16.gmra.mxu0 %v1433_v50 }
  0x44   :  { %719 = vmatmul.mubr.bf16.gmra.mxu1 %v1434_v51  ;;  %606 = vmatprep.mubr.bf16.mxu0 %v1435_v52 }
  0x45   :  { %726 = vmatprep.mubr.bf16.mxu1 %v1437_v53 }
  0x4b   :  { %607 = vmatmul.mubr.bf16.gmra.mxu0 %v1439_v54 }
  0x4c   :  { %727 = vmatmul.mubr.bf16.gmra.mxu1 %v1440_v55  ;;  %614 = vmatprep.mubr.bf16.mxu0 %v1441_v56 }
  0x4d   :  { %734 = vmatprep.mubr.bf16.mxu1 %v1443_v57 }
  0x53   :  { %615 = vmatmul.mubr.bf16.gmra.mxu0 %v1445_v58 }
  0x54   :  { %735 = vmatmul.mubr.bf16.gmra.mxu1 %v1446_v59  ;;  %622 = vmatprep.mubr.bf16.mxu0 %v1447_v60 }
  0x55   :  { %742 = vmatprep.mubr.bf16.mxu1 %v1449_v61 }
  0x5b   :  { %623 = vmatmul.mubr.bf16.gmra.mxu0 %v1451_v62 }
  0x5c   :  { %743 = vmatmul.mubr.bf16.gmra.mxu1 %v1452_v63  ;;  %630 = vmatprep.mubr.bf16.mxu0 %v1453_v0 }
  0x5d   :  { %750 = vmatprep.mubr.bf16.mxu1 %v1455_v1 }
  0x63   :  { %631 = vmatmul.mubr.bf16.gmra.mxu0 %v1457_v2 }
  0x64   :  { %751 = vmatmul.mubr.bf16.gmra.mxu1 %v1458_v3  ;;  %638 = vmatprep.mubr.bf16.mxu0 %v1459_v4 }
  0x65   :  { %758 = vmatprep.mubr.bf16.mxu1 %v1461_v5 }
  0x6b   :  { %639 = vmatmul.mubr.bf16.gmra.mxu0 %v1463_v8 }
  0x6c   :  { %759 = vmatmul.mubr.bf16.gmra.mxu1 %v1464_v9  ;;  %646 = vmatprep.mubr.bf16.mxu0 %v1052_v10 }
  0x6d   :  { %766 = vmatprep.mubr.bf16.mxu1 %v1054_v11 }
  0x73   :  { %647 = vmatmul.mubr.bf16.gmra.mxu0 %v1051_v12 }
  0x74   :  { %767 = vmatmul.mubr.bf16.gmra.mxu1 %v1053_v13 }
  0xe3   :  { %v1225_v14 = vpop.f32.mrf.mxu0 }
  0xe4   :  { %v1307_v15 = vpop.f32.mrf.mxu1 }
  0xe5   :  { %v1226_v17 = vpop.f32.mrf.mxu0 }
  0xe6   :  { %v1227_v18 = vadd.f32 %v1226_v17, %v1225_v14  ;;  %v1308_v19 = vpop.f32.mrf.mxu1 }
  0xe7   :  { %v1228_v20 = vpop.f32.mrf.mxu0  ;;  %v1309_v22 = vadd.f32 %v1308_v19, %v1307_v15 }
  0xe8   :  { %v569_v21 = vadd.f32 %v1227_v18, %v1756_v16  ;;  %v1310_v23 = vpop.f32.mrf.mxu1 }
  0xe9   :  { %v1229_v24 = vpop.f32.mrf.mxu0 }
  0xea   :  { %v1759_v25 = vadd.f32 %v1309_v22, %v569_v21  ;;  %v1230_v26 = vadd.f32 %v1229_v24, %v1228_v20  ;;  %v1311_v27 = vpop.f32.mrf.mxu1 }
  0xeb   :  { %v1231_v28 = vpop.f32.mrf.mxu0  ;;  %v1312_v31 = vadd.f32 %v1311_v27, %v1310_v23 }
  0xec   :  { %v795_v29 = vmin.f32 %v1759_v25, 0.0  ;;  %v572_v30 = vadd.f32 %v1230_v26, %v1756_v16  ;;  %v1313_v32 = vpop.f32.mrf.mxu1  ;;  %vm774_vm0 = vcmp.gt.f32.partialorder %v1759_v25, 0.0 }
  0xed   :  { %v1232_v33 = vpop.f32.mrf.mxu0 }
  0xee   :  { %v816_v34 = vmul.f32 1.442695, %v795_v29  ;;  %v1763_v35 = vadd.f32 %v1312_v31, %v572_v30  ;;  %v1233_v36 = vadd.f32 %v1232_v33, %v1231_v28  ;;  %v1314_v37 = vpop.f32.mrf.mxu1 }
  0xef   :  { %v1234_v38 = vpop.f32.mrf.mxu0  ;;  %v1315_v41 = vadd.f32 %v1314_v37, %v1313_v32 }
  0xf0   :  { %1469 = vpow2.f32 %v816_v34  ;;  %v796_v39 = vmin.f32 %v1763_v35, 0.0  ;;  %v577_v40 = vadd.f32 %v1233_v36, %v1756_v16  ;;  %v1316_v42 = vpop.f32.mrf.mxu1  ;;  %vm775_vm1 = vcmp.gt.f32.partialorder %v1763_v35, 0.0 }
  0xf1   :  { %v1235_v43 = vpop.f32.mrf.mxu0 }
  0xf2   :  { %v818_v44 = vmul.f32 1.442695, %v796_v39  ;;  %v1767_v45 = vadd.f32 %v1315_v41, %v577_v40  ;;  %v1236_v46 = vadd.f32 %v1235_v43, %v1234_v38  ;;  %v1317_v47 = vpop.f32.mrf.mxu1 }
  0xf3   :  { %v1237_v48 = vpop.f32.mrf.mxu0  ;;  %v1318_v51 = vadd.f32 %v1317_v47, %v1316_v42 }
  0xf4   :  { %1471 = vpow2.f32 %v818_v44  ;;  %v797_v49 = vmin.f32 %v1767_v45, 0.0  ;;  %v580_v50 = vadd.f32 %v1236_v46, %v1756_v16  ;;  %v1319_v52 = vpop.f32.mrf.mxu1  ;;  %vm776_vm2 = vcmp.gt.f32.partialorder %v1767_v45, 0.0 }
  0xf5   :  { %v1238_v53 = vpop.f32.mrf.mxu0 }
  0xf6   :  { %v820_v54 = vmul.f32 1.442695, %v797_v49  ;;  %v1771_v55 = vadd.f32 %v1318_v51, %v580_v50  ;;  %v1239_v56 = vadd.f32 %v1238_v53, %v1237_v48  ;;  %v1320_v57 = vpop.f32.mrf.mxu1 }
  0xf7   :  { %v1240_v58 = vpop.f32.mrf.mxu0  ;;  %v1321_v61 = vadd.f32 %v1320_v57, %v1319_v52 }
  0xf8   :  { %1473 = vpow2.f32 %v820_v54  ;;  %v798_v59 = vmin.f32 %v1771_v55, 0.0  ;;  %v585_v60 = vadd.f32 %v1239_v56, %v1756_v16  ;;  %v1322_v62 = vpop.f32.mrf.mxu1  ;;  %vm777_vm3 = vcmp.gt.f32.partialorder %v1771_v55, 0.0 }
  0xf9   :  { %v1241_v63 = vpop.f32.mrf.mxu0 }
  0xfa   :  { %v822_v0 = vmul.f32 1.442695, %v798_v59  ;;  %v1775_v1 = vadd.f32 %v1321_v61, %v585_v60  ;;  %v1242_v2 = vadd.f32 %v1241_v63, %v1240_v58  ;;  %v1323_v3 = vpop.f32.mrf.mxu1 }
  0xfb   :  { %v1243_v4 = vpop.f32.mrf.mxu0  ;;  %v1324_v7 = vadd.f32 %v1323_v3, %v1322_v62 }
  0xfc   :  { %1475 = vpow2.f32 %v822_v0  ;;  %v799_v5 = vmin.f32 %v1775_v1, 0.0  ;;  %v588_v6 = vadd.f32 %v1242_v2, %v1756_v16  ;;  %v1325_v8 = vpop.f32.mrf.mxu1  ;;  %vm778_vm4 = vcmp.gt.f32.partialorder %v1775_v1, 0.0 }
  0xfd   :  { %v1470_v9 = vpop.eup %1469  ;;  %v1244_v10 = vpop.f32.mrf.mxu0 }
  0xfe   :  { %v824_v11 = vmul.f32 1.442695, %v799_v5  ;;  %v1779_v12 = vadd.f32 %v1324_v7, %v588_v6  ;;  %v1245_v13 = vadd.f32 %v1244_v10, %v1243_v4  ;;  %v1326_v14 = vpop.f32.mrf.mxu1  ;;  %v1087_v15 = vadd.f32 -1.0, %v1470_v9 }
  0xff   :  { %v1246_v17 = vpop.f32.mrf.mxu0  ;;  %v1327_v22 = vadd.f32 %v1326_v14, %v1325_v8 }
 0x100   :  { %1477 = vpow2.f32 %v824_v11  ;;  %v800_v18 = vmin.f32 %v1779_v12, 0.0  ;;  %v1328_v19 = vpop.f32.mrf.mxu1  ;;  %v593_v21 = vadd.f32 %v1245_v13, %v1756_v16  ;;  %v879_v29 = vsel %vm774_vm0, %v1759_v25, %v1087_v15 }
 0x101   :  { %v1472_v20 = vpop.eup %1471  ;;  %v1247_v23 = vpop.f32.mrf.mxu0  ;;  %vm779_vm5 = vcmp.gt.f32.partialorder %v1779_v12, 0.0 }
 0x102   :  { %v1088_v24 = vadd.f32 -1.0, %v1472_v20  ;;  %v826_v26 = vmul.f32 1.442695, %v800_v18  ;;  %v1248_v27 = vadd.f32 %v1247_v23, %v1246_v17  ;;  %v1329_v28 = vpop.f32.mrf.mxu1  ;;  %v1786_v30 = vadd.f32 %v1327_v22, %v593_v21 }
 0x103   :  { %v1249_v31 = vpop.f32.mrf.mxu0  ;;  %v1330_v34 = vadd.f32 %v1329_v28, %v1328_v19 }
 0x104   :  { %v880_v32 = vsel %vm775_vm1, %v1763_v35, %v1088_v24  ;;  %1479 = vpow2.f32 %v826_v26  ;;  %v596_v33 = vadd.f32 %v1248_v27, %v1756_v16  ;;  %v1331_v36 = vpop.f32.mrf.mxu1  ;;  %v801_v39 = vmin.f32 %v1786_v30, 0.0 }
 0x105   :  { %v1474_v37 = vpop.eup %1473  ;;  %v1153_v38 = vpack.c.bf16 %v880_v32, %v879_v29  ;;  %v1250_v40 = vpop.f32.mrf.mxu0  ;;  %vm780_vm6 = vcmp.gt.f32.partialorder %v1786_v30, 0.0 }
 0x106   :  { %v1791_v41 = vadd.f32 %v1330_v34, %v596_v33  ;;  %v1251_v25 = vadd.f32 %v1250_v40, %v1249_v31  ;;  %v1332_v42 = vpop.f32.mrf.mxu1  ;;  %v828_v43 = vmul.f32 1.442695, %v801_v39  ;;  %v1089_v44 = vadd.f32 -1.0, %v1474_v37 }
 0x107   :  { %1154 = vst [vmem:[%s1905_s3] sm:$0xff] %v1153_v38   ;;  %v1252_v35 = vpop.f32.mrf.mxu0  ;;  %v1333_v48 = vadd.f32 %v1332_v42, %v1331_v36 }
 0x108   :  { %v802_v46 = vmin.f32 %v1791_v41, 0.0  ;;  %v601_v47 = vadd.f32 %v1251_v25, %v1756_v16  ;;  %v1334_v49 = vpop.f32.mrf.mxu1  ;;  %1481 = vpow2.f32 %v828_v43  ;;  %v881_v59 = vsel %vm776_vm2, %v1767_v45, %v1089_v44 }
 0x109   :  { %v1476_v50 = vpop.eup %1475  ;;  %v1253_v51 = vpop.f32.mrf.mxu0  ;;  %vm781_vm7 = vcmp.gt.f32.partialorder %v1791_v41, 0.0 }
 0x10a   :  { %v1090_v52 = vadd.f32 -1.0, %v1476_v50  ;;  %v830_v53 = vmul.f32 1.442695, %v802_v46  ;;  %v1798_v54 = vadd.f32 %v1333_v48, %v601_v47  ;;  %v1254_v56 = vadd.f32 %v1253_v51, %v1252_v35  ;;  %v1335_v57 = vpop.f32.mrf.mxu1 }
 0x10b   :  { %v1255_v58 = vpop.f32.mrf.mxu0  ;;  %v1336_v3 = vadd.f32 %v1335_v57, %v1334_v49 }
 0x10c   :  { %v882_v60 = vsel %vm777_vm3, %v1771_v55, %v1090_v52  ;;  %1483 = vpow2.f32 %v830_v53  ;;  %v803_v61 = vmin.f32 %v1798_v54, 0.0  ;;  %v1337_v62 = vpop.f32.mrf.mxu1  ;;  %v604_v2 = vadd.f32 %v1254_v56, %v1756_v16 }
 0x10d   :  { %v1478_v63 = vpop.eup %1477  ;;  %v1158_v0 = vpack.c.bf16 %v882_v60, %v881_v59  ;;  %v1256_v4 = vpop.f32.mrf.mxu0  ;;  %vm782_vm8 = vcmp.gt.f32.partialorder %v1798_v54, 0.0 }
 0x10e   :  { %v832_v5 = vmul.f32 1.442695, %v803_v61  ;;  %v1257_v6 = vadd.f32 %v1256_v4, %v1255_v58  ;;  %v1338_v7 = vpop.f32.mrf.mxu1  ;;  %v1091_v45 = vadd.f32 -1.0, %v1478_v63  ;;  %v1809_v8 = vadd.f32 %v1336_v3, %v604_v2 }
 0x10f   :  { %1200 = vst [vmem:[%s1905_s3 + $0x8] sm:$0xff] %v1158_v0   ;;  %v1258_v55 = vpop.f32.mrf.mxu0  ;;  %v1339_v10 = vadd.f32 %v1338_v7, %v1337_v62 }
 0x110   :  { %v609_v9 = vadd.f32 %v1257_v6, %v1756_v16  ;;  %v1340_v11 = vpop.f32.mrf.mxu1  ;;  %1485 = vpow2.f32 %v832_v5  ;;  %v804_v14 = vmin.f32 %v1809_v8, 0.0  ;;  %v883_v21 = vsel %vm778_vm4, %v1775_v1, %v1091_v45 }
 0x111   :  { %v1480_v13 = vpop.eup %1479  ;;  %v1259_v15 = vpop.f32.mrf.mxu0  ;;  %vm783_vm9 = vcmp.gt.f32.partialorder %v1809_v8, 0.0 }
 0x112   :  { %v1092_v17 = vadd.f32 -1.0, %v1480_v13  ;;  %v1814_v18 = vadd.f32 %v1339_v10, %v609_v9  ;;  %v1260_v19 = vadd.f32 %v1259_v15, %v1258_v55  ;;  %v1341_v20 = vpop.f32.mrf.mxu1  ;;  %v834_v22 = vmul.f32 1.442695, %v804_v14 }
 0x113   :  { %v1261_v23 = vpop.f32.mrf.mxu0  ;;  %v1342_v28 = vadd.f32 %v1341_v20, %v1340_v11 }
 0x114   :  { %v884_v24 = vsel %vm779_vm5, %v1779_v12, %v1092_v17  ;;  %v805_v26 = vmin.f32 %v1814_v18, 0.0  ;;  %v612_v27 = vadd.f32 %v1260_v19, %v1756_v16  ;;  %v1343_v29 = vpop.f32.mrf.mxu1  ;;  %1487 = vpow2.f32 %v834_v22 }
 0x115   :  { %v1163_v31 = vpack.c.bf16 %v884_v24, %v883_v21  ;;  %v1262_v32 = vpop.f32.mrf.mxu0  ;;  %v1482_v33 = vpop.eup %1481  ;;  %vm784_vm10 = vcmp.gt.f32.partialorder %v1814_v18, 0.0 }
 0x116   :  { %v836_v34 = vmul.f32 1.442695, %v805_v26  ;;  %v1821_v36 = vadd.f32 %v1342_v28, %v612_v27  ;;  %v1263_v1 = vadd.f32 %v1262_v32, %v1261_v23  ;;  %v1344_v37 = vpop.f32.mrf.mxu1  ;;  %v1093_v12 = vadd.f32 -1.0, %v1482_v33 }
 0x117   :  { %1201 = vst [vmem:[%s1905_s3 + $0x10] sm:$0xff] %v1163_v31   ;;  %v1264_v38 = vpop.f32.mrf.mxu0  ;;  %v1345_v25 = vadd.f32 %v1344_v37, %v1343_v29 }
 0x118   :  { %1489 = vpow2.f32 %v836_v34  ;;  %v806_v39 = vmin.f32 %v1821_v36, 0.0  ;;  %v617_v40 = vadd.f32 %v1263_v1, %v1756_v16  ;;  %v1346_v42 = vpop.f32.mrf.mxu1  ;;  %v885_v51 = vsel %vm780_vm6, %v1786_v30, %v1093_v12 }
 0x119   :  { %v1484_v43 = vpop.eup %1483  ;;  %v1265_v35 = vpop.f32.mrf.mxu0  ;;  %vm785_vm11 = vcmp.gt.f32.partialorder %v1821_v36, 0.0 }
 0x11a   :  { %v1094_v44 = vadd.f32 -1.0, %v1484_v43  ;;  %v838_v46 = vmul.f32 1.442695, %v806_v39  ;;  %v1828_v47 = vadd.f32 %v1345_v25, %v617_v40  ;;  %v1266_v48 = vadd.f32 %v1265_v35, %v1264_v38  ;;  %v1347_v49 = vpop.f32.mrf.mxu1 }
 0x11b   :  { %v1267_v50 = vpop.f32.mrf.mxu0  ;;  %v1348_v59 = vadd.f32 %v1347_v49, %v1346_v42 }
 0x11c   :  { %v886_v52 = vsel %vm781_vm7, %v1791_v41, %v1094_v44  ;;  %1491 = vpow2.f32 %v838_v46  ;;  %v807_v53 = vmin.f32 %v1828_v47, 0.0  ;;  %v1349_v56 = vpop.f32.mrf.mxu1  ;;  %v620_v58 = vadd.f32 %v1266_v48, %v1756_v16 }
 0x11d   :  { %v1168_v57 = vpack.c.bf16 %v886_v52, %v885_v51  ;;  %v1268_v60 = vpop.f32.mrf.mxu0  ;;  %v1486_v61 = vpop.eup %1485  ;;  %vm786_vm12 = vcmp.gt.f32.partialorder %v1828_v47, 0.0 }
 0x11e   :  { %v840_v62 = vmul.f32 1.442695, %v807_v53  ;;  %v1269_v63 = vadd.f32 %v1268_v60, %v1267_v50  ;;  %v1350_v0 = vpop.f32.mrf.mxu1  ;;  %v1839_v30 = vadd.f32 %v1348_v59, %v620_v58  ;;  %v1095_v5 = vadd.f32 -1.0, %v1486_v61 }
 0x11f   :  { %1202 = vst [vmem:[%s1905_s3 + $0x18] sm:$0xff] %v1168_v57   ;;  %v1270_v41 = vpop.f32.mrf.mxu0  ;;  %v1351_v3 = vadd.f32 %v1350_v0, %v1349_v56 }
 0x120   :  { %v625_v2 = vadd.f32 %v1269_v63, %v1756_v16  ;;  %v1352_v4 = vpop.f32.mrf.mxu1  ;;  %1493 = vpow2.f32 %v840_v62  ;;  %v808_v6 = vmin.f32 %v1839_v30, 0.0  ;;  %v887_v22 = vsel %vm782_vm8, %v1798_v54, %v1095_v5 }
 0x121   :  { %v1271_v7 = vpop.f32.mrf.mxu0  ;;  %v1488_v45 = vpop.eup %1487  ;;  %vm787_vm13 = vcmp.gt.f32.partialorder %v1839_v30, 0.0 }
 0x122   :  { %v1843_v55 = vadd.f32 %v1351_v3, %v625_v2  ;;  %v1272_v9 = vadd.f32 %v1271_v7, %v1270_v41  ;;  %v1353_v10 = vpop.f32.mrf.mxu1  ;;  %v1096_v11 = vadd.f32 -1.0, %v1488_v45  ;;  %v842_v13 = vmul.f32 1.442695, %v808_v6 }
 0x123   :  { %v1273_v14 = vpop.f32.mrf.mxu0  ;;  %v1354_v19 = vadd.f32 %v1353_v10, %v1352_v4 }
 0x124   :  { %v809_v15 = vmin.f32 %v1843_v55, 0.0  ;;  %v628_v17 = vadd.f32 %v1272_v9, %v1756_v16  ;;  %v1355_v20 = vpop.f32.mrf.mxu1  ;;  %v888_v23 = vsel %vm783_vm9, %v1809_v8, %v1096_v11  ;;  %1495 = vpow2.f32 %v842_v13 }
 0x125   :  { %v1490_v21 = vpop.eup %1489  ;;  %v1274_v24 = vpop.f32.mrf.mxu0  ;;  %v1173_v26 = vpack.c.bf16 %v888_v23, %v887_v22  ;;  %vm788_vm14 = vcmp.gt.f32.partialorder %v1843_v55, 0.0 }
 0x126   :  { %v844_v27 = vmul.f32 1.442695, %v809_v15  ;;  %v1851_v28 = vadd.f32 %v1354_v19, %v628_v17  ;;  %v1356_v29 = vpop.f32.mrf.mxu1  ;;  %v1097_v31 = vadd.f32 -1.0, %v1490_v21  ;;  %v1275_v32 = vadd.f32 %v1274_v24, %v1273_v14 }
 0x127   :  { %v1276_v33 = vpop.f32.mrf.mxu0  ;;  %1203 = vst [vmem:[%s1905_s3 + $0x20] sm:$0xff] %v1173_v26   ;;  %v1357_v37 = vadd.f32 %v1356_v29, %v1355_v20 }
 0x128   :  { %1497 = vpow2.f32 %v844_v27  ;;  %v810_v34 = vmin.f32 %v1851_v28, 0.0  ;;  %v1358_v54 = vpop.f32.mrf.mxu1  ;;  %v633_v8 = vadd.f32 %v1275_v32, %v1756_v16  ;;  %v889_v42 = vsel %vm784_vm10, %v1814_v18, %v1097_v31 }
 0x129   :  { %v1492_v1 = vpop.eup %1491  ;;  %v1277_v12 = vpop.f32.mrf.mxu0  ;;  %vm789_vm15 = vcmp.gt.f32.partialorder %v1851_v28, 0.0 }
 0x12a   :  { %v1098_v38 = vadd.f32 -1.0, %v1492_v1  ;;  %v846_v39 = vmul.f32 1.442695, %v810_v34  ;;  %v1278_v40 = vadd.f32 %v1277_v12, %v1276_v33  ;;  %v1359_v25 = vpop.f32.mrf.mxu1  ;;  %v1861_v43 = vadd.f32 %v1357_v37, %v633_v8 }
 0x12b   :  { %v1279_v35 = vpop.f32.mrf.mxu0  ;;  %v1360_v48 = vadd.f32 %v1359_v25, %v1358_v54 }
 0x12c   :  { %v890_v44 = vsel %vm785_vm11, %v1821_v36, %v1098_v38  ;;  %1499 = vpow2.f32 %v846_v39  ;;  %v636_v46 = vadd.f32 %v1278_v40, %v1756_v16  ;;  %v1361_v49 = vpop.f32.mrf.mxu1  ;;  %v811_v51 = vmin.f32 %v1861_v43, 0.0 }
 0x12d   :  { %v1178_v50 = vpack.c.bf16 %v890_v44, %v889_v42  ;;  %v1280_v52 = vpop.f32.mrf.mxu0  ;;  %v1494_v53 = vpop.eup %1493  ;;  %vm790_vm0 = vcmp.gt.f32.partialorder %v1861_v43, 0.0 }
 0x12e   :  { %v1866_v56 = vadd.f32 %v1360_v48, %v636_v46  ;;  %v1281_v18 = vadd.f32 %v1280_v52, %v1279_v35  ;;  %v1362_v57 = vpop.f32.mrf.mxu1  ;;  %v848_v58 = vmul.f32 1.442695, %v811_v51  ;;  %v1099_v63 = vadd.f32 -1.0, %v1494_v53 }
 0x12f   :  { %1204 = vst [vmem:[%s1905_s3 + $0x28] sm:$0xff] %v1178_v50   ;;  %v1282_v36 = vpop.f32.mrf.mxu0  ;;  %v1363_v61 = vadd.f32 %v1362_v57, %v1361_v49 }
 0x130   :  { %v812_v59 = vmin.f32 %v1866_v56, 0.0  ;;  %v641_v60 = vadd.f32 %v1281_v18, %v1756_v16  ;;  %v1364_v62 = vpop.f32.mrf.mxu1  ;;  %1501 = vpow2.f32 %v848_v58  ;;  %v891_v14 = vsel %vm786_vm12, %v1828_v47, %v1099_v63 }
 0x131   :  { %v1283_v0 = vpop.f32.mrf.mxu0  ;;  %v1496_v41 = vpop.eup %1495  ;;  %vm791_vm1 = vcmp.gt.f32.partialorder %v1866_v56, 0.0 }
 0x132   :  { %v850_v2 = vmul.f32 1.442695, %v812_v59  ;;  %v761_v3 = vadd.f32 %v1363_v61, %v641_v60  ;;  %v1284_v4 = vadd.f32 %v1283_v0, %v1282_v36  ;;  %v1365_v5 = vpop.f32.mrf.mxu1  ;;  %v1100_v6 = vadd.f32 -1.0, %v1496_v41 }
 0x133   :  { %v1285_v7 = vpop.f32.mrf.mxu0  ;;  %v1366_v10 = vadd.f32 %v1365_v5, %v1364_v62 }
 0x134   :  { %1503 = vpow2.f32 %v850_v2  ;;  %v813_v45 = vmin.f32 %v761_v3, 0.0  ;;  %v644_v9 = vadd.f32 %v1284_v4, %v1756_v16  ;;  %v1367_v11 = vpop.f32.mrf.mxu1  ;;  %v892_v15 = vsel %vm787_vm13, %v1839_v30, %v1100_v6 }
 0x135   :  { %v1498_v13 = vpop.eup %1497  ;;  %v1286_v17 = vpop.f32.mrf.mxu0  ;;  %v1183_v19 = vpack.c.bf16 %v892_v15, %v891_v14  ;;  %vm792_vm2 = vcmp.gt.f32.partialorder %v761_v3, 0.0 }
 0x136   :  { %v852_v20 = vmul.f32 1.442695, %v813_v45  ;;  %v764_v21 = vadd.f32 %v1366_v10, %v644_v9  ;;  %v1368_v22 = vpop.f32.mrf.mxu1  ;;  %v1287_v23 = vadd.f32 %v1286_v17, %v1285_v7  ;;  %v1101_v26 = vadd.f32 -1.0, %v1498_v13 }
 0x137   :  { %v1288_v24 = vpop.f32.mrf.mxu0  ;;  %1205 = vst [vmem:[%s1905_s3 + $0x30] sm:$0xff] %v1183_v19   ;;  %v1369_v32 = vadd.f32 %v1368_v22, %v1367_v11 }
 0x138   :  { %1505 = vpow2.f32 %v852_v20  ;;  %v814_v27 = vmin.f32 %v764_v21, 0.0  ;;  %v1370_v29 = vpop.f32.mrf.mxu1  ;;  %v649_v47 = vadd.f32 %v1287_v23, %v1756_v16  ;;  %v893_v8 = vsel %vm788_vm14, %v1843_v55, %v1101_v26 }
 0x139   :  { %v1500_v31 = vpop.eup %1499  ;;  %v1289_v30 = vpop.f32.mrf.mxu0  ;;  %vm793_vm3 = vcmp.gt.f32.partialorder %v764_v21, 0.0 }
 0x13a   :  { %v1102_v33 = vadd.f32 -1.0, %v1500_v31  ;;  %v854_v34 = vmul.f32 1.442695, %v814_v27  ;;  %v1371_v54 = vpop.f32.mrf.mxu1  ;;  %v769_v1 = vadd.f32 %v1369_v32, %v649_v47 }
 0x13c   :  { %v894_v37 = vsel %vm789_vm15, %v1851_v28, %v1102_v33  ;;  %1507 = vpow2.f32 %v854_v34  ;;  %v815_v38 = vmin.f32 %v769_v1, 0.0  ;;  %vm794_vm4 = vcmp.gt.f32.partialorder %v769_v1, 0.0 }
 0x13d   :  { %v1188_v12 = vpack.c.bf16 %v894_v37, %v893_v8  ;;  %v1502_v39 = vpop.eup %1501 }
 0x13e   :  { %v856_v16 = vmul.f32 1.442695, %v815_v38  ;;  %v1103_v40 = vadd.f32 -1.0, %v1502_v39 }
 0x13f   :  { %1206 = vst [vmem:[%s1905_s3 + $0x38] sm:$0xff] %v1188_v12  }
 0x140   :  { %1509 = vpow2.f32 %v856_v16  ;;  %v895_v55 = vsel %vm790_vm0, %v1861_v43, %v1103_v40 }
 0x141   :  { %v1504_v25 = vpop.eup %1503 }
 0x142   :  { %v1104_v42 = vadd.f32 -1.0, %v1504_v25 }
 0x144   :  { %v896_v28 = vsel %vm791_vm1, %v1866_v56, %v1104_v42 }
 0x145   :  { %v1506_v35 = vpop.eup %1505  ;;  %v1193_v44 = vpack.c.bf16 %v896_v28, %v895_v55 }
 0x146   :  { %v1105_v46 = vadd.f32 -1.0, %v1506_v35 }
 0x147   :  { %1207 = vst [vmem:[%s1905_s3 + $0x40] sm:$0xff] %v1193_v44  }
 0x148   :  { %v897_v50 = vsel %vm792_vm2, %v761_v3, %v1105_v46 }
 0x149   :  { %v1508_v48 = vpop.eup %1507 }
 0x14a   :  { %v1106_v49 = vadd.f32 -1.0, %v1508_v48 }
 0x14c   :  { %v898_v51 = vsel %vm793_vm3, %v764_v21, %v1106_v49 }
 0x14d   :  { %v1198_v52 = vpack.c.bf16 %v898_v51, %v897_v50  ;;  %v1510_v53 = vpop.eup %1509 }
 0x14e   :  { %v1107_v43 = vadd.f32 -1.0, %v1510_v53 }
 0x14f   :  { %1208 = vst [vmem:[%s1905_s3 + $0x48] sm:$0xff] %v1198_v52  }
 0x150   :  { %v899_v56 = vsel %vm794_vm4, %v769_v1, %v1107_v43 }
 0x151   :  { %v1149_v18 = vpack.c.bf16 %v899_v56, %v899_v56 }
 0x153   :  { %1005 = vst [vmem:[%s1905_s3 + $0x50] sm:$0x1] %v1149_v18 }

// kernel: forward.6
= control target key start
LH: loop header
LB: loop body
LE: loop exit
PB: predicated region body
PF: predicated region fallthrough
CT: control target
= control target key end

     0   :  { %v1385_v34 = vmov 0.0   ;;  %vm1386_vm0 = vmmov 0   ;;  %vm516_vm1 = vcmask 523264   ;;  %s1811_s1 = inlined_call_operand.vmem [shape: bf16[576,128], index: 1, kind: input, shape index: {}]   ;;  %s1812_s0 = inlined_call_operand.vmem [shape: bf16[98,576], index: 0, kind: input, shape index: {}]   ;;  %s1813_s2 = inlined_call_operand.vmem [shape: f32[1,128], index: 2, kind: input, shape index: {}]   ;;  %s1814_s3 = inlined_call_operand.vmem [shape: bf16[98,128], index: 3, kind: output, shape index: {}]  }
   0x1   :  { %v1276_v0 = vld [vmem:[%s1811_s1 + $0x78] sm:$0xff]   ;;  %v1280_v4 = vld [vmem:[%s1811_s1 + $0x70] sm:$0xff]   ;;  %v1284_v8 = vld [vmem:[%s1811_s1 + $0x68] sm:$0xff]  }
   0x2   :  { %v1277_v1 = vld [vmem:[%s1811_s1 + $0xf8] sm:$0xff]   ;;  %1103 = vmatprep.subr.bf16.mxu0 %v1276_v0  ;;  %v1281_v5 = vld [vmem:[%s1811_s1 + $0xf0] sm:$0xff]   ;;  %v1285_v9 = vld [vmem:[%s1811_s1 + $0xe8] sm:$0xff]  }
   0x3   :  { %v1278_v2 = vld [vmem:[%s1811_s1 + $0x38] sm:$0xff]   ;;  %1161 = vmatprep.subr.bf16.mxu1 %v1277_v1  ;;  %v1282_v6 = vld [vmem:[%s1811_s1 + $0x30] sm:$0xff]   ;;  %v1286_v10 = vld [vmem:[%s1811_s1 + $0x28] sm:$0xff]  }
   0x4   :  { %v1279_v3 = vld [vmem:[%s1811_s1 + $0xb8] sm:$0xff]   ;;  %1104 = vmatpush3.bf16.msra.mxu0 %v1278_v2  ;;  %v1283_v7 = vld [vmem:[%s1811_s1 + $0xb0] sm:$0xff]   ;;  %v1287_v11 = vld [vmem:[%s1811_s1 + $0xa8] sm:$0xff]  }
   0x5   :  { %1162 = vmatpush3.bf16.msra.mxu1 %v1279_v3  ;;  %1105 = vmatprep.subr.bf16.mxu0 %v1280_v4  ;;  %v1288_v12 = vld [vmem:[%s1811_s1 + $0x60] sm:$0xff]   ;;  %v1292_v16 = vld [vmem:[%s1811_s1 + $0x58] sm:$0xff]   ;;  %v1296_v20 = vld [vmem:[%s1811_s1 + $0x50] sm:$0xff]  }
   0x6   :  { %1163 = vmatprep.subr.bf16.mxu1 %v1281_v5  ;;  %v1289_v13 = vld [vmem:[%s1811_s1 + $0xe0] sm:$0xff]   ;;  %v1293_v17 = vld [vmem:[%s1811_s1 + $0xd8] sm:$0xff]   ;;  %v1297_v21 = vld [vmem:[%s1811_s1 + $0xd0] sm:$0xff]  }
   0x7   :  { %v1290_v14 = vld [vmem:[%s1811_s1 + $0x20] sm:$0xff]   ;;  %v1294_v18 = vld [vmem:[%s1811_s1 + $0x18] sm:$0xff]   ;;  %v1298_v22 = vld [vmem:[%s1811_s1 + $0x10] sm:$0xff]  }
   0x8   :  { %1106 = vmatpush3.bf16.msra.mxu0 %v1282_v6  ;;  %v1291_v15 = vld [vmem:[%s1811_s1 + $0xa0] sm:$0xff]   ;;  %v1295_v19 = vld [vmem:[%s1811_s1 + $0x98] sm:$0xff]   ;;  %v1299_v23 = vld [vmem:[%s1811_s1 + $0x90] sm:$0xff]  }
   0x9   :  { %1164 = vmatpush3.bf16.msra.mxu1 %v1283_v7  ;;  %1107 = vmatprep.subr.bf16.mxu0 %v1284_v8  ;;  %v1300_v24 = vld [vmem:[%s1811_s1 + $0x48] sm:$0xff]   ;;  %v1304_v28 = vld [vmem:[%s1811_s1 + $0x40] sm:$0xff]   ;;  %v1314_v37 = vld [vmem:[%s1811_s1 + $0x118] sm:$0xff]  }
   0xa   :  { %1165 = vmatprep.subr.bf16.mxu1 %v1285_v9  ;;  %v1301_v25 = vld [vmem:[%s1811_s1 + $0xc8] sm:$0xff]   ;;  %v1305_v29 = vld [vmem:[%s1811_s1 + $0xc0] sm:$0xff]   ;;  %v1325_v43 = vld [vmem:[%s1811_s1 + $0x110] sm:$0xff]  }
   0xb   :  { %v1302_v26 = vld [vmem:[%s1811_s1 + $0x8] sm:$0xff]   ;;  %v1306_v30 = vld [vmem:[%s1811_s1] sm:$0xff]   ;;  %v1323_v44 = vld [vmem:[%s1812_s0 + $0x5c] ss:$20 sps:$4 sm:$0xff]  }
   0xc   :  { %1108 = vmatpush3.bf16.msra.mxu0 %v1286_v10  ;;  %v1303_v27 = vld [vmem:[%s1811_s1 + $0x88] sm:$0xff]   ;;  %v1307_v31 = vld [vmem:[%s1811_s1 + $0x80] sm:$0xff]   ;;  %v1328_v48 = vld [vmem:[%s1812_s0 + $0x7c] ss:$20 sps:$4 sm:$0xff]  }
   0xd   :  { %1166 = vmatpush3.bf16.msra.mxu1 %v1287_v11  ;;  %1109 = vmatprep.subr.bf16.mxu0 %v1288_v12  ;;  %v1308_v32 = vld [vmem:[%s1812_s0] ss:$20 sps:$4 sm:$0xff]   ;;  %v1310_v33 = vld [vmem:[%s1812_s0 + $0x4] ss:$20 sps:$4 sm:$0xff]   ;;  %v1311_v35 = vld [vmem:[%s1812_s0 + $0x8] ss:$20 sps:$4 sm:$0xff]  }
   0xe   :  { %1167 = vmatprep.subr.bf16.mxu1 %v1289_v13  ;;  %v1313_v36 = vld [vmem:[%s1812_s0 + $0xc] ss:$20 sps:$4 sm:$0xff]   ;;  %570 = vmatprep.mubr.bf16.mxu0 %v1310_v33  ;;  %v1317_v39 = vld [vmem:[%s1812_s0 + $0x34] ss:$20 sps:$4 sm:$0xff]   ;;  %v1320_v41 = vld [vmem:[%s1812_s0 + $0x30] ss:$20 sps:$4 sm:$0xff]  }
   0xf   :  { %658 = vmatprep.mubr.bf16.mxu1 %v1313_v36  ;;  %v1315_v38 = vld [vmem:[%s1812_s0 + $0x2c] ss:$20 sps:$4 sm:$0xff]   ;;  %v1319_v40 = vld [vmem:[%s1812_s0 + $0x28] ss:$20 sps:$4 sm:$0xff]   ;;  %v1326_v46 = vld [vmem:[%s1812_s0 + $0x50] ss:$20 sps:$4 sm:$0xff]  }
  0x10   :  { %1110 = vmatpush3.bf16.msra.mxu0 %v1290_v14  ;;  %v1321_v42 = vld [vmem:[%s1812_s0 + $0x54] ss:$20 sps:$4 sm:$0xff]   ;;  %v1327_v47 = vld [vmem:[%s1812_s0 + $0x58] ss:$20 sps:$4 sm:$0xff]   ;;  %v1347_v50 = vld [vmem:[%s1811_s1 + $0x100] sm:$0xff]  }
  0x11   :  { %1168 = vmatpush3.bf16.msra.mxu1 %v1291_v15  ;;  %1111 = vmatprep.subr.bf16.mxu0 %v1292_v16  ;;  %v1334_v45 = vld [vmem:[%s1811_s1 + $0x108] sm:$0xff]   ;;  %v1330_v49 = vld [vmem:[%s1812_s0 + $0x84] ss:$20 sps:$4 sm:$0xff]   ;;  %v1333_v52 = vld [vmem:[%s1812_s0 + $0x80] ss:$20 sps:$4 sm:$0xff]  }
  0x12   :  { %1169 = vmatprep.subr.bf16.mxu1 %v1293_v17  ;;  %v1332_v51 = vld [vmem:[%s1812_s0 + $0x78] ss:$20 sps:$4 sm:$0xff]   ;;  %v1339_v55 = vld [vmem:[%s1812_s0 + $0xa0] ss:$20 sps:$4 sm:$0xff]   ;;  %v1340_v56 = vld [vmem:[%s1812_s0 + $0xa8] ss:$20 sps:$4 sm:$0xff]  }
  0x13   :  { %v1335_v53 = vld [vmem:[%s1812_s0 + $0xa4] ss:$20 sps:$4 sm:$0xff]   ;;  %v1337_v54 = vld [vmem:[%s1812_s0 + $0xac] ss:$20 sps:$4 sm:$0xff]   ;;  %v1343_v58 = vld [vmem:[%s1812_s0 + $0xd4] ss:$20 sps:$4 sm:$0xff]  }
  0x14   :  { %1112 = vmatpush3.bf16.msra.mxu0 %v1294_v18  ;;  %v1341_v57 = vld [vmem:[%s1812_s0 + $0xcc] ss:$20 sps:$4 sm:$0xff]   ;;  %v51_v59 = vld [vmem:[%s1812_s0 + $0xf0] sm:$0x11]  ;;  %v52_v60 = vld [vmem:[%s1812_s0 + $0xf8] sm:$0x11] }
  0x15   :  { %1170 = vmatpush3.bf16.msra.mxu1 %v1295_v19  ;;  %1113 = vmatprep.subr.bf16.mxu0 %v1296_v20  ;;  %v1345_v61 = vld [vmem:[%s1812_s0 + $0xc8] ss:$20 sps:$4 sm:$0xff]   ;;  %v1346_v62 = vld [vmem:[%s1812_s0 + $0xd0] ss:$20 sps:$4 sm:$0xff]   ;;  %v982_v63 = vcombine.high %v51_v59, %v51_v59  ;;  %v984_v0 = vcombine.high %v52_v60, %v52_v60  ;;  %v981_v1 = vcombine.low %v51_v59, %v51_v59  ;;  %v1354_v5 = vld [vmem:[%s1812_s0 + $0x38] ss:$20 sps:$4 sm:$0xff]  }
  0x16   :  { %1171 = vmatprep.subr.bf16.mxu1 %v1297_v21  ;;  %v983_v2 = vcombine.low %v52_v60, %v52_v60  ;;  %v1352_v3 = vld [vmem:[%s1812_s0 + $0x10] ss:$20 sps:$4 sm:$0xff]   ;;  %v1355_v6 = vld [vmem:[%s1812_s0 + $0xd8] ss:$20 sps:$4 sm:$0xff]   ;;  %v1356_v7 = vld [vmem:[%s1812_s0 + $0x60] ss:$20 sps:$4 sm:$0xff]  }
  0x17   :  { %v1353_v4 = vld [vmem:[%s1812_s0 + $0xb0] ss:$20 sps:$4 sm:$0xff]   ;;  %v1357_v8 = vld [vmem:[%s1812_s0 + $0x100] ss:$0 sps:$4 sm:$0x11]  }
  0x18   :  { %1114 = vmatpush3.bf16.msra.mxu0 %v1298_v22  ;;  %v1358_v9 = vld [vmem:[%s1812_s0 + $0x88] ss:$20 sps:$4 sm:$0xff]   ;;  %v1688_v59 = vld [vmem:[%s1813_s2] ss:$0 sm:$0xff] }
  0x19   :  { %1172 = vmatpush3.bf16.msra.mxu1 %v1299_v23  ;;  %1115 = vmatprep.subr.bf16.mxu0 %v1300_v24 }
  0x1a   :  { %1173 = vmatprep.subr.bf16.mxu1 %v1301_v25 }
  0x1c   :  { %1116 = vmatpush3.bf16.msra.mxu0 %v1302_v26 }
  0x1d   :  { %1174 = vmatpush3.bf16.msra.mxu1 %v1303_v27  ;;  %1117 = vmatprep.subr.bf16.mxu0 %v1304_v28 }
  0x1e   :  { %1175 = vmatprep.subr.bf16.mxu1 %v1305_v29 }
  0x20   :  { %1118 = vmatpush3.bf16.msra.mxu0 %v1306_v30 }
  0x21   :  { %1176 = vmatpush3.bf16.msra.mxu1 %v1307_v31  ;;  %1230 = vmatprep.subr.bf16.mxu0 %v1385_v34 }
  0x22   :  { %1266 = vmatprep.subr.bf16.mxu1 %v1385_v34 }
  0x23   :  { %571 = vmatmul.mubr.bf16.vlgmr.msra.gmra.mxu0 %v1308_v32 }
  0x24   :  { %659 = vmatmul.mubr.bf16.vlgmr.msra.gmra.mxu1 %v1311_v35  ;;  %1231 = vmatpush3.bf16.msra.mxu0 %v1314_v37 }
  0x25   :  { %578 = vmatprep.mubr.bf16.mxu0 %v1315_v38  ;;  %1270 = vmatpush3.bf16.msra.mxu1 %v1314_v37 }
  0x26   :  { %666 = vmatprep.mubr.bf16.mxu1 %v1317_v39  ;;  %1232 = vmatprep.subr.bf16.mxu0 %v1385_v34 }
  0x27   :  { %1267 = vmatprep.subr.bf16.mxu1 %v1385_v34 }
  0x28   :  { %1233 = vmatpush3.bf16.msra.mxu0 %v1325_v43 }
  0x29   :  { %1271 = vmatpush3.bf16.msra.mxu1 %v1325_v43  ;;  %1234 = vmatprep.subr.bf16.mxu0 %v1385_v34 }
  0x2a   :  { %1268 = vmatprep.subr.bf16.mxu1 %v1385_v34 }
  0x2b   :  { %579 = vmatmul.mubr.bf16.gmra.mxu0 %v1319_v40 }
  0x2c   :  { %667 = vmatmul.mubr.bf16.gmra.mxu1 %v1320_v41  ;;  %586 = vmatprep.mubr.bf16.mxu0 %v1321_v42 }
  0x2d   :  { %674 = vmatprep.mubr.bf16.mxu1 %v1323_v44  ;;  %1235 = vmatpush3.bf16.msra.mxu0 %v1334_v45 }
  0x2e   :  { %1272 = vmatpush3.bf16.msra.mxu1 %v1334_v45  ;;  %1236 = vmatprep.subr.bf16.mxu0 %v1385_v34 }
  0x2f   :  { %1269 = vmatprep.subr.bf16.mxu1 %v1385_v34 }
  0x31   :  { %1237 = vmatpush3.bf16.msra.mxu0 %v1347_v50 }
  0x32   :  { %1273 = vmatpush3.bf16.msra.mxu1 %v1347_v50 }
  0x33   :  { %587 = vmatmul.mubr.bf16.gmra.mxu0 %v1326_v46 }
  0x34   :  { %675 = vmatmul.mubr.bf16.gmra.mxu1 %v1327_v47  ;;  %594 = vmatprep.mubr.bf16.mxu0 %v1328_v48 }
  0x35   :  { %682 = vmatprep.mubr.bf16.mxu1 %v1330_v49 }
  0x3b   :  { %595 = vmatmul.mubr.bf16.gmra.mxu0 %v1332_v51 }
  0x3c   :  { %683 = vmatmul.mubr.bf16.gmra.mxu1 %v1333_v52  ;;  %602 = vmatprep.mubr.bf16.mxu0 %v1335_v53 }
  0x3d   :  { %690 = vmatprep.mubr.bf16.mxu1 %v1337_v54 }
  0x43   :  { %603 = vmatmul.mubr.bf16.gmra.mxu0 %v1339_v55 }
  0x44   :  { %691 = vmatmul.mubr.bf16.gmra.mxu1 %v1340_v56  ;;  %610 = vmatprep.mubr.bf16.mxu0 %v1341_v57 }
  0x45   :  { %698 = vmatprep.mubr.bf16.mxu1 %v1343_v58 }
  0x4b   :  { %611 = vmatmul.mubr.bf16.gmra.mxu0 %v1345_v61 }
  0x4c   :  { %699 = vmatmul.mubr.bf16.gmra.mxu1 %v1346_v62  ;;  %618 = vmatprep.mubr.bf16.mxu0 %v982_v63 }
  0x4d   :  { %706 = vmatprep.mubr.bf16.mxu1 %v984_v0 }
  0x53   :  { %619 = vmatmul.mubr.bf16.gmra.mxu0 %v981_v1 }
  0x54   :  { %707 = vmatmul.mubr.bf16.gmra.mxu1 %v983_v2  ;;  %1238 = vmatprep.mubr.msk.bf16.mxu0 %vm1386_vm0, %v1385_v34 }
  0x55   :  { %1254 = vmatprep.mubr.msk.bf16.mxu1 %vm1386_vm0, %v1385_v34 }
  0x5b   :  { %1239 = vmatmul.mubr.msk.bf16.vlgmr.msra.gmra.mxu0 %vm516_vm1, %v1352_v3 }
  0x5c   :  { %1255 = vmatmul.mubr.msk.bf16.vlgmr.msra.gmra.mxu1 %vm516_vm1, %v1353_v4  ;;  %1242 = vmatprep.mubr.msk.bf16.mxu0 %vm1386_vm0, %v1385_v34 }
  0x5d   :  { %1258 = vmatprep.mubr.msk.bf16.mxu1 %vm1386_vm0, %v1385_v34 }
  0x63   :  { %1243 = vmatmul.mubr.msk.bf16.gmra.mxu0 %vm516_vm1, %v1354_v5 }
  0x64   :  { %1259 = vmatmul.mubr.msk.bf16.gmra.mxu1 %vm516_vm1, %v1355_v6  ;;  %1246 = vmatprep.mubr.msk.bf16.mxu0 %vm1386_vm0, %v1385_v34 }
  0x65   :  { %1262 = vmatprep.mubr.msk.bf16.mxu1 %vm1386_vm0, %v1385_v34 }
  0x6b   :  { %1247 = vmatmul.mubr.msk.bf16.gmra.mxu0 %vm516_vm1, %v1356_v7 }
  0x6c   :  { %1263 = vmatmul.mubr.msk.bf16.gmra.mxu1 %vm516_vm1, %v1357_v8  ;;  %1250 = vmatprep.mubr.msk.bf16.mxu0 %vm1386_vm0, %v1385_v34 }
  0x73   :  { %1251 = vmatmul.mubr.msk.bf16.gmra.mxu0 %vm516_vm1, %v1358_v9 }
  0xe3   :  { %v1119_v10 = vpop.f32.mrf.mxu0 }
  0xe4   :  { %v1177_v11 = vpop.f32.mrf.mxu1 }
  0xe5   :  { %v1120_v12 = vpop.f32.mrf.mxu0 }
  0xe6   :  { %v1178_v13 = vpop.f32.mrf.mxu1  ;;  %v1121_v57 = vadd.f32 %v1120_v12, %v1119_v10 }
  0xe7   :  { %v1122_v14 = vpop.f32.mrf.mxu0  ;;  %v1179_v1 = vadd.f32 %v1178_v13, %v1177_v11 }
  0xe8   :  { %v1180_v15 = vpop.f32.mrf.mxu1  ;;  %v573_v0 = vadd.f32 %v1121_v57, %v1688_v59 }
  0xe9   :  { %v1123_v16 = vpop.f32.mrf.mxu0 }
  0xea   :  { %v1181_v17 = vpop.f32.mrf.mxu1  ;;  %v1124_v2 = vadd.f32 %v1123_v16, %v1122_v14 }
  0xeb   :  { %v1125_v18 = vpop.f32.mrf.mxu0 }
  0xec   :  { %v1643_v19 = vpop.f32.mrf.mxu1  ;;  %v576_v12 = vadd.f32 %v1124_v2, %v1688_v59 }
  0xed   :  { %v1126_v20 = vpop.f32.mrf.mxu0 }
  0xee   :  { %v1645_v21 = vpop.f32.mrf.mxu1  ;;  %v1127_v9 = vadd.f32 %v1126_v20, %v1125_v18 }
  0xef   :  { %v1647_v22 = vpop.f32.mrf.mxu0  ;;  %v1185_v18 = vadd.f32 %v1645_v21, %v1643_v19 }
  0xf0   :  { %v1649_v23 = vpop.f32.mrf.mxu1 }
  0xf1   :  { %v1129_v24 = vpop.f32.mrf.mxu0 }
  0xf2   :  { %v1651_v25 = vpop.f32.mrf.mxu1  ;;  %v1130_v16 = vadd.f32 %v1129_v24, %v1647_v22 }
  0xf3   :  { %v1653_v26 = vpop.f32.mrf.mxu0  ;;  %v1188_v19 = vadd.f32 %v1651_v25, %v1649_v23 }
  0xf4   :  { %v1655_v27 = vpop.f32.mrf.mxu1 }
  0xf5   :  { %v1657_v28 = vpop.f32.mrf.mxu0 }
  0xf6   :  { %v1659_v29 = vpop.f32.mrf.mxu1 }
  0xf7   :  { %v1661_v30 = vpop.f32.mrf.mxu0 }
  0xf8   :  { %v1663_v31 = vpop.f32.mrf.mxu1 }
  0xf9   :  { %v1665_v32 = vpop.f32.mrf.mxu0 }
  0xfa   :  { %v1667_v33 = vpop.f32.mrf.mxu1 }
  0xfb   :  { %v1669_v34 = vpop.f32.mrf.mxu0 }
  0xfc   :  { %v1671_v35 = vpop.f32.mrf.mxu1 }
  0xfd   :  { %v1673_v36 = vpop.f32.mrf.mxu0 }
  0xfe   :  { %v1675_v37 = vpop.f32.mrf.mxu1 }
  0xff   :  { %v1677_v38 = vpop.f32.mrf.mxu0 }
 0x100   :  { %v1679_v39 = vpop.f32.mrf.mxu1 }
 0x101   :  { %1815 = vst [vmem:[#allocation2_spill] sm:$0xff] %v1679_v39  ;;  %v1681_v40 = vpop.f32.mrf.mxu0 }
 0x102   :  { %v1683_v41 = vpop.f32.mrf.mxu1 }
 0x103   :  { %1816 = vst [vmem:[#allocation3_spill] sm:$0xff] %v1683_v41  ;;  %v1143_v42 = vpop.f32.mrf.mxu0  ;;  %v661_v41 = vadd.f32 %v1179_v1, %v573_v0 }
 0x104   :  { %v1201_v43 = vpop.f32.mrf.mxu1 }
 0x105   :  { %v1144_v44 = vpop.f32.mrf.mxu0 }
 0x106   :  { %v1202_v45 = vpop.f32.mrf.mxu1  ;;  %v1145_v60 = vadd.f32 %v1144_v44, %v1143_v42  ;;  %v1182_v42 = vadd.f32 %v1181_v17, %v1180_v15 }
 0x107   :  { %v1146_v46 = vpop.f32.mrf.mxu0  ;;  %v1203_v5 = vadd.f32 %v1202_v45, %v1201_v43  ;;  %v581_v45 = vadd.f32 %v1127_v9, %v1688_v59 }
 0x108   :  { %v1204_v47 = vpop.f32.mrf.mxu1  ;;  %v605_v4 = vadd.f32 %v1145_v60, %v1688_v59 }
 0x109   :  { %v1147_v48 = vpop.f32.mrf.mxu0 }
 0x10a   :  { %v1205_v49 = vpop.f32.mrf.mxu1  ;;  %v1148_v6 = vadd.f32 %v1147_v48, %v1146_v46  ;;  %v693_v14 = vadd.f32 %v1203_v5, %v605_v4  ;;  %v664_v48 = vadd.f32 %v1182_v42, %v576_v12  ;;  %v1191_v12 = vadd.f32 %v1659_v29, %v1655_v27 }
 0x10b   :  { %v1149_v50 = vpop.f32.mrf.mxu0  ;;  %v1206_v57 = vadd.f32 %v1205_v49, %v1204_v47 }
 0x10c   :  { %v1207_v51 = vpop.f32.mrf.mxu1  ;;  %v608_v39 = vadd.f32 %v1148_v6, %v1688_v59 }
 0x10d   :  { %v1150_v52 = vpop.f32.mrf.mxu0 }
 0x10e   :  { %v1208_v53 = vpop.f32.mrf.mxu1  ;;  %v1151_v11 = vadd.f32 %v1150_v52, %v1149_v50  ;;  %v584_v52 = vadd.f32 %v1130_v16, %v1688_v59 }
 0x10f   :  { %v1152_v54 = vpop.f32.mrf.mxu0  ;;  %v1209_v50 = vadd.f32 %v1208_v53, %v1207_v51  ;;  %v669_v53 = vadd.f32 %v1185_v18, %v581_v45  ;;  %v1194_v45 = vadd.f32 %v1667_v33, %v1663_v31 }
 0x110   :  { %v1210_v55 = vpop.f32.mrf.mxu1  ;;  %v613_v49 = vadd.f32 %v1151_v11, %v1688_v59 }
 0x111   :  { %v1153_v56 = vpop.f32.mrf.mxu0 }
 0x112   :  { %v1211_v58 = vpop.f32.mrf.mxu1  ;;  %v1154_v17 = vadd.f32 %v1153_v56, %v1152_v54  ;;  %v1133_v56 = vadd.f32 %v1657_v28, %v1653_v26 }
 0x113   :  { %v1155_v61 = vpop.f32.mrf.mxu0 }
 0x114   :  { %v1690_v62 = vpop.f32.mrf.mxu1  ;;  %v616_v4 = vadd.f32 %v1154_v17, %v1688_v59 }
 0x115   :  { %v1156_v63 = vpop.f32.mrf.mxu0 }
 0x116   :  { %v1693_v3 = vpop.f32.mrf.mxu1  ;;  %v1157_v23 = vadd.f32 %v1156_v63, %v1155_v61  ;;  %v589_v63 = vadd.f32 %v1133_v56, %v1688_v59 }
 0x117   :  { %v1158_v7 = vpop.f32.mrf.mxu0 }
 0x118   :  { %v1216_v8 = vpop.f32.mrf.mxu1 }
 0x119   :  { %v1159_v10 = vpop.f32.mrf.mxu0  ;;  %v701_v8 = vadd.f32 %v1209_v50, %v613_v49 }
 0x11a   :  { %v1217_v44 = vpop.f32.mrf.mxu1  ;;  %v672_v10 = vadd.f32 %v1188_v19, %v584_v52 }
 0x11b   :  { %v748_v13 = vpop.f32.mrf.mxu0 }
 0x11c   :  { %v1699_v60 = vadd.f32 %v748_v13, %v661_v41  ;;  %v780_v43 = vpop.f32.mrf.mxu1  ;;  %v696_v41 = vadd.f32 %v1206_v57, %v608_v39  ;;  %v1212_v39 = vadd.f32 %v1211_v58, %v1210_v55  ;;  %v1136_v55 = vadd.f32 %v1665_v32, %v1661_v30 }
 0x11d   :  { %v1704_v20 = vadd.f32 %v780_v43, %v693_v14  ;;  %v1240_v15 = vpop.f32.mrf.mxu0  ;;  %v621_v13 = vadd.f32 %v1157_v23, %v1688_v59  ;;  %v1215_v14 = vadd.f32 %v1693_v3, %v1690_v62  ;;  %v1139_v62 = vadd.f32 %v1673_v36, %v1669_v34 }
 0x11e   :  { %v815_v46 = vmin.f32 %v1699_v60, 0.0  ;;  %v1256_v47 = vpop.f32.mrf.mxu1  ;;  %v704_v11 = vadd.f32 %v1212_v39, %v616_v4  ;;  %v592_v43 = vadd.f32 %v1136_v55, %v1688_v59  ;;  %vm802_vm2 = vcmp.gt.f32.partialorder %v1699_v60, 0.0 }
 0x11f   :  { %v823_v22 = vmin.f32 %v1704_v20, 0.0  ;;  %v751_v24 = vpop.f32.mrf.mxu0  ;;  %v677_v47 = vadd.f32 %v1191_v12, %v589_v63  ;;  %v709_v31 = vadd.f32 %v1215_v14, %v621_v13  ;;  %v597_v19 = vadd.f32 %v1139_v62, %v1688_v59 }
 0x120   :  { %v828_v21 = vmul.f32 1.442695, %v815_v46  ;;  %v1712_v0 = vadd.f32 %v751_v24, %v664_v48  ;;  %v783_v54 = vpop.f32.mrf.mxu1  ;;  %v1142_v48 = vadd.f32 %v1681_v40, %v1677_v38  ;;  %v680_v36 = vadd.f32 %v1194_v45, %v592_v43 }
 0x121   :  { %v844_v1 = vmul.f32 1.442695, %v823_v22  ;;  %v1716_v2 = vadd.f32 %v783_v54, %v696_v41  ;;  %v1241_v51 = vpop.f32.mrf.mxu0  ;;  %vm810_vm3 = vcmp.gt.f32.partialorder %v1704_v20, 0.0 }
 0x122   :  { %1359 = vpow2.f32 %v828_v21  ;;  %v816_v5 = vmin.f32 %v1712_v0, 0.0  ;;  %v1257_v6 = vpop.f32.mrf.mxu1  ;;  %v1197_v21 = vadd.f32 %v1675_v37, %v1671_v35  ;;  %v600_v56 = vadd.f32 %v1142_v48, %v1688_v59  ;;  %v1818_v51 = vld [vmem:[#allocation3_spill] sm:$0xff] }
 0x123   :  { %1361 = vpow2.f32 %v844_v1  ;;  %v824_v25 = vmin.f32 %v1716_v2, 0.0  ;;  %v756_v7 = vpop.f32.mrf.mxu0  ;;  %v1817_v1 = vld [vmem:[#allocation2_spill] sm:$0xff]  ;;  %vm803_vm4 = vcmp.gt.f32.partialorder %v1712_v0, 0.0  ;;  %vm811_vm5 = vcmp.gt.f32.partialorder %v1716_v2, 0.0 }
 0x124   :  { %v830_v9 = vmul.f32 1.442695, %v816_v5  ;;  %v1721_v26 = vadd.f32 %v756_v7, %v669_v53  ;;  %v788_v28 = vpop.f32.mrf.mxu1  ;;  %v1200_v53 = vadd.f32 %v1818_v51, %v1817_v1 }
 0x125   :  { %v846_v58 = vmul.f32 1.442695, %v824_v25  ;;  %v1727_v42 = vadd.f32 %v788_v28, %v701_v8  ;;  %v1244_v61 = vpop.f32.mrf.mxu0 }
 0x126   :  { %1363 = vpow2.f32 %v830_v9  ;;  %v817_v44 = vmin.f32 %v1721_v26, 0.0  ;;  %v1260_v57 = vpop.f32.mrf.mxu1  ;;  %v685_v9 = vadd.f32 %v1197_v21, %v597_v19  ;;  %v688_v55 = vadd.f32 %v1200_v53, %v600_v56 }
 0x127   :  { %1365 = vpow2.f32 %v846_v58  ;;  %v825_v27 = vmin.f32 %v1727_v42, 0.0  ;;  %v759_v29 = vpop.f32.mrf.mxu0  ;;  %vm804_vm6 = vcmp.gt.f32.partialorder %v1721_v26, 0.0  ;;  %vm812_vm7 = vcmp.gt.f32.partialorder %v1727_v42, 0.0 }
 0x128   :  { %v832_v30 = vmul.f32 1.442695, %v817_v44  ;;  %v1735_v32 = vadd.f32 %v759_v29, %v672_v10  ;;  %v791_v16 = vpop.f32.mrf.mxu1 }
 0x129   :  { %v848_v18 = vmul.f32 1.442695, %v825_v27  ;;  %v1740_v15 = vadd.f32 %v791_v16, %v704_v11  ;;  %v1245_v17 = vpop.f32.mrf.mxu0 }
 0x12a   :  { %1367 = vpow2.f32 %v832_v30  ;;  %v818_v3 = vmin.f32 %v1735_v32, 0.0  ;;  %v1261_v46 = vpop.f32.mrf.mxu1  ;;  %vm805_vm8 = vcmp.gt.f32.partialorder %v1735_v32, 0.0 }
 0x12b   :  { %1369 = vpow2.f32 %v848_v18  ;;  %v826_v49 = vmin.f32 %v1740_v15, 0.0  ;;  %v764_v50 = vpop.f32.mrf.mxu0  ;;  %vm813_vm9 = vcmp.gt.f32.partialorder %v1740_v15, 0.0 }
 0x12c   :  { %v834_v33 = vmul.f32 1.442695, %v818_v3  ;;  %v1748_v22 = vadd.f32 %v764_v50, %v677_v47  ;;  %v796_v24 = vpop.f32.mrf.mxu1 }
 0x12d   :  { %v850_v41 = vmul.f32 1.442695, %v826_v49  ;;  %v1750_v52 = vadd.f32 %v796_v24, %v709_v31  ;;  %v1248_v34 = vpop.f32.mrf.mxu0 }
 0x12e   :  { %1371 = vpow2.f32 %v834_v33  ;;  %v819_v38 = vmin.f32 %v1748_v22, 0.0  ;;  %v1264_v40 = vpop.f32.mrf.mxu1  ;;  %vm806_vm11 = vcmp.gt.f32.partialorder %v1748_v22, 0.0 }
 0x12f   :  { %v1360_v54 = vpop.eup %1359  ;;  %1373 = vpow2.f32 %v850_v41  ;;  %v827_v4 = vmin.f32 %v1750_v52, 0.0  ;;  %v767_v39 = vpop.f32.mrf.mxu0  ;;  %vm814_vm10 = vcmp.gt.f32.partialorder %v1750_v52, 0.0 }
 0x130   :  { %v1362_v5 = vpop.eup %1361  ;;  %v836_v6 = vmul.f32 1.442695, %v819_v38  ;;  %v1760_v23 = vadd.f32 %v767_v39, %v680_v36  ;;  %v799_v25 = vpop.f32.mrf.mxu1  ;;  %v1029_v7 = vadd.f32 -1.0, %v1360_v54 }
 0x131   :  { %v852_v35 = vmul.f32 1.442695, %v827_v4  ;;  %v1249_v37 = vpop.f32.mrf.mxu0  ;;  %v1037_v10 = vadd.f32 -1.0, %v1362_v5 }
 0x132   :  { %1375 = vpow2.f32 %v836_v6  ;;  %v820_v8 = vmin.f32 %v1760_v23, 0.0  ;;  %v1265_v59 = vpop.f32.mrf.mxu1  ;;  %v867_v13 = vsel %vm802_vm2, %v1699_v60, %v1029_v7  ;;  %vm807_vm12 = vcmp.gt.f32.partialorder %v1760_v23, 0.0 }
 0x133   :  { %v1364_v28 = vpop.eup %1363  ;;  %1377 = vpow2.f32 %v852_v35  ;;  %v772_v12 = vpop.f32.mrf.mxu0  ;;  %v875_v30 = vsel %vm810_vm3, %v1704_v20, %v1037_v10 }
 0x134   :  { %v1366_v58 = vpop.eup %1365  ;;  %v1030_v61 = vadd.f32 -1.0, %v1364_v28  ;;  %v838_v63 = vmul.f32 1.442695, %v820_v8  ;;  %v1764_v44 = vadd.f32 %v772_v12, %v685_v9 }
 0x135   :  { %v1038_v57 = vadd.f32 -1.0, %v1366_v58  ;;  %v1252_v11 = vpop.f32.mrf.mxu0 }
 0x136   :  { %v868_v14 = vsel %vm803_vm4, %v1712_v0, %v1030_v61  ;;  %1379 = vpow2.f32 %v838_v63  ;;  %v821_v27 = vmin.f32 %v1764_v44, 0.0  ;;  %vm808_vm13 = vcmp.gt.f32.partialorder %v1764_v44, 0.0 }
 0x137   :  { %v1368_v29 = vpop.eup %1367  ;;  %v1071_v16 = vpack.c.bf16 %v868_v14, %v867_v13  ;;  %v876_v43 = vsel %vm811_vm5, %v1716_v2, %v1038_v57  ;;  %v775_v45 = vpop.f32.mrf.mxu0 }
 0x138   :  { %v1370_v18 = vpop.eup %1369  ;;  %v1091_v17 = vpack.c.bf16 %v876_v43, %v875_v30  ;;  %v840_v62 = vmul.f32 1.442695, %v821_v27  ;;  %v776_v3 = vadd.f32 %v775_v45, %v688_v55  ;;  %v1031_v0 = vadd.f32 -1.0, %v1368_v29 }
 0x139   :  { %1072 = vst [vmem:[%s1814_s3] sm:$0xff] %v1071_v16   ;;  %v1253_v60 = vpop.f32.mrf.mxu0  ;;  %v1039_v47 = vadd.f32 -1.0, %v1370_v18 }
 0x13a   :  { %1101 = vst [vmem:[%s1814_s3 + $0x20] sm:$0xff] %v1091_v17   ;;  %1381 = vpow2.f32 %v840_v62  ;;  %v822_v20 = vmin.f32 %v776_v3, 0.0  ;;  %v869_v31 = vsel %vm804_vm6, %v1721_v26, %v1031_v0  ;;  %vm809_vm14 = vcmp.gt.f32.partialorder %v776_v3, 0.0 }
 0x13b   :  { %v1372_v46 = vpop.eup %1371  ;;  %v877_v41 = vsel %vm812_vm7, %v1727_v42, %v1039_v47 }
 0x13c   :  { %v1374_v2 = vpop.eup %1373  ;;  %v1032_v48 = vadd.f32 -1.0, %v1372_v46  ;;  %v842_v49 = vmul.f32 1.442695, %v822_v20 }
 0x13d   :  { %v1040_v50 = vadd.f32 -1.0, %v1374_v2 }
 0x13e   :  { %v870_v33 = vsel %vm805_vm8, %v1735_v32, %v1032_v48  ;;  %1383 = vpow2.f32 %v842_v49 }
 0x13f   :  { %v1376_v24 = vpop.eup %1375  ;;  %v1076_v34 = vpack.c.bf16 %v870_v33, %v869_v31  ;;  %v878_v36 = vsel %vm813_vm9, %v1740_v15, %v1040_v50 }
 0x140   :  { %v1378_v19 = vpop.eup %1377  ;;  %v1096_v21 = vpack.c.bf16 %v878_v36, %v877_v41  ;;  %v1033_v26 = vadd.f32 -1.0, %v1376_v24 }
 0x141   :  { %1098 = vst [vmem:[%s1814_s3 + $0x8] sm:$0xff] %v1076_v34   ;;  %v1041_v38 = vadd.f32 -1.0, %v1378_v19 }
 0x142   :  { %1102 = vst [vmem:[%s1814_s3 + $0x28] sm:$0xff] %v1096_v21   ;;  %v871_v15 = vsel %vm806_vm11, %v1748_v22, %v1033_v26 }
 0x143   :  { %v1380_v32 = vpop.eup %1379  ;;  %v879_v42 = vsel %vm814_vm10, %v1750_v52, %v1041_v38 }
 0x144   :  { %v1067_v40 = vpack.c.bf16 %v879_v42, %v879_v42  ;;  %v1034_v54 = vadd.f32 -1.0, %v1380_v32 }
 0x146   :  { %945 = vst [vmem:[%s1814_s3 + $0x30] sm:$0x1] %v1067_v40  ;;  %v872_v56 = vsel %vm807_vm12, %v1760_v23, %v1034_v54 }
 0x147   :  { %v1382_v1 = vpop.eup %1381  ;;  %v1081_v51 = vpack.c.bf16 %v872_v56, %v871_v15 }
 0x148   :  { %v1035_v52 = vadd.f32 -1.0, %v1382_v1 }
 0x149   :  { %1099 = vst [vmem:[%s1814_s3 + $0x10] sm:$0xff] %v1081_v51  }
 0x14a   :  { %v873_v22 = vsel %vm808_vm13, %v1764_v44, %v1035_v52 }
 0x14b   :  { %v1384_v53 = vpop.eup %1383 }
 0x14c   :  { %v1036_v4 = vadd.f32 -1.0, %v1384_v53 }
 0x14e   :  { %v874_v39 = vsel %vm809_vm14, %v776_v3, %v1036_v4 }
 0x14f   :  { %v1086_v5 = vpack.c.bf16 %v874_v39, %v873_v22 }
 0x151   :  { %1100 = vst [vmem:[%s1814_s3 + $0x18] sm:$0xff] %v1086_v5  }

// kernel: forward.7
= control target key start
LH: loop header
LB: loop body
LE: loop exit
PB: predicated region body
PF: predicated region fallthrough
CT: control target
= control target key end

     0   :  { %vm4853_vm0 = vcmask 523264   ;;  %s14089_s1 = inlined_call_operand.vmem [shape: bf16[3136,512], index: 1, kind: input, shape index: {}]   ;;  %s14090_s0 = inlined_call_operand.vmem [shape: bf16[8,3136], index: 0, kind: input, shape index: {}]   ;;  %s14091_s2 = inlined_call_operand.vmem [shape: f32[1,512], index: 2, kind: input, shape index: {}]   ;;  %s14092_s3 = inlined_call_operand.vmem [shape: bf16[512,512], index: 3, kind: input, shape index: {}]   ;;  %s14093_s5 = inlined_call_operand.vmem [shape: bf16[512,512], index: 5, kind: input, shape index: {}]   ;;  %s14094_s4 = inlined_call_operand.vmem [shape: f32[1,512], index: 4, kind: input, shape index: {}]   ;;  %s14095_s6 = inlined_call_operand.vmem [shape: f32[1,512], index: 6, kind: input, shape index: {}]   ;;  %s14096_s7 = inlined_call_operand.vmem [shape: f32[8,512], index: 7, kind: output, shape index: {}]  }
   0x1   :  { %v8971_v0 = vld [vmem:[%s14089_s1 + $0xe4] ss:$16 sps:$4 sm:$0xff]   ;;  %v8975_v2 = vld [vmem:[%s14089_s1 + $0xe0] ss:$16 sps:$4 sm:$0xff]   ;;  %v28_v48 = vld [vmem:[%s14090_s0 + $0x8] sm:$0xff] }
   0x2   :  { %v8973_v1 = vld [vmem:[%s14089_s1 + $0x2e4] ss:$16 sps:$4 sm:$0xff]   ;;  %4857 = vmatprep.subr.bf16.mxu0 %v8971_v0  ;;  %v8976_v3 = vld [vmem:[%s14089_s1 + $0x2e0] ss:$16 sps:$4 sm:$0xff]   ;;  %v10767_v51 = vcombine.high %v28_v48, %v28_v48 }
   0x3   :  { %4898 = vmatprep.subr.bf16.mxu1 %v8973_v1  ;;  %v8977_v4 = vld [vmem:[%s14089_s1 + $0xc4] ss:$16 sps:$4 sm:$0xff]   ;;  %4858 = vmatpush1.bf16.msra.mxu0 %v8975_v2  ;;  %v8981_v6 = vld [vmem:[%s14089_s1 + $0xc0] ss:$16 sps:$4 sm:$0xff]  }
   0x4   :  { %4899 = vmatpush1.bf16.msra.mxu1 %v8976_v3  ;;  %v8979_v5 = vld [vmem:[%s14089_s1 + $0x2c4] ss:$16 sps:$4 sm:$0xff]   ;;  %4859 = vmatprep.subr.bf16.mxu0 %v8977_v4  ;;  %v8982_v7 = vld [vmem:[%s14089_s1 + $0x2c0] ss:$16 sps:$4 sm:$0xff]  }
   0x5   :  { %4900 = vmatprep.subr.bf16.mxu1 %v8979_v5  ;;  %v8983_v8 = vld [vmem:[%s14089_s1 + $0xa4] ss:$16 sps:$4 sm:$0xff]   ;;  %v8987_v10 = vld [vmem:[%s14089_s1 + $0xa0] ss:$16 sps:$4 sm:$0xff]   ;;  %4930 = vmatprep.mubr.bf16.mxu1 %v10767_v51 }
   0x6   :  { %v8985_v9 = vld [vmem:[%s14089_s1 + $0x2a4] ss:$16 sps:$4 sm:$0xff]   ;;  %v8988_v11 = vld [vmem:[%s14089_s1 + $0x2a0] ss:$16 sps:$4 sm:$0xff]  }
   0x7   :  { %4860 = vmatpush1.bf16.msra.mxu0 %v8981_v6  ;;  %v8989_v12 = vld [vmem:[%s14089_s1 + $0x84] ss:$16 sps:$4 sm:$0xff]   ;;  %v8993_v14 = vld [vmem:[%s14089_s1 + $0x80] ss:$16 sps:$4 sm:$0xff]  }
   0x8   :  { %4901 = vmatpush1.bf16.msra.mxu1 %v8982_v7  ;;  %4861 = vmatprep.subr.bf16.mxu0 %v8983_v8  ;;  %v8991_v13 = vld [vmem:[%s14089_s1 + $0x284] ss:$16 sps:$4 sm:$0xff]   ;;  %v8994_v15 = vld [vmem:[%s14089_s1 + $0x280] ss:$16 sps:$4 sm:$0xff]   ;;  %v10827_v7 = vcombine.low %v28_v48, %v28_v48 }
   0x9   :  { %4902 = vmatprep.subr.bf16.mxu1 %v8985_v9  ;;  %v8995_v16 = vld [vmem:[%s14089_s1 + $0x64] ss:$16 sps:$4 sm:$0xff]   ;;  %v8999_v18 = vld [vmem:[%s14089_s1 + $0x60] ss:$16 sps:$4 sm:$0xff]  }
   0xa   :  { %v8997_v17 = vld [vmem:[%s14089_s1 + $0x264] ss:$16 sps:$4 sm:$0xff]   ;;  %v9000_v19 = vld [vmem:[%s14089_s1 + $0x260] ss:$16 sps:$4 sm:$0xff]  }
   0xb   :  { %4862 = vmatpush1.bf16.msra.mxu0 %v8987_v10  ;;  %v9001_v20 = vld [vmem:[%s14089_s1 + $0x44] ss:$16 sps:$4 sm:$0xff]   ;;  %v9005_v22 = vld [vmem:[%s14089_s1 + $0x40] ss:$16 sps:$4 sm:$0xff]  }
   0xc   :  { %4903 = vmatpush1.bf16.msra.mxu1 %v8988_v11  ;;  %4863 = vmatprep.subr.bf16.mxu0 %v8989_v12  ;;  %v9003_v21 = vld [vmem:[%s14089_s1 + $0x244] ss:$16 sps:$4 sm:$0xff]   ;;  %v9006_v23 = vld [vmem:[%s14089_s1 + $0x240] ss:$16 sps:$4 sm:$0xff]  }
   0xd   :  { %4904 = vmatprep.subr.bf16.mxu1 %v8991_v13  ;;  %v9007_v24 = vld [vmem:[%s14089_s1 + $0x24] ss:$16 sps:$4 sm:$0xff]   ;;  %v9011_v26 = vld [vmem:[%s14089_s1 + $0x20] ss:$16 sps:$4 sm:$0xff]  }
   0xe   :  { %v9009_v25 = vld [vmem:[%s14089_s1 + $0x224] ss:$16 sps:$4 sm:$0xff]   ;;  %v9012_v27 = vld [vmem:[%s14089_s1 + $0x220] ss:$16 sps:$4 sm:$0xff]  }
   0xf   :  { %4864 = vmatpush1.bf16.msra.mxu0 %v8993_v14  ;;  %v9013_v28 = vld [vmem:[%s14089_s1 + $0x4] ss:$16 sps:$4 sm:$0xff]   ;;  %v9017_v30 = vld [vmem:[%s14089_s1] ss:$16 sps:$4 sm:$0xff]  }
  0x10   :  { %4905 = vmatpush1.bf16.msra.mxu1 %v8994_v15  ;;  %4865 = vmatprep.subr.bf16.mxu0 %v8995_v16  ;;  %v9015_v29 = vld [vmem:[%s14089_s1 + $0x204] ss:$16 sps:$4 sm:$0xff]   ;;  %v9018_v31 = vld [vmem:[%s14089_s1 + $0x200] ss:$16 sps:$4 sm:$0xff]  }
  0x11   :  { %4906 = vmatprep.subr.bf16.mxu1 %v8997_v17  ;;  %v9019_v32 = vld [vmem:[%s14089_s1 + $0x1e4] ss:$16 sps:$4 sm:$0xff]   ;;  %v9023_v34 = vld [vmem:[%s14089_s1 + $0x1e0] ss:$16 sps:$4 sm:$0xff]  }
  0x12   :  { %v9021_v33 = vld [vmem:[%s14089_s1 + $0x3e4] ss:$16 sps:$4 sm:$0xff]   ;;  %v9024_v35 = vld [vmem:[%s14089_s1 + $0x3e0] ss:$16 sps:$4 sm:$0xff]  }
  0x13   :  { %4866 = vmatpush1.bf16.msra.mxu0 %v8999_v18  ;;  %v9025_v36 = vld [vmem:[%s14089_s1 + $0x1c4] ss:$16 sps:$4 sm:$0xff]   ;;  %v9029_v38 = vld [vmem:[%s14089_s1 + $0x1c0] ss:$16 sps:$4 sm:$0xff]  }
  0x14   :  { %4907 = vmatpush1.bf16.msra.mxu1 %v9000_v19  ;;  %4867 = vmatprep.subr.bf16.mxu0 %v9001_v20  ;;  %v9027_v37 = vld [vmem:[%s14089_s1 + $0x3c4] ss:$16 sps:$4 sm:$0xff]   ;;  %v9030_v39 = vld [vmem:[%s14089_s1 + $0x3c0] ss:$16 sps:$4 sm:$0xff]  }
  0x15   :  { %4908 = vmatprep.subr.bf16.mxu1 %v9003_v21  ;;  %v9031_v40 = vld [vmem:[%s14089_s1 + $0x1a4] ss:$16 sps:$4 sm:$0xff]   ;;  %v9035_v42 = vld [vmem:[%s14089_s1 + $0x1a0] ss:$16 sps:$4 sm:$0xff]  }
  0x16   :  { %v9033_v41 = vld [vmem:[%s14089_s1 + $0x3a4] ss:$16 sps:$4 sm:$0xff]   ;;  %v9036_v43 = vld [vmem:[%s14089_s1 + $0x3a0] ss:$16 sps:$4 sm:$0xff]  }
  0x17   :  { %4868 = vmatpush1.bf16.msra.mxu0 %v9005_v22  ;;  %v9037_v44 = vld [vmem:[%s14089_s1 + $0x184] ss:$16 sps:$4 sm:$0xff]   ;;  %v9041_v49 = vld [vmem:[%s14089_s1 + $0x180] ss:$16 sps:$4 sm:$0xff]  }
  0x18   :  { %4909 = vmatpush1.bf16.msra.mxu1 %v9006_v23  ;;  %4869 = vmatprep.subr.bf16.mxu0 %v9007_v24  ;;  %v9039_v45 = vld [vmem:[%s14089_s1 + $0x384] ss:$16 sps:$4 sm:$0xff]   ;;  %v9042_v50 = vld [vmem:[%s14089_s1 + $0x380] ss:$16 sps:$4 sm:$0xff]  }
  0x19   :  { %4910 = vmatprep.subr.bf16.mxu1 %v9009_v25  ;;  %v27_v46 = vld [vmem:[%s14090_s0] sm:$0xff] }
  0x1a   :  { %v10756_v47 = vcombine.high %v27_v46, %v27_v46  ;;  %v9043_v52 = vld [vmem:[%s14089_s1 + $0x164] ss:$16 sps:$4 sm:$0xff]   ;;  %v9047_v54 = vld [vmem:[%s14089_s1 + $0x160] ss:$16 sps:$4 sm:$0xff]   ;;  %v10825_v6 = vcombine.low %v27_v46, %v27_v46 }
  0x1b   :  { %4870 = vmatpush1.bf16.msra.mxu0 %v9011_v26  ;;  %v9045_v53 = vld [vmem:[%s14089_s1 + $0x364] ss:$16 sps:$4 sm:$0xff]   ;;  %v9048_v55 = vld [vmem:[%s14089_s1 + $0x360] ss:$16 sps:$4 sm:$0xff]  }
  0x1c   :  { %4911 = vmatpush1.bf16.msra.mxu1 %v9012_v27  ;;  %4871 = vmatprep.subr.bf16.mxu0 %v9013_v28  ;;  %v9049_v56 = vld [vmem:[%s14089_s1 + $0x144] ss:$16 sps:$4 sm:$0xff]   ;;  %v9053_v58 = vld [vmem:[%s14089_s1 + $0x140] ss:$16 sps:$4 sm:$0xff]  }
  0x1d   :  { %4912 = vmatprep.subr.bf16.mxu1 %v9015_v29  ;;  %4889 = vmatprep.mubr.bf16.mxu0 %v10756_v47  ;;  %v9051_v57 = vld [vmem:[%s14089_s1 + $0x344] ss:$16 sps:$4 sm:$0xff]   ;;  %v9054_v59 = vld [vmem:[%s14089_s1 + $0x340] ss:$16 sps:$4 sm:$0xff]  }
  0x1e   :  { %v9055_v60 = vld [vmem:[%s14089_s1 + $0x124] ss:$16 sps:$4 sm:$0xff]   ;;  %v9059_v62 = vld [vmem:[%s14089_s1 + $0x120] ss:$16 sps:$4 sm:$0xff]  }
  0x1f   :  { %4872 = vmatpush1.bf16.msra.mxu0 %v9017_v30  ;;  %v9057_v61 = vld [vmem:[%s14089_s1 + $0x324] ss:$16 sps:$4 sm:$0xff]   ;;  %v9060_v63 = vld [vmem:[%s14089_s1 + $0x320] ss:$16 sps:$4 sm:$0xff]  }
  0x20   :  { %4913 = vmatpush1.bf16.msra.mxu1 %v9018_v31  ;;  %4873 = vmatprep.subr.bf16.mxu0 %v9019_v32  ;;  %v9061_v0 = vld [vmem:[%s14089_s1 + $0x104] ss:$16 sps:$4 sm:$0xff]   ;;  %v9065_v2 = vld [vmem:[%s14089_s1 + $0x100] ss:$16 sps:$4 sm:$0xff]  }
  0x21   :  { %4914 = vmatprep.subr.bf16.mxu1 %v9021_v33  ;;  %v9063_v1 = vld [vmem:[%s14089_s1 + $0x304] ss:$16 sps:$4 sm:$0xff]   ;;  %v9066_v3 = vld [vmem:[%s14089_s1 + $0x300] ss:$16 sps:$4 sm:$0xff]   ;;  %v10911_v33 = vld [vmem:[%s14090_s0 + $0x18] sm:$0xff] }
  0x22   :  { %v9073_v4 = vld [vmem:[%s14089_s1 + $0x4e4] ss:$16 sps:$4 sm:$0xff]   ;;  %v9071_v8 = vld [vmem:[%s14089_s1 + $0x4e0] ss:$16 sps:$4 sm:$0xff]  }
  0x23   :  { %4874 = vmatpush2.bf16.msra.mxu0 %v9023_v34  ;;  %v9076_v5 = vld [vmem:[%s14089_s1 + $0x6e4] ss:$16 sps:$4 sm:$0xff]   ;;  %v9074_v9 = vld [vmem:[%s14089_s1 + $0x6e0] ss:$16 sps:$4 sm:$0xff]  }
  0x24   :  { %4915 = vmatpush2.bf16.msra.mxu1 %v9024_v35  ;;  %4875 = vmatprep.subr.bf16.mxu0 %v9025_v36  ;;  %v9079_v10 = vld [vmem:[%s14089_s1 + $0x4c4] ss:$16 sps:$4 sm:$0xff]   ;;  %v9077_v12 = vld [vmem:[%s14089_s1 + $0x4c0] ss:$16 sps:$4 sm:$0xff]  }
  0x25   :  { %4916 = vmatprep.subr.bf16.mxu1 %v9027_v37  ;;  %v9082_v11 = vld [vmem:[%s14089_s1 + $0x6c4] ss:$16 sps:$4 sm:$0xff]   ;;  %v9080_v13 = vld [vmem:[%s14089_s1 + $0x6c0] ss:$16 sps:$4 sm:$0xff]   ;;  %v10925_v37 = vcombine.high %v10911_v33, %v10911_v33 }
  0x26   :  { %v9085_v14 = vld [vmem:[%s14089_s1 + $0x4a4] ss:$16 sps:$4 sm:$0xff]   ;;  %v9083_v16 = vld [vmem:[%s14089_s1 + $0x4a0] ss:$16 sps:$4 sm:$0xff]  }
  0x27   :  { %4876 = vmatpush2.bf16.msra.mxu0 %v9029_v38  ;;  %v9088_v15 = vld [vmem:[%s14089_s1 + $0x6a4] ss:$16 sps:$4 sm:$0xff]   ;;  %v9086_v17 = vld [vmem:[%s14089_s1 + $0x6a0] ss:$16 sps:$4 sm:$0xff]  }
  0x28   :  { %4917 = vmatpush2.bf16.msra.mxu1 %v9030_v39  ;;  %4877 = vmatprep.subr.bf16.mxu0 %v9031_v40  ;;  %v9091_v18 = vld [vmem:[%s14089_s1 + $0x484] ss:$16 sps:$4 sm:$0xff]   ;;  %v9089_v20 = vld [vmem:[%s14089_s1 + $0x480] ss:$16 sps:$4 sm:$0xff]  }
  0x29   :  { %4918 = vmatprep.subr.bf16.mxu1 %v9033_v41  ;;  %v9094_v19 = vld [vmem:[%s14089_s1 + $0x684] ss:$16 sps:$4 sm:$0xff]   ;;  %v9092_v21 = vld [vmem:[%s14089_s1 + $0x680] ss:$16 sps:$4 sm:$0xff]  }
  0x2a   :  { %v9097_v22 = vld [vmem:[%s14089_s1 + $0x464] ss:$16 sps:$4 sm:$0xff]   ;;  %v9095_v24 = vld [vmem:[%s14089_s1 + $0x460] ss:$16 sps:$4 sm:$0xff]  }
  0x2b   :  { %4878 = vmatpush2.bf16.msra.mxu0 %v9035_v42  ;;  %v9100_v23 = vld [vmem:[%s14089_s1 + $0x664] ss:$16 sps:$4 sm:$0xff]   ;;  %v9098_v25 = vld [vmem:[%s14089_s1 + $0x660] ss:$16 sps:$4 sm:$0xff]  }
  0x2c   :  { %4919 = vmatpush2.bf16.msra.mxu1 %v9036_v43  ;;  %4879 = vmatprep.subr.bf16.mxu0 %v9037_v44  ;;  %v9103_v26 = vld [vmem:[%s14089_s1 + $0x444] ss:$16 sps:$4 sm:$0xff]   ;;  %v9101_v28 = vld [vmem:[%s14089_s1 + $0x440] ss:$16 sps:$4 sm:$0xff]  }
  0x2d   :  { %4920 = vmatprep.subr.bf16.mxu1 %v9039_v45  ;;  %v9106_v27 = vld [vmem:[%s14089_s1 + $0x644] ss:$16 sps:$4 sm:$0xff]   ;;  %v9104_v29 = vld [vmem:[%s14089_s1 + $0x640] ss:$16 sps:$4 sm:$0xff]  }
  0x2e   :  { %v9109_v30 = vld [vmem:[%s14089_s1 + $0x424] ss:$16 sps:$4 sm:$0xff]   ;;  %v9107_v34 = vld [vmem:[%s14089_s1 + $0x420] ss:$16 sps:$4 sm:$0xff]  }
  0x2f   :  { %4880 = vmatpush2.bf16.msra.mxu0 %v9041_v49  ;;  %v9112_v31 = vld [vmem:[%s14089_s1 + $0x624] ss:$16 sps:$4 sm:$0xff]   ;;  %v9110_v35 = vld [vmem:[%s14089_s1 + $0x620] ss:$16 sps:$4 sm:$0xff]  }
  0x30   :  { %4921 = vmatpush2.bf16.msra.mxu1 %v9042_v50  ;;  %4881 = vmatprep.subr.bf16.mxu0 %v9043_v52  ;;  %v10906_v32 = vld [vmem:[%s14090_s0 + $0x10] sm:$0xff] }
  0x31   :  { %4922 = vmatprep.subr.bf16.mxu1 %v9045_v53  ;;  %v10921_v36 = vcombine.high %v10906_v32, %v10906_v32  ;;  %v9115_v38 = vld [vmem:[%s14089_s1 + $0x404] ss:$16 sps:$4 sm:$0xff]   ;;  %v9113_v40 = vld [vmem:[%s14089_s1 + $0x400] ss:$16 sps:$4 sm:$0xff]  }
  0x32   :  { %v9118_v39 = vld [vmem:[%s14089_s1 + $0x604] ss:$16 sps:$4 sm:$0xff]   ;;  %v9116_v41 = vld [vmem:[%s14089_s1 + $0x600] ss:$16 sps:$4 sm:$0xff]  }
  0x33   :  { %4882 = vmatpush2.bf16.msra.mxu0 %v9047_v54  ;;  %v9121_v42 = vld [vmem:[%s14089_s1 + $0x5e4] ss:$16 sps:$4 sm:$0xff]   ;;  %v9119_v44 = vld [vmem:[%s14089_s1 + $0x5e0] ss:$16 sps:$4 sm:$0xff]  }
  0x34   :  { %4923 = vmatpush2.bf16.msra.mxu1 %v9048_v55  ;;  %4883 = vmatprep.subr.bf16.mxu0 %v9049_v56  ;;  %v9124_v43 = vld [vmem:[%s14089_s1 + $0x7e4] ss:$16 sps:$4 sm:$0xff]   ;;  %v9122_v45 = vld [vmem:[%s14089_s1 + $0x7e0] ss:$16 sps:$4 sm:$0xff]  }
  0x35   :  { %4924 = vmatprep.subr.bf16.mxu1 %v9051_v57  ;;  %v9127_v46 = vld [vmem:[%s14089_s1 + $0x5c4] ss:$16 sps:$4 sm:$0xff]   ;;  %v9125_v49 = vld [vmem:[%s14089_s1 + $0x5c0] ss:$16 sps:$4 sm:$0xff]  }
  0x36   :  { %v9130_v48 = vld [vmem:[%s14089_s1 + $0x7c4] ss:$16 sps:$4 sm:$0xff]   ;;  %v9128_v50 = vld [vmem:[%s14089_s1 + $0x7c0] ss:$16 sps:$4 sm:$0xff]  }
  0x37   :  { %4884 = vmatpush2.bf16.msra.mxu0 %v9053_v58  ;;  %v9133_v52 = vld [vmem:[%s14089_s1 + $0x5a4] ss:$16 sps:$4 sm:$0xff]   ;;  %v9131_v54 = vld [vmem:[%s14089_s1 + $0x5a0] ss:$16 sps:$4 sm:$0xff]  }
  0x38   :  { %4925 = vmatpush2.bf16.msra.mxu1 %v9054_v59  ;;  %4885 = vmatprep.subr.bf16.mxu0 %v9055_v60  ;;  %v9136_v53 = vld [vmem:[%s14089_s1 + $0x7a4] ss:$16 sps:$4 sm:$0xff]   ;;  %v9134_v55 = vld [vmem:[%s14089_s1 + $0x7a0] ss:$16 sps:$4 sm:$0xff]  }
  0x39   :  { %4926 = vmatprep.subr.bf16.mxu1 %v9057_v61  ;;  %v9139_v56 = vld [vmem:[%s14089_s1 + $0x584] ss:$16 sps:$4 sm:$0xff]   ;;  %v9137_v58 = vld [vmem:[%s14089_s1 + $0x580] ss:$16 sps:$4 sm:$0xff]  }
  0x3a   :  { %v9142_v57 = vld [vmem:[%s14089_s1 + $0x784] ss:$16 sps:$4 sm:$0xff]   ;;  %v9140_v59 = vld [vmem:[%s14089_s1 + $0x780] ss:$16 sps:$4 sm:$0xff]  }
  0x3b   :  { %4886 = vmatpush2.bf16.msra.mxu0 %v9059_v62  ;;  %v9145_v60 = vld [vmem:[%s14089_s1 + $0x564] ss:$16 sps:$4 sm:$0xff]   ;;  %v9143_v62 = vld [vmem:[%s14089_s1 + $0x560] ss:$16 sps:$4 sm:$0xff]  }
  0x3c   :  { %4927 = vmatpush2.bf16.msra.mxu1 %v9060_v63  ;;  %4887 = vmatprep.subr.bf16.mxu0 %v9061_v0  ;;  %v9148_v61 = vld [vmem:[%s14089_s1 + $0x764] ss:$16 sps:$4 sm:$0xff]   ;;  %v9146_v63 = vld [vmem:[%s14089_s1 + $0x760] ss:$16 sps:$4 sm:$0xff]  }
  0x3d   :  { %4928 = vmatprep.subr.bf16.mxu1 %v9063_v1  ;;  %v9151_v0 = vld [vmem:[%s14089_s1 + $0x544] ss:$16 sps:$4 sm:$0xff]  }
  0x3e   :  { %v9154_v1 = vld [vmem:[%s14089_s1 + $0x744] ss:$16 sps:$4 sm:$0xff]  }
  0x3f   :  { %4888 = vmatpush2.bf16.msra.mxu0 %v9065_v2  ;;  %v9149_v2 = vld [vmem:[%s14089_s1 + $0x540] ss:$16 sps:$4 sm:$0xff]  }
  0x40   :  { %4929 = vmatpush2.bf16.msra.mxu1 %v9066_v3  ;;  %4939 = vmatprep.subr.bf16.mxu0 %v9073_v4  ;;  %v9152_v3 = vld [vmem:[%s14089_s1 + $0x740] ss:$16 sps:$4 sm:$0xff]   ;;  %v9157_v4 = vld [vmem:[%s14089_s1 + $0x524] ss:$16 sps:$4 sm:$0xff]  }
  0x41   :  { %4980 = vmatprep.subr.bf16.mxu1 %v9076_v5  ;;  %v9160_v5 = vld [vmem:[%s14089_s1 + $0x724] ss:$16 sps:$4 sm:$0xff]  }
  0x42   :  { %4890 = vmatmul.mubr.bf16.vlgmr.msra.gmra.mxu0 %v10825_v6 }
  0x43   :  { %4931 = vmatmul.mubr.bf16.vlgmr.msra.gmra.mxu1 %v10827_v7  ;;  %4940 = vmatpush1.bf16.msra.mxu0 %v9071_v8  ;;  %v9155_v8 = vld [vmem:[%s14089_s1 + $0x520] ss:$16 sps:$4 sm:$0xff]  }
  0x44   :  { %4981 = vmatpush1.bf16.msra.mxu1 %v9074_v9  ;;  %4941 = vmatprep.subr.bf16.mxu0 %v9079_v10  ;;  %v9158_v9 = vld [vmem:[%s14089_s1 + $0x720] ss:$16 sps:$4 sm:$0xff]   ;;  %v9163_v10 = vld [vmem:[%s14089_s1 + $0x504] ss:$16 sps:$4 sm:$0xff]  }
  0x45   :  { %4982 = vmatprep.subr.bf16.mxu1 %v9082_v11  ;;  %4971 = vmatprep.mubr.bf16.mxu0 %v10921_v36  ;;  %v9166_v11 = vld [vmem:[%s14089_s1 + $0x704] ss:$16 sps:$4 sm:$0xff]  }
  0x46   :  { %5012 = vmatprep.mubr.bf16.mxu1 %v10925_v37 }
  0x47   :  { %4942 = vmatpush1.bf16.msra.mxu0 %v9077_v12  ;;  %v9161_v12 = vld [vmem:[%s14089_s1 + $0x500] ss:$16 sps:$4 sm:$0xff]  }
  0x48   :  { %4983 = vmatpush1.bf16.msra.mxu1 %v9080_v13  ;;  %4943 = vmatprep.subr.bf16.mxu0 %v9085_v14  ;;  %v9164_v13 = vld [vmem:[%s14089_s1 + $0x700] ss:$16 sps:$4 sm:$0xff]   ;;  %v9173_v14 = vld [vmem:[%s14089_s1 + $0x8e4] ss:$16 sps:$4 sm:$0xff]  }
  0x49   :  { %4984 = vmatprep.subr.bf16.mxu1 %v9088_v15  ;;  %v9176_v15 = vld [vmem:[%s14089_s1 + $0xae4] ss:$16 sps:$4 sm:$0xff]  }
  0x4b   :  { %4944 = vmatpush1.bf16.msra.mxu0 %v9083_v16  ;;  %v11045_v16 = vcombine.low %v10906_v32, %v10906_v32  ;;  %v9191_v32 = vld [vmem:[%s14089_s1 + $0x884] ss:$16 sps:$4 sm:$0xff]  }
  0x4c   :  { %4985 = vmatpush1.bf16.msra.mxu1 %v9086_v17  ;;  %4945 = vmatprep.subr.bf16.mxu0 %v9091_v18  ;;  %v11049_v17 = vcombine.low %v10911_v33, %v10911_v33  ;;  %v9171_v18 = vld [vmem:[%s14089_s1 + $0x8e0] ss:$16 sps:$4 sm:$0xff]   ;;  %v9194_v33 = vld [vmem:[%s14089_s1 + $0xa84] ss:$16 sps:$4 sm:$0xff]  }
  0x4d   :  { %4986 = vmatprep.subr.bf16.mxu1 %v9094_v19  ;;  %v9174_v19 = vld [vmem:[%s14089_s1 + $0xae0] ss:$16 sps:$4 sm:$0xff]  }
  0x4f   :  { %4946 = vmatpush1.bf16.msra.mxu0 %v9089_v20  ;;  %v9179_v20 = vld [vmem:[%s14089_s1 + $0x8c4] ss:$16 sps:$4 sm:$0xff]  }
  0x50   :  { %4987 = vmatpush1.bf16.msra.mxu1 %v9092_v21  ;;  %4947 = vmatprep.subr.bf16.mxu0 %v9097_v22  ;;  %v9182_v21 = vld [vmem:[%s14089_s1 + $0xac4] ss:$16 sps:$4 sm:$0xff]  }
  0x51   :  { %4988 = vmatprep.subr.bf16.mxu1 %v9100_v23  ;;  %v11066_v22 = vld [vmem:[%s14090_s0 + $0x20] sm:$0xff]  ;;  %v11071_v23 = vld [vmem:[%s14090_s0 + $0x28] sm:$0xff] }
  0x53   :  { %4948 = vmatpush1.bf16.msra.mxu0 %v9095_v24  ;;  %v11075_v24 = vcombine.high %v11066_v22, %v11066_v22 }
  0x54   :  { %4989 = vmatpush1.bf16.msra.mxu1 %v9098_v25  ;;  %4949 = vmatprep.subr.bf16.mxu0 %v9103_v26  ;;  %v11079_v25 = vcombine.high %v11071_v23, %v11071_v23  ;;  %v9177_v26 = vld [vmem:[%s14089_s1 + $0x8c0] ss:$16 sps:$4 sm:$0xff]  }
  0x55   :  { %4990 = vmatprep.subr.bf16.mxu1 %v9106_v27  ;;  %v9180_v27 = vld [vmem:[%s14089_s1 + $0xac0] ss:$16 sps:$4 sm:$0xff]  }
  0x57   :  { %4950 = vmatpush1.bf16.msra.mxu0 %v9101_v28  ;;  %v9185_v28 = vld [vmem:[%s14089_s1 + $0x8a4] ss:$16 sps:$4 sm:$0xff]  }
  0x58   :  { %4991 = vmatpush1.bf16.msra.mxu1 %v9104_v29  ;;  %4951 = vmatprep.subr.bf16.mxu0 %v9109_v30  ;;  %v9188_v29 = vld [vmem:[%s14089_s1 + $0xaa4] ss:$16 sps:$4 sm:$0xff]   ;;  %v9183_v30 = vld [vmem:[%s14089_s1 + $0x8a0] ss:$16 sps:$4 sm:$0xff]  }
  0x59   :  { %4992 = vmatprep.subr.bf16.mxu1 %v9112_v31  ;;  %v9186_v31 = vld [vmem:[%s14089_s1 + $0xaa0] ss:$16 sps:$4 sm:$0xff]  }
  0x5b   :  { %4952 = vmatpush1.bf16.msra.mxu0 %v9107_v34  ;;  %v9189_v34 = vld [vmem:[%s14089_s1 + $0x880] ss:$16 sps:$4 sm:$0xff]  }
  0x5c   :  { %4993 = vmatpush1.bf16.msra.mxu1 %v9110_v35  ;;  %4953 = vmatprep.subr.bf16.mxu0 %v9115_v38  ;;  %v9192_v35 = vld [vmem:[%s14089_s1 + $0xa80] ss:$16 sps:$4 sm:$0xff]   ;;  %v9197_v38 = vld [vmem:[%s14089_s1 + $0x864] ss:$16 sps:$4 sm:$0xff]  }
  0x5d   :  { %4994 = vmatprep.subr.bf16.mxu1 %v9118_v39  ;;  %v9200_v39 = vld [vmem:[%s14089_s1 + $0xa64] ss:$16 sps:$4 sm:$0xff]  }
  0x5f   :  { %4954 = vmatpush1.bf16.msra.mxu0 %v9113_v40  ;;  %v9195_v40 = vld [vmem:[%s14089_s1 + $0x860] ss:$16 sps:$4 sm:$0xff]  }
  0x60   :  { %4995 = vmatpush1.bf16.msra.mxu1 %v9116_v41  ;;  %4955 = vmatprep.subr.bf16.mxu0 %v9121_v42  ;;  %v9198_v41 = vld [vmem:[%s14089_s1 + $0xa60] ss:$16 sps:$4 sm:$0xff]   ;;  %v9203_v42 = vld [vmem:[%s14089_s1 + $0x844] ss:$16 sps:$4 sm:$0xff]  }
  0x61   :  { %4996 = vmatprep.subr.bf16.mxu1 %v9124_v43  ;;  %v9206_v43 = vld [vmem:[%s14089_s1 + $0xa44] ss:$16 sps:$4 sm:$0xff]  }
  0x63   :  { %4956 = vmatpush2.bf16.msra.mxu0 %v9119_v44  ;;  %v9201_v44 = vld [vmem:[%s14089_s1 + $0x840] ss:$16 sps:$4 sm:$0xff]  }
  0x64   :  { %4997 = vmatpush2.bf16.msra.mxu1 %v9122_v45  ;;  %4957 = vmatprep.subr.bf16.mxu0 %v9127_v46  ;;  %v9204_v45 = vld [vmem:[%s14089_s1 + $0xa40] ss:$16 sps:$4 sm:$0xff]   ;;  %v9209_v46 = vld [vmem:[%s14089_s1 + $0x824] ss:$16 sps:$4 sm:$0xff]  }
  0x65   :  { %4998 = vmatprep.subr.bf16.mxu1 %v9130_v48  ;;  %v9212_v48 = vld [vmem:[%s14089_s1 + $0xa24] ss:$16 sps:$4 sm:$0xff]  }
  0x67   :  { %4958 = vmatpush2.bf16.msra.mxu0 %v9125_v49  ;;  %v9207_v49 = vld [vmem:[%s14089_s1 + $0x820] ss:$16 sps:$4 sm:$0xff]  }
  0x68   :  { %4999 = vmatpush2.bf16.msra.mxu1 %v9128_v50  ;;  %4959 = vmatprep.subr.bf16.mxu0 %v9133_v52  ;;  %v9210_v50 = vld [vmem:[%s14089_s1 + $0xa20] ss:$16 sps:$4 sm:$0xff]   ;;  %v9215_v52 = vld [vmem:[%s14089_s1 + $0x804] ss:$16 sps:$4 sm:$0xff]  }
  0x69   :  { %5000 = vmatprep.subr.bf16.mxu1 %v9136_v53  ;;  %v9218_v53 = vld [vmem:[%s14089_s1 + $0xa04] ss:$16 sps:$4 sm:$0xff]  }
  0x6b   :  { %4960 = vmatpush2.bf16.msra.mxu0 %v9131_v54  ;;  %v9213_v54 = vld [vmem:[%s14089_s1 + $0x800] ss:$16 sps:$4 sm:$0xff]  }
  0x6c   :  { %5001 = vmatpush2.bf16.msra.mxu1 %v9134_v55  ;;  %4961 = vmatprep.subr.bf16.mxu0 %v9139_v56  ;;  %v9216_v55 = vld [vmem:[%s14089_s1 + $0xa00] ss:$16 sps:$4 sm:$0xff]   ;;  %v9221_v56 = vld [vmem:[%s14089_s1 + $0x9e4] ss:$16 sps:$4 sm:$0xff]  }
  0x6d   :  { %5002 = vmatprep.subr.bf16.mxu1 %v9142_v57  ;;  %v9224_v57 = vld [vmem:[%s14089_s1 + $0xbe4] ss:$16 sps:$4 sm:$0xff]  }
  0x6f   :  { %4962 = vmatpush2.bf16.msra.mxu0 %v9137_v58  ;;  %v9219_v58 = vld [vmem:[%s14089_s1 + $0x9e0] ss:$16 sps:$4 sm:$0xff]  }
  0x70   :  { %5003 = vmatpush2.bf16.msra.mxu1 %v9140_v59  ;;  %4963 = vmatprep.subr.bf16.mxu0 %v9145_v60  ;;  %v9222_v59 = vld [vmem:[%s14089_s1 + $0xbe0] ss:$16 sps:$4 sm:$0xff]   ;;  %v9227_v60 = vld [vmem:[%s14089_s1 + $0x9c4] ss:$16 sps:$4 sm:$0xff]  }
  0x71   :  { %5004 = vmatprep.subr.bf16.mxu1 %v9148_v61  ;;  %v9230_v61 = vld [vmem:[%s14089_s1 + $0xbc4] ss:$16 sps:$4 sm:$0xff]  }
  0x73   :  { %4964 = vmatpush2.bf16.msra.mxu0 %v9143_v62  ;;  %v9225_v62 = vld [vmem:[%s14089_s1 + $0x9c0] ss:$16 sps:$4 sm:$0xff]  }
  0x74   :  { %5005 = vmatpush2.bf16.msra.mxu1 %v9146_v63  ;;  %4965 = vmatprep.subr.bf16.mxu0 %v9151_v0  ;;  %v9228_v63 = vld [vmem:[%s14089_s1 + $0xbc0] ss:$16 sps:$4 sm:$0xff]   ;;  %v9233_v0 = vld [vmem:[%s14089_s1 + $0x9a4] ss:$16 sps:$4 sm:$0xff]  }
  0x75   :  { %5006 = vmatprep.subr.bf16.mxu1 %v9154_v1  ;;  %v9236_v1 = vld [vmem:[%s14089_s1 + $0xba4] ss:$16 sps:$4 sm:$0xff]  }
  0x77   :  { %4966 = vmatpush2.bf16.msra.mxu0 %v9149_v2  ;;  %v9231_v2 = vld [vmem:[%s14089_s1 + $0x9a0] ss:$16 sps:$4 sm:$0xff]  }
  0x78   :  { %5007 = vmatpush2.bf16.msra.mxu1 %v9152_v3  ;;  %4967 = vmatprep.subr.bf16.mxu0 %v9157_v4  ;;  %v9234_v3 = vld [vmem:[%s14089_s1 + $0xba0] ss:$16 sps:$4 sm:$0xff]   ;;  %v9239_v4 = vld [vmem:[%s14089_s1 + $0x984] ss:$16 sps:$4 sm:$0xff]  }
  0x79   :  { %5008 = vmatprep.subr.bf16.mxu1 %v9160_v5  ;;  %v9242_v5 = vld [vmem:[%s14089_s1 + $0xb84] ss:$16 sps:$4 sm:$0xff]  }
  0x7b   :  { %4968 = vmatpush2.bf16.msra.mxu0 %v9155_v8  ;;  %v9237_v8 = vld [vmem:[%s14089_s1 + $0x980] ss:$16 sps:$4 sm:$0xff]  }
  0x7c   :  { %5009 = vmatpush2.bf16.msra.mxu1 %v9158_v9  ;;  %4969 = vmatprep.subr.bf16.mxu0 %v9163_v10  ;;  %v9240_v9 = vld [vmem:[%s14089_s1 + $0xb80] ss:$16 sps:$4 sm:$0xff]   ;;  %v9245_v10 = vld [vmem:[%s14089_s1 + $0x964] ss:$16 sps:$4 sm:$0xff]  }
  0x7d   :  { %5010 = vmatprep.subr.bf16.mxu1 %v9166_v11  ;;  %v9248_v11 = vld [vmem:[%s14089_s1 + $0xb64] ss:$16 sps:$4 sm:$0xff]  }
  0x7f   :  { %4970 = vmatpush2.bf16.msra.mxu0 %v9161_v12  ;;  %v9243_v12 = vld [vmem:[%s14089_s1 + $0x960] ss:$16 sps:$4 sm:$0xff]  }
  0x80   :  { %5011 = vmatpush2.bf16.msra.mxu1 %v9164_v13  ;;  %5021 = vmatprep.subr.bf16.mxu0 %v9173_v14  ;;  %v9246_v13 = vld [vmem:[%s14089_s1 + $0xb60] ss:$16 sps:$4 sm:$0xff]   ;;  %v9251_v14 = vld [vmem:[%s14089_s1 + $0x944] ss:$16 sps:$4 sm:$0xff]  }
  0x81   :  { %5062 = vmatprep.subr.bf16.mxu1 %v9176_v15  ;;  %v9254_v15 = vld [vmem:[%s14089_s1 + $0xb44] ss:$16 sps:$4 sm:$0xff]  }
  0x82   :  { %4972 = vmatmul.mubr.bf16.vlgmr.msra.gmra.mxu0 %v11045_v16 }
  0x83   :  { %5013 = vmatmul.mubr.bf16.vlgmr.msra.gmra.mxu1 %v11049_v17  ;;  %5022 = vmatpush1.bf16.msra.mxu0 %v9171_v18  ;;  %v9249_v18 = vld [vmem:[%s14089_s1 + $0x940] ss:$16 sps:$4 sm:$0xff]  }
  0x84   :  { %5063 = vmatpush1.bf16.msra.mxu1 %v9174_v19  ;;  %5023 = vmatprep.subr.bf16.mxu0 %v9179_v20  ;;  %v9252_v19 = vld [vmem:[%s14089_s1 + $0xb40] ss:$16 sps:$4 sm:$0xff]   ;;  %v9257_v20 = vld [vmem:[%s14089_s1 + $0x924] ss:$16 sps:$4 sm:$0xff]  }
  0x85   :  { %5064 = vmatprep.subr.bf16.mxu1 %v9182_v21  ;;  %5053 = vmatprep.mubr.bf16.mxu0 %v11075_v24  ;;  %v9260_v21 = vld [vmem:[%s14089_s1 + $0xb24] ss:$16 sps:$4 sm:$0xff]  }
  0x86   :  { %5094 = vmatprep.mubr.bf16.mxu1 %v11079_v25 }
  0x87   :  { %5024 = vmatpush1.bf16.msra.mxu0 %v9177_v26  ;;  %v9255_v26 = vld [vmem:[%s14089_s1 + $0x920] ss:$16 sps:$4 sm:$0xff]  }
  0x88   :  { %5065 = vmatpush1.bf16.msra.mxu1 %v9180_v27  ;;  %5025 = vmatprep.subr.bf16.mxu0 %v9185_v28  ;;  %v9258_v27 = vld [vmem:[%s14089_s1 + $0xb20] ss:$16 sps:$4 sm:$0xff]   ;;  %v9263_v28 = vld [vmem:[%s14089_s1 + $0x904] ss:$16 sps:$4 sm:$0xff]  }
  0x89   :  { %5066 = vmatprep.subr.bf16.mxu1 %v9188_v29  ;;  %v9266_v29 = vld [vmem:[%s14089_s1 + $0xb04] ss:$16 sps:$4 sm:$0xff]  }
  0x8b   :  { %5026 = vmatpush1.bf16.msra.mxu0 %v9183_v30  ;;  %v9261_v30 = vld [vmem:[%s14089_s1 + $0x900] ss:$16 sps:$4 sm:$0xff]  }
  0x8c   :  { %5067 = vmatpush1.bf16.msra.mxu1 %v9186_v31  ;;  %5027 = vmatprep.subr.bf16.mxu0 %v9191_v32  ;;  %v9264_v31 = vld [vmem:[%s14089_s1 + $0xb00] ss:$16 sps:$4 sm:$0xff]   ;;  %v9273_v32 = vld [vmem:[%s14089_s1 + $0xce4] ss:$16 sps:$4 sm:$0xff]  }
  0x8d   :  { %5068 = vmatprep.subr.bf16.mxu1 %v9194_v33  ;;  %v9276_v33 = vld [vmem:[%s14089_s1 + $0xee4] ss:$16 sps:$4 sm:$0xff]  }
  0x8f   :  { %5028 = vmatpush1.bf16.msra.mxu0 %v9189_v34  ;;  %v9271_v34 = vld [vmem:[%s14089_s1 + $0xce0] ss:$16 sps:$4 sm:$0xff]  }
  0x90   :  { %5069 = vmatpush1.bf16.msra.mxu1 %v9192_v35  ;;  %5029 = vmatprep.subr.bf16.mxu0 %v9197_v38  ;;  %v11271_v35 = vld [vmem:[%s14090_s0 + $0x30] sm:$0xff]  ;;  %v11275_v38 = vcombine.low %v11066_v22, %v11066_v22 }
  0x91   :  { %5070 = vmatprep.subr.bf16.mxu1 %v9200_v39  ;;  %v11279_v39 = vcombine.low %v11071_v23, %v11071_v23  ;;  %v9279_v22 = vld [vmem:[%s14089_s1 + $0xcc4] ss:$16 sps:$4 sm:$0xff]  }
  0x92   :  { %v9282_v23 = vld [vmem:[%s14089_s1 + $0xec4] ss:$16 sps:$4 sm:$0xff]  }
  0x93   :  { %5030 = vmatpush1.bf16.msra.mxu0 %v9195_v40  ;;  %v11284_v40 = vld [vmem:[%s14090_s0 + $0x38] sm:$0xff] }
  0x94   :  { %5071 = vmatpush1.bf16.msra.mxu1 %v9198_v41  ;;  %5031 = vmatprep.subr.bf16.mxu0 %v9203_v42  ;;  %v9274_v41 = vld [vmem:[%s14089_s1 + $0xee0] ss:$16 sps:$4 sm:$0xff]   ;;  %v11297_v42 = vcombine.high %v11271_v35, %v11271_v35 }
  0x95   :  { %5072 = vmatprep.subr.bf16.mxu1 %v9206_v43  ;;  %v11301_v43 = vcombine.high %v11284_v40, %v11284_v40 }
  0x97   :  { %5032 = vmatpush1.bf16.msra.mxu0 %v9201_v44  ;;  %v9277_v44 = vld [vmem:[%s14089_s1 + $0xcc0] ss:$16 sps:$4 sm:$0xff]  }
  0x98   :  { %5073 = vmatpush1.bf16.msra.mxu1 %v9204_v45  ;;  %5033 = vmatprep.subr.bf16.mxu0 %v9209_v46  ;;  %v9280_v45 = vld [vmem:[%s14089_s1 + $0xec0] ss:$16 sps:$4 sm:$0xff]   ;;  %v9285_v46 = vld [vmem:[%s14089_s1 + $0xca4] ss:$16 sps:$4 sm:$0xff]  }
  0x99   :  { %5074 = vmatprep.subr.bf16.mxu1 %v9212_v48  ;;  %v9288_v48 = vld [vmem:[%s14089_s1 + $0xea4] ss:$16 sps:$4 sm:$0xff]  }
  0x9b   :  { %5034 = vmatpush1.bf16.msra.mxu0 %v9207_v49  ;;  %v9283_v49 = vld [vmem:[%s14089_s1 + $0xca0] ss:$16 sps:$4 sm:$0xff]  }
  0x9c   :  { %5075 = vmatpush1.bf16.msra.mxu1 %v9210_v50  ;;  %5035 = vmatprep.subr.bf16.mxu0 %v9215_v52  ;;  %v9286_v50 = vld [vmem:[%s14089_s1 + $0xea0] ss:$16 sps:$4 sm:$0xff]   ;;  %v9291_v52 = vld [vmem:[%s14089_s1 + $0xc84] ss:$16 sps:$4 sm:$0xff]  }
  0x9d   :  { %5076 = vmatprep.subr.bf16.mxu1 %v9218_v53  ;;  %v9294_v53 = vld [vmem:[%s14089_s1 + $0xe84] ss:$16 sps:$4 sm:$0xff]  }
  0x9f   :  { %5036 = vmatpush1.bf16.msra.mxu0 %v9213_v54  ;;  %v9289_v54 = vld [vmem:[%s14089_s1 + $0xc80] ss:$16 sps:$4 sm:$0xff]  }
  0xa0   :  { %5077 = vmatpush1.bf16.msra.mxu1 %v9216_v55  ;;  %5037 = vmatprep.subr.bf16.mxu0 %v9221_v56  ;;  %v9292_v55 = vld [vmem:[%s14089_s1 + $0xe80] ss:$16 sps:$4 sm:$0xff]   ;;  %v9297_v56 = vld [vmem:[%s14089_s1 + $0xc64] ss:$16 sps:$4 sm:$0xff]  }
  0xa1   :  { %5078 = vmatprep.subr.bf16.mxu1 %v9224_v57  ;;  %v9300_v57 = vld [vmem:[%s14089_s1 + $0xe64] ss:$16 sps:$4 sm:$0xff]  }
  0xa3   :  { %5038 = vmatpush2.bf16.msra.mxu0 %v9219_v58  ;;  %v9295_v58 = vld [vmem:[%s14089_s1 + $0xc60] ss:$16 sps:$4 sm:$0xff]  }
  0xa4   :  { %5079 = vmatpush2.bf16.msra.mxu1 %v9222_v59  ;;  %5039 = vmatprep.subr.bf16.mxu0 %v9227_v60  ;;  %v9298_v59 = vld [vmem:[%s14089_s1 + $0xe60] ss:$16 sps:$4 sm:$0xff]   ;;  %v9303_v60 = vld [vmem:[%s14089_s1 + $0xc44] ss:$16 sps:$4 sm:$0xff]  }
  0xa5   :  { %5080 = vmatprep.subr.bf16.mxu1 %v9230_v61  ;;  %v9306_v61 = vld [vmem:[%s14089_s1 + $0xe44] ss:$16 sps:$4 sm:$0xff]  }
  0xa7   :  { %5040 = vmatpush2.bf16.msra.mxu0 %v9225_v62  ;;  %v9301_v62 = vld [vmem:[%s14089_s1 + $0xc40] ss:$16 sps:$4 sm:$0xff]  }
  0xa8   :  { %5081 = vmatpush2.bf16.msra.mxu1 %v9228_v63  ;;  %5041 = vmatprep.subr.bf16.mxu0 %v9233_v0  ;;  %v9304_v63 = vld [vmem:[%s14089_s1 + $0xe40] ss:$16 sps:$4 sm:$0xff]   ;;  %v9309_v0 = vld [vmem:[%s14089_s1 + $0xc24] ss:$16 sps:$4 sm:$0xff]  }
  0xa9   :  { %5082 = vmatprep.subr.bf16.mxu1 %v9236_v1  ;;  %v9312_v1 = vld [vmem:[%s14089_s1 + $0xe24] ss:$16 sps:$4 sm:$0xff]  }
  0xab   :  { %5042 = vmatpush2.bf16.msra.mxu0 %v9231_v2  ;;  %v9307_v2 = vld [vmem:[%s14089_s1 + $0xc20] ss:$16 sps:$4 sm:$0xff]  }
  0xac   :  { %5083 = vmatpush2.bf16.msra.mxu1 %v9234_v3  ;;  %5043 = vmatprep.subr.bf16.mxu0 %v9239_v4  ;;  %v9310_v3 = vld [vmem:[%s14089_s1 + $0xe20] ss:$16 sps:$4 sm:$0xff]   ;;  %v9315_v4 = vld [vmem:[%s14089_s1 + $0xc04] ss:$16 sps:$4 sm:$0xff]  }
  0xad   :  { %5084 = vmatprep.subr.bf16.mxu1 %v9242_v5  ;;  %v9318_v5 = vld [vmem:[%s14089_s1 + $0xe04] ss:$16 sps:$4 sm:$0xff]  }
  0xaf   :  { %5044 = vmatpush2.bf16.msra.mxu0 %v9237_v8  ;;  %v9313_v8 = vld [vmem:[%s14089_s1 + $0xc00] ss:$16 sps:$4 sm:$0xff]  }
  0xb0   :  { %5085 = vmatpush2.bf16.msra.mxu1 %v9240_v9  ;;  %5045 = vmatprep.subr.bf16.mxu0 %v9245_v10  ;;  %v9316_v9 = vld [vmem:[%s14089_s1 + $0xe00] ss:$16 sps:$4 sm:$0xff]   ;;  %v9321_v10 = vld [vmem:[%s14089_s1 + $0xde4] ss:$16 sps:$4 sm:$0xff]  }
  0xb1   :  { %5086 = vmatprep.subr.bf16.mxu1 %v9248_v11  ;;  %v9324_v11 = vld [vmem:[%s14089_s1 + $0xfe4] ss:$16 sps:$4 sm:$0xff]  }
  0xb3   :  { %5046 = vmatpush2.bf16.msra.mxu0 %v9243_v12  ;;  %v9319_v12 = vld [vmem:[%s14089_s1 + $0xde0] ss:$16 sps:$4 sm:$0xff]  }
  0xb4   :  { %5087 = vmatpush2.bf16.msra.mxu1 %v9246_v13  ;;  %5047 = vmatprep.subr.bf16.mxu0 %v9251_v14  ;;  %v9322_v13 = vld [vmem:[%s14089_s1 + $0xfe0] ss:$16 sps:$4 sm:$0xff]   ;;  %v9327_v14 = vld [vmem:[%s14089_s1 + $0xdc4] ss:$16 sps:$4 sm:$0xff]  }
  0xb5   :  { %5088 = vmatprep.subr.bf16.mxu1 %v9254_v15  ;;  %v9330_v15 = vld [vmem:[%s14089_s1 + $0xfc4] ss:$16 sps:$4 sm:$0xff]  }
  0xb7   :  { %5048 = vmatpush2.bf16.msra.mxu0 %v9249_v18  ;;  %v9325_v18 = vld [vmem:[%s14089_s1 + $0xdc0] ss:$16 sps:$4 sm:$0xff]  }
  0xb8   :  { %5089 = vmatpush2.bf16.msra.mxu1 %v9252_v19  ;;  %5049 = vmatprep.subr.bf16.mxu0 %v9257_v20  ;;  %v9328_v19 = vld [vmem:[%s14089_s1 + $0xfc0] ss:$16 sps:$4 sm:$0xff]   ;;  %v9333_v20 = vld [vmem:[%s14089_s1 + $0xda4] ss:$16 sps:$4 sm:$0xff]  }
  0xb9   :  { %5090 = vmatprep.subr.bf16.mxu1 %v9260_v21  ;;  %v9336_v21 = vld [vmem:[%s14089_s1 + $0xfa4] ss:$16 sps:$4 sm:$0xff]  }
  0xbb   :  { %5050 = vmatpush2.bf16.msra.mxu0 %v9255_v26  ;;  %v9331_v26 = vld [vmem:[%s14089_s1 + $0xda0] ss:$16 sps:$4 sm:$0xff]  }
  0xbc   :  { %5091 = vmatpush2.bf16.msra.mxu1 %v9258_v27  ;;  %5051 = vmatprep.subr.bf16.mxu0 %v9263_v28  ;;  %v9334_v27 = vld [vmem:[%s14089_s1 + $0xfa0] ss:$16 sps:$4 sm:$0xff]   ;;  %v9339_v28 = vld [vmem:[%s14089_s1 + $0xd84] ss:$16 sps:$4 sm:$0xff]  }
  0xbd   :  { %5092 = vmatprep.subr.bf16.mxu1 %v9266_v29  ;;  %v9342_v29 = vld [vmem:[%s14089_s1 + $0xf84] ss:$16 sps:$4 sm:$0xff]  }
  0xbf   :  { %5052 = vmatpush2.bf16.msra.mxu0 %v9261_v30  ;;  %v9337_v30 = vld [vmem:[%s14089_s1 + $0xd80] ss:$16 sps:$4 sm:$0xff]  }
  0xc0   :  { %5093 = vmatpush2.bf16.msra.mxu1 %v9264_v31  ;;  %5103 = vmatprep.subr.bf16.mxu0 %v9273_v32  ;;  %v9340_v31 = vld [vmem:[%s14089_s1 + $0xf80] ss:$16 sps:$4 sm:$0xff]   ;;  %v9345_v32 = vld [vmem:[%s14089_s1 + $0xd64] ss:$16 sps:$4 sm:$0xff]  }
  0xc1   :  { %5144 = vmatprep.subr.bf16.mxu1 %v9276_v33  ;;  %v9348_v33 = vld [vmem:[%s14089_s1 + $0xf64] ss:$16 sps:$4 sm:$0xff]  }
  0xc2   :  { %5054 = vmatmul.mubr.bf16.vlgmr.msra.gmra.mxu0 %v11275_v38 }
  0xc3   :  { %5095 = vmatmul.mubr.bf16.vlgmr.msra.gmra.mxu1 %v11279_v39  ;;  %5104 = vmatpush1.bf16.msra.mxu0 %v9271_v34  ;;  %v9343_v34 = vld [vmem:[%s14089_s1 + $0xd60] ss:$16 sps:$4 sm:$0xff]  }
  0xc4   :  { %5145 = vmatpush1.bf16.msra.mxu1 %v9274_v41  ;;  %5105 = vmatprep.subr.bf16.mxu0 %v9279_v22  ;;  %v9346_v41 = vld [vmem:[%s14089_s1 + $0xf60] ss:$16 sps:$4 sm:$0xff]   ;;  %v9351_v22 = vld [vmem:[%s14089_s1 + $0xd44] ss:$16 sps:$4 sm:$0xff]  }
  0xc5   :  { %5146 = vmatprep.subr.bf16.mxu1 %v9282_v23  ;;  %5135 = vmatprep.mubr.bf16.mxu0 %v11297_v42  ;;  %v9354_v23 = vld [vmem:[%s14089_s1 + $0xf44] ss:$16 sps:$4 sm:$0xff]  }
  0xc6   :  { %5176 = vmatprep.mubr.bf16.mxu1 %v11301_v43 }
  0xc7   :  { %5106 = vmatpush1.bf16.msra.mxu0 %v9277_v44  ;;  %v9349_v44 = vld [vmem:[%s14089_s1 + $0xd40] ss:$16 sps:$4 sm:$0xff]  }
  0xc8   :  { %5147 = vmatpush1.bf16.msra.mxu1 %v9280_v45  ;;  %5107 = vmatprep.subr.bf16.mxu0 %v9285_v46  ;;  %v9352_v45 = vld [vmem:[%s14089_s1 + $0xf40] ss:$16 sps:$4 sm:$0xff]   ;;  %v9357_v46 = vld [vmem:[%s14089_s1 + $0xd24] ss:$16 sps:$4 sm:$0xff]  }
  0xc9   :  { %5148 = vmatprep.subr.bf16.mxu1 %v9288_v48  ;;  %v826_v48 = vlaneseq }
  0xcb   :  { %5108 = vmatpush1.bf16.msra.mxu0 %v9283_v49  ;;  %v9360_v49 = vld [vmem:[%s14089_s1 + $0xf24] ss:$16 sps:$4 sm:$0xff]  }
  0xcc   :  { %5149 = vmatpush1.bf16.msra.mxu1 %v9286_v50  ;;  %5109 = vmatprep.subr.bf16.mxu0 %v9291_v52  ;;  %v9355_v50 = vld [vmem:[%s14089_s1 + $0xd20] ss:$16 sps:$4 sm:$0xff]  }
  0xcd   :  { %5150 = vmatprep.subr.bf16.mxu1 %v9294_v53  ;;  %v9358_v52 = vld [vmem:[%s14089_s1 + $0xf20] ss:$16 sps:$4 sm:$0xff]   ;;  %v9363_v53 = vld [vmem:[%s14089_s1 + $0xd04] ss:$16 sps:$4 sm:$0xff]  }
  0xcf   :  { %5110 = vmatpush1.bf16.msra.mxu0 %v9289_v54  ;;  %v11472_v54 = vshrl.u32 %v826_v48, 7  ;;  %v9395_v48 = vld [vmem:[%s14089_s1 + $0x1060] ss:$16 sps:$4 sm:$0xff]  }
  0xd0   :  { %5151 = vmatpush1.bf16.msra.mxu1 %v9292_v55  ;;  %5111 = vmatprep.subr.bf16.mxu0 %v9297_v56  ;;  %v9366_v55 = vld [vmem:[%s14089_s1 + $0xf04] ss:$16 sps:$4 sm:$0xff]   ;;  %v9361_v56 = vld [vmem:[%s14089_s1 + $0xd00] ss:$16 sps:$4 sm:$0xff]  }
  0xd1   :  { %5152 = vmatprep.subr.bf16.mxu1 %v9300_v57  ;;  %v9364_v57 = vld [vmem:[%s14089_s1 + $0xf00] ss:$16 sps:$4 sm:$0xff]  }
  0xd3   :  { %5112 = vmatpush1.bf16.msra.mxu0 %v9295_v58  ;;  %v824_v58 = vld [vmem:[%s14091_s2] sm:$0xf] }
  0xd4   :  { %5153 = vmatpush1.bf16.msra.mxu1 %v9298_v59  ;;  %5113 = vmatprep.subr.bf16.mxu0 %v9303_v60  ;;  %v11487_v59 = vsub.s32 0, %v11472_v54  ;;  %v9373_v60 = vld [vmem:[%s14089_s1 + $0x10e4] ss:$16 sps:$4 sm:$0xff]  }
  0xd5   :  { %5154 = vmatprep.subr.bf16.mxu1 %v9306_v61  ;;  %v9376_v61 = vld [vmem:[%s14089_s1 + $0x12e4] ss:$16 sps:$4 sm:$0xff]  }
  0xd7   :  { %5114 = vmatpush1.bf16.msra.mxu0 %v9301_v62  ;;  %v9371_v62 = vld [vmem:[%s14089_s1 + $0x10e0] ss:$16 sps:$4 sm:$0xff]  }
  0xd8   :  { %5155 = vmatpush1.bf16.msra.mxu1 %v9304_v63  ;;  %5115 = vmatprep.subr.bf16.mxu0 %v9309_v0  ;;  %v11499_v63 = vsub.s32 1, %v11472_v54  ;;  %v11503_v0 = vcombine.low %v11271_v35, %v11271_v35  ;;  %v9374_v35 = vld [vmem:[%s14089_s1 + $0x12e0] ss:$16 sps:$4 sm:$0xff]  }
  0xd9   :  { %5156 = vmatprep.subr.bf16.mxu1 %v9312_v1  ;;  %v11507_v1 = vcombine.low %v11284_v40, %v11284_v40  ;;  %v9379_v40 = vld [vmem:[%s14089_s1 + $0x10c4] ss:$16 sps:$4 sm:$0xff]  }
  0xdb   :  { %5116 = vmatpush1.bf16.msra.mxu0 %v9307_v2  ;;  %v11512_v2 = vld [vmem:[%s14090_s0 + $0x40] sm:$0xff] }
  0xdc   :  { %5157 = vmatpush1.bf16.msra.mxu1 %v9310_v3  ;;  %5117 = vmatprep.subr.bf16.mxu0 %v9315_v4  ;;  %v11517_v3 = vld [vmem:[%s14090_s0 + $0x48] sm:$0xff]  ;;  %v829_v4 = vrot.slane %v824_v58, %v11487_v59 }
  0xdd   :  { %5158 = vmatprep.subr.bf16.mxu1 %v9318_v5  ;;  %v9382_v5 = vld [vmem:[%s14089_s1 + $0x12c4] ss:$16 sps:$4 sm:$0xff]  }
  0xdf   :  { %5118 = vmatpush1.bf16.msra.mxu0 %v9313_v8  ;;  %v833_v8 = vrot.slane %v824_v58, %v11499_v63  ;;  %v9407_v58 = vld [vmem:[%s14089_s1 + $0x1020] ss:$16 sps:$4 sm:$0xff]  }
  0xe0   :  { %5159 = vmatpush1.bf16.msra.mxu1 %v9316_v9  ;;  %5119 = vmatprep.subr.bf16.mxu0 %v9321_v10  ;;  %v11532_v9 = vcombine.high %v11512_v2, %v11512_v2  ;;  %v11536_v10 = vcombine.high %v11517_v3, %v11517_v3 }
  0xe1   :  { %5160 = vmatprep.subr.bf16.mxu1 %v9324_v11 }
  0xe3   :  { %5120 = vmatpush2.bf16.msra.mxu0 %v9319_v12 }
  0xe4   :  { %5161 = vmatpush2.bf16.msra.mxu1 %v9322_v13  ;;  %5121 = vmatprep.subr.bf16.mxu0 %v9327_v14  ;;  %v9377_v13 = vld [vmem:[%s14089_s1 + $0x10c0] ss:$16 sps:$4 sm:$0xff]  }
  0xe5   :  { %5162 = vmatprep.subr.bf16.mxu1 %v9330_v15  ;;  %v9380_v15 = vld [vmem:[%s14089_s1 + $0x12c0] ss:$16 sps:$4 sm:$0xff]  }
  0xe7   :  { %5122 = vmatpush2.bf16.msra.mxu0 %v9325_v18 }
  0xe8   :  { %5163 = vmatpush2.bf16.msra.mxu1 %v9328_v19  ;;  %5123 = vmatprep.subr.bf16.mxu0 %v9333_v20  ;;  %v9385_v20 = vld [vmem:[%s14089_s1 + $0x10a4] ss:$16 sps:$4 sm:$0xff]  }
  0xe9   :  { %5164 = vmatprep.subr.bf16.mxu1 %v9336_v21  ;;  %v9388_v21 = vld [vmem:[%s14089_s1 + $0x12a4] ss:$16 sps:$4 sm:$0xff]  }
  0xeb   :  { %5124 = vmatpush2.bf16.msra.mxu0 %v9331_v26 }
  0xec   :  { %5165 = vmatpush2.bf16.msra.mxu1 %v9334_v27  ;;  %5125 = vmatprep.subr.bf16.mxu0 %v9339_v28 }
  0xed   :  { %5166 = vmatprep.subr.bf16.mxu1 %v9342_v29 }
  0xef   :  { %5126 = vmatpush2.bf16.msra.mxu0 %v9337_v30  ;;  %v9383_v30 = vld [vmem:[%s14089_s1 + $0x10a0] ss:$16 sps:$4 sm:$0xff]  }
  0xf0   :  { %5167 = vmatpush2.bf16.msra.mxu1 %v9340_v31  ;;  %5127 = vmatprep.subr.bf16.mxu0 %v9345_v32  ;;  %v9386_v32 = vld [vmem:[%s14089_s1 + $0x12a0] ss:$16 sps:$4 sm:$0xff]  }
  0xf1   :  { %5168 = vmatprep.subr.bf16.mxu1 %v9348_v33 }
  0xf3   :  { %5128 = vmatpush2.bf16.msra.mxu0 %v9343_v34 }
  0xf4   :  { %5169 = vmatpush2.bf16.msra.mxu1 %v9346_v41  ;;  %5129 = vmatprep.subr.bf16.mxu0 %v9351_v22  ;;  %v9391_v41 = vld [vmem:[%s14089_s1 + $0x1084] ss:$16 sps:$4 sm:$0xff]  }
  0xf5   :  { %5170 = vmatprep.subr.bf16.mxu1 %v9354_v23  ;;  %v9394_v22 = vld [vmem:[%s14089_s1 + $0x1284] ss:$16 sps:$4 sm:$0xff]   ;;  %v9389_v23 = vld [vmem:[%s14089_s1 + $0x1080] ss:$16 sps:$4 sm:$0xff]  }
  0xf7   :  { %5130 = vmatpush2.bf16.msra.mxu0 %v9349_v44  ;;  %v9392_v44 = vld [vmem:[%s14089_s1 + $0x1280] ss:$16 sps:$4 sm:$0xff]  }
  0xf8   :  { %5171 = vmatpush2.bf16.msra.mxu1 %v9352_v45  ;;  %5131 = vmatprep.subr.bf16.mxu0 %v9357_v46  ;;  %v9397_v45 = vld [vmem:[%s14089_s1 + $0x1064] ss:$16 sps:$4 sm:$0xff]  }
  0xf9   :  { %5172 = vmatprep.subr.bf16.mxu1 %v9360_v49  ;;  %v9400_v46 = vld [vmem:[%s14089_s1 + $0x1264] ss:$16 sps:$4 sm:$0xff]   ;;  %v9398_v49 = vld [vmem:[%s14089_s1 + $0x1260] ss:$16 sps:$4 sm:$0xff]  }
  0xfb   :  { %5132 = vmatpush2.bf16.msra.mxu0 %v9355_v50  ;;  %v9403_v50 = vld [vmem:[%s14089_s1 + $0x1044] ss:$16 sps:$4 sm:$0xff]  }
  0xfc   :  { %5173 = vmatpush2.bf16.msra.mxu1 %v9358_v52  ;;  %5133 = vmatprep.subr.bf16.mxu0 %v9363_v53  ;;  %v9406_v52 = vld [vmem:[%s14089_s1 + $0x1244] ss:$16 sps:$4 sm:$0xff]   ;;  %v9401_v53 = vld [vmem:[%s14089_s1 + $0x1040] ss:$16 sps:$4 sm:$0xff]  }
  0xfd   :  { %5174 = vmatprep.subr.bf16.mxu1 %v9366_v55  ;;  %v9404_v55 = vld [vmem:[%s14089_s1 + $0x1240] ss:$16 sps:$4 sm:$0xff]  }
  0xff   :  { %5134 = vmatpush2.bf16.msra.mxu0 %v9361_v56  ;;  %v9409_v56 = vld [vmem:[%s14089_s1 + $0x1024] ss:$16 sps:$4 sm:$0xff]  }
 0x100   :  { %5175 = vmatpush2.bf16.msra.mxu1 %v9364_v57  ;;  %5185 = vmatprep.subr.bf16.mxu0 %v9373_v60  ;;  %v9412_v57 = vld [vmem:[%s14089_s1 + $0x1224] ss:$16 sps:$4 sm:$0xff]   ;;  %v9410_v60 = vld [vmem:[%s14089_s1 + $0x1220] ss:$16 sps:$4 sm:$0xff]  }
 0x101   :  { %5226 = vmatprep.subr.bf16.mxu1 %v9376_v61  ;;  %v9415_v61 = vld [vmem:[%s14089_s1 + $0x1004] ss:$16 sps:$4 sm:$0xff]  }
 0x102   :  { %v4891_v11 = vpop.f32.mrf.mxu0  ;;  %5136 = vmatmul.mubr.bf16.vlgmr.msra.gmra.mxu0 %v11503_v0 }
 0x103   :  { %v4932_v12 = vpop.f32.mrf.mxu1  ;;  %5177 = vmatmul.mubr.bf16.vlgmr.msra.gmra.mxu1 %v11507_v1  ;;  %v4892_v14 = vadd.f32 %v4891_v11, %v829_v4  ;;  %5186 = vmatpush1.bf16.msra.mxu0 %v9371_v62  ;;  %v9418_v62 = vld [vmem:[%s14089_s1 + $0x1204] ss:$16 sps:$4 sm:$0xff]   ;;  %v9413_v4 = vld [vmem:[%s14089_s1 + $0x1000] ss:$16 sps:$4 sm:$0xff]  }
 0x104   :  { %5227 = vmatpush1.bf16.msra.mxu1 %v9374_v35  ;;  %v4893_v18 = vpop.f32.mrf.mxu0  ;;  %5187 = vmatprep.subr.bf16.mxu0 %v9379_v40  ;;  %v9416_v35 = vld [vmem:[%s14089_s1 + $0x1200] ss:$16 sps:$4 sm:$0xff]   ;;  %v9421_v40 = vld [vmem:[%s14089_s1 + $0x11e4] ss:$16 sps:$4 sm:$0xff]  }
 0x105   :  { %v4934_v19 = vpop.f32.mrf.mxu1  ;;  %5228 = vmatprep.subr.bf16.mxu1 %v9382_v5  ;;  %v11552_v26 = vadd.f32 %v4932_v12, %v4892_v14  ;;  %v4894_v27 = vadd.f32 %v4893_v18, %v833_v8  ;;  %5217 = vmatprep.mubr.bf16.mxu0 %v11532_v9  ;;  %v9424_v5 = vld [vmem:[%s14089_s1 + $0x13e4] ss:$16 sps:$4 sm:$0xff]   ;;  %v9419_v8 = vld [vmem:[%s14089_s1 + $0x11e0] ss:$16 sps:$4 sm:$0xff]  }
 0x106   :  { %5258 = vmatprep.mubr.bf16.mxu1 %v11536_v10  ;;  %v4895_v28 = vpop.f32.mrf.mxu0  ;;  %v9422_v11 = vld [vmem:[%s14089_s1 + $0x13e0] ss:$16 sps:$4 sm:$0xff]   ;;  %v9427_v12 = vld [vmem:[%s14089_s1 + $0x11c4] ss:$16 sps:$4 sm:$0xff]  }
 0x107   :  { %v4936_v29 = vpop.f32.mrf.mxu1  ;;  %v11559_v31 = vadd.f32 %v4934_v19, %v4894_v27  ;;  %5188 = vmatpush1.bf16.msra.mxu0 %v9377_v13  ;;  %v9430_v13 = vld [vmem:[%s14089_s1 + $0x13c4] ss:$16 sps:$4 sm:$0xff]   ;;  %v9425_v14 = vld [vmem:[%s14089_s1 + $0x11c0] ss:$16 sps:$4 sm:$0xff]  }
 0x108   :  { %5229 = vmatpush1.bf16.msra.mxu1 %v9380_v15  ;;  %v4896_v33 = vpop.f32.mrf.mxu0  ;;  %5189 = vmatprep.subr.bf16.mxu0 %v9385_v20  ;;  %v9428_v15 = vld [vmem:[%s14089_s1 + $0x13c0] ss:$16 sps:$4 sm:$0xff]   ;;  %v9433_v18 = vld [vmem:[%s14089_s1 + $0x11a4] ss:$16 sps:$4 sm:$0xff]  }
 0x109   :  { %v4937_v34 = vpop.f32.mrf.mxu1  ;;  %5230 = vmatprep.subr.bf16.mxu1 %v9388_v21  ;;  %v9436_v19 = vld [vmem:[%s14089_s1 + $0x13a4] ss:$16 sps:$4 sm:$0xff]   ;;  %v9431_v20 = vld [vmem:[%s14089_s1 + $0x11a0] ss:$16 sps:$4 sm:$0xff]  }
 0x10a   :  { %v9434_v21 = vld [vmem:[%s14089_s1 + $0x13a0] ss:$16 sps:$4 sm:$0xff]   ;;  %v9439_v27 = vld [vmem:[%s14089_s1 + $0x1184] ss:$16 sps:$4 sm:$0xff]  }
 0x10b   :  { %5190 = vmatpush1.bf16.msra.mxu0 %v9383_v30  ;;  %v9442_v28 = vld [vmem:[%s14089_s1 + $0x1384] ss:$16 sps:$4 sm:$0xff]   ;;  %v9437_v29 = vld [vmem:[%s14089_s1 + $0x1180] ss:$16 sps:$4 sm:$0xff]  }
 0x10c   :  { %5231 = vmatpush1.bf16.msra.mxu1 %v9386_v32  ;;  %5191 = vmatprep.subr.bf16.mxu0 %v9391_v41  ;;  %v9440_v30 = vld [vmem:[%s14089_s1 + $0x1380] ss:$16 sps:$4 sm:$0xff]   ;;  %v9445_v32 = vld [vmem:[%s14089_s1 + $0x1164] ss:$16 sps:$4 sm:$0xff]  }
 0x10d   :  { %5232 = vmatprep.subr.bf16.mxu1 %v9394_v22  ;;  %v9448_v33 = vld [vmem:[%s14089_s1 + $0x1364] ss:$16 sps:$4 sm:$0xff]   ;;  %v9443_v34 = vld [vmem:[%s14089_s1 + $0x1160] ss:$16 sps:$4 sm:$0xff]  }
 0x10e   :  { %v9446_v41 = vld [vmem:[%s14089_s1 + $0x1360] ss:$16 sps:$4 sm:$0xff]   ;;  %v9451_v22 = vld [vmem:[%s14089_s1 + $0x1144] ss:$16 sps:$4 sm:$0xff]  }
 0x10f   :  { %5192 = vmatpush1.bf16.msra.mxu0 %v9389_v23  ;;  %v9454_v23 = vld [vmem:[%s14089_s1 + $0x1344] ss:$16 sps:$4 sm:$0xff]  }
 0x110   :  { %5233 = vmatpush1.bf16.msra.mxu1 %v9392_v44  ;;  %5193 = vmatprep.subr.bf16.mxu0 %v9397_v45  ;;  %v9449_v44 = vld [vmem:[%s14089_s1 + $0x1140] ss:$16 sps:$4 sm:$0xff]  }
 0x111   :  { %5234 = vmatprep.subr.bf16.mxu1 %v9400_v46  ;;  %v9452_v45 = vld [vmem:[%s14089_s1 + $0x1340] ss:$16 sps:$4 sm:$0xff]   ;;  %v9457_v46 = vld [vmem:[%s14089_s1 + $0x1124] ss:$16 sps:$4 sm:$0xff]  }
 0x113   :  { %5194 = vmatpush1.bf16.msra.mxu0 %v9395_v48  ;;  %v9460_v48 = vld [vmem:[%s14089_s1 + $0x1324] ss:$16 sps:$4 sm:$0xff]  }
 0x114   :  { %5235 = vmatpush1.bf16.msra.mxu1 %v9398_v49  ;;  %5195 = vmatprep.subr.bf16.mxu0 %v9403_v50  ;;  %v9455_v49 = vld [vmem:[%s14089_s1 + $0x1120] ss:$16 sps:$4 sm:$0xff]  }
 0x115   :  { %5236 = vmatprep.subr.bf16.mxu1 %v9406_v52  ;;  %v9458_v50 = vld [vmem:[%s14089_s1 + $0x1320] ss:$16 sps:$4 sm:$0xff]   ;;  %v9463_v52 = vld [vmem:[%s14089_s1 + $0x1104] ss:$16 sps:$4 sm:$0xff]  }
 0x117   :  { %5196 = vmatpush1.bf16.msra.mxu0 %v9401_v53  ;;  %v9466_v53 = vld [vmem:[%s14089_s1 + $0x1304] ss:$16 sps:$4 sm:$0xff]  }
 0x118   :  { %5237 = vmatpush1.bf16.msra.mxu1 %v9404_v55  ;;  %5197 = vmatprep.subr.bf16.mxu0 %v9409_v56  ;;  %v9461_v55 = vld [vmem:[%s14089_s1 + $0x1100] ss:$16 sps:$4 sm:$0xff]  }
 0x119   :  { %5238 = vmatprep.subr.bf16.mxu1 %v9412_v57  ;;  %v9464_v56 = vld [vmem:[%s14089_s1 + $0x1300] ss:$16 sps:$4 sm:$0xff]   ;;  %v9473_v57 = vld [vmem:[%s14089_s1 + $0x14e4] ss:$16 sps:$4 sm:$0xff]  }
 0x11b   :  { %5198 = vmatpush1.bf16.msra.mxu0 %v9407_v58  ;;  %v9476_v58 = vld [vmem:[%s14089_s1 + $0x16e4] ss:$16 sps:$4 sm:$0xff]  }
 0x11c   :  { %5239 = vmatpush1.bf16.msra.mxu1 %v9410_v60  ;;  %5199 = vmatprep.subr.bf16.mxu0 %v9415_v61  ;;  %v11729_v60 = vld [vmem:[%s14090_s0 + $0x50] sm:$0xff]  ;;  %v11734_v61 = vld [vmem:[%s14090_s0 + $0x58] sm:$0xff] }
 0x11d   :  { %5240 = vmatprep.subr.bf16.mxu1 %v9418_v62  ;;  %v9471_v62 = vld [vmem:[%s14089_s1 + $0x14e0] ss:$16 sps:$4 sm:$0xff]  }
 0x11f   :  { %5200 = vmatpush1.bf16.msra.mxu0 %v9413_v4  ;;  %v9474_v4 = vld [vmem:[%s14089_s1 + $0x16e0] ss:$16 sps:$4 sm:$0xff]  }
 0x120   :  { %5241 = vmatpush1.bf16.msra.mxu1 %v9416_v35  ;;  %5201 = vmatprep.subr.bf16.mxu0 %v9421_v40  ;;  %v11744_v35 = vcombine.low %v11512_v2, %v11512_v2  ;;  %v11748_v40 = vcombine.low %v11517_v3, %v11517_v3  ;;  %v9477_v2 = vld [vmem:[%s14089_s1 + $0x14c0] ss:$16 sps:$4 sm:$0xff]  }
 0x121   :  { %5242 = vmatprep.subr.bf16.mxu1 %v9424_v5  ;;  %v9479_v5 = vld [vmem:[%s14089_s1 + $0x14c4] ss:$16 sps:$4 sm:$0xff]   ;;  %v9480_v3 = vld [vmem:[%s14089_s1 + $0x16c0] ss:$16 sps:$4 sm:$0xff]  }
 0x123   :  { %5202 = vmatpush2.bf16.msra.mxu0 %v9419_v8  ;;  %v9482_v8 = vld [vmem:[%s14089_s1 + $0x16c4] ss:$16 sps:$4 sm:$0xff]  }
 0x124   :  { %5243 = vmatpush2.bf16.msra.mxu1 %v9422_v11  ;;  %5203 = vmatprep.subr.bf16.mxu0 %v9427_v12  ;;  %v11764_v11 = vcombine.high %v11729_v60, %v11729_v60  ;;  %v11768_v12 = vcombine.high %v11734_v61, %v11734_v61 }
 0x125   :  { %5244 = vmatprep.subr.bf16.mxu1 %v9430_v13 }
 0x127   :  { %5204 = vmatpush2.bf16.msra.mxu0 %v9425_v14 }
 0x128   :  { %5245 = vmatpush2.bf16.msra.mxu1 %v9428_v15  ;;  %5205 = vmatprep.subr.bf16.mxu0 %v9433_v18 }
 0x129   :  { %5246 = vmatprep.subr.bf16.mxu1 %v9436_v19 }
 0x12b   :  { %5206 = vmatpush2.bf16.msra.mxu0 %v9431_v20  ;;  %v9485_v20 = vld [vmem:[%s14089_s1 + $0x14a4] ss:$16 sps:$4 sm:$0xff]  }
 0x12c   :  { %5247 = vmatpush2.bf16.msra.mxu1 %v9434_v21  ;;  %5207 = vmatprep.subr.bf16.mxu0 %v9439_v27  ;;  %v9488_v21 = vld [vmem:[%s14089_s1 + $0x16a4] ss:$16 sps:$4 sm:$0xff]  }
 0x12d   :  { %5248 = vmatprep.subr.bf16.mxu1 %v9442_v28 }
 0x12f   :  { %5208 = vmatpush2.bf16.msra.mxu0 %v9437_v29  ;;  %v9486_v29 = vld [vmem:[%s14089_s1 + $0x16a0] ss:$16 sps:$4 sm:$0xff]  }
 0x130   :  { %5249 = vmatpush2.bf16.msra.mxu1 %v9440_v30  ;;  %5209 = vmatprep.subr.bf16.mxu0 %v9445_v32 }
 0x131   :  { %5250 = vmatprep.subr.bf16.mxu1 %v9448_v33 }
 0x133   :  { %5210 = vmatpush2.bf16.msra.mxu0 %v9443_v34 }
 0x134   :  { %5251 = vmatpush2.bf16.msra.mxu1 %v9446_v41  ;;  %5211 = vmatprep.subr.bf16.mxu0 %v9451_v22  ;;  %v9491_v41 = vld [vmem:[%s14089_s1 + $0x1484] ss:$16 sps:$4 sm:$0xff]  }
 0x135   :  { %5252 = vmatprep.subr.bf16.mxu1 %v9454_v23  ;;  %v9494_v22 = vld [vmem:[%s14089_s1 + $0x1684] ss:$16 sps:$4 sm:$0xff]   ;;  %v9489_v23 = vld [vmem:[%s14089_s1 + $0x1480] ss:$16 sps:$4 sm:$0xff]  }
 0x137   :  { %5212 = vmatpush2.bf16.msra.mxu0 %v9449_v44  ;;  %v9492_v44 = vld [vmem:[%s14089_s1 + $0x1680] ss:$16 sps:$4 sm:$0xff]  }
 0x138   :  { %5253 = vmatpush2.bf16.msra.mxu1 %v9452_v45  ;;  %5213 = vmatprep.subr.bf16.mxu0 %v9457_v46  ;;  %v9497_v45 = vld [vmem:[%s14089_s1 + $0x1464] ss:$16 sps:$4 sm:$0xff]  }
 0x139   :  { %5254 = vmatprep.subr.bf16.mxu1 %v9460_v48  ;;  %v9500_v46 = vld [vmem:[%s14089_s1 + $0x1664] ss:$16 sps:$4 sm:$0xff]   ;;  %v9495_v48 = vld [vmem:[%s14089_s1 + $0x1460] ss:$16 sps:$4 sm:$0xff]  }
 0x13b   :  { %5214 = vmatpush2.bf16.msra.mxu0 %v9455_v49  ;;  %v9498_v49 = vld [vmem:[%s14089_s1 + $0x1660] ss:$16 sps:$4 sm:$0xff]  }
 0x13c   :  { %5255 = vmatpush2.bf16.msra.mxu1 %v9458_v50  ;;  %5215 = vmatprep.subr.bf16.mxu0 %v9463_v52  ;;  %v9503_v50 = vld [vmem:[%s14089_s1 + $0x1444] ss:$16 sps:$4 sm:$0xff]  }
 0x13d   :  { %5256 = vmatprep.subr.bf16.mxu1 %v9466_v53  ;;  %v9506_v52 = vld [vmem:[%s14089_s1 + $0x1644] ss:$16 sps:$4 sm:$0xff]   ;;  %v9501_v53 = vld [vmem:[%s14089_s1 + $0x1440] ss:$16 sps:$4 sm:$0xff]  }
 0x13f   :  { %5216 = vmatpush2.bf16.msra.mxu0 %v9461_v55  ;;  %v9504_v55 = vld [vmem:[%s14089_s1 + $0x1640] ss:$16 sps:$4 sm:$0xff]  }
 0x140   :  { %5257 = vmatpush2.bf16.msra.mxu1 %v9464_v56  ;;  %5267 = vmatprep.subr.bf16.mxu0 %v9473_v57  ;;  %v9509_v56 = vld [vmem:[%s14089_s1 + $0x1424] ss:$16 sps:$4 sm:$0xff]  }
 0x141   :  { %5308 = vmatprep.subr.bf16.mxu1 %v9476_v58  ;;  %v9512_v57 = vld [vmem:[%s14089_s1 + $0x1624] ss:$16 sps:$4 sm:$0xff]   ;;  %v9507_v58 = vld [vmem:[%s14089_s1 + $0x1420] ss:$16 sps:$4 sm:$0xff]  }
 0x142   :  { %v4973_v13 = vpop.f32.mrf.mxu0  ;;  %5218 = vmatmul.mubr.bf16.vlgmr.msra.gmra.mxu0 %v11744_v35 }
 0x143   :  { %v5014_v14 = vpop.f32.mrf.mxu1  ;;  %5259 = vmatmul.mubr.bf16.vlgmr.msra.gmra.mxu1 %v11748_v40  ;;  %v4974_v15 = vadd.f32 %v4973_v13, %v11552_v26  ;;  %5268 = vmatpush1.bf16.msra.mxu0 %v9471_v62  ;;  %v9483_v26 = vld [vmem:[%s14089_s1 + $0x14a0] ss:$16 sps:$4 sm:$0xff]   ;;  %v9524_v13 = vld [vmem:[%s14089_s1 + $0x17e4] ss:$16 sps:$4 sm:$0xff]  }
 0x144   :  { %5309 = vmatpush1.bf16.msra.mxu1 %v9474_v4  ;;  %v4975_v18 = vpop.f32.mrf.mxu0  ;;  %5269 = vmatprep.subr.bf16.mxu0 %v9479_v5  ;;  %v9510_v62 = vld [vmem:[%s14089_s1 + $0x1620] ss:$16 sps:$4 sm:$0xff]   ;;  %v9515_v4 = vld [vmem:[%s14089_s1 + $0x1404] ss:$16 sps:$4 sm:$0xff]  }
 0x145   :  { %v5016_v19 = vpop.f32.mrf.mxu1  ;;  %5310 = vmatprep.subr.bf16.mxu1 %v9482_v8  ;;  %v11779_v27 = vadd.f32 %v5014_v14, %v4974_v15  ;;  %v4976_v28 = vadd.f32 %v4975_v18, %v11559_v31  ;;  %5299 = vmatprep.mubr.bf16.mxu0 %v11764_v11  ;;  %v9518_v5 = vld [vmem:[%s14089_s1 + $0x1604] ss:$16 sps:$4 sm:$0xff]   ;;  %v9513_v8 = vld [vmem:[%s14089_s1 + $0x1400] ss:$16 sps:$4 sm:$0xff]  }
 0x146   :  { %5340 = vmatprep.mubr.bf16.mxu1 %v11768_v12  ;;  %v4977_v30 = vpop.f32.mrf.mxu0  ;;  %v9519_v14 = vld [vmem:[%s14089_s1 + $0x15e0] ss:$16 sps:$4 sm:$0xff]   ;;  %v9527_v18 = vld [vmem:[%s14089_s1 + $0x15c4] ss:$16 sps:$4 sm:$0xff]  }
 0x147   :  { %v5018_v32 = vpop.f32.mrf.mxu1  ;;  %v11790_v33 = vadd.f32 %v5016_v19, %v4976_v28  ;;  %5270 = vmatpush1.bf16.msra.mxu0 %v9477_v2  ;;  %v9516_v2 = vld [vmem:[%s14089_s1 + $0x1600] ss:$16 sps:$4 sm:$0xff]   ;;  %v9530_v19 = vld [vmem:[%s14089_s1 + $0x17c4] ss:$16 sps:$4 sm:$0xff]  }
 0x148   :  { %5311 = vmatpush1.bf16.msra.mxu1 %v9480_v3  ;;  %v4978_v34 = vpop.f32.mrf.mxu0  ;;  %5271 = vmatprep.subr.bf16.mxu0 %v9485_v20  ;;  %v9521_v3 = vld [vmem:[%s14089_s1 + $0x15e4] ss:$16 sps:$4 sm:$0xff]   ;;  %v9522_v15 = vld [vmem:[%s14089_s1 + $0x17e0] ss:$16 sps:$4 sm:$0xff]  }
 0x149   :  { %v5019_v31 = vpop.f32.mrf.mxu1  ;;  %5312 = vmatprep.subr.bf16.mxu1 %v9488_v21  ;;  %v9525_v20 = vld [vmem:[%s14089_s1 + $0x15c0] ss:$16 sps:$4 sm:$0xff]   ;;  %v9533_v28 = vld [vmem:[%s14089_s1 + $0x15a4] ss:$16 sps:$4 sm:$0xff]  }
 0x14a   :  { %v9528_v21 = vld [vmem:[%s14089_s1 + $0x17c0] ss:$16 sps:$4 sm:$0xff]   ;;  %v9539_v32 = vld [vmem:[%s14089_s1 + $0x1584] ss:$16 sps:$4 sm:$0xff]  }
 0x14b   :  { %5272 = vmatpush1.bf16.msra.mxu0 %v9483_v26  ;;  %v9536_v26 = vld [vmem:[%s14089_s1 + $0x17a4] ss:$16 sps:$4 sm:$0xff]   ;;  %v9534_v30 = vld [vmem:[%s14089_s1 + $0x17a0] ss:$16 sps:$4 sm:$0xff]  }
 0x14c   :  { %5313 = vmatpush1.bf16.msra.mxu1 %v9486_v29  ;;  %5273 = vmatprep.subr.bf16.mxu0 %v9491_v41  ;;  %v9531_v29 = vld [vmem:[%s14089_s1 + $0x15a0] ss:$16 sps:$4 sm:$0xff]   ;;  %v9542_v34 = vld [vmem:[%s14089_s1 + $0x1784] ss:$16 sps:$4 sm:$0xff]  }
 0x14d   :  { %5314 = vmatprep.subr.bf16.mxu1 %v9494_v22  ;;  %v9537_v31 = vld [vmem:[%s14089_s1 + $0x1580] ss:$16 sps:$4 sm:$0xff]   ;;  %v9545_v22 = vld [vmem:[%s14089_s1 + $0x1564] ss:$16 sps:$4 sm:$0xff]  }
 0x14e   :  { %v9540_v41 = vld [vmem:[%s14089_s1 + $0x1780] ss:$16 sps:$4 sm:$0xff]  }
 0x14f   :  { %5274 = vmatpush1.bf16.msra.mxu0 %v9489_v23  ;;  %v9548_v23 = vld [vmem:[%s14089_s1 + $0x1764] ss:$16 sps:$4 sm:$0xff]  }
 0x150   :  { %5315 = vmatpush1.bf16.msra.mxu1 %v9492_v44  ;;  %5275 = vmatprep.subr.bf16.mxu0 %v9497_v45  ;;  %v9543_v44 = vld [vmem:[%s14089_s1 + $0x1560] ss:$16 sps:$4 sm:$0xff]  }
 0x151   :  { %5316 = vmatprep.subr.bf16.mxu1 %v9500_v46  ;;  %v9546_v45 = vld [vmem:[%s14089_s1 + $0x1760] ss:$16 sps:$4 sm:$0xff]   ;;  %v9551_v46 = vld [vmem:[%s14089_s1 + $0x1544] ss:$16 sps:$4 sm:$0xff]  }
 0x153   :  { %5276 = vmatpush1.bf16.msra.mxu0 %v9495_v48  ;;  %v9554_v48 = vld [vmem:[%s14089_s1 + $0x1744] ss:$16 sps:$4 sm:$0xff]  }
 0x154   :  { %5317 = vmatpush1.bf16.msra.mxu1 %v9498_v49  ;;  %5277 = vmatprep.subr.bf16.mxu0 %v9503_v50  ;;  %v9549_v49 = vld [vmem:[%s14089_s1 + $0x1540] ss:$16 sps:$4 sm:$0xff]  }
 0x155   :  { %5318 = vmatprep.subr.bf16.mxu1 %v9506_v52  ;;  %v9552_v50 = vld [vmem:[%s14089_s1 + $0x1740] ss:$16 sps:$4 sm:$0xff]   ;;  %v9557_v52 = vld [vmem:[%s14089_s1 + $0x1524] ss:$16 sps:$4 sm:$0xff]  }
 0x157   :  { %5278 = vmatpush1.bf16.msra.mxu0 %v9501_v53  ;;  %v9560_v53 = vld [vmem:[%s14089_s1 + $0x1724] ss:$16 sps:$4 sm:$0xff]  }
 0x158   :  { %5319 = vmatpush1.bf16.msra.mxu1 %v9504_v55  ;;  %5279 = vmatprep.subr.bf16.mxu0 %v9509_v56  ;;  %v9555_v55 = vld [vmem:[%s14089_s1 + $0x1520] ss:$16 sps:$4 sm:$0xff]  }
 0x159   :  { %5320 = vmatprep.subr.bf16.mxu1 %v9512_v57  ;;  %v9558_v56 = vld [vmem:[%s14089_s1 + $0x1720] ss:$16 sps:$4 sm:$0xff]   ;;  %v9563_v57 = vld [vmem:[%s14089_s1 + $0x1504] ss:$16 sps:$4 sm:$0xff]  }
 0x15b   :  { %5280 = vmatpush1.bf16.msra.mxu0 %v9507_v58  ;;  %v9566_v58 = vld [vmem:[%s14089_s1 + $0x1704] ss:$16 sps:$4 sm:$0xff]  }
 0x15c   :  { %5321 = vmatpush1.bf16.msra.mxu1 %v9510_v62  ;;  %5281 = vmatprep.subr.bf16.mxu0 %v9515_v4  ;;  %v9561_v62 = vld [vmem:[%s14089_s1 + $0x1500] ss:$16 sps:$4 sm:$0xff]  }
 0x15d   :  { %5322 = vmatprep.subr.bf16.mxu1 %v9518_v5  ;;  %v9564_v4 = vld [vmem:[%s14089_s1 + $0x1700] ss:$16 sps:$4 sm:$0xff]   ;;  %v9573_v5 = vld [vmem:[%s14089_s1 + $0x1864] ss:$16 sps:$4 sm:$0xff]  }
 0x15f   :  { %5282 = vmatpush1.bf16.msra.mxu0 %v9513_v8  ;;  %v9576_v8 = vld [vmem:[%s14089_s1 + $0xec] ss:$16 sps:$4 sm:$0xff]  }
 0x160   :  { %5323 = vmatpush1.bf16.msra.mxu1 %v9516_v2  ;;  %5283 = vmatprep.subr.bf16.mxu0 %v9521_v3  ;;  %v9571_v2 = vld [vmem:[%s14089_s1 + $0x1860] ss:$16 sps:$4 sm:$0xff]   ;;  %v9574_v3 = vld [vmem:[%s14089_s1 + $0xe8] ss:$16 sps:$4 sm:$0xff]  }
 0x161   :  { %5324 = vmatprep.subr.bf16.mxu1 %v9524_v13  ;;  %v11962_v13 = vcombine.low %v11729_v60, %v11729_v60  ;;  %v9577_v60 = vld [vmem:[%s14089_s1 + $0x1840] ss:$16 sps:$4 sm:$0xff]  }
 0x163   :  { %5284 = vmatpush2.bf16.msra.mxu0 %v9519_v14  ;;  %v11966_v14 = vcombine.low %v11734_v61, %v11734_v61  ;;  %v9580_v61 = vld [vmem:[%s14089_s1 + $0xc8] ss:$16 sps:$4 sm:$0xff]  }
 0x164   :  { %5325 = vmatpush2.bf16.msra.mxu1 %v9522_v15  ;;  %5285 = vmatprep.subr.bf16.mxu0 %v9527_v18  ;;  %v9579_v15 = vld [vmem:[%s14089_s1 + $0x1844] ss:$16 sps:$4 sm:$0xff]   ;;  %v9582_v18 = vld [vmem:[%s14089_s1 + $0xcc] ss:$16 sps:$4 sm:$0xff]  }
 0x165   :  { %5326 = vmatprep.subr.bf16.mxu1 %v9530_v19 }
 0x167   :  { %5286 = vmatpush2.bf16.msra.mxu0 %v9525_v20 }
 0x168   :  { %5327 = vmatpush2.bf16.msra.mxu1 %v9528_v21  ;;  %5287 = vmatprep.subr.bf16.mxu0 %v9533_v28 }
 0x169   :  { %5328 = vmatprep.subr.bf16.mxu1 %v9536_v26 }
 0x16b   :  { %5288 = vmatpush2.bf16.msra.mxu0 %v9531_v29  ;;  %v9585_v29 = vld [vmem:[%s14089_s1 + $0x1824] ss:$16 sps:$4 sm:$0xff]  }
 0x16c   :  { %5329 = vmatpush2.bf16.msra.mxu1 %v9534_v30  ;;  %5289 = vmatprep.subr.bf16.mxu0 %v9539_v32  ;;  %v9588_v30 = vld [vmem:[%s14089_s1 + $0xac] ss:$16 sps:$4 sm:$0xff]  }
 0x16d   :  { %5330 = vmatprep.subr.bf16.mxu1 %v9542_v34 }
 0x16f   :  { %5290 = vmatpush2.bf16.msra.mxu0 %v9537_v31  ;;  %v9586_v31 = vld [vmem:[%s14089_s1 + $0xa8] ss:$16 sps:$4 sm:$0xff]  }
 0x170   :  { %5331 = vmatpush2.bf16.msra.mxu1 %v9540_v41  ;;  %5291 = vmatprep.subr.bf16.mxu0 %v9545_v22  ;;  %v10574_v41 = vmov 0  }
 0x171   :  { %5332 = vmatprep.subr.bf16.mxu1 %v9548_v23 }
 0x173   :  { %5292 = vmatpush2.bf16.msra.mxu0 %v9543_v44 }
 0x174   :  { %5333 = vmatpush2.bf16.msra.mxu1 %v9546_v45  ;;  %5293 = vmatprep.subr.bf16.mxu0 %v9551_v46  ;;  %v9591_v46 = vld [vmem:[%s14089_s1 + $0x1804] ss:$16 sps:$4 sm:$0xff]  }
 0x175   :  { %5334 = vmatprep.subr.bf16.mxu1 %v9554_v48  ;;  %v9594_v48 = vld [vmem:[%s14089_s1 + $0x8c] ss:$16 sps:$4 sm:$0xff]  }
 0x177   :  { %5294 = vmatpush2.bf16.msra.mxu0 %v9549_v49  ;;  %v9592_v49 = vld [vmem:[%s14089_s1 + $0x88] ss:$16 sps:$4 sm:$0xff]  }
 0x178   :  { %5335 = vmatpush2.bf16.msra.mxu1 %v9552_v50  ;;  %5295 = vmatprep.subr.bf16.mxu0 %v9557_v52  ;;  %v9595_v50 = vld [vmem:[%s14090_s0 + $0x60] ss:$0 sps:$4 sm:$0xff]   ;;  %v9598_v52 = vld [vmem:[%s14089_s1 + $0x6c] ss:$16 sps:$4 sm:$0xff]  }
 0x179   :  { %5336 = vmatprep.subr.bf16.mxu1 %v9560_v53  ;;  %v9601_v53 = vld [vmem:[%s14089_s1 + $0x2ec] ss:$16 sps:$4 sm:$0xff]  }
 0x17b   :  { %5296 = vmatpush2.bf16.msra.mxu0 %v9555_v55  ;;  %v9596_v55 = vld [vmem:[%s14089_s1 + $0x68] ss:$16 sps:$4 sm:$0xff]  }
 0x17c   :  { %5337 = vmatpush2.bf16.msra.mxu1 %v9558_v56  ;;  %5297 = vmatprep.subr.bf16.mxu0 %v9563_v57  ;;  %v9599_v56 = vld [vmem:[%s14089_s1 + $0x2e8] ss:$16 sps:$4 sm:$0xff]   ;;  %v9604_v57 = vld [vmem:[%s14089_s1 + $0x4c] ss:$16 sps:$4 sm:$0xff]  }
 0x17d   :  { %5338 = vmatprep.subr.bf16.mxu1 %v9566_v58  ;;  %v9607_v58 = vld [vmem:[%s14089_s1 + $0x2cc] ss:$16 sps:$4 sm:$0xff]  }
 0x17f   :  { %5298 = vmatpush2.bf16.msra.mxu0 %v9561_v62  ;;  %v9602_v62 = vld [vmem:[%s14089_s1 + $0x48] ss:$16 sps:$4 sm:$0xff]  }
 0x180   :  { %5339 = vmatpush2.bf16.msra.mxu1 %v9564_v4  ;;  %5357 = vmatprep.subr.bf16.mxu0 %v9573_v5  ;;  %v9605_v4 = vld [vmem:[%s14089_s1 + $0x2c8] ss:$16 sps:$4 sm:$0xff]   ;;  %v9610_v5 = vld [vmem:[%s14089_s1 + $0x2c] ss:$16 sps:$4 sm:$0xff]  }
 0x181   :  { %5390 = vmatprep.subr.bf16.mxu1 %v9576_v8  ;;  %v9613_v8 = vld [vmem:[%s14089_s1 + $0x2ac] ss:$16 sps:$4 sm:$0xff]  }
 0x182   :  { %v5055_v19 = vpop.f32.mrf.mxu0  ;;  %5300 = vmatmul.mubr.bf16.vlgmr.msra.gmra.mxu0 %v11962_v13 }
 0x183   :  { %v5096_v20 = vpop.f32.mrf.mxu1  ;;  %5341 = vmatmul.mubr.bf16.vlgmr.msra.gmra.mxu1 %v11966_v14  ;;  %v5056_v21 = vadd.f32 %v5055_v19, %v11779_v27  ;;  %5358 = vmatpush1.bf16.msra.mxu0 %v9571_v2  ;;  %v9583_v27 = vld [vmem:[%s14089_s1 + $0x1820] ss:$16 sps:$4 sm:$0xff]   ;;  %v9608_v2 = vld [vmem:[%s14089_s1 + $0x28] ss:$16 sps:$4 sm:$0xff]   ;;  %v9625_v19 = vld [vmem:[%s14089_s1 + $0x26c] ss:$16 sps:$4 sm:$0xff]  }
 0x184   :  { %5391 = vmatpush1.bf16.msra.mxu1 %v9574_v3  ;;  %v5057_v28 = vpop.f32.mrf.mxu0  ;;  %5359 = vmatprep.subr.bf16.mxu0 %v9579_v15  ;;  %v9611_v3 = vld [vmem:[%s14089_s1 + $0x2a8] ss:$16 sps:$4 sm:$0xff]   ;;  %v9616_v15 = vld [vmem:[%s14089_s1 + $0xc] ss:$16 sps:$4 sm:$0xff]  }
 0x185   :  { %v5098_v26 = vpop.f32.mrf.mxu1  ;;  %5392 = vmatprep.subr.bf16.mxu1 %v9582_v18  ;;  %v11989_v32 = vadd.f32 %v5096_v20, %v5056_v21  ;;  %v5058_v34 = vadd.f32 %v5057_v28, %v11790_v33  ;;  %5381 = vmatprep.mubr.bf16.mxu0 %v10574_v41  ;;  %v9614_v18 = vld [vmem:[%s14089_s1 + $0x8] ss:$16 sps:$4 sm:$0xff]   ;;  %v9628_v28 = vld [vmem:[%s14089_s1 + $0x1cc] ss:$16 sps:$4 sm:$0xff]  }
 0x186   :  { %5422 = vmatprep.mubr.bf16.mxu1 %v10756_v47  ;;  %v5059_v22 = vpop.f32.mrf.mxu0  ;;  %v9589_v47 = vld [vmem:[%s14089_s1 + $0x1800] ss:$16 sps:$4 sm:$0xff]   ;;  %v9620_v20 = vld [vmem:[%s14089_s1 + $0x1e8] ss:$16 sps:$4 sm:$0xff]  }
 0x187   :  { %v5100_v23 = vpop.f32.mrf.mxu1  ;;  %v12000_v44 = vadd.f32 %v5098_v26, %v5058_v34  ;;  %5360 = vmatpush1.bf16.msra.mxu0 %v9577_v60  ;;  %v9617_v60 = vld [vmem:[%s14089_s1 + $0x288] ss:$16 sps:$4 sm:$0xff]   ;;  %v9631_v26 = vld [vmem:[%s14089_s1 + $0x24c] ss:$16 sps:$4 sm:$0xff]  }
 0x188   :  { %5393 = vmatpush1.bf16.msra.mxu1 %v9580_v61  ;;  %v5060_v33 = vpop.f32.mrf.mxu0  ;;  %5361 = vmatprep.subr.bf16.mxu0 %v9585_v29  ;;  %v9622_v61 = vld [vmem:[%s14089_s1 + $0x1ec] ss:$16 sps:$4 sm:$0xff]   ;;  %v9623_v21 = vld [vmem:[%s14089_s1 + $0x268] ss:$16 sps:$4 sm:$0xff]  }
 0x189   :  { %v5101_v45 = vpop.f32.mrf.mxu1  ;;  %5394 = vmatprep.subr.bf16.mxu1 %v9588_v30  ;;  %v9626_v29 = vld [vmem:[%s14089_s1 + $0x1c8] ss:$16 sps:$4 sm:$0xff]   ;;  %v9634_v34 = vld [vmem:[%s14089_s1 + $0x1ac] ss:$16 sps:$4 sm:$0xff]  }
 0x18a   :  { %v9629_v30 = vld [vmem:[%s14089_s1 + $0x248] ss:$16 sps:$4 sm:$0xff]   ;;  %v9640_v23 = vld [vmem:[%s14089_s1 + $0x18c] ss:$16 sps:$4 sm:$0xff]  }
 0x18b   :  { %5362 = vmatpush1.bf16.msra.mxu0 %v9583_v27  ;;  %v9637_v27 = vld [vmem:[%s14089_s1 + $0x22c] ss:$16 sps:$4 sm:$0xff]   ;;  %v9635_v22 = vld [vmem:[%s14089_s1 + $0x228] ss:$16 sps:$4 sm:$0xff]  }
 0x18c   :  { %5395 = vmatpush1.bf16.msra.mxu1 %v9586_v31  ;;  %5363 = vmatprep.subr.bf16.mxu0 %v9591_v46  ;;  %v9632_v31 = vld [vmem:[%s14089_s1 + $0x1a8] ss:$16 sps:$4 sm:$0xff]   ;;  %v9643_v33 = vld [vmem:[%s14089_s1 + $0x20c] ss:$16 sps:$4 sm:$0xff]  }
 0x18d   :  { %5396 = vmatprep.subr.bf16.mxu1 %v9594_v48  ;;  %v9638_v45 = vld [vmem:[%s14089_s1 + $0x188] ss:$16 sps:$4 sm:$0xff]   ;;  %v9646_v48 = vld [vmem:[%s14089_s1 + $0x16c] ss:$16 sps:$4 sm:$0xff]  }
 0x18e   :  { %v9641_v46 = vld [vmem:[%s14089_s1 + $0x208] ss:$16 sps:$4 sm:$0xff]  }
 0x18f   :  { %5364 = vmatpush1.bf16.msra.mxu0 %v9589_v47  ;;  %v9649_v47 = vld [vmem:[%s14089_s1 + $0x3ec] ss:$16 sps:$4 sm:$0xff]  }
 0x190   :  { %5397 = vmatpush1.bf16.msra.mxu1 %v9592_v49  ;;  %5431 = vmatprep.subr.bf16.mxu0 %v9601_v53  ;;  %v9644_v49 = vld [vmem:[%s14089_s1 + $0x168] ss:$16 sps:$4 sm:$0xff]   ;;  %v9655_v53 = vld [vmem:[%s14089_s1 + $0x3cc] ss:$16 sps:$4 sm:$0xff]  }
 0x191   :  { %5398 = vmatprep.subr.bf16.mxu1 %v9598_v52  ;;  %v9652_v52 = vld [vmem:[%s14089_s1 + $0x14c] ss:$16 sps:$4 sm:$0xff]  }
 0x192   :  { %8704 = vmatmul.mubr.msk.bf16.vlgmr.msra.gmra.mxu0 %vm4853_vm0, %v9595_v50  ;;  %v9647_v50 = vld [vmem:[%s14089_s1 + $0x3e8] ss:$16 sps:$4 sm:$0xff]  }
 0x193   :  { %5432 = vmatpush1.bf16.msra.mxu0 %v9599_v56  ;;  %5463 = vmatprep.mubr.bf16.mxu0 %v10767_v51  ;;  %v9619_v51 = vld [vmem:[%s14089_s1 + $0x28c] ss:$16 sps:$4 sm:$0xff]   ;;  %v9653_v56 = vld [vmem:[%s14089_s1 + $0x3c8] ss:$16 sps:$4 sm:$0xff]  }
 0x194   :  { %5399 = vmatpush1.bf16.msra.mxu1 %v9596_v55  ;;  %5433 = vmatprep.subr.bf16.mxu0 %v9607_v58  ;;  %v9650_v55 = vld [vmem:[%s14089_s1 + $0x148] ss:$16 sps:$4 sm:$0xff]   ;;  %v9661_v58 = vld [vmem:[%s14089_s1 + $0x3ac] ss:$16 sps:$4 sm:$0xff]  }
 0x195   :  { %5400 = vmatprep.subr.bf16.mxu1 %v9604_v57  ;;  %v9658_v57 = vld [vmem:[%s14089_s1 + $0x12c] ss:$16 sps:$4 sm:$0xff]  }
 0x197   :  { %5434 = vmatpush1.bf16.msra.mxu0 %v9605_v4  ;;  %v9659_v4 = vld [vmem:[%s14089_s1 + $0x3a8] ss:$16 sps:$4 sm:$0xff]  }
 0x198   :  { %5401 = vmatpush1.bf16.msra.mxu1 %v9602_v62  ;;  %5435 = vmatprep.subr.bf16.mxu0 %v9613_v8  ;;  %v9656_v62 = vld [vmem:[%s14089_s1 + $0x128] ss:$16 sps:$4 sm:$0xff]   ;;  %v9667_v8 = vld [vmem:[%s14089_s1 + $0x38c] ss:$16 sps:$4 sm:$0xff]  }
 0x199   :  { %5402 = vmatprep.subr.bf16.mxu1 %v9610_v5  ;;  %v9664_v5 = vld [vmem:[%s14089_s1 + $0x10c] ss:$16 sps:$4 sm:$0xff]  }
 0x19b   :  { %5436 = vmatpush1.bf16.msra.mxu0 %v9611_v3  ;;  %v9665_v3 = vld [vmem:[%s14089_s1 + $0x388] ss:$16 sps:$4 sm:$0xff]  }
 0x19c   :  { %5403 = vmatpush1.bf16.msra.mxu1 %v9608_v2  ;;  %5437 = vmatprep.subr.bf16.mxu0 %v9619_v51  ;;  %v9662_v2 = vld [vmem:[%s14089_s1 + $0x108] ss:$16 sps:$4 sm:$0xff]   ;;  %v9673_v51 = vld [vmem:[%s14089_s1 + $0x4ec] ss:$16 sps:$4 sm:$0xff]  }
 0x19d   :  { %5404 = vmatprep.subr.bf16.mxu1 %v9616_v15  ;;  %v9670_v15 = vld [vmem:[%s14089_s1 + $0x36c] ss:$16 sps:$4 sm:$0xff]  }
 0x19f   :  { %5438 = vmatpush1.bf16.msra.mxu0 %v9617_v60  ;;  %v9671_v60 = vld [vmem:[%s14089_s1 + $0x4e8] ss:$16 sps:$4 sm:$0xff]  }
 0x1a0   :  { %5405 = vmatpush1.bf16.msra.mxu1 %v9614_v18  ;;  %5439 = vmatprep.subr.bf16.mxu0 %v9625_v19  ;;  %v9668_v18 = vld [vmem:[%s14089_s1 + $0x368] ss:$16 sps:$4 sm:$0xff]   ;;  %v9679_v19 = vld [vmem:[%s14089_s1 + $0x4cc] ss:$16 sps:$4 sm:$0xff]  }
 0x1a1   :  { %5406 = vmatprep.subr.bf16.mxu1 %v9622_v61  ;;  %v9676_v61 = vld [vmem:[%s14089_s1 + $0x34c] ss:$16 sps:$4 sm:$0xff]  }
 0x1a3   :  { %5440 = vmatpush1.bf16.msra.mxu0 %v9623_v21  ;;  %v9677_v21 = vld [vmem:[%s14089_s1 + $0x4c8] ss:$16 sps:$4 sm:$0xff]  }
 0x1a4   :  { %5407 = vmatpush2.bf16.msra.mxu1 %v9620_v20  ;;  %5441 = vmatprep.subr.bf16.mxu0 %v9631_v26  ;;  %v9674_v20 = vld [vmem:[%s14089_s1 + $0x348] ss:$16 sps:$4 sm:$0xff]  }
 0x1a5   :  { %5408 = vmatprep.subr.bf16.mxu1 %v9628_v28 }
 0x1a7   :  { %5442 = vmatpush1.bf16.msra.mxu0 %v9629_v30 }
 0x1a8   :  { %5409 = vmatpush2.bf16.msra.mxu1 %v9626_v29  ;;  %5443 = vmatprep.subr.bf16.mxu0 %v9637_v27  ;;  %v9682_v27 = vld [vmem:[%s14089_s1 + $0x32c] ss:$16 sps:$4 sm:$0xff]  }
 0x1a9   :  { %5410 = vmatprep.subr.bf16.mxu1 %v9634_v34 }
 0x1ab   :  { %5444 = vmatpush1.bf16.msra.mxu0 %v9635_v22 }
 0x1ac   :  { %5411 = vmatpush2.bf16.msra.mxu1 %v9632_v31  ;;  %5445 = vmatprep.subr.bf16.mxu0 %v9643_v33  ;;  %v9685_v31 = vld [vmem:[%s14089_s1 + $0x4ac] ss:$16 sps:$4 sm:$0xff]  }
 0x1ad   :  { %5412 = vmatprep.subr.bf16.mxu1 %v9640_v23  ;;  %v9683_v23 = vld [vmem:[%s14089_s1 + $0x4a8] ss:$16 sps:$4 sm:$0xff]  }
 0x1af   :  { %5446 = vmatpush1.bf16.msra.mxu0 %v9641_v46 }
 0x1b0   :  { %5413 = vmatpush2.bf16.msra.mxu1 %v9638_v45  ;;  %5447 = vmatprep.subr.bf16.mxu0 %v9649_v47 }
 0x1b1   :  { %5414 = vmatprep.subr.bf16.mxu1 %v9646_v48 }
 0x1b3   :  { %5448 = vmatpush2.bf16.msra.mxu0 %v9647_v50  ;;  %v9689_v50 = vld [vmem:[%s14089_s1 + $0x488] ss:$16 sps:$4 sm:$0xff]  }
 0x1b4   :  { %5415 = vmatpush2.bf16.msra.mxu1 %v9644_v49  ;;  %5449 = vmatprep.subr.bf16.mxu0 %v9655_v53  ;;  %v9691_v49 = vld [vmem:[%s14089_s1 + $0x48c] ss:$16 sps:$4 sm:$0xff]  }
 0x1b5   :  { %5416 = vmatprep.subr.bf16.mxu1 %v9652_v52  ;;  %v9694_v52 = vld [vmem:[%s14089_s1 + $0x46c] ss:$16 sps:$4 sm:$0xff]  }
 0x1b6   :  { %v9697_v53 = vld [vmem:[%s14089_s1 + $0x6ec] ss:$16 sps:$4 sm:$0xff]  }
 0x1b7   :  { %5450 = vmatpush2.bf16.msra.mxu0 %v9653_v56  ;;  %v9695_v56 = vld [vmem:[%s14089_s1 + $0x6e8] ss:$16 sps:$4 sm:$0xff]  }
 0x1b8   :  { %5417 = vmatpush2.bf16.msra.mxu1 %v9650_v55  ;;  %5451 = vmatprep.subr.bf16.mxu0 %v9661_v58  ;;  %v9692_v55 = vld [vmem:[%s14089_s1 + $0x468] ss:$16 sps:$4 sm:$0xff]   ;;  %v9703_v58 = vld [vmem:[%s14089_s1 + $0x6cc] ss:$16 sps:$4 sm:$0xff]  }
 0x1b9   :  { %5418 = vmatprep.subr.bf16.mxu1 %v9658_v57  ;;  %v9700_v57 = vld [vmem:[%s14089_s1 + $0x44c] ss:$16 sps:$4 sm:$0xff]  }
 0x1bb   :  { %5452 = vmatpush2.bf16.msra.mxu0 %v9659_v4  ;;  %v9701_v4 = vld [vmem:[%s14089_s1 + $0x6c8] ss:$16 sps:$4 sm:$0xff]  }
 0x1bc   :  { %5419 = vmatpush2.bf16.msra.mxu1 %v9656_v62  ;;  %5453 = vmatprep.subr.bf16.mxu0 %v9667_v8  ;;  %v9698_v62 = vld [vmem:[%s14089_s1 + $0x448] ss:$16 sps:$4 sm:$0xff]  }
 0x1bd   :  { %5420 = vmatprep.subr.bf16.mxu1 %v9664_v5  ;;  %v9706_v5 = vld [vmem:[%s14089_s1 + $0x42c] ss:$16 sps:$4 sm:$0xff]   ;;  %v9704_v8 = vld [vmem:[%s14089_s1 + $0x428] ss:$16 sps:$4 sm:$0xff]  }
 0x1bf   :  { %5454 = vmatpush2.bf16.msra.mxu0 %v9665_v3  ;;  %v9712_v3 = vld [vmem:[%s14089_s1 + $0x40c] ss:$16 sps:$4 sm:$0xff]  }
 0x1c0   :  { %5421 = vmatpush2.bf16.msra.mxu1 %v9662_v2  ;;  %5455 = vmatprep.subr.bf16.mxu0 %v9670_v15  ;;  %v9707_v2 = vld [vmem:[%s14089_s1 + $0x6a8] ss:$16 sps:$4 sm:$0xff]  }
 0x1c1   :  { %5472 = vmatprep.subr.bf16.mxu1 %v9673_v51  ;;  %v9710_v15 = vld [vmem:[%s14089_s1 + $0x408] ss:$16 sps:$4 sm:$0xff]  }
 0x1c2   :  { %v5137_v28 = vpop.f32.mrf.mxu0  ;;  %v9713_v51 = vld [vmem:[%s14089_s1 + $0x688] ss:$16 sps:$4 sm:$0xff]  }
 0x1c3   :  { %v5178_v26 = vpop.f32.mrf.mxu1  ;;  %5423 = vmatmul.mubr.bf16.vlgmr.msra.gmra.mxu1 %v10825_v6  ;;  %v5138_v29 = vadd.f32 %v5137_v28, %v11989_v32  ;;  %5456 = vmatpush2.bf16.msra.mxu0 %v9668_v18  ;;  %v9680_v32 = vld [vmem:[%s14089_s1 + $0x328] ss:$16 sps:$4 sm:$0xff]   ;;  %v9718_v18 = vld [vmem:[%s14089_s1 + $0x5ec] ss:$16 sps:$4 sm:$0xff]  }
 0x1c4   :  { %5473 = vmatpush1.bf16.msra.mxu1 %v9671_v60  ;;  %v5139_v30 = vpop.f32.mrf.mxu0  ;;  %5457 = vmatprep.subr.bf16.mxu0 %v9676_v61  ;;  %v9721_v60 = vld [vmem:[%s14089_s1 + $0x66c] ss:$16 sps:$4 sm:$0xff]   ;;  %v9716_v61 = vld [vmem:[%s14089_s1 + $0x5e8] ss:$16 sps:$4 sm:$0xff]  }
 0x1c5   :  { %v5180_v34 = vpop.f32.mrf.mxu1  ;;  %5474 = vmatprep.subr.bf16.mxu1 %v9679_v19  ;;  %v12195_v22 = vadd.f32 %v5178_v26, %v5138_v29  ;;  %v5140_v6 = vadd.f32 %v5139_v30, %v12000_v44  ;;  %5504 = vmatprep.mubr.bf16.mxu1 %v10921_v36  ;;  %v9688_v44 = vld [vmem:[%s14089_s1 + $0x30c] ss:$16 sps:$4 sm:$0xff]   ;;  %v9686_v36 = vld [vmem:[%s14089_s1 + $0x308] ss:$16 sps:$4 sm:$0xff]  }
 0x1c6   :  { %v5141_v33 = vpop.f32.mrf.mxu0  ;;  %v9719_v19 = vld [vmem:[%s14089_s1 + $0x668] ss:$16 sps:$4 sm:$0xff]   ;;  %v9730_v29 = vld [vmem:[%s14089_s1 + $0x5ac] ss:$16 sps:$4 sm:$0xff]  }
 0x1c7   :  { %v5182_v45 = vpop.f32.mrf.mxu1  ;;  %v12205_v46 = vadd.f32 %v5180_v34, %v5140_v6  ;;  %5458 = vmatpush2.bf16.msra.mxu0 %v9674_v20  ;;  %v9724_v20 = vld [vmem:[%s14089_s1 + $0x5cc] ss:$16 sps:$4 sm:$0xff]   ;;  %v9722_v28 = vld [vmem:[%s14089_s1 + $0x5c8] ss:$16 sps:$4 sm:$0xff]  }
 0x1c8   :  { %5475 = vmatpush1.bf16.msra.mxu1 %v9677_v21  ;;  %v5142_v48 = vpop.f32.mrf.mxu0  ;;  %5459 = vmatprep.subr.bf16.mxu0 %v9682_v27  ;;  %v9727_v21 = vld [vmem:[%s14089_s1 + $0x64c] ss:$16 sps:$4 sm:$0xff]   ;;  %v9725_v26 = vld [vmem:[%s14089_s1 + $0x648] ss:$16 sps:$4 sm:$0xff]  }
 0x1c9   :  { %v5183_v47 = vpop.f32.mrf.mxu1  ;;  %5476 = vmatprep.subr.bf16.mxu1 %v9685_v31  ;;  %v9733_v30 = vld [vmem:[%s14089_s1 + $0x62c] ss:$16 sps:$4 sm:$0xff]   ;;  %v9728_v34 = vld [vmem:[%s14089_s1 + $0x5a8] ss:$16 sps:$4 sm:$0xff]  }
 0x1ca   :  { %v9731_v27 = vld [vmem:[%s14089_s1 + $0x628] ss:$16 sps:$4 sm:$0xff]   ;;  %v9736_v31 = vld [vmem:[%s14089_s1 + $0x58c] ss:$16 sps:$4 sm:$0xff]  }
 0x1cb   :  { %5460 = vmatpush2.bf16.msra.mxu0 %v9680_v32  ;;  %v9739_v6 = vld [vmem:[%s14089_s1 + $0x60c] ss:$16 sps:$4 sm:$0xff]   ;;  %v9734_v32 = vld [vmem:[%s14089_s1 + $0x588] ss:$16 sps:$4 sm:$0xff]  }
 0x1cc   :  { %5477 = vmatpush1.bf16.msra.mxu1 %v9683_v23  ;;  %5461 = vmatprep.subr.bf16.mxu0 %v9688_v44  ;;  %v9737_v23 = vld [vmem:[%s14089_s1 + $0x608] ss:$16 sps:$4 sm:$0xff]   ;;  %v9742_v33 = vld [vmem:[%s14089_s1 + $0x56c] ss:$16 sps:$4 sm:$0xff]  }
 0x1cd   :  { %5478 = vmatprep.subr.bf16.mxu1 %v9691_v49  ;;  %v9745_v45 = vld [vmem:[%s14089_s1 + $0x7ec] ss:$16 sps:$4 sm:$0xff]   ;;  %v9740_v48 = vld [vmem:[%s14089_s1 + $0x568] ss:$16 sps:$4 sm:$0xff]  }
 0x1ce   :  { %v9743_v47 = vld [vmem:[%s14089_s1 + $0x7e8] ss:$16 sps:$4 sm:$0xff]   ;;  %v9748_v44 = vld [vmem:[%s14089_s1 + $0x54c] ss:$16 sps:$4 sm:$0xff]  }
 0x1cf   :  { %5462 = vmatpush2.bf16.msra.mxu0 %v9686_v36  ;;  %v9751_v49 = vld [vmem:[%s14089_s1 + $0x7cc] ss:$16 sps:$4 sm:$0xff]   ;;  %v9746_v36 = vld [vmem:[%s14089_s1 + $0x548] ss:$16 sps:$4 sm:$0xff]  }
 0x1d0   :  { %5479 = vmatpush1.bf16.msra.mxu1 %v9689_v50  ;;  %5513 = vmatprep.subr.bf16.mxu0 %v9697_v53  ;;  %v9749_v50 = vld [vmem:[%s14089_s1 + $0x7c8] ss:$16 sps:$4 sm:$0xff]   ;;  %v9757_v53 = vld [vmem:[%s14089_s1 + $0x7ac] ss:$16 sps:$4 sm:$0xff]  }
 0x1d1   :  { %5480 = vmatprep.subr.bf16.mxu1 %v9694_v52  ;;  %v9754_v52 = vld [vmem:[%s14089_s1 + $0x52c] ss:$16 sps:$4 sm:$0xff]  }
 0x1d2   :  { %5464 = vmatmul.mubr.bf16.vlgmr.msra.gmra.mxu0 %v10827_v7  ;;  %v9709_v7 = vld [vmem:[%s14089_s1 + $0x6ac] ss:$16 sps:$4 sm:$0xff]  }
 0x1d3   :  { %5514 = vmatpush1.bf16.msra.mxu0 %v9695_v56  ;;  %5545 = vmatprep.mubr.bf16.mxu0 %v10925_v37  ;;  %v9715_v37 = vld [vmem:[%s14089_s1 + $0x68c] ss:$16 sps:$4 sm:$0xff]   ;;  %v9755_v56 = vld [vmem:[%s14089_s1 + $0x7a8] ss:$16 sps:$4 sm:$0xff]  }
 0x1d4   :  { %5481 = vmatpush1.bf16.msra.mxu1 %v9692_v55  ;;  %5515 = vmatprep.subr.bf16.mxu0 %v9703_v58  ;;  %v9752_v55 = vld [vmem:[%s14089_s1 + $0x528] ss:$16 sps:$4 sm:$0xff]   ;;  %v9763_v58 = vld [vmem:[%s14089_s1 + $0x78c] ss:$16 sps:$4 sm:$0xff]  }
 0x1d5   :  { %5482 = vmatprep.subr.bf16.mxu1 %v9700_v57  ;;  %v9760_v57 = vld [vmem:[%s14089_s1 + $0x50c] ss:$16 sps:$4 sm:$0xff]  }
 0x1d7   :  { %5516 = vmatpush1.bf16.msra.mxu0 %v9701_v4  ;;  %v9761_v4 = vld [vmem:[%s14089_s1 + $0x788] ss:$16 sps:$4 sm:$0xff]  }
 0x1d8   :  { %5483 = vmatpush1.bf16.msra.mxu1 %v9698_v62  ;;  %5517 = vmatprep.subr.bf16.mxu0 %v9709_v7  ;;  %v9758_v62 = vld [vmem:[%s14089_s1 + $0x508] ss:$16 sps:$4 sm:$0xff]   ;;  %v9769_v7 = vld [vmem:[%s14089_s1 + $0x8ec] ss:$16 sps:$4 sm:$0xff]  }
 0x1d9   :  { %5484 = vmatprep.subr.bf16.mxu1 %v9706_v5  ;;  %v9766_v5 = vld [vmem:[%s14089_s1 + $0x76c] ss:$16 sps:$4 sm:$0xff]  }
 0x1db   :  { %5518 = vmatpush1.bf16.msra.mxu0 %v9707_v2  ;;  %v9767_v2 = vld [vmem:[%s14089_s1 + $0x8e8] ss:$16 sps:$4 sm:$0xff]  }
 0x1dc   :  { %5485 = vmatpush1.bf16.msra.mxu1 %v9704_v8  ;;  %5519 = vmatprep.subr.bf16.mxu0 %v9715_v37  ;;  %v9764_v8 = vld [vmem:[%s14089_s1 + $0x768] ss:$16 sps:$4 sm:$0xff]   ;;  %v9775_v37 = vld [vmem:[%s14089_s1 + $0x8cc] ss:$16 sps:$4 sm:$0xff]  }
 0x1dd   :  { %5486 = vmatprep.subr.bf16.mxu1 %v9712_v3  ;;  %v9772_v3 = vld [vmem:[%s14089_s1 + $0x74c] ss:$16 sps:$4 sm:$0xff]  }
 0x1df   :  { %5520 = vmatpush1.bf16.msra.mxu0 %v9713_v51 }
 0x1e0   :  { %5487 = vmatpush1.bf16.msra.mxu1 %v9710_v15  ;;  %5521 = vmatprep.subr.bf16.mxu0 %v9721_v60  ;;  %v9770_v60 = vld [vmem:[%s14089_s1 + $0x748] ss:$16 sps:$4 sm:$0xff]  }
 0x1e1   :  { %5488 = vmatprep.subr.bf16.mxu1 %v9718_v18 }
 0x1e3   :  { %5522 = vmatpush1.bf16.msra.mxu0 %v9719_v19 }
 0x1e4   :  { %5489 = vmatpush2.bf16.msra.mxu1 %v9716_v61  ;;  %5523 = vmatprep.subr.bf16.mxu0 %v9727_v21  ;;  %v9773_v61 = vld [vmem:[%s14089_s1 + $0x8c8] ss:$16 sps:$4 sm:$0xff]  }
 0x1e5   :  { %5490 = vmatprep.subr.bf16.mxu1 %v9724_v20 }
 0x1e7   :  { %5524 = vmatpush1.bf16.msra.mxu0 %v9725_v26 }
 0x1e8   :  { %5491 = vmatpush2.bf16.msra.mxu1 %v9722_v28  ;;  %5525 = vmatprep.subr.bf16.mxu0 %v9733_v30 }
 0x1e9   :  { %5492 = vmatprep.subr.bf16.mxu1 %v9730_v29 }
 0x1eb   :  { %5526 = vmatpush1.bf16.msra.mxu0 %v9731_v27  ;;  %v9779_v27 = vld [vmem:[%s14089_s1 + $0x8a8] ss:$16 sps:$4 sm:$0xff]  }
 0x1ec   :  { %5493 = vmatpush2.bf16.msra.mxu1 %v9728_v34  ;;  %5527 = vmatprep.subr.bf16.mxu0 %v9739_v6  ;;  %v9776_v34 = vld [vmem:[%s14089_s1 + $0x728] ss:$16 sps:$4 sm:$0xff]  }
 0x1ed   :  { %5494 = vmatprep.subr.bf16.mxu1 %v9736_v31 }
 0x1ef   :  { %5528 = vmatpush1.bf16.msra.mxu0 %v9737_v23  ;;  %v9785_v23 = vld [vmem:[%s14089_s1 + $0x888] ss:$16 sps:$4 sm:$0xff]  }
 0x1f0   :  { %5495 = vmatpush2.bf16.msra.mxu1 %v9734_v32  ;;  %5529 = vmatprep.subr.bf16.mxu0 %v9745_v45  ;;  %v9782_v32 = vld [vmem:[%s14089_s1 + $0x708] ss:$16 sps:$4 sm:$0xff]   ;;  %v9793_v45 = vld [vmem:[%s14089_s1 + $0xaec] ss:$16 sps:$4 sm:$0xff]  }
 0x1f1   :  { %5496 = vmatprep.subr.bf16.mxu1 %v9742_v33  ;;  %v9790_v33 = vld [vmem:[%s14089_s1 + $0x86c] ss:$16 sps:$4 sm:$0xff]  }
 0x1f3   :  { %5530 = vmatpush2.bf16.msra.mxu0 %v9743_v47  ;;  %v9791_v47 = vld [vmem:[%s14089_s1 + $0xae8] ss:$16 sps:$4 sm:$0xff]  }
 0x1f4   :  { %5497 = vmatpush2.bf16.msra.mxu1 %v9740_v48  ;;  %5531 = vmatprep.subr.bf16.mxu0 %v9751_v49  ;;  %v9788_v48 = vld [vmem:[%s14089_s1 + $0x868] ss:$16 sps:$4 sm:$0xff]   ;;  %v9799_v49 = vld [vmem:[%s14089_s1 + $0xacc] ss:$16 sps:$4 sm:$0xff]  }
 0x1f5   :  { %5498 = vmatprep.subr.bf16.mxu1 %v9748_v44  ;;  %v9796_v44 = vld [vmem:[%s14089_s1 + $0x84c] ss:$16 sps:$4 sm:$0xff]  }
 0x1f7   :  { %5532 = vmatpush2.bf16.msra.mxu0 %v9749_v50  ;;  %v9797_v50 = vld [vmem:[%s14089_s1 + $0xac8] ss:$16 sps:$4 sm:$0xff]  }
 0x1f8   :  { %5499 = vmatpush2.bf16.msra.mxu1 %v9746_v36  ;;  %5533 = vmatprep.subr.bf16.mxu0 %v9757_v53  ;;  %v9794_v36 = vld [vmem:[%s14089_s1 + $0x848] ss:$16 sps:$4 sm:$0xff]  }
 0x1f9   :  { %5500 = vmatprep.subr.bf16.mxu1 %v9754_v52  ;;  %v9802_v52 = vld [vmem:[%s14089_s1 + $0x82c] ss:$16 sps:$4 sm:$0xff]   ;;  %v9800_v53 = vld [vmem:[%s14089_s1 + $0x828] ss:$16 sps:$4 sm:$0xff]  }
 0x1fb   :  { %5534 = vmatpush2.bf16.msra.mxu0 %v9755_v56  ;;  %v9808_v56 = vld [vmem:[%s14089_s1 + $0x80c] ss:$16 sps:$4 sm:$0xff]  }
 0x1fc   :  { %5501 = vmatpush2.bf16.msra.mxu1 %v9752_v55  ;;  %5535 = vmatprep.subr.bf16.mxu0 %v9763_v58  ;;  %v9803_v55 = vld [vmem:[%s14089_s1 + $0xaa8] ss:$16 sps:$4 sm:$0xff]  }
 0x1fd   :  { %5502 = vmatprep.subr.bf16.mxu1 %v9760_v57  ;;  %v9806_v57 = vld [vmem:[%s14089_s1 + $0x808] ss:$16 sps:$4 sm:$0xff]  }
 0x1fe   :  { %v9809_v58 = vld [vmem:[%s14089_s1 + $0xa88] ss:$16 sps:$4 sm:$0xff]  }
 0x1ff   :  { %5536 = vmatpush2.bf16.msra.mxu0 %v9761_v4  ;;  %v9817_v4 = vld [vmem:[%s14089_s1 + $0xa6c] ss:$16 sps:$4 sm:$0xff]  }
 0x200   :  { %5503 = vmatpush2.bf16.msra.mxu1 %v9758_v62  ;;  %5537 = vmatprep.subr.bf16.mxu0 %v9766_v5  ;;  %v9814_v62 = vld [vmem:[%s14089_s1 + $0x9ec] ss:$16 sps:$4 sm:$0xff]   ;;  %v9812_v5 = vld [vmem:[%s14089_s1 + $0x9e8] ss:$16 sps:$4 sm:$0xff]  }
 0x201   :  { %5554 = vmatprep.subr.bf16.mxu1 %v9769_v7  ;;  %v9815_v7 = vld [vmem:[%s14089_s1 + $0xa68] ss:$16 sps:$4 sm:$0xff]  }
 0x202   :  { %v5219_v15 = vpop.f32.mrf.mxu0 }
 0x203   :  { %v5260_v51 = vpop.f32.mrf.mxu1  ;;  %5505 = vmatmul.mubr.bf16.vlgmr.msra.gmra.mxu1 %v11045_v16  ;;  %v5220_v18 = vadd.f32 %v5219_v15, %v12195_v22  ;;  %5538 = vmatpush2.bf16.msra.mxu0 %v9764_v8  ;;  %v9778_v16 = vld [vmem:[%s14089_s1 + $0x72c] ss:$16 sps:$4 sm:$0xff]  }
 0x204   :  { %5555 = vmatpush1.bf16.msra.mxu1 %v9767_v2  ;;  %v5221_v19 = vpop.f32.mrf.mxu0  ;;  %5539 = vmatprep.subr.bf16.mxu0 %v9772_v3  ;;  %v9781_v22 = vld [vmem:[%s14089_s1 + $0x8ac] ss:$16 sps:$4 sm:$0xff]   ;;  %v9818_v3 = vld [vmem:[%s14089_s1 + $0x9c8] ss:$16 sps:$4 sm:$0xff]  }
 0x205   :  { %v5262_v20 = vpop.f32.mrf.mxu1  ;;  %5556 = vmatprep.subr.bf16.mxu1 %v9775_v37  ;;  %v12397_v21 = vadd.f32 %v5260_v51, %v5220_v18  ;;  %v5222_v28 = vadd.f32 %v5221_v19, %v12205_v46  ;;  %5586 = vmatprep.mubr.bf16.mxu1 %v11075_v24  ;;  %v9784_v24 = vld [vmem:[%s14089_s1 + $0x70c] ss:$16 sps:$4 sm:$0xff]   ;;  %v9821_v37 = vld [vmem:[%s14089_s1 + $0xa48] ss:$16 sps:$4 sm:$0xff]  }
 0x206   :  { %v5223_v26 = vpop.f32.mrf.mxu0  ;;  %v9787_v46 = vld [vmem:[%s14089_s1 + $0x88c] ss:$16 sps:$4 sm:$0xff]   ;;  %v9824_v18 = vld [vmem:[%s14089_s1 + $0x9a8] ss:$16 sps:$4 sm:$0xff]  }
 0x207   :  { %v5264_v29 = vpop.f32.mrf.mxu1  ;;  %v12401_v30 = vadd.f32 %v5262_v20, %v5222_v28  ;;  %5540 = vmatpush2.bf16.msra.mxu0 %v9770_v60  ;;  %v9820_v8 = vld [vmem:[%s14089_s1 + $0x9cc] ss:$16 sps:$4 sm:$0xff]   ;;  %v9827_v60 = vld [vmem:[%s14089_s1 + $0xa28] ss:$16 sps:$4 sm:$0xff]  }
 0x208   :  { %5557 = vmatpush1.bf16.msra.mxu1 %v9773_v61  ;;  %v5224_v31 = vpop.f32.mrf.mxu0  ;;  %5541 = vmatprep.subr.bf16.mxu0 %v9778_v16  ;;  %v9823_v2 = vld [vmem:[%s14089_s1 + $0xa4c] ss:$16 sps:$4 sm:$0xff]   ;;  %v9830_v20 = vld [vmem:[%s14089_s1 + $0x988] ss:$16 sps:$4 sm:$0xff]  }
 0x209   :  { %v5265_v6 = vpop.f32.mrf.mxu1  ;;  %5558 = vmatprep.subr.bf16.mxu1 %v9781_v22  ;;  %v9826_v15 = vld [vmem:[%s14089_s1 + $0x9ac] ss:$16 sps:$4 sm:$0xff]   ;;  %v9833_v16 = vld [vmem:[%s14089_s1 + $0xa08] ss:$16 sps:$4 sm:$0xff]  }
 0x20a   :  { %v9829_v51 = vld [vmem:[%s14089_s1 + $0xa2c] ss:$16 sps:$4 sm:$0xff]   ;;  %v9836_v26 = vld [vmem:[%s14089_s1 + $0x968] ss:$16 sps:$4 sm:$0xff]  }
 0x20b   :  { %5542 = vmatpush2.bf16.msra.mxu0 %v9776_v34  ;;  %v9832_v61 = vld [vmem:[%s14089_s1 + $0x98c] ss:$16 sps:$4 sm:$0xff]   ;;  %v9839_v29 = vld [vmem:[%s14089_s1 + $0xbe8] ss:$16 sps:$4 sm:$0xff]  }
 0x20c   :  { %5559 = vmatpush1.bf16.msra.mxu1 %v9779_v27  ;;  %5543 = vmatprep.subr.bf16.mxu0 %v9784_v24  ;;  %v9835_v19 = vld [vmem:[%s14089_s1 + $0xa0c] ss:$16 sps:$4 sm:$0xff]   ;;  %v9842_v31 = vld [vmem:[%s14089_s1 + $0x948] ss:$16 sps:$4 sm:$0xff]  }
 0x20d   :  { %5560 = vmatprep.subr.bf16.mxu1 %v9787_v46  ;;  %v9838_v22 = vld [vmem:[%s14089_s1 + $0x96c] ss:$16 sps:$4 sm:$0xff]   ;;  %v9845_v6 = vld [vmem:[%s14089_s1 + $0xbc8] ss:$16 sps:$4 sm:$0xff]  }
 0x20e   :  { %v9841_v28 = vld [vmem:[%s14089_s1 + $0xbec] ss:$16 sps:$4 sm:$0xff]  }
 0x20f   :  { %5544 = vmatpush2.bf16.msra.mxu0 %v9782_v32  ;;  %v9844_v34 = vld [vmem:[%s14089_s1 + $0x94c] ss:$16 sps:$4 sm:$0xff]   ;;  %v9848_v32 = vld [vmem:[%s14089_s1 + $0x928] ss:$16 sps:$4 sm:$0xff]  }
 0x210   :  { %5561 = vmatpush1.bf16.msra.mxu1 %v9785_v23  ;;  %5595 = vmatprep.subr.bf16.mxu0 %v9793_v45  ;;  %v9847_v27 = vld [vmem:[%s14089_s1 + $0xbcc] ss:$16 sps:$4 sm:$0xff]   ;;  %v9851_v23 = vld [vmem:[%s14089_s1 + $0xba8] ss:$16 sps:$4 sm:$0xff]  }
 0x211   :  { %5562 = vmatprep.subr.bf16.mxu1 %v9790_v33  ;;  %v9850_v24 = vld [vmem:[%s14089_s1 + $0x92c] ss:$16 sps:$4 sm:$0xff]  }
 0x212   :  { %5546 = vmatmul.mubr.bf16.vlgmr.msra.gmra.mxu0 %v11049_v17  ;;  %v9805_v17 = vld [vmem:[%s14089_s1 + $0xaac] ss:$16 sps:$4 sm:$0xff]  }
 0x213   :  { %5596 = vmatpush1.bf16.msra.mxu0 %v9791_v47  ;;  %5627 = vmatprep.mubr.bf16.mxu0 %v11079_v25  ;;  %v9811_v25 = vld [vmem:[%s14089_s1 + $0xa8c] ss:$16 sps:$4 sm:$0xff]   ;;  %v9857_v47 = vld [vmem:[%s14089_s1 + $0xb88] ss:$16 sps:$4 sm:$0xff]  }
 0x214   :  { %5563 = vmatpush1.bf16.msra.mxu1 %v9788_v48  ;;  %5597 = vmatprep.subr.bf16.mxu0 %v9799_v49  ;;  %v9853_v46 = vld [vmem:[%s14089_s1 + $0xbac] ss:$16 sps:$4 sm:$0xff]   ;;  %v9854_v48 = vld [vmem:[%s14089_s1 + $0x908] ss:$16 sps:$4 sm:$0xff]  }
 0x215   :  { %5564 = vmatprep.subr.bf16.mxu1 %v9796_v44  ;;  %v9856_v33 = vld [vmem:[%s14089_s1 + $0x90c] ss:$16 sps:$4 sm:$0xff]  }
 0x216   :  { %v9859_v45 = vld [vmem:[%s14089_s1 + $0xb8c] ss:$16 sps:$4 sm:$0xff]  }
 0x217   :  { %5598 = vmatpush1.bf16.msra.mxu0 %v9797_v50  ;;  %v9862_v44 = vld [vmem:[%s14089_s1 + $0xb6c] ss:$16 sps:$4 sm:$0xff]   ;;  %v9863_v50 = vld [vmem:[%s14089_s1 + $0xce8] ss:$16 sps:$4 sm:$0xff]  }
 0x218   :  { %5565 = vmatpush1.bf16.msra.mxu1 %v9794_v36  ;;  %5599 = vmatprep.subr.bf16.mxu0 %v9805_v17  ;;  %v9865_v49 = vld [vmem:[%s14089_s1 + $0xcec] ss:$16 sps:$4 sm:$0xff]   ;;  %v9860_v36 = vld [vmem:[%s14089_s1 + $0xb68] ss:$16 sps:$4 sm:$0xff]  }
 0x219   :  { %5566 = vmatprep.subr.bf16.mxu1 %v9802_v52  ;;  %v9868_v52 = vld [vmem:[%s14089_s1 + $0xb4c] ss:$16 sps:$4 sm:$0xff]  }
 0x21a   :  { %v9871_v17 = vld [vmem:[%s14089_s1 + $0xccc] ss:$16 sps:$4 sm:$0xff]  }
 0x21b   :  { %5600 = vmatpush1.bf16.msra.mxu0 %v9803_v55 }
 0x21c   :  { %5567 = vmatpush1.bf16.msra.mxu1 %v9800_v53  ;;  %5601 = vmatprep.subr.bf16.mxu0 %v9811_v25  ;;  %v9866_v25 = vld [vmem:[%s14089_s1 + $0xb48] ss:$16 sps:$4 sm:$0xff]  }
 0x21d   :  { %5568 = vmatprep.subr.bf16.mxu1 %v9808_v56 }
 0x21f   :  { %5602 = vmatpush1.bf16.msra.mxu0 %v9809_v58 }
 0x220   :  { %5569 = vmatpush1.bf16.msra.mxu1 %v9806_v57  ;;  %5603 = vmatprep.subr.bf16.mxu0 %v9817_v4  ;;  %v9869_v57 = vld [vmem:[%s14089_s1 + $0xcc8] ss:$16 sps:$4 sm:$0xff]  }
 0x221   :  { %5570 = vmatprep.subr.bf16.mxu1 %v9814_v62 }
 0x223   :  { %5604 = vmatpush1.bf16.msra.mxu0 %v9815_v7 }
 0x224   :  { %5571 = vmatpush2.bf16.msra.mxu1 %v9812_v5  ;;  %5605 = vmatprep.subr.bf16.mxu0 %v9823_v2 }
 0x225   :  { %5572 = vmatprep.subr.bf16.mxu1 %v9820_v8 }
 0x227   :  { %5606 = vmatpush1.bf16.msra.mxu0 %v9821_v37  ;;  %v9875_v37 = vld [vmem:[%s14089_s1 + $0xca8] ss:$16 sps:$4 sm:$0xff]  }
 0x228   :  { %5573 = vmatpush2.bf16.msra.mxu1 %v9818_v3  ;;  %5607 = vmatprep.subr.bf16.mxu0 %v9829_v51  ;;  %v9872_v3 = vld [vmem:[%s14089_s1 + $0xb28] ss:$16 sps:$4 sm:$0xff]  }
 0x229   :  { %5574 = vmatprep.subr.bf16.mxu1 %v9826_v15 }
 0x22b   :  { %5608 = vmatpush1.bf16.msra.mxu0 %v9827_v60  ;;  %v9881_v60 = vld [vmem:[%s14089_s1 + $0xc88] ss:$16 sps:$4 sm:$0xff]  }
 0x22c   :  { %5575 = vmatpush2.bf16.msra.mxu1 %v9824_v18  ;;  %5609 = vmatprep.subr.bf16.mxu0 %v9835_v19  ;;  %v9878_v18 = vld [vmem:[%s14089_s1 + $0xb08] ss:$16 sps:$4 sm:$0xff]   ;;  %v9889_v19 = vld [vmem:[%s14089_s1 + $0xeec] ss:$16 sps:$4 sm:$0xff]  }
 0x22d   :  { %5576 = vmatprep.subr.bf16.mxu1 %v9832_v61  ;;  %v9886_v61 = vld [vmem:[%s14089_s1 + $0xc6c] ss:$16 sps:$4 sm:$0xff]  }
 0x22f   :  { %5610 = vmatpush1.bf16.msra.mxu0 %v9833_v16  ;;  %v9887_v16 = vld [vmem:[%s14089_s1 + $0xee8] ss:$16 sps:$4 sm:$0xff]  }
 0x230   :  { %5577 = vmatpush2.bf16.msra.mxu1 %v9830_v20  ;;  %5611 = vmatprep.subr.bf16.mxu0 %v9841_v28  ;;  %v9884_v20 = vld [vmem:[%s14089_s1 + $0xc68] ss:$16 sps:$4 sm:$0xff]   ;;  %v9895_v28 = vld [vmem:[%s14089_s1 + $0xecc] ss:$16 sps:$4 sm:$0xff]  }
 0x231   :  { %5578 = vmatprep.subr.bf16.mxu1 %v9838_v22  ;;  %v9892_v22 = vld [vmem:[%s14089_s1 + $0xc4c] ss:$16 sps:$4 sm:$0xff]  }
 0x233   :  { %5612 = vmatpush2.bf16.msra.mxu0 %v9839_v29 }
 0x234   :  { %5579 = vmatpush2.bf16.msra.mxu1 %v9836_v26  ;;  %5613 = vmatprep.subr.bf16.mxu0 %v9847_v27  ;;  %v9893_v27 = vld [vmem:[%s14089_s1 + $0xec8] ss:$16 sps:$4 sm:$0xff]  }
 0x235   :  { %5580 = vmatprep.subr.bf16.mxu1 %v9844_v34  ;;  %v9890_v34 = vld [vmem:[%s14089_s1 + $0xc48] ss:$16 sps:$4 sm:$0xff]  }
 0x237   :  { %5614 = vmatpush2.bf16.msra.mxu0 %v9845_v6  ;;  %v9898_v6 = vld [vmem:[%s14089_s1 + $0xc2c] ss:$16 sps:$4 sm:$0xff]  }
 0x238   :  { %5581 = vmatpush2.bf16.msra.mxu1 %v9842_v31  ;;  %5615 = vmatprep.subr.bf16.mxu0 %v9853_v46 }
 0x239   :  { %5582 = vmatprep.subr.bf16.mxu1 %v9850_v24 }
 0x23b   :  { %5616 = vmatpush2.bf16.msra.mxu0 %v9851_v23  ;;  %v9899_v23 = vld [vmem:[%s14089_s1 + $0xea8] ss:$16 sps:$4 sm:$0xff]  }
 0x23c   :  { %5583 = vmatpush2.bf16.msra.mxu1 %v9848_v32  ;;  %5617 = vmatprep.subr.bf16.mxu0 %v9859_v45  ;;  %v9896_v32 = vld [vmem:[%s14089_s1 + $0xc28] ss:$16 sps:$4 sm:$0xff]   ;;  %v9904_v45 = vld [vmem:[%s14089_s1 + $0xc0c] ss:$16 sps:$4 sm:$0xff]  }
 0x23d   :  { %5584 = vmatprep.subr.bf16.mxu1 %v9856_v33 }
 0x23f   :  { %5618 = vmatpush2.bf16.msra.mxu0 %v9857_v47  ;;  %v9905_v47 = vld [vmem:[%s14089_s1 + $0xe88] ss:$16 sps:$4 sm:$0xff]  }
 0x240   :  { %5585 = vmatpush2.bf16.msra.mxu1 %v9854_v48  ;;  %5619 = vmatprep.subr.bf16.mxu0 %v9862_v44  ;;  %v9902_v48 = vld [vmem:[%s14089_s1 + $0xc08] ss:$16 sps:$4 sm:$0xff]   ;;  %v9910_v44 = vld [vmem:[%s14089_s1 + $0xdec] ss:$16 sps:$4 sm:$0xff]  }
 0x241   :  { %5636 = vmatprep.subr.bf16.mxu1 %v9865_v49  ;;  %v9913_v49 = vld [vmem:[%s14089_s1 + $0xe6c] ss:$16 sps:$4 sm:$0xff]  }
 0x242   :  { %v5301_v53 = vpop.f32.mrf.mxu0 }
 0x243   :  { %v5342_v55 = vpop.f32.mrf.mxu1  ;;  %5587 = vmatmul.mubr.bf16.vlgmr.msra.gmra.mxu1 %v11275_v38  ;;  %v5302_v56 = vadd.f32 %v5301_v53, %v12397_v21  ;;  %5620 = vmatpush2.bf16.msra.mxu0 %v9860_v36  ;;  %v9874_v38 = vld [vmem:[%s14089_s1 + $0xb2c] ss:$16 sps:$4 sm:$0xff]   ;;  %v9908_v36 = vld [vmem:[%s14089_s1 + $0xde8] ss:$16 sps:$4 sm:$0xff]  }
 0x244   :  { %5637 = vmatpush1.bf16.msra.mxu1 %v9863_v50  ;;  %v5303_v58 = vpop.f32.mrf.mxu0  ;;  %5621 = vmatprep.subr.bf16.mxu0 %v9868_v52  ;;  %v9877_v21 = vld [vmem:[%s14089_s1 + $0xcac] ss:$16 sps:$4 sm:$0xff]   ;;  %v9911_v50 = vld [vmem:[%s14089_s1 + $0xe68] ss:$16 sps:$4 sm:$0xff]  }
 0x245   :  { %v5344_v62 = vpop.f32.mrf.mxu1  ;;  %5638 = vmatprep.subr.bf16.mxu1 %v9871_v17  ;;  %v5343_v4 = vadd.f32 %v5342_v55, %v5302_v56  ;;  %v5304_v5 = vadd.f32 %v5303_v58, %v12401_v30  ;;  %5668 = vmatprep.mubr.bf16.mxu1 %v11297_v42  ;;  %v9880_v42 = vld [vmem:[%s14089_s1 + $0xb0c] ss:$16 sps:$4 sm:$0xff]   ;;  %v9914_v53 = vld [vmem:[%s14089_s1 + $0xdc8] ss:$16 sps:$4 sm:$0xff]  }
 0x246   :  { %v5305_v7 = vpop.f32.mrf.mxu0  ;;  %v9883_v30 = vld [vmem:[%s14089_s1 + $0xc8c] ss:$16 sps:$4 sm:$0xff]   ;;  %v9917_v55 = vld [vmem:[%s14089_s1 + $0xe48] ss:$16 sps:$4 sm:$0xff]  }
 0x247   :  { %v5346_v8 = vpop.f32.mrf.mxu1  ;;  %v5345_v2 = vadd.f32 %v5344_v62, %v5304_v5  ;;  %5622 = vmatpush2.bf16.msra.mxu0 %v9866_v25  ;;  %v9916_v52 = vld [vmem:[%s14089_s1 + $0xdcc] ss:$16 sps:$4 sm:$0xff]   ;;  %v9923_v58 = vld [vmem:[%s14089_s1 + $0xe28] ss:$16 sps:$4 sm:$0xff]  }
 0x248   :  { %5639 = vmatpush1.bf16.msra.mxu1 %v9869_v57  ;;  %v5306_v15 = vpop.f32.mrf.mxu0  ;;  %5623 = vmatprep.subr.bf16.mxu0 %v9874_v38  ;;  %v9919_v17 = vld [vmem:[%s14089_s1 + $0xe4c] ss:$16 sps:$4 sm:$0xff]   ;;  %v9920_v57 = vld [vmem:[%s14089_s1 + $0xda8] ss:$16 sps:$4 sm:$0xff]  }
 0x249   :  { %v5347_v51 = vpop.f32.mrf.mxu1  ;;  %5640 = vmatprep.subr.bf16.mxu1 %v9877_v21  ;;  %v9922_v56 = vld [vmem:[%s14089_s1 + $0xdac] ss:$16 sps:$4 sm:$0xff]   ;;  %v9926_v21 = vld [vmem:[%s14089_s1 + $0xd88] ss:$16 sps:$4 sm:$0xff]  }
 0x24a   :  { %v9925_v25 = vld [vmem:[%s14089_s1 + $0xe2c] ss:$16 sps:$4 sm:$0xff]   ;;  %v9932_v8 = vld [vmem:[%s14089_s1 + $0xd68] ss:$16 sps:$4 sm:$0xff]  }
 0x24b   :  { %5624 = vmatpush2.bf16.msra.mxu0 %v9872_v3  ;;  %v9928_v62 = vld [vmem:[%s14089_s1 + $0xd8c] ss:$16 sps:$4 sm:$0xff]   ;;  %v9938_v15 = vld [vmem:[%s14089_s1 + $0xd48] ss:$16 sps:$4 sm:$0xff]  }
 0x24c   :  { %5641 = vmatpush1.bf16.msra.mxu1 %v9875_v37  ;;  %5625 = vmatprep.subr.bf16.mxu0 %v9880_v42  ;;  %v9931_v38 = vld [vmem:[%s14089_s1 + $0xe0c] ss:$16 sps:$4 sm:$0xff]   ;;  %v9941_v51 = vld [vmem:[%s14089_s1 + $0xfc8] ss:$16 sps:$4 sm:$0xff]  }
 0x24d   :  { %5642 = vmatprep.subr.bf16.mxu1 %v9883_v30  ;;  %v9934_v5 = vld [vmem:[%s14089_s1 + $0xd6c] ss:$16 sps:$4 sm:$0xff]  }
 0x24e   :  { %v9937_v7 = vld [vmem:[%s14089_s1 + $0xfec] ss:$16 sps:$4 sm:$0xff]  }
 0x24f   :  { %5626 = vmatpush2.bf16.msra.mxu0 %v9878_v18  ;;  %v9940_v3 = vld [vmem:[%s14089_s1 + $0xd4c] ss:$16 sps:$4 sm:$0xff]   ;;  %v9944_v18 = vld [vmem:[%s14089_s1 + $0xd28] ss:$16 sps:$4 sm:$0xff]  }
 0x250   :  { %5643 = vmatpush1.bf16.msra.mxu1 %v9881_v60  ;;  %5677 = vmatprep.subr.bf16.mxu0 %v9889_v19  ;;  %v9943_v37 = vld [vmem:[%s14089_s1 + $0xfcc] ss:$16 sps:$4 sm:$0xff]   ;;  %v9947_v60 = vld [vmem:[%s14089_s1 + $0xfa8] ss:$16 sps:$4 sm:$0xff]  }
 0x251   :  { %5644 = vmatprep.subr.bf16.mxu1 %v9886_v61  ;;  %v9946_v42 = vld [vmem:[%s14089_s1 + $0xd2c] ss:$16 sps:$4 sm:$0xff]  }
 0x252   :  { %v5383_v26 = vpop.f32.mrf.mxu0  ;;  %5628 = vmatmul.mubr.bf16.vlgmr.msra.gmra.mxu0 %v11279_v39  ;;  %v9901_v39 = vld [vmem:[%s14089_s1 + $0xeac] ss:$16 sps:$4 sm:$0xff]  }
 0x253   :  { %v12638_v29 = vadd.f32 %v5383_v26, %v5343_v4  ;;  %5678 = vmatpush1.bf16.msra.mxu0 %v9887_v16  ;;  %5709 = vmatprep.mubr.bf16.mxu0 %v11301_v43  ;;  %v9907_v43 = vld [vmem:[%s14089_s1 + $0xe8c] ss:$16 sps:$4 sm:$0xff]   ;;  %v9929_v4 = vld [vmem:[%s14089_s1 + $0xe08] ss:$16 sps:$4 sm:$0xff]  }
 0x254   :  { %5645 = vmatpush1.bf16.msra.mxu1 %v9884_v20  ;;  %v5385_v31 = vpop.f32.mrf.mxu0  ;;  %5679 = vmatprep.subr.bf16.mxu0 %v9895_v28  ;;  %v9949_v30 = vld [vmem:[%s14089_s1 + $0xfac] ss:$16 sps:$4 sm:$0xff]   ;;  %v9950_v20 = vld [vmem:[%s14089_s1 + $0xd08] ss:$16 sps:$4 sm:$0xff]  }
 0x255   :  { %5646 = vmatprep.subr.bf16.mxu1 %v9892_v22  ;;  %v12652_v24 = vadd.f32 %v5385_v31, %v5345_v2  ;;  %v9935_v2 = vld [vmem:[%s14089_s1 + $0xfe8] ss:$16 sps:$4 sm:$0xff]   ;;  %v9952_v61 = vld [vmem:[%s14089_s1 + $0xd0c] ss:$16 sps:$4 sm:$0xff]   ;;  %vm5923_vm2 = vcmp.gt.f32.partialorder %v12638_v29, 0.0 }
 0x256   :  { %v5387_v46 = vpop.f32.mrf.mxu0  ;;  %v9955_v19 = vld [vmem:[%s14089_s1 + $0xf8c] ss:$16 sps:$4 sm:$0xff]   ;;  %v9953_v16 = vld [vmem:[%s14089_s1 + $0xf88] ss:$16 sps:$4 sm:$0xff]  }
 0x257   :  { %5680 = vmatpush1.bf16.msra.mxu0 %v9893_v27  ;;  %v9958_v22 = vld [vmem:[%s14089_s1 + $0xf6c] ss:$16 sps:$4 sm:$0xff]   ;;  %v9956_v26 = vld [vmem:[%s14089_s1 + $0xf68] ss:$16 sps:$4 sm:$0xff]   ;;  %vm5924_vm1 = vcmp.gt.f32.partialorder %v12652_v24, 0.0 }
 0x258   :  { %5647 = vmatpush1.bf16.msra.mxu1 %v9890_v34  ;;  %v5388_v33 = vpop.f32.mrf.mxu0  ;;  %5681 = vmatprep.subr.bf16.mxu0 %v9901_v39  ;;  %v9961_v28 = vld [vmem:[%s14089_s1 + $0x10ec] ss:$16 sps:$4 sm:$0xff]   ;;  %v9959_v34 = vld [vmem:[%s14089_s1 + $0x10e8] ss:$16 sps:$4 sm:$0xff]  }
 0x259   :  { %5648 = vmatprep.subr.bf16.mxu1 %v9898_v6  ;;  %v9964_v27 = vld [vmem:[%s14089_s1 + $0xf4c] ss:$16 sps:$4 sm:$0xff]   ;;  %v9962_v39 = vld [vmem:[%s14089_s1 + $0xf48] ss:$16 sps:$4 sm:$0xff]  }
 0x25a   :  { %v9967_v31 = vld [vmem:[%s14089_s1 + $0x10cc] ss:$16 sps:$4 sm:$0xff]   ;;  %v9965_v46 = vld [vmem:[%s14089_s1 + $0x10c8] ss:$16 sps:$4 sm:$0xff]  }
 0x25b   :  { %5682 = vmatpush1.bf16.msra.mxu0 %v9899_v23  ;;  %v9970_v23 = vld [vmem:[%s14089_s1 + $0xf2c] ss:$16 sps:$4 sm:$0xff]  }
 0x25c   :  { %5649 = vmatpush1.bf16.msra.mxu1 %v9896_v32  ;;  %5683 = vmatprep.subr.bf16.mxu0 %v9907_v43  ;;  %v9971_v43 = vld [vmem:[%s14089_s1 + $0x10a8] ss:$16 sps:$4 sm:$0xff]  }
 0x25d   :  { %5650 = vmatprep.subr.bf16.mxu1 %v9904_v45  ;;  %v9968_v45 = vld [vmem:[%s14089_s1 + $0xf28] ss:$16 sps:$4 sm:$0xff]  }
 0x25f   :  { %5684 = vmatpush1.bf16.msra.mxu0 %v9905_v47  ;;  %v9976_v47 = vld [vmem:[%s14089_s1 + $0xf0c] ss:$16 sps:$4 sm:$0xff]  }
 0x260   :  { %5651 = vmatpush1.bf16.msra.mxu1 %v9902_v48  ;;  %5685 = vmatprep.subr.bf16.mxu0 %v9913_v49  ;;  %v12817_v49 = vsub.s32 3, %v11472_v54 }
 0x261   :  { %5652 = vmatprep.subr.bf16.mxu1 %v9910_v44  ;;  %v12814_v44 = vsub.s32 2, %v11472_v54  ;;  %v9985_v54 = vld [vmem:[%s14089_s1 + $0x12ec] ss:$16 sps:$4 sm:$0xff]  }
 0x263   :  { %5686 = vmatpush1.bf16.msra.mxu0 %v9911_v50  ;;  %v9977_v50 = vld [vmem:[%s14089_s1 + $0x1088] ss:$16 sps:$4 sm:$0xff]  }
 0x264   :  { %5653 = vmatpush2.bf16.msra.mxu1 %v9908_v36  ;;  %5687 = vmatprep.subr.bf16.mxu0 %v9919_v17  ;;  %v9974_v36 = vld [vmem:[%s14089_s1 + $0xf08] ss:$16 sps:$4 sm:$0xff]   ;;  %v10572_v17 = vld [vmem:[%s14091_s2] sm:$0xf] }
 0x265   :  { %5654 = vmatprep.subr.bf16.mxu1 %v9916_v52  ;;  %v9982_v52 = vld [vmem:[%s14089_s1 + $0x106c] ss:$16 sps:$4 sm:$0xff]  }
 0x267   :  { %5688 = vmatpush1.bf16.msra.mxu0 %v9917_v55  ;;  %v841_v55 = vrot.slane %v10572_v17, %v12817_v49 }
 0x268   :  { %5655 = vmatpush2.bf16.msra.mxu1 %v9914_v53  ;;  %5689 = vmatprep.subr.bf16.mxu0 %v9925_v25  ;;  %v837_v53 = vrot.slane %v10572_v17, %v12814_v44  ;;  %v9983_v25 = vld [vmem:[%s14089_s1 + $0x12e8] ss:$16 sps:$4 sm:$0xff]  }
 0x269   :  { %5656 = vmatprep.subr.bf16.mxu1 %v9922_v56  ;;  %v9980_v56 = vld [vmem:[%s14089_s1 + $0x1068] ss:$16 sps:$4 sm:$0xff]  }
 0x26a   :  { %v10040_v17 = vld [vmem:[%s14089_s1 + $0x1128] ss:$16 sps:$4 sm:$0xff]  }
 0x26b   :  { %5690 = vmatpush1.bf16.msra.mxu0 %v9923_v58  ;;  %v9991_v58 = vld [vmem:[%s14089_s1 + $0x12cc] ss:$16 sps:$4 sm:$0xff]  }
 0x26c   :  { %5657 = vmatpush2.bf16.msra.mxu1 %v9920_v57  ;;  %5691 = vmatprep.subr.bf16.mxu0 %v9931_v38  ;;  %v9988_v57 = vld [vmem:[%s14089_s1 + $0x104c] ss:$16 sps:$4 sm:$0xff]   ;;  %v9986_v38 = vld [vmem:[%s14089_s1 + $0x1048] ss:$16 sps:$4 sm:$0xff]  }
 0x26d   :  { %5658 = vmatprep.subr.bf16.mxu1 %v9928_v62 }
 0x26f   :  { %5692 = vmatpush1.bf16.msra.mxu0 %v9929_v4 }
 0x270   :  { %5659 = vmatpush2.bf16.msra.mxu1 %v9926_v21  ;;  %5693 = vmatprep.subr.bf16.mxu0 %v9937_v7  ;;  %v9989_v21 = vld [vmem:[%s14089_s1 + $0x12c8] ss:$16 sps:$4 sm:$0xff]  }
 0x271   :  { %5660 = vmatprep.subr.bf16.mxu1 %v9934_v5  ;;  %v9994_v5 = vld [vmem:[%s14089_s1 + $0x102c] ss:$16 sps:$4 sm:$0xff]  }
 0x273   :  { %5694 = vmatpush2.bf16.msra.mxu0 %v9935_v2 }
 0x274   :  { %5661 = vmatpush2.bf16.msra.mxu1 %v9932_v8  ;;  %5695 = vmatprep.subr.bf16.mxu0 %v9943_v37 }
 0x275   :  { %5662 = vmatprep.subr.bf16.mxu1 %v9940_v3  ;;  %v9997_v3 = vld [vmem:[%s14089_s1 + $0x12ac] ss:$16 sps:$4 sm:$0xff]  }
 0x277   :  { %5696 = vmatpush2.bf16.msra.mxu0 %v9941_v51 }
 0x278   :  { %5663 = vmatpush2.bf16.msra.mxu1 %v9938_v15  ;;  %5697 = vmatprep.subr.bf16.mxu0 %v9949_v30  ;;  %v9995_v15 = vld [vmem:[%s14089_s1 + $0x12a8] ss:$16 sps:$4 sm:$0xff]   ;;  %v10000_v30 = vld [vmem:[%s14089_s1 + $0x100c] ss:$16 sps:$4 sm:$0xff]  }
 0x279   :  { %5664 = vmatprep.subr.bf16.mxu1 %v9946_v42 }
 0x27b   :  { %5698 = vmatpush2.bf16.msra.mxu0 %v9947_v60  ;;  %v9998_v60 = vld [vmem:[%s14089_s1 + $0x1008] ss:$16 sps:$4 sm:$0xff]  }
 0x27c   :  { %5665 = vmatpush2.bf16.msra.mxu1 %v9944_v18  ;;  %5699 = vmatprep.subr.bf16.mxu0 %v9955_v19  ;;  %v10003_v18 = vld [vmem:[%s14089_s1 + $0x128c] ss:$16 sps:$4 sm:$0xff]  }
 0x27d   :  { %5666 = vmatprep.subr.bf16.mxu1 %v9952_v61  ;;  %v10006_v61 = vld [vmem:[%s14089_s1 + $0x11ec] ss:$16 sps:$4 sm:$0xff]  }
 0x27e   :  { %v10009_v19 = vld [vmem:[%s14089_s1 + $0x126c] ss:$16 sps:$4 sm:$0xff]  }
 0x27f   :  { %5700 = vmatpush2.bf16.msra.mxu0 %v9953_v16  ;;  %v10007_v16 = vld [vmem:[%s14089_s1 + $0x1268] ss:$16 sps:$4 sm:$0xff]  }
 0x280   :  { %5667 = vmatpush2.bf16.msra.mxu1 %v9950_v20  ;;  %5701 = vmatprep.subr.bf16.mxu0 %v9958_v22  ;;  %v10004_v20 = vld [vmem:[%s14089_s1 + $0x11e8] ss:$16 sps:$4 sm:$0xff]   ;;  %v10012_v22 = vld [vmem:[%s14089_s1 + $0x11cc] ss:$16 sps:$4 sm:$0xff]  }
 0x281   :  { %5718 = vmatprep.subr.bf16.mxu1 %v9961_v28  ;;  %v10015_v28 = vld [vmem:[%s14089_s1 + $0x124c] ss:$16 sps:$4 sm:$0xff]  }
 0x283   :  { %v5424_v6 = vpop.f32.mrf.mxu1  ;;  %5669 = vmatmul.mubr.bf16.vlgmr.msra.gmra.mxu1 %v11503_v0  ;;  %5702 = vmatpush2.bf16.msra.mxu0 %v9956_v26  ;;  %v9973_v0 = vld [vmem:[%s14089_s1 + $0x10ac] ss:$16 sps:$4 sm:$0xff]   ;;  %v10010_v26 = vld [vmem:[%s14089_s1 + $0x11c8] ss:$16 sps:$4 sm:$0xff]  }
 0x284   :  { %5719 = vmatpush1.bf16.msra.mxu1 %v9959_v34  ;;  %5703 = vmatprep.subr.bf16.mxu0 %v9964_v27  ;;  %v5425_v62 = vadd.f32 %v5424_v6, %v837_v53  ;;  %v10013_v34 = vld [vmem:[%s14089_s1 + $0x1248] ss:$16 sps:$4 sm:$0xff]   ;;  %v10018_v27 = vld [vmem:[%s14089_s1 + $0x11ac] ss:$16 sps:$4 sm:$0xff]  }
 0x285   :  { %v5426_v32 = vpop.f32.mrf.mxu1  ;;  %5720 = vmatprep.subr.bf16.mxu1 %v9967_v31  ;;  %5750 = vmatprep.mubr.bf16.mxu1 %v11532_v9  ;;  %v9979_v9 = vld [vmem:[%s14089_s1 + $0x108c] ss:$16 sps:$4 sm:$0xff]   ;;  %v10016_v6 = vld [vmem:[%s14089_s1 + $0x11a8] ss:$16 sps:$4 sm:$0xff]  }
 0x286   :  { %v5427_v7 = vadd.f32 %v5426_v32, %v841_v55  ;;  %v10021_v31 = vld [vmem:[%s14089_s1 + $0x122c] ss:$16 sps:$4 sm:$0xff]   ;;  %v10043_v53 = vld [vmem:[%s14089_s1 + $0x13a8] ss:$16 sps:$4 sm:$0xff]  }
 0x287   :  { %v5428_v33 = vpop.f32.mrf.mxu1  ;;  %5704 = vmatpush2.bf16.msra.mxu0 %v9962_v39  ;;  %v10019_v39 = vld [vmem:[%s14089_s1 + $0x1228] ss:$16 sps:$4 sm:$0xff]   ;;  %v10027_v32 = vld [vmem:[%s14089_s1 + $0x120c] ss:$16 sps:$4 sm:$0xff]  }
 0x288   :  { %5721 = vmatpush1.bf16.msra.mxu1 %v9965_v46  ;;  %5705 = vmatprep.subr.bf16.mxu0 %v9970_v23  ;;  %v10024_v46 = vld [vmem:[%s14089_s1 + $0x118c] ss:$16 sps:$4 sm:$0xff]   ;;  %v10022_v23 = vld [vmem:[%s14089_s1 + $0x1188] ss:$16 sps:$4 sm:$0xff]  }
 0x289   :  { %v5429_v48 = vpop.f32.mrf.mxu1  ;;  %5722 = vmatprep.subr.bf16.mxu1 %v9973_v0  ;;  %v10025_v0 = vld [vmem:[%s14089_s1 + $0x1208] ss:$16 sps:$4 sm:$0xff]   ;;  %v10030_v33 = vld [vmem:[%s14089_s1 + $0x116c] ss:$16 sps:$4 sm:$0xff]  }
 0x28a   :  { %v10031_v48 = vld [vmem:[%s14089_s1 + $0x13e8] ss:$16 sps:$4 sm:$0xff]   ;;  %v10048_v55 = vld [vmem:[%s14089_s1 + $0x110c] ss:$16 sps:$4 sm:$0xff]  }
 0x28b   :  { %5706 = vmatpush2.bf16.msra.mxu0 %v9968_v45  ;;  %v10033_v45 = vld [vmem:[%s14089_s1 + $0x13ec] ss:$16 sps:$4 sm:$0xff]  }
 0x28c   :  { %5723 = vmatpush1.bf16.msra.mxu1 %v9971_v43  ;;  %5707 = vmatprep.subr.bf16.mxu0 %v9976_v47  ;;  %v10028_v43 = vld [vmem:[%s14089_s1 + $0x1168] ss:$16 sps:$4 sm:$0xff]   ;;  %v10036_v47 = vld [vmem:[%s14089_s1 + $0x114c] ss:$16 sps:$4 sm:$0xff]  }
 0x28d   :  { %5724 = vmatprep.subr.bf16.mxu1 %v9979_v9  ;;  %v10039_v9 = vld [vmem:[%s14089_s1 + $0x13cc] ss:$16 sps:$4 sm:$0xff]  }
 0x28f   :  { %5708 = vmatpush2.bf16.msra.mxu0 %v9974_v36  ;;  %v10034_v36 = vld [vmem:[%s14089_s1 + $0x1148] ss:$16 sps:$4 sm:$0xff]  }
 0x290   :  { %5725 = vmatpush1.bf16.msra.mxu1 %v9977_v50  ;;  %5759 = vmatprep.subr.bf16.mxu0 %v9985_v54  ;;  %v10037_v50 = vld [vmem:[%s14089_s1 + $0x13c8] ss:$16 sps:$4 sm:$0xff]   ;;  %v10045_v54 = vld [vmem:[%s14089_s1 + $0x13ac] ss:$16 sps:$4 sm:$0xff]  }
 0x291   :  { %5726 = vmatprep.subr.bf16.mxu1 %v9982_v52  ;;  %v10042_v52 = vld [vmem:[%s14089_s1 + $0x112c] ss:$16 sps:$4 sm:$0xff]  }
 0x292   :  { %v5465_v4 = vpop.f32.mrf.mxu0  ;;  %5710 = vmatmul.mubr.bf16.vlgmr.msra.gmra.mxu0 %v11507_v1  ;;  %v9992_v1 = vld [vmem:[%s14089_s1 + $0x1028] ss:$16 sps:$4 sm:$0xff]  }
 0x293   :  { %v12858_v8 = vadd.f32 %v5465_v4, %v5425_v62  ;;  %5760 = vmatpush1.bf16.msra.mxu0 %v9983_v25  ;;  %5791 = vmatprep.mubr.bf16.mxu0 %v11536_v10  ;;  %v10001_v10 = vld [vmem:[%s14089_s1 + $0x1288] ss:$16 sps:$4 sm:$0xff]   ;;  %v10057_v62 = vld [vmem:[%s14089_s1 + $0x14ec] ss:$16 sps:$4 sm:$0xff]  }
 0x294   :  { %5727 = vmatpush1.bf16.msra.mxu1 %v9980_v56  ;;  %v5467_v2 = vpop.f32.mrf.mxu0  ;;  %5761 = vmatprep.subr.bf16.mxu0 %v9991_v58  ;;  %v10051_v56 = vld [vmem:[%s14089_s1 + $0x138c] ss:$16 sps:$4 sm:$0xff]   ;;  %v10046_v25 = vld [vmem:[%s14089_s1 + $0x1108] ss:$16 sps:$4 sm:$0xff]  }
 0x295   :  { %5728 = vmatprep.subr.bf16.mxu1 %v9988_v57  ;;  %v12863_v37 = vadd.f32 %v5467_v2, %v5427_v7  ;;  %v10049_v57 = vld [vmem:[%s14089_s1 + $0x1388] ss:$16 sps:$4 sm:$0xff]   ;;  %v10054_v58 = vld [vmem:[%s14089_s1 + $0x136c] ss:$16 sps:$4 sm:$0xff]  }
 0x296   :  { %v5469_v51 = vpop.f32.mrf.mxu0  ;;  %v10060_v4 = vld [vmem:[%s14089_s1 + $0x134c] ss:$16 sps:$4 sm:$0xff]  }
 0x297   :  { %5762 = vmatpush1.bf16.msra.mxu0 %v9989_v21  ;;  %v10055_v21 = vld [vmem:[%s14089_s1 + $0x14e8] ss:$16 sps:$4 sm:$0xff]   ;;  %v10066_v51 = vld [vmem:[%s14089_s1 + $0x132c] ss:$16 sps:$4 sm:$0xff]  }
 0x298   :  { %5729 = vmatpush1.bf16.msra.mxu1 %v9986_v38  ;;  %v5470_v42 = vpop.f32.mrf.mxu0  ;;  %5763 = vmatprep.subr.bf16.mxu0 %v9997_v3  ;;  %v10052_v38 = vld [vmem:[%s14089_s1 + $0x1368] ss:$16 sps:$4 sm:$0xff]  }
 0x299   :  { %5730 = vmatprep.subr.bf16.mxu1 %v9994_v5  ;;  %v10063_v5 = vld [vmem:[%s14089_s1 + $0x14cc] ss:$16 sps:$4 sm:$0xff]   ;;  %v10058_v3 = vld [vmem:[%s14089_s1 + $0x1348] ss:$16 sps:$4 sm:$0xff]  }
 0x29b   :  { %5764 = vmatpush1.bf16.msra.mxu0 %v9995_v15 }
 0x29c   :  { %5731 = vmatpush1.bf16.msra.mxu1 %v9992_v1  ;;  %5765 = vmatprep.subr.bf16.mxu0 %v10003_v18  ;;  %v10061_v1 = vld [vmem:[%s14089_s1 + $0x14c8] ss:$16 sps:$4 sm:$0xff]  }
 0x29d   :  { %5732 = vmatprep.subr.bf16.mxu1 %v10000_v30  ;;  %v10064_v30 = vld [vmem:[%s14089_s1 + $0x1328] ss:$16 sps:$4 sm:$0xff]  }
 0x29e   :  { %v10067_v18 = vld [vmem:[%s14089_s1 + $0x14a8] ss:$16 sps:$4 sm:$0xff]  }
 0x29f   :  { %5766 = vmatpush1.bf16.msra.mxu0 %v10001_v10  ;;  %v10070_v10 = vld [vmem:[%s14089_s1 + $0x1308] ss:$16 sps:$4 sm:$0xff]  }
 0x2a0   :  { %5733 = vmatpush1.bf16.msra.mxu1 %v9998_v60  ;;  %5767 = vmatprep.subr.bf16.mxu0 %v10009_v19  ;;  %v10078_v19 = vld [vmem:[%s14089_s1 + $0x146c] ss:$16 sps:$4 sm:$0xff]  }
 0x2a1   :  { %5734 = vmatprep.subr.bf16.mxu1 %v10006_v61  ;;  %v10073_v61 = vld [vmem:[%s14089_s1 + $0x1488] ss:$16 sps:$4 sm:$0xff]  }
 0x2a3   :  { %5768 = vmatpush1.bf16.msra.mxu0 %v10007_v16  ;;  %v10076_v16 = vld [vmem:[%s14089_s1 + $0x1468] ss:$16 sps:$4 sm:$0xff]  }
 0x2a4   :  { %5735 = vmatpush2.bf16.msra.mxu1 %v10004_v20  ;;  %5769 = vmatprep.subr.bf16.mxu0 %v10015_v28  ;;  %v10081_v20 = vld [vmem:[%s14089_s1 + $0x16ec] ss:$16 sps:$4 sm:$0xff]  }
 0x2a5   :  { %5736 = vmatprep.subr.bf16.mxu1 %v10012_v22  ;;  %v10079_v22 = vld [vmem:[%s14089_s1 + $0x16e8] ss:$16 sps:$4 sm:$0xff]   ;;  %v10084_v28 = vld [vmem:[%s14089_s1 + $0x144c] ss:$16 sps:$4 sm:$0xff]  }
 0x2a7   :  { %5770 = vmatpush1.bf16.msra.mxu0 %v10013_v34 }
 0x2a8   :  { %5737 = vmatpush2.bf16.msra.mxu1 %v10010_v26  ;;  %5771 = vmatprep.subr.bf16.mxu0 %v10021_v31  ;;  %v10087_v26 = vld [vmem:[%s14089_s1 + $0x16cc] ss:$16 sps:$4 sm:$0xff]   ;;  %v10082_v31 = vld [vmem:[%s14089_s1 + $0x1448] ss:$16 sps:$4 sm:$0xff]  }
 0x2a9   :  { %5738 = vmatprep.subr.bf16.mxu1 %v10018_v27 }
 0x2ab   :  { %5772 = vmatpush1.bf16.msra.mxu0 %v10019_v39 }
 0x2ac   :  { %5739 = vmatpush2.bf16.msra.mxu1 %v10016_v6  ;;  %5773 = vmatprep.subr.bf16.mxu0 %v10027_v32  ;;  %v10085_v6 = vld [vmem:[%s14089_s1 + $0x16c8] ss:$16 sps:$4 sm:$0xff]  }
 0x2ad   :  { %5740 = vmatprep.subr.bf16.mxu1 %v10024_v46  ;;  %v10090_v46 = vld [vmem:[%s14089_s1 + $0x142c] ss:$16 sps:$4 sm:$0xff]  }
 0x2af   :  { %5774 = vmatpush1.bf16.msra.mxu0 %v10025_v0  ;;  %v10088_v0 = vld [vmem:[%s14089_s1 + $0x1428] ss:$16 sps:$4 sm:$0xff]  }
 0x2b0   :  { %5741 = vmatpush2.bf16.msra.mxu1 %v10022_v23  ;;  %5775 = vmatprep.subr.bf16.mxu0 %v10033_v45 }
 0x2b1   :  { %5742 = vmatprep.subr.bf16.mxu1 %v10030_v33  ;;  %v10091_v33 = vld [vmem:[%s14089_s1 + $0x16a8] ss:$16 sps:$4 sm:$0xff]  }
 0x2b3   :  { %5776 = vmatpush2.bf16.msra.mxu0 %v10031_v48  ;;  %v10094_v48 = vld [vmem:[%s14089_s1 + $0x1408] ss:$16 sps:$4 sm:$0xff]  }
 0x2b4   :  { %5743 = vmatpush2.bf16.msra.mxu1 %v10028_v43  ;;  %5777 = vmatprep.subr.bf16.mxu0 %v10039_v9  ;;  %v10096_v43 = vld [vmem:[%s14089_s1 + $0x140c] ss:$16 sps:$4 sm:$0xff]  }
 0x2b5   :  { %5744 = vmatprep.subr.bf16.mxu1 %v10036_v47  ;;  %v10097_v47 = vld [vmem:[%s14089_s1 + $0x1688] ss:$16 sps:$4 sm:$0xff]   ;;  %v10102_v9 = vld [vmem:[%s14089_s1 + $0x15ec] ss:$16 sps:$4 sm:$0xff]  }
 0x2b7   :  { %5778 = vmatpush2.bf16.msra.mxu0 %v10037_v50  ;;  %v10100_v50 = vld [vmem:[%s14089_s1 + $0x15e8] ss:$16 sps:$4 sm:$0xff]  }
 0x2b8   :  { %5745 = vmatpush2.bf16.msra.mxu1 %v10034_v36  ;;  %5779 = vmatprep.subr.bf16.mxu0 %v10045_v54  ;;  %v10105_v36 = vld [vmem:[%s14089_s1 + $0x166c] ss:$16 sps:$4 sm:$0xff]  }
 0x2b9   :  { %5746 = vmatprep.subr.bf16.mxu1 %v10042_v52  ;;  %v10103_v52 = vld [vmem:[%s14089_s1 + $0x1668] ss:$16 sps:$4 sm:$0xff]   ;;  %v10108_v54 = vld [vmem:[%s14089_s1 + $0x15cc] ss:$16 sps:$4 sm:$0xff]  }
 0x2bb   :  { %5780 = vmatpush2.bf16.msra.mxu0 %v10043_v53  ;;  %v10106_v53 = vld [vmem:[%s14089_s1 + $0x15c8] ss:$16 sps:$4 sm:$0xff]  }
 0x2bc   :  { %5747 = vmatpush2.bf16.msra.mxu1 %v10040_v17  ;;  %5781 = vmatprep.subr.bf16.mxu0 %v10051_v56  ;;  %v10111_v17 = vld [vmem:[%s14089_s1 + $0x164c] ss:$16 sps:$4 sm:$0xff]  }
 0x2bd   :  { %5748 = vmatprep.subr.bf16.mxu1 %v10048_v55  ;;  %v10109_v55 = vld [vmem:[%s14089_s1 + $0x1648] ss:$16 sps:$4 sm:$0xff]   ;;  %v10114_v56 = vld [vmem:[%s14089_s1 + $0x15ac] ss:$16 sps:$4 sm:$0xff]  }
 0x2bf   :  { %5782 = vmatpush2.bf16.msra.mxu0 %v10049_v57  ;;  %v10112_v57 = vld [vmem:[%s14089_s1 + $0x15a8] ss:$16 sps:$4 sm:$0xff]  }
 0x2c0   :  { %5749 = vmatpush2.bf16.msra.mxu1 %v10046_v25  ;;  %5783 = vmatprep.subr.bf16.mxu0 %v10054_v58  ;;  %v10117_v25 = vld [vmem:[%s14089_s1 + $0x162c] ss:$16 sps:$4 sm:$0xff]   ;;  %v10115_v58 = vld [vmem:[%s14089_s1 + $0x1628] ss:$16 sps:$4 sm:$0xff]  }
 0x2c1   :  { %5800 = vmatprep.subr.bf16.mxu1 %v10057_v62  ;;  %v10120_v62 = vld [vmem:[%s14089_s1 + $0x158c] ss:$16 sps:$4 sm:$0xff]  }
 0x2c3   :  { %v5506_v7 = vpop.f32.mrf.mxu1  ;;  %5751 = vmatmul.mubr.bf16.vlgmr.msra.gmra.mxu1 %v11744_v35  ;;  %5784 = vmatpush2.bf16.msra.mxu0 %v10052_v38  ;;  %v10069_v35 = vld [vmem:[%s14089_s1 + $0x14ac] ss:$16 sps:$4 sm:$0xff]  }
 0x2c4   :  { %v5507_v2 = vadd.f32 %v5506_v7, %v12858_v8  ;;  %5801 = vmatpush1.bf16.msra.mxu1 %v10055_v21  ;;  %5785 = vmatprep.subr.bf16.mxu0 %v10060_v4  ;;  %v10123_v38 = vld [vmem:[%s14089_s1 + $0x160c] ss:$16 sps:$4 sm:$0xff]   ;;  %v10118_v21 = vld [vmem:[%s14089_s1 + $0x1588] ss:$16 sps:$4 sm:$0xff]  }
 0x2c5   :  { %v5508_v15 = vpop.f32.mrf.mxu1  ;;  %5802 = vmatprep.subr.bf16.mxu1 %v10063_v5  ;;  %5832 = vmatprep.mubr.bf16.mxu1 %v11764_v11  ;;  %v10075_v11 = vld [vmem:[%s14089_s1 + $0x148c] ss:$16 sps:$4 sm:$0xff]   ;;  %v10121_v4 = vld [vmem:[%s14089_s1 + $0x1608] ss:$16 sps:$4 sm:$0xff]  }
 0x2c6   :  { %v5509_v8 = vadd.f32 %v5508_v15, %v12863_v37  ;;  %v10072_v37 = vld [vmem:[%s14089_s1 + $0x130c] ss:$16 sps:$4 sm:$0xff]  }
 0x2c7   :  { %v5510_v42 = vpop.f32.mrf.mxu1  ;;  %5786 = vmatpush2.bf16.msra.mxu0 %v10058_v3  ;;  %v10126_v5 = vld [vmem:[%s14089_s1 + $0x156c] ss:$16 sps:$4 sm:$0xff]   ;;  %v10127_v3 = vld [vmem:[%s14089_s1 + $0x17e8] ss:$16 sps:$4 sm:$0xff]  }
 0x2c8   :  { %5803 = vmatpush1.bf16.msra.mxu1 %v10061_v1  ;;  %5787 = vmatprep.subr.bf16.mxu0 %v10066_v51  ;;  %v10129_v7 = vld [vmem:[%s14089_s1 + $0x17ec] ss:$16 sps:$4 sm:$0xff]   ;;  %v5928_v51 = vmin.f32 %v12652_v24, 0.0 }
 0x2c9   :  { %v5511_v60 = vpop.f32.mrf.mxu1  ;;  %5804 = vmatprep.subr.bf16.mxu1 %v10069_v35  ;;  %v10132_v1 = vld [vmem:[%s14089_s1 + $0x154c] ss:$16 sps:$4 sm:$0xff]   ;;  %v10130_v35 = vld [vmem:[%s14089_s1 + $0x1548] ss:$16 sps:$4 sm:$0xff]  }
 0x2ca   :  { %v10135_v15 = vld [vmem:[%s14089_s1 + $0x17cc] ss:$16 sps:$4 sm:$0xff]   ;;  %v10136_v60 = vld [vmem:[%s14089_s1 + $0x1528] ss:$16 sps:$4 sm:$0xff]  }
 0x2cb   :  { %5788 = vmatpush2.bf16.msra.mxu0 %v10064_v30  ;;  %v10138_v42 = vld [vmem:[%s14089_s1 + $0x152c] ss:$16 sps:$4 sm:$0xff]  }
 0x2cc   :  { %5805 = vmatpush1.bf16.msra.mxu1 %v10067_v18  ;;  %5789 = vmatprep.subr.bf16.mxu0 %v10072_v37  ;;  %v10141_v30 = vld [vmem:[%s14089_s1 + $0x17ac] ss:$16 sps:$4 sm:$0xff]   ;;  %v5933_v18 = vmul.f32 1.442695, %v5928_v51  ;;  %v10139_v37 = vld [vmem:[%s14089_s1 + $0x17a8] ss:$16 sps:$4 sm:$0xff]  }
 0x2cd   :  { %5806 = vmatprep.subr.bf16.mxu1 %v10075_v11  ;;  %v10144_v11 = vld [vmem:[%s14089_s1 + $0x150c] ss:$16 sps:$4 sm:$0xff]   ;;  %v10184_v51 = vld [vmem:[%s14092_s3 + $0x60] ss:$16 sps:$4 sm:$0xff]  }
 0x2ce   :  { %10556 = vpow2.f32 %v5933_v18  ;;  %v10277_v18 = vld [vmem:[%s14092_s3 + $0x280] ss:$16 sps:$4 sm:$0xff]  }
 0x2cf   :  { %5790 = vmatpush2.bf16.msra.mxu0 %v10070_v10  ;;  %v10147_v10 = vld [vmem:[%s14089_s1 + $0x178c] ss:$16 sps:$4 sm:$0xff]  }
 0x2d0   :  { %5807 = vmatpush1.bf16.msra.mxu1 %v10073_v61  ;;  %5841 = vmatprep.subr.bf16.mxu0 %v10081_v20  ;;  %v10142_v61 = vld [vmem:[%s14089_s1 + $0x1508] ss:$16 sps:$4 sm:$0xff]   ;;  %v10150_v20 = vld [vmem:[%s14089_s1 + $0x176c] ss:$16 sps:$4 sm:$0xff]  }
 0x2d1   :  { %5808 = vmatprep.subr.bf16.mxu1 %v10078_v19  ;;  %v10145_v19 = vld [vmem:[%s14089_s1 + $0x1788] ss:$16 sps:$4 sm:$0xff]  }
 0x2d2   :  { %v5547_v34 = vpop.f32.mrf.mxu0  ;;  %5792 = vmatmul.mubr.bf16.vlgmr.msra.gmra.mxu0 %v11748_v40  ;;  %v10093_v40 = vld [vmem:[%s14089_s1 + $0x16ac] ss:$16 sps:$4 sm:$0xff]  }
 0x2d3   :  { %v13051_v27 = vadd.f32 %v5547_v34, %v5507_v2  ;;  %5842 = vmatpush1.bf16.msra.mxu0 %v10079_v22  ;;  %5873 = vmatprep.mubr.bf16.mxu0 %v11768_v12  ;;  %v10099_v12 = vld [vmem:[%s14089_s1 + $0x168c] ss:$16 sps:$4 sm:$0xff]   ;;  %v10124_v2 = vld [vmem:[%s14089_s1 + $0x1568] ss:$16 sps:$4 sm:$0xff]  }
 0x2d4   :  { %5809 = vmatpush1.bf16.msra.mxu1 %v10076_v16  ;;  %v5549_v39 = vpop.f32.mrf.mxu0  ;;  %5843 = vmatprep.subr.bf16.mxu0 %v10087_v26  ;;  %v10153_v16 = vld [vmem:[%s14089_s1 + $0x186c] ss:$16 sps:$4 sm:$0xff]   ;;  %v10148_v22 = vld [vmem:[%s14089_s1 + $0x1768] ss:$16 sps:$4 sm:$0xff]  }
 0x2d5   :  { %5810 = vmatprep.subr.bf16.mxu1 %v10084_v28  ;;  %v13065_v32 = vadd.f32 %v5549_v39, %v5509_v8  ;;  %v10133_v8 = vld [vmem:[%s14089_s1 + $0x17c8] ss:$16 sps:$4 sm:$0xff]   ;;  %v10156_v26 = vld [vmem:[%s14089_s1 + $0x174c] ss:$16 sps:$4 sm:$0xff]  }
 0x2d6   :  { %v5551_v23 = vpop.f32.mrf.mxu0  ;;  %v10151_v28 = vld [vmem:[%s14089_s1 + $0x1868] ss:$16 sps:$4 sm:$0xff]   ;;  %v10159_v34 = vld [vmem:[%s14089_s1 + $0x184c] ss:$16 sps:$4 sm:$0xff]  }
 0x2d7   :  { %5844 = vmatpush1.bf16.msra.mxu0 %v10085_v6  ;;  %v10154_v39 = vld [vmem:[%s14089_s1 + $0x1748] ss:$16 sps:$4 sm:$0xff]   ;;  %v10162_v23 = vld [vmem:[%s14089_s1 + $0x172c] ss:$16 sps:$4 sm:$0xff]  }
 0x2d8   :  { %5811 = vmatpush1.bf16.msra.mxu1 %v10082_v31  ;;  %v5552_v45 = vpop.f32.mrf.mxu0  ;;  %5845 = vmatprep.subr.bf16.mxu0 %v10093_v40 }
 0x2d9   :  { %5812 = vmatprep.subr.bf16.mxu1 %v10090_v46  ;;  %v10157_v46 = vld [vmem:[%s14089_s1 + $0x1848] ss:$16 sps:$4 sm:$0xff]  }
 0x2da   :  { %v10160_v45 = vld [vmem:[%s14089_s1 + $0x1728] ss:$16 sps:$4 sm:$0xff]  }
 0x2db   :  { %5846 = vmatpush1.bf16.msra.mxu0 %v10091_v33  ;;  %v10557_v33 = vpop.eup %10556 }
 0x2dc   :  { %5813 = vmatpush1.bf16.msra.mxu1 %v10088_v0  ;;  %5847 = vmatprep.subr.bf16.mxu0 %v10099_v12 }
 0x2dd   :  { %5814 = vmatprep.subr.bf16.mxu1 %v10096_v43  ;;  %v10163_v43 = vld [vmem:[%s14089_s1 + $0x1828] ss:$16 sps:$4 sm:$0xff]  }
 0x2df   :  { %5848 = vmatpush1.bf16.msra.mxu0 %v10097_v47  ;;  %v10166_v47 = vld [vmem:[%s14089_s1 + $0x1708] ss:$16 sps:$4 sm:$0xff]  }
 0x2e0   :  { %5815 = vmatpush1.bf16.msra.mxu1 %v10094_v48  ;;  %5849 = vmatprep.subr.bf16.mxu0 %v10105_v36  ;;  %v8707_v48 = vadd.f32 -1.0, %v10557_v33  ;;  %v10174_v36 = vld [vmem:[%s14092_s3 + $0xe4] ss:$16 sps:$4 sm:$0xff]  }
 0x2e1   :  { %5816 = vmatprep.subr.bf16.mxu1 %v10102_v9  ;;  %v10169_v9 = vld [vmem:[%s14089_s1 + $0x1808] ss:$16 sps:$4 sm:$0xff]  }
 0x2e3   :  { %5850 = vmatpush1.bf16.msra.mxu0 %v10103_v52  ;;  %v10172_v52 = vld [vmem:[%s14092_s3 + $0xe0] ss:$16 sps:$4 sm:$0xff]  }
 0x2e4   :  { %5817 = vmatpush2.bf16.msra.mxu1 %v10100_v50  ;;  %5851 = vmatprep.subr.bf16.mxu0 %v10111_v17  ;;  %v5944_v50 = vsel %vm5924_vm1, %v12652_v24, %v8707_v48  ;;  %v10573_v24 = vld [vmem:[%s14090_s0 + $0x60] ss:$0 sps:$4 sm:$0xff]  }
 0x2e5   :  { %5818 = vmatprep.subr.bf16.mxu1 %v10108_v54  ;;  %v10177_v54 = vld [vmem:[%s14092_s3 + $0xc4] ss:$16 sps:$4 sm:$0xff]   ;;  %v13246_v17 = vpack.c.bf16 %v5944_v50, %v5944_v50  ;;  %v10286_v50 = vld [vmem:[%s14092_s3 + $0x220] ss:$16 sps:$4 sm:$0xff]  }
 0x2e7   :  { %5852 = vmatpush1.bf16.msra.mxu0 %v10109_v55 }
 0x2e8   :  { %5819 = vmatpush2.bf16.msra.mxu1 %v10106_v53  ;;  %5853 = vmatprep.subr.bf16.mxu0 %v10117_v25 }
 0x2e9   :  { %5820 = vmatprep.subr.bf16.mxu1 %v10114_v56  ;;  %v10175_v56 = vld [vmem:[%s14092_s3 + $0xc0] ss:$16 sps:$4 sm:$0xff]  }
 0x2eb   :  { %5854 = vmatpush1.bf16.msra.mxu0 %v10115_v58 }
 0x2ec   :  { %5821 = vmatpush2.bf16.msra.mxu1 %v10112_v57  ;;  %5855 = vmatprep.subr.bf16.mxu0 %v10123_v38 }
 0x2ed   :  { %5822 = vmatprep.subr.bf16.mxu1 %v10120_v62  ;;  %v10178_v62 = vld [vmem:[%s14092_s3 + $0xa0] ss:$16 sps:$4 sm:$0xff]  }
 0x2ef   :  { %5856 = vmatpush1.bf16.msra.mxu0 %v10121_v4  ;;  %v10268_v4 = vld [vmem:[%s14092_s3 + $0x2e0] ss:$16 sps:$4 sm:$0xff]  }
 0x2f0   :  { %5823 = vmatpush2.bf16.msra.mxu1 %v10118_v21  ;;  %5857 = vmatprep.subr.bf16.mxu0 %v10129_v7  ;;  %v10183_v21 = vld [vmem:[%s14092_s3 + $0x84] ss:$16 sps:$4 sm:$0xff]  }
 0x2f1   :  { %5824 = vmatprep.subr.bf16.mxu1 %v10126_v5  ;;  %v10270_v5 = vld [vmem:[%s14092_s3 + $0x2e4] ss:$16 sps:$4 sm:$0xff]  }
 0x2f2   :  { %v10273_v7 = vld [vmem:[%s14092_s3 + $0x2c4] ss:$16 sps:$4 sm:$0xff]  }
 0x2f3   :  { %5858 = vmatpush2.bf16.msra.mxu0 %v10127_v3  ;;  %v10271_v3 = vld [vmem:[%s14092_s3 + $0x2c0] ss:$16 sps:$4 sm:$0xff]  }
 0x2f4   :  { %5825 = vmatpush2.bf16.msra.mxu1 %v10124_v2  ;;  %5859 = vmatprep.subr.bf16.mxu0 %v10135_v15  ;;  %v10181_v2 = vld [vmem:[%s14092_s3 + $0x80] ss:$16 sps:$4 sm:$0xff]   ;;  %v10276_v15 = vld [vmem:[%s14092_s3 + $0x2a4] ss:$16 sps:$4 sm:$0xff]  }
 0x2f5   :  { %5826 = vmatprep.subr.bf16.mxu1 %v10132_v1  ;;  %v10186_v1 = vld [vmem:[%s14092_s3 + $0x64] ss:$16 sps:$4 sm:$0xff]  }
 0x2f7   :  { %5860 = vmatpush2.bf16.msra.mxu0 %v10133_v8  ;;  %v10189_v8 = vld [vmem:[%s14092_s3 + $0x44] ss:$16 sps:$4 sm:$0xff]  }
 0x2f8   :  { %5827 = vmatpush2.bf16.msra.mxu1 %v10130_v35  ;;  %5861 = vmatprep.subr.bf16.mxu0 %v10141_v30  ;;  %v10274_v35 = vld [vmem:[%s14092_s3 + $0x2a0] ss:$16 sps:$4 sm:$0xff]  }
 0x2f9   :  { %5828 = vmatprep.subr.bf16.mxu1 %v10138_v42  ;;  %v10279_v42 = vld [vmem:[%s14092_s3 + $0x284] ss:$16 sps:$4 sm:$0xff]   ;;  %v10187_v30 = vld [vmem:[%s14092_s3 + $0x40] ss:$16 sps:$4 sm:$0xff]  }
 0x2fb   :  { %5862 = vmatpush2.bf16.msra.mxu0 %v10139_v37  ;;  %v10282_v37 = vld [vmem:[%s14092_s3 + $0x264] ss:$16 sps:$4 sm:$0xff]  }
 0x2fc   :  { %5829 = vmatpush2.bf16.msra.mxu1 %v10136_v60  ;;  %5863 = vmatprep.subr.bf16.mxu0 %v10147_v10  ;;  %v10192_v60 = vld [vmem:[%s14092_s3 + $0x24] ss:$16 sps:$4 sm:$0xff]   ;;  %v10280_v10 = vld [vmem:[%s14092_s3 + $0x260] ss:$16 sps:$4 sm:$0xff]  }
 0x2fd   :  { %5830 = vmatprep.subr.bf16.mxu1 %v10144_v11  ;;  %v10190_v11 = vld [vmem:[%s14092_s3 + $0x20] ss:$16 sps:$4 sm:$0xff]  }
 0x2ff   :  { %5864 = vmatpush2.bf16.msra.mxu0 %v10145_v19  ;;  %v10193_v19 = vld [vmem:[%s14092_s3] ss:$16 sps:$4 sm:$0xff]  }
 0x300   :  { %5831 = vmatpush2.bf16.msra.mxu1 %v10142_v61  ;;  %5865 = vmatprep.subr.bf16.mxu0 %v10150_v20  ;;  %v10195_v61 = vld [vmem:[%s14092_s3 + $0x4] ss:$16 sps:$4 sm:$0xff]  }
 0x301   :  { %5890 = vmatprep.subr.bf16.mxu1 %v10153_v16  ;;  %v10198_v20 = vld [vmem:[%s14092_s3 + $0x1e4] ss:$16 sps:$4 sm:$0xff]   ;;  %v10196_v16 = vld [vmem:[%s14092_s3 + $0x1e0] ss:$16 sps:$4 sm:$0xff]  }
 0x303   :  { %v5588_v31 = vpop.f32.mrf.mxu1  ;;  %5833 = vmatmul.mubr.bf16.vlgmr.msra.gmra.mxu1 %v11962_v13  ;;  %5866 = vmatpush2.bf16.msra.mxu0 %v10148_v22  ;;  %v10165_v13 = vld [vmem:[%s14089_s1 + $0x182c] ss:$16 sps:$4 sm:$0xff]   ;;  %v10201_v22 = vld [vmem:[%s14092_s3 + $0x1c4] ss:$16 sps:$4 sm:$0xff]  }
 0x304   :  { %v5589_v6 = vadd.f32 %v5588_v31, %v13051_v27  ;;  %5891 = vmatpush1.bf16.msra.mxu1 %v10151_v28  ;;  %5867 = vmatprep.subr.bf16.mxu0 %v10156_v26  ;;  %v5927_v28 = vmin.f32 %v12638_v29, 0.0  ;;  %v10199_v26 = vld [vmem:[%s14092_s3 + $0x1c0] ss:$16 sps:$4 sm:$0xff]  }
 0x305   :  { %v5590_v40 = vpop.f32.mrf.mxu1  ;;  %5892 = vmatprep.subr.bf16.mxu1 %v10159_v34  ;;  %5914 = vmatprep.mubr.bf16.mxu1 %v10574_v41  ;;  %v10171_v41 = vld [vmem:[%s14089_s1 + $0x180c] ss:$16 sps:$4 sm:$0xff]   ;;  %v10204_v34 = vld [vmem:[%s14092_s3 + $0x1a4] ss:$16 sps:$4 sm:$0xff]  }
 0x306   :  { %v5591_v27 = vadd.f32 %v5590_v40, %v13065_v32  ;;  %v10168_v32 = vld [vmem:[%s14089_s1 + $0x170c] ss:$16 sps:$4 sm:$0xff]   ;;  %v5931_v31 = vmul.f32 1.442695, %v5927_v28  ;;  %v10210_v40 = vld [vmem:[%s14092_s3 + $0x164] ss:$16 sps:$4 sm:$0xff]  }
 0x307   :  { %v5592_v0 = vpop.f32.mrf.mxu1  ;;  %5868 = vmatpush2.bf16.msra.mxu0 %v10154_v39  ;;  %v10207_v39 = vld [vmem:[%s14092_s3 + $0x184] ss:$16 sps:$4 sm:$0xff]   ;;  %v10307_v28 = vld [vmem:[%s14092_s3 + $0x340] ss:$16 sps:$4 sm:$0xff]  }
 0x308   :  { %5893 = vmatpush1.bf16.msra.mxu1 %v10157_v46  ;;  %5869 = vmatprep.subr.bf16.mxu0 %v10162_v23  ;;  %10558 = vpow2.f32 %v5931_v31  ;;  %v10205_v46 = vld [vmem:[%s14092_s3 + $0x180] ss:$16 sps:$4 sm:$0xff]   ;;  %v10285_v0 = vld [vmem:[%s14092_s3 + $0x244] ss:$16 sps:$4 sm:$0xff]   ;;  %v10238_v31 = vld [vmem:[%s14092_s3 + $0x28] ss:$16 sps:$4 sm:$0xff]  }
 0x309   :  { %v5593_v12 = vpop.f32.mrf.mxu1  ;;  %5894 = vmatprep.subr.bf16.mxu1 %v10165_v13  ;;  %v10208_v23 = vld [vmem:[%s14092_s3 + $0x160] ss:$16 sps:$4 sm:$0xff]   ;;  %v10213_v13 = vld [vmem:[%s14092_s3 + $0x144] ss:$16 sps:$4 sm:$0xff]  }
 0x30b   :  { %5870 = vmatpush2.bf16.msra.mxu0 %v10160_v45  ;;  %v10211_v45 = vld [vmem:[%s14092_s3 + $0x140] ss:$16 sps:$4 sm:$0xff]  }
 0x30c   :  { %5895 = vmatpush1.bf16.msra.mxu1 %v10163_v43  ;;  %5871 = vmatprep.subr.bf16.mxu0 %v10168_v32  ;;  %v10283_v43 = vld [vmem:[%s14092_s3 + $0x240] ss:$16 sps:$4 sm:$0xff]   ;;  %v10216_v32 = vld [vmem:[%s14092_s3 + $0x124] ss:$16 sps:$4 sm:$0xff]  }
 0x30d   :  { %5896 = vmatprep.subr.bf16.mxu1 %v10171_v41 }
 0x30f   :  { %5872 = vmatpush2.bf16.msra.mxu0 %v10166_v47 }
 0x310   :  { %5897 = vmatpush1.bf16.msra.mxu1 %v10169_v9  ;;  %6741 = vmatprep.subr.bf16.mxu0 %v10174_v36  ;;  %v10288_v9 = vld [vmem:[%s14092_s3 + $0x224] ss:$16 sps:$4 sm:$0xff]   ;;  %v10214_v36 = vld [vmem:[%s14092_s3 + $0x120] ss:$16 sps:$4 sm:$0xff]  }
 0x311   :  { %6782 = vmatprep.subr.bf16.mxu1 %v10270_v5 }
 0x312   :  { %v5629_v53 = vpop.f32.mrf.mxu0  ;;  %5874 = vmatmul.mubr.bf16.vlgmr.msra.gmra.mxu0 %v11966_v14  ;;  %v10180_v14 = vld [vmem:[%s14092_s3 + $0xa4] ss:$16 sps:$4 sm:$0xff]  }
 0x313   :  { %8705 = vmatmul.mubr.msk.bf16.vlgmr.msra.gmra.mxu1 %vm4853_vm0, %v10573_v24  ;;  %v13253_v55 = vadd.f32 %v5629_v53, %v5589_v6  ;;  %6742 = vmatpush1.bf16.msra.mxu0 %v10172_v52  ;;  %v10202_v6 = vld [vmem:[%s14092_s3 + $0x1a0] ss:$16 sps:$4 sm:$0xff]   ;;  %v10291_v53 = vld [vmem:[%s14092_s3 + $0x204] ss:$16 sps:$4 sm:$0xff]  }
 0x314   :  { %6773 = vmatprep.mubr.bf16.mxu0 %v13246_v17  ;;  %v5631_v25 = vpop.f32.mrf.mxu0  ;;  %6743 = vmatprep.subr.bf16.mxu0 %v10177_v54  ;;  %v10219_v54 = vld [vmem:[%s14092_s3 + $0x104] ss:$16 sps:$4 sm:$0xff]  }
 0x315   :  { %v13262_v57 = vadd.f32 %v5631_v25, %v5591_v27  ;;  %6783 = vmatpush1.bf16.msra.mxu1 %v10268_v4  ;;  %v10559_v48 = vpop.eup %10558  ;;  %v10217_v25 = vld [vmem:[%s14092_s3 + $0x100] ss:$16 sps:$4 sm:$0xff]   ;;  %v10297_v4 = vld [vmem:[%s14092_s3 + $0x3c4] ss:$16 sps:$4 sm:$0xff]  }
 0x316   :  { %v5633_v58 = vpop.f32.mrf.mxu0  ;;  %6784 = vmatprep.subr.bf16.mxu1 %v10273_v7  ;;  %v8706_v24 = vadd.f32 -1.0, %v10559_v48  ;;  %v10223_v7 = vld [vmem:[%s14092_s3 + $0xc8] ss:$16 sps:$4 sm:$0xff]   ;;  %v10258_v48 = vld [vmem:[%s14092_s3 + $0x16c] ss:$16 sps:$4 sm:$0xff]  }
 0x317   :  { %6744 = vmatpush1.bf16.msra.mxu0 %v10175_v56  ;;  %v10294_v56 = vld [vmem:[%s14092_s3 + $0x3e4] ss:$16 sps:$4 sm:$0xff]   ;;  %v10292_v58 = vld [vmem:[%s14092_s3 + $0x3e0] ss:$16 sps:$4 sm:$0xff]  }
 0x318   :  { %v5634_v38 = vpop.f32.mrf.mxu0  ;;  %6745 = vmatprep.subr.bf16.mxu0 %v10180_v14  ;;  %v10222_v14 = vld [vmem:[%s14092_s3 + $0xec] ss:$16 sps:$4 sm:$0xff]  }
 0x319   :  { %6785 = vmatpush1.bf16.msra.mxu1 %v10271_v3 }
 0x31a   :  { %6786 = vmatprep.subr.bf16.mxu1 %v10276_v15 }
 0x31b   :  { %6746 = vmatpush1.bf16.msra.mxu0 %v10178_v62  ;;  %v10220_v62 = vld [vmem:[%s14092_s3 + $0xe8] ss:$16 sps:$4 sm:$0xff]  }
 0x31c   :  { %6747 = vmatprep.subr.bf16.mxu0 %v10183_v21  ;;  %v10225_v21 = vld [vmem:[%s14092_s3 + $0xcc] ss:$16 sps:$4 sm:$0xff]  }
 0x31d   :  { %6787 = vmatpush1.bf16.msra.mxu1 %v10274_v35  ;;  %v10226_v35 = vld [vmem:[%s14092_s3 + $0xa8] ss:$16 sps:$4 sm:$0xff]  }
 0x31e   :  { %6788 = vmatprep.subr.bf16.mxu1 %v10279_v42 }
 0x31f   :  { %6748 = vmatpush1.bf16.msra.mxu0 %v10181_v2  ;;  %v10295_v2 = vld [vmem:[%s14092_s3 + $0x3c0] ss:$16 sps:$4 sm:$0xff]  }
 0x320   :  { %6749 = vmatprep.subr.bf16.mxu0 %v10186_v1  ;;  %v10228_v1 = vld [vmem:[%s14092_s3 + $0xac] ss:$16 sps:$4 sm:$0xff]  }
 0x321   :  { %6789 = vmatpush1.bf16.msra.mxu1 %v10277_v18  ;;  %v10303_v18 = vld [vmem:[%s14092_s3 + $0x384] ss:$16 sps:$4 sm:$0xff]  }
 0x322   :  { %6790 = vmatprep.subr.bf16.mxu1 %v10282_v37  ;;  %v10301_v37 = vld [vmem:[%s14092_s3 + $0x380] ss:$16 sps:$4 sm:$0xff]  }
 0x323   :  { %6750 = vmatpush1.bf16.msra.mxu0 %v10184_v51 }
 0x324   :  { %6751 = vmatprep.subr.bf16.mxu0 %v10189_v8  ;;  %v10298_v8 = vld [vmem:[%s14092_s3 + $0x3a0] ss:$16 sps:$4 sm:$0xff]  }
 0x325   :  { %6791 = vmatpush1.bf16.msra.mxu1 %v10280_v10  ;;  %v10306_v10 = vld [vmem:[%s14092_s3 + $0x364] ss:$16 sps:$4 sm:$0xff]  }
 0x326   :  { %6792 = vmatprep.subr.bf16.mxu1 %v10285_v0  ;;  %v10244_v0 = vld [vmem:[%s14092_s3 + $0x1e8] ss:$16 sps:$4 sm:$0xff]  }
 0x327   :  { %6752 = vmatpush1.bf16.msra.mxu0 %v10187_v30  ;;  %v10231_v30 = vld [vmem:[%s14092_s3 + $0x8c] ss:$16 sps:$4 sm:$0xff]  }
 0x328   :  { %6753 = vmatprep.subr.bf16.mxu0 %v10192_v60  ;;  %v10229_v60 = vld [vmem:[%s14092_s3 + $0x88] ss:$16 sps:$4 sm:$0xff]  }
 0x329   :  { %6793 = vmatpush1.bf16.msra.mxu1 %v10283_v43  ;;  %v10252_v43 = vld [vmem:[%s14092_s3 + $0x1ac] ss:$16 sps:$4 sm:$0xff]  }
 0x32a   :  { %6794 = vmatprep.subr.bf16.mxu1 %v10288_v9  ;;  %v10261_v9 = vld [vmem:[%s14092_s3 + $0x14c] ss:$16 sps:$4 sm:$0xff]  }
 0x32b   :  { %6754 = vmatpush1.bf16.msra.mxu0 %v10190_v11  ;;  %v10234_v11 = vld [vmem:[%s14092_s3 + $0x6c] ss:$16 sps:$4 sm:$0xff]  }
 0x32c   :  { %6755 = vmatprep.subr.bf16.mxu0 %v10195_v61  ;;  %v10232_v61 = vld [vmem:[%s14092_s3 + $0x68] ss:$16 sps:$4 sm:$0xff]  }
 0x32d   :  { %6795 = vmatpush1.bf16.msra.mxu1 %v10286_v50 }
 0x32e   :  { %6796 = vmatprep.subr.bf16.mxu1 %v10291_v53  ;;  %v10264_v53 = vld [vmem:[%s14092_s3 + $0x12c] ss:$16 sps:$4 sm:$0xff]  }
 0x32f   :  { %6756 = vmatpush1.bf16.msra.mxu0 %v10193_v19  ;;  %v10304_v19 = vld [vmem:[%s14092_s3 + $0x360] ss:$16 sps:$4 sm:$0xff]  }
 0x330   :  { %6757 = vmatprep.subr.bf16.mxu0 %v10198_v20  ;;  %v10237_v20 = vld [vmem:[%s14092_s3 + $0x4c] ss:$16 sps:$4 sm:$0xff]  }
 0x333   :  { %6758 = vmatpush2.bf16.msra.mxu0 %v10196_v16  ;;  %v10309_v16 = vld [vmem:[%s14092_s3 + $0x344] ss:$16 sps:$4 sm:$0xff]  }
 0x334   :  { %6759 = vmatprep.subr.bf16.mxu0 %v10201_v22  ;;  %v10235_v22 = vld [vmem:[%s14092_s3 + $0x48] ss:$16 sps:$4 sm:$0xff]  }
 0x337   :  { %6760 = vmatpush2.bf16.msra.mxu0 %v10199_v26  ;;  %v10240_v26 = vld [vmem:[%s14092_s3 + $0x2c] ss:$16 sps:$4 sm:$0xff]  }
 0x338   :  { %6761 = vmatprep.subr.bf16.mxu0 %v10204_v34  ;;  %v10312_v34 = vld [vmem:[%s14092_s3 + $0x324] ss:$16 sps:$4 sm:$0xff]  }
 0x33b   :  { %6762 = vmatpush2.bf16.msra.mxu0 %v10202_v6  ;;  %v10310_v6 = vld [vmem:[%s14092_s3 + $0x320] ss:$16 sps:$4 sm:$0xff]  }
 0x33c   :  { %6763 = vmatprep.subr.bf16.mxu0 %v10207_v39  ;;  %v10243_v39 = vld [vmem:[%s14092_s3 + $0xc] ss:$16 sps:$4 sm:$0xff]  }
 0x33f   :  { %6764 = vmatpush2.bf16.msra.mxu0 %v10205_v46  ;;  %v10315_v46 = vld [vmem:[%s14092_s3 + $0x304] ss:$16 sps:$4 sm:$0xff]  }
 0x340   :  { %6765 = vmatprep.subr.bf16.mxu0 %v10210_v40  ;;  %v10241_v40 = vld [vmem:[%s14092_s3 + $0x8] ss:$16 sps:$4 sm:$0xff]  }
 0x343   :  { %v5670_v27 = vpop.f32.mrf.mxu1  ;;  %6766 = vmatpush2.bf16.msra.mxu0 %v10208_v23  ;;  %v10313_v23 = vld [vmem:[%s14092_s3 + $0x300] ss:$16 sps:$4 sm:$0xff]  }
 0x344   :  { %v5671_v33 = vadd.f32 %v5670_v27, %v13253_v55  ;;  %6767 = vmatprep.subr.bf16.mxu0 %v10213_v13  ;;  %v10289_v55 = vld [vmem:[%s14092_s3 + $0x200] ss:$16 sps:$4 sm:$0xff]   ;;  %v10246_v13 = vld [vmem:[%s14092_s3 + $0x1ec] ss:$16 sps:$4 sm:$0xff]  }
 0x345   :  { %v5672_v12 = vpop.f32.mrf.mxu1  ;;  %6797 = vmatpush1.bf16.msra.mxu1 %v10289_v55  ;;  %v10318_v27 = vld [vmem:[%s14092_s3 + $0x2ec] ss:$16 sps:$4 sm:$0xff]  }
 0x346   :  { %v5673_v41 = vadd.f32 %v5672_v12, %v13262_v57  ;;  %v5943_v57 = vsel %vm5923_vm2, %v12638_v29, %v8706_v24  ;;  %6798 = vmatprep.subr.bf16.mxu1 %v10294_v56  ;;  %v10250_v12 = vld [vmem:[%s14092_s3 + $0x1a8] ss:$16 sps:$4 sm:$0xff]  }
 0x347   :  { %v5674_v47 = vpop.f32.mrf.mxu1  ;;  %6768 = vmatpush2.bf16.msra.mxu0 %v10211_v45  ;;  %v13410_v38 = vpack.c.bf16 %v5943_v57, %v5943_v57  ;;  %v10247_v45 = vld [vmem:[%s14092_s3 + $0x1c8] ss:$16 sps:$4 sm:$0xff]  }
 0x348   :  { %6769 = vmatprep.subr.bf16.mxu0 %v10216_v32  ;;  %v10255_v32 = vld [vmem:[%s14092_s3 + $0x18c] ss:$16 sps:$4 sm:$0xff]   ;;  %v10256_v47 = vld [vmem:[%s14092_s3 + $0x168] ss:$16 sps:$4 sm:$0xff]  }
 0x349   :  { %v5675_v52 = vpop.f32.mrf.mxu1  ;;  %6799 = vmatpush2.bf16.msra.mxu1 %v10292_v58  ;;  %v10262_v56 = vld [vmem:[%s14092_s3 + $0x128] ss:$16 sps:$4 sm:$0xff]  }
 0x34a   :  { %6800 = vmatprep.subr.bf16.mxu1 %v10297_v4  ;;  %v10259_v52 = vld [vmem:[%s14092_s3 + $0x148] ss:$16 sps:$4 sm:$0xff]  }
 0x34b   :  { %6770 = vmatpush2.bf16.msra.mxu0 %v10214_v36  ;;  %v10265_v57 = vld [vmem:[%s14092_s3 + $0x108] ss:$16 sps:$4 sm:$0xff]  }
 0x34c   :  { %6771 = vmatprep.subr.bf16.mxu0 %v10219_v54 }
 0x34d   :  { %6801 = vmatpush2.bf16.msra.mxu1 %v10295_v2 }
 0x34f   :  { %6772 = vmatpush2.bf16.msra.mxu0 %v10217_v25 }
 0x350   :  { %6823 = vmatprep.subr.bf16.mxu0 %v10222_v14  ;;  %v10267_v14 = vld [vmem:[%s14092_s3 + $0x10c] ss:$16 sps:$4 sm:$0xff]  }
 0x352   :  { %v5711_v29 = vpop.f32.mrf.mxu0  ;;  %6774 = vmatmul.mubr.bf16.vlgmr.msra.gmra.mxu0 %v13410_v38 }
 0x353   :  { %v13419_v5 = vadd.f32 %v5711_v29, %v5671_v33  ;;  %6824 = vmatpush1.bf16.msra.mxu0 %v10220_v62  ;;  %6855 = vmatprep.mubr.bf16.mxu0 %v13246_v17  ;;  %v10300_v17 = vld [vmem:[%s14092_s3 + $0x3a4] ss:$16 sps:$4 sm:$0xff]   ;;  %v10249_v33 = vld [vmem:[%s14092_s3 + $0x1cc] ss:$16 sps:$4 sm:$0xff]  }
 0x354   :  { %v5713_v3 = vpop.f32.mrf.mxu0  ;;  %6825 = vmatprep.subr.bf16.mxu0 %v10225_v21  ;;  %6802 = vmatprep.subr.bf16.mxu1 %v10300_v17 }
 0x355   :  { %v13431_v15 = vadd.f32 %v5713_v3, %v5673_v41  ;;  %6803 = vmatpush2.bf16.msra.mxu1 %v10298_v8  ;;  %v10253_v41 = vld [vmem:[%s14092_s3 + $0x188] ss:$16 sps:$4 sm:$0xff]  }
 0x356   :  { %v5715_v51 = vpop.f32.mrf.mxu0  ;;  %6804 = vmatprep.subr.bf16.mxu1 %v10303_v18 }
 0x357   :  { %6826 = vmatpush1.bf16.msra.mxu0 %v10223_v7 }
 0x358   :  { %v5716_v42 = vpop.f32.mrf.mxu0  ;;  %6827 = vmatprep.subr.bf16.mxu0 %v10228_v1 }
 0x359   :  { %6805 = vmatpush2.bf16.msra.mxu1 %v10301_v37 }
 0x35a   :  { %6806 = vmatprep.subr.bf16.mxu1 %v10306_v10 }
 0x35b   :  { %6828 = vmatpush1.bf16.msra.mxu0 %v10226_v35 }
 0x35c   :  { %6829 = vmatprep.subr.bf16.mxu0 %v10231_v30 }
 0x35d   :  { %6807 = vmatpush2.bf16.msra.mxu1 %v10304_v19 }
 0x35e   :  { %6808 = vmatprep.subr.bf16.mxu1 %v10309_v16 }
 0x35f   :  { %6830 = vmatpush1.bf16.msra.mxu0 %v10229_v60 }
 0x360   :  { %6831 = vmatprep.subr.bf16.mxu0 %v10234_v11 }
 0x361   :  { %6809 = vmatpush2.bf16.msra.mxu1 %v10307_v28  ;;  %v10366_v28 = vld [vmem:[%s14093_s5 + $0xe4] ss:$16 sps:$4 sm:$0xff]  }
 0x362   :  { %6810 = vmatprep.subr.bf16.mxu1 %v10312_v34  ;;  %v10369_v34 = vld [vmem:[%s14093_s5 + $0xc4] ss:$16 sps:$4 sm:$0xff]  }
 0x363   :  { %6832 = vmatpush1.bf16.msra.mxu0 %v10232_v61 }
 0x364   :  { %6833 = vmatprep.subr.bf16.mxu0 %v10237_v20 }
 0x365   :  { %6811 = vmatpush2.bf16.msra.mxu1 %v10310_v6  ;;  %v10372_v6 = vld [vmem:[%s14093_s5 + $0xa4] ss:$16 sps:$4 sm:$0xff]  }
 0x366   :  { %6812 = vmatprep.subr.bf16.mxu1 %v10315_v46  ;;  %v10375_v46 = vld [vmem:[%s14093_s5 + $0x84] ss:$16 sps:$4 sm:$0xff]  }
 0x367   :  { %6834 = vmatpush1.bf16.msra.mxu0 %v10235_v22  ;;  %v10364_v22 = vld [vmem:[%s14093_s5 + $0xe0] ss:$16 sps:$4 sm:$0xff]  }
 0x368   :  { %6835 = vmatprep.subr.bf16.mxu0 %v10240_v26 }
 0x369   :  { %6813 = vmatpush2.bf16.msra.mxu1 %v10313_v23  ;;  %v10378_v23 = vld [vmem:[%s14093_s5 + $0x64] ss:$16 sps:$4 sm:$0xff]  }
 0x36a   :  { %6864 = vmatprep.subr.bf16.mxu1 %v10318_v27 }
 0x36b   :  { %6836 = vmatpush1.bf16.msra.mxu0 %v10238_v31  ;;  %v10367_v31 = vld [vmem:[%s14093_s5 + $0xc0] ss:$16 sps:$4 sm:$0xff]  }
 0x36c   :  { %6837 = vmatprep.subr.bf16.mxu0 %v10243_v39  ;;  %v10370_v39 = vld [vmem:[%s14093_s5 + $0xa0] ss:$16 sps:$4 sm:$0xff]  }
 0x36f   :  { %6838 = vmatpush1.bf16.msra.mxu0 %v10241_v40  ;;  %v10373_v40 = vld [vmem:[%s14093_s5 + $0x80] ss:$16 sps:$4 sm:$0xff]  }
 0x370   :  { %6839 = vmatprep.subr.bf16.mxu0 %v10246_v13  ;;  %v10376_v13 = vld [vmem:[%s14093_s5 + $0x60] ss:$16 sps:$4 sm:$0xff]  }
 0x373   :  { %6840 = vmatpush2.bf16.msra.mxu0 %v10244_v0  ;;  %v10381_v0 = vld [vmem:[%s14093_s5 + $0x44] ss:$16 sps:$4 sm:$0xff]  }
 0x374   :  { %6841 = vmatprep.subr.bf16.mxu0 %v10249_v33 }
 0x377   :  { %6842 = vmatpush2.bf16.msra.mxu0 %v10247_v45 }
 0x378   :  { %6843 = vmatprep.subr.bf16.mxu0 %v10252_v43 }
 0x37b   :  { %6844 = vmatpush2.bf16.msra.mxu0 %v10250_v12  ;;  %v10379_v12 = vld [vmem:[%s14093_s5 + $0x40] ss:$16 sps:$4 sm:$0xff]  }
 0x37c   :  { %6845 = vmatprep.subr.bf16.mxu0 %v10255_v32 }
 0x37f   :  { %6846 = vmatpush2.bf16.msra.mxu0 %v10253_v41  ;;  %v10316_v41 = vld [vmem:[%s14092_s3 + $0x2e8] ss:$16 sps:$4 sm:$0xff]  }
 0x380   :  { %6847 = vmatprep.subr.bf16.mxu0 %v10258_v48 }
 0x383   :  { %v5752_v36 = vpop.f32.mrf.mxu1  ;;  %6848 = vmatpush2.bf16.msra.mxu0 %v10256_v47  ;;  %v10321_v47 = vld [vmem:[%s14092_s3 + $0x2cc] ss:$16 sps:$4 sm:$0xff]  }
 0x384   :  { %v5753_v50 = vadd.f32 %v5752_v36, %v13419_v5  ;;  %6849 = vmatprep.subr.bf16.mxu0 %v10261_v9  ;;  %v10384_v9 = vld [vmem:[%s14093_s5 + $0x24] ss:$16 sps:$4 sm:$0xff]  }
 0x385   :  { %v5754_v54 = vpop.f32.mrf.mxu1 }
 0x386   :  { %v5755_v24 = vadd.f32 %v5754_v54, %v13431_v15  ;;  %v10319_v54 = vld [vmem:[%s14092_s3 + $0x2c8] ss:$16 sps:$4 sm:$0xff]  }
 0x387   :  { %v5756_v55 = vpop.f32.mrf.mxu1  ;;  %6850 = vmatpush2.bf16.msra.mxu0 %v10259_v52  ;;  %v10382_v52 = vld [vmem:[%s14093_s5 + $0x20] ss:$16 sps:$4 sm:$0xff]  }
 0x388   :  { %6851 = vmatprep.subr.bf16.mxu0 %v10264_v53  ;;  %v10387_v53 = vld [vmem:[%s14093_s5 + $0x4] ss:$16 sps:$4 sm:$0xff]   ;;  %v10385_v55 = vld [vmem:[%s14093_s5] ss:$16 sps:$4 sm:$0xff]  }
 0x389   :  { %v5757_v25 = vpop.f32.mrf.mxu1 }
 0x38a   :  { %v10390_v25 = vld [vmem:[%s14093_s5 + $0x1e4] ss:$16 sps:$4 sm:$0xff]  }
 0x38b   :  { %6852 = vmatpush2.bf16.msra.mxu0 %v10262_v56  ;;  %v10322_v56 = vld [vmem:[%s14092_s3 + $0x2a8] ss:$16 sps:$4 sm:$0xff]  }
 0x38c   :  { %6853 = vmatprep.subr.bf16.mxu0 %v10267_v14  ;;  %v10327_v14 = vld [vmem:[%s14092_s3 + $0x28c] ss:$16 sps:$4 sm:$0xff]  }
 0x38f   :  { %6854 = vmatpush2.bf16.msra.mxu0 %v10265_v57  ;;  %v10388_v57 = vld [vmem:[%s14093_s5 + $0x1e0] ss:$16 sps:$4 sm:$0xff]  }
 0x390   :  { %7723 = vmatprep.subr.bf16.mxu0 %v10366_v28  ;;  %v10361_v28 = vld [vmem:[%s14092_s3 + $0x308] ss:$16 sps:$4 sm:$0xff]  }
 0x392   :  { %v5793_v58 = vpop.f32.mrf.mxu0  ;;  %6856 = vmatmul.mubr.bf16.vlgmr.msra.gmra.mxu0 %v13410_v38 }
 0x393   :  { %v5794_v3 = vadd.f32 %v5793_v58, %v5753_v50  ;;  %7724 = vmatpush1.bf16.msra.mxu0 %v10364_v22  ;;  %v10325_v58 = vld [vmem:[%s14092_s3 + $0x288] ss:$16 sps:$4 sm:$0xff]   ;;  %v10363_v22 = vld [vmem:[%s14092_s3 + $0x30c] ss:$16 sps:$4 sm:$0xff]  }
 0x394   :  { %v5795_v62 = vpop.f32.mrf.mxu0  ;;  %7725 = vmatprep.subr.bf16.mxu0 %v10369_v34  ;;  %v10391_v34 = vld [vmem:[%s14093_s5 + $0x1c0] ss:$16 sps:$4 sm:$0xff]  }
 0x395   :  { %v5796_v1 = vadd.f32 %v5795_v62, %v5755_v24  ;;  %v10324_v24 = vld [vmem:[%s14092_s3 + $0x2ac] ss:$16 sps:$4 sm:$0xff]  }
 0x396   :  { %v5797_v21 = vpop.f32.mrf.mxu0  ;;  %v10330_v62 = vld [vmem:[%s14092_s3 + $0x26c] ss:$16 sps:$4 sm:$0xff]  }
 0x397   :  { %7726 = vmatpush1.bf16.msra.mxu0 %v10367_v31  ;;  %v10328_v21 = vld [vmem:[%s14092_s3 + $0x268] ss:$16 sps:$4 sm:$0xff]   ;;  %v10396_v31 = vld [vmem:[%s14093_s5 + $0x1a4] ss:$16 sps:$4 sm:$0xff]  }
 0x398   :  { %v5798_v29 = vpop.f32.mrf.mxu0  ;;  %7727 = vmatprep.subr.bf16.mxu0 %v10372_v6  ;;  %v10394_v6 = vld [vmem:[%s14093_s5 + $0x1a0] ss:$16 sps:$4 sm:$0xff]  }
 0x399   :  { %v10333_v29 = vld [vmem:[%s14092_s3 + $0x24c] ss:$16 sps:$4 sm:$0xff]  }
 0x39b   :  { %7728 = vmatpush1.bf16.msra.mxu0 %v10370_v39  ;;  %v10399_v39 = vld [vmem:[%s14093_s5 + $0x184] ss:$16 sps:$4 sm:$0xff]  }
 0x39c   :  { %7729 = vmatprep.subr.bf16.mxu0 %v10375_v46  ;;  %v10397_v46 = vld [vmem:[%s14093_s5 + $0x180] ss:$16 sps:$4 sm:$0xff]  }
 0x39f   :  { %7730 = vmatpush1.bf16.msra.mxu0 %v10373_v40  ;;  %v10402_v40 = vld [vmem:[%s14093_s5 + $0x164] ss:$16 sps:$4 sm:$0xff]  }
 0x3a0   :  { %7731 = vmatprep.subr.bf16.mxu0 %v10378_v23  ;;  %v10400_v23 = vld [vmem:[%s14093_s5 + $0x160] ss:$16 sps:$4 sm:$0xff]  }
 0x3a3   :  { %7732 = vmatpush1.bf16.msra.mxu0 %v10376_v13  ;;  %v10405_v13 = vld [vmem:[%s14093_s5 + $0x144] ss:$16 sps:$4 sm:$0xff]  }
 0x3a4   :  { %7733 = vmatprep.subr.bf16.mxu0 %v10381_v0  ;;  %v10408_v0 = vld [vmem:[%s14093_s5 + $0x124] ss:$16 sps:$4 sm:$0xff]  }
 0x3a7   :  { %7734 = vmatpush1.bf16.msra.mxu0 %v10379_v12  ;;  %v10412_v12 = vld [vmem:[%s14093_s5 + $0x2e0] ss:$16 sps:$4 sm:$0xff]  }
 0x3a8   :  { %7735 = vmatprep.subr.bf16.mxu0 %v10384_v9 }
 0x3ab   :  { %7736 = vmatpush1.bf16.msra.mxu0 %v10382_v52 }
 0x3ac   :  { %7737 = vmatprep.subr.bf16.mxu0 %v10387_v53  ;;  %v10430_v53 = vld [vmem:[%s14093_s5 + $0x280] ss:$16 sps:$4 sm:$0xff]  }
 0x3af   :  { %7738 = vmatpush1.bf16.msra.mxu0 %v10385_v55 }
 0x3b0   :  { %7739 = vmatprep.subr.bf16.mxu0 %v10390_v25  ;;  %v10438_v25 = vld [vmem:[%s14093_s5 + $0x264] ss:$16 sps:$4 sm:$0xff]  }
 0x3b3   :  { %7740 = vmatpush2.bf16.msra.mxu0 %v10388_v57  ;;  %v10444_v57 = vld [vmem:[%s14093_s5 + $0x244] ss:$16 sps:$4 sm:$0xff]  }
 0x3c3   :  { %v5834_v4 = vpop.f32.mrf.mxu1 }
 0x3c4   :  { %v5835_v15 = vadd.f32 %v5834_v4, %v5794_v3  ;;  %v10331_v4 = vld [vmem:[%s14092_s3 + $0x248] ss:$16 sps:$4 sm:$0xff]  }
 0x3c5   :  { %v5836_v5 = vpop.f32.mrf.mxu1  ;;  %v10337_v3 = vld [vmem:[%s14092_s3 + $0x208] ss:$16 sps:$4 sm:$0xff]  }
 0x3c6   :  { %v5837_v35 = vadd.f32 %v5836_v5, %v5796_v1  ;;  %v10336_v5 = vld [vmem:[%s14092_s3 + $0x22c] ss:$16 sps:$4 sm:$0xff]  }
 0x3c7   :  { %v5838_v7 = vpop.f32.mrf.mxu1  ;;  %v10342_v1 = vld [vmem:[%s14092_s3 + $0x3ec] ss:$16 sps:$4 sm:$0xff]  }
 0x3c8   :  { %v10334_v7 = vld [vmem:[%s14092_s3 + $0x228] ss:$16 sps:$4 sm:$0xff]  }
 0x3c9   :  { %v5839_v2 = vpop.f32.mrf.mxu1 }
 0x3ca   :  { %v10339_v2 = vld [vmem:[%s14092_s3 + $0x20c] ss:$16 sps:$4 sm:$0xff]  }
 0x3d2   :  { %v5875_v51 = vpop.f32.mrf.mxu0 }
 0x3d3   :  { %v5916_v17 = vpop.f32.mrf.mxu1  ;;  %v5876_v8 = vadd.f32 %v5875_v51, %v5835_v15  ;;  %v10340_v15 = vld [vmem:[%s14092_s3 + $0x3e8] ss:$16 sps:$4 sm:$0xff]   ;;  %v10345_v51 = vld [vmem:[%s14092_s3 + $0x3cc] ss:$16 sps:$4 sm:$0xff]  }
 0x3d4   :  { %v5877_v42 = vpop.f32.mrf.mxu0 }
 0x3d5   :  { %v5918_v30 = vpop.f32.mrf.mxu1  ;;  %v5917_v18 = vadd.f32 %v5916_v17, %v5876_v8  ;;  %v5878_v60 = vadd.f32 %v5877_v42, %v5837_v35  ;;  %v10343_v35 = vld [vmem:[%s14092_s3 + $0x3c8] ss:$16 sps:$4 sm:$0xff]   ;;  %v10348_v8 = vld [vmem:[%s14092_s3 + $0x3ac] ss:$16 sps:$4 sm:$0xff]  }
 0x3d6   :  { %v5879_v37 = vpop.f32.mrf.mxu0 }
 0x3d7   :  { %v5920_v38 = vpop.f32.mrf.mxu1  ;;  %v5929_v11 = vmin.f32 %v5917_v18, 0.0  ;;  %v5919_v10 = vadd.f32 %v5918_v30, %v5878_v60  ;;  %vm5925_vm3 = vcmp.gt.f32.partialorder %v5917_v18, 0.0  ;;  %v10351_v60 = vld [vmem:[%s14092_s3 + $0x38c] ss:$16 sps:$4 sm:$0xff]  }
 0x3d8   :  { %v5880_v61 = vpop.f32.mrf.mxu0  ;;  %v10349_v38 = vld [vmem:[%s14092_s3 + $0x388] ss:$16 sps:$4 sm:$0xff]  }
 0x3d9   :  { %v5921_v19 = vpop.f32.mrf.mxu1  ;;  %v5935_v20 = vmul.f32 1.442695, %v5929_v11  ;;  %v5930_v16 = vmin.f32 %v5919_v10, 0.0  ;;  %vm5926_vm4 = vcmp.gt.f32.partialorder %v5919_v10, 0.0  ;;  %v10354_v11 = vld [vmem:[%s14092_s3 + $0x36c] ss:$16 sps:$4 sm:$0xff]  }
 0x3da   :  { %v10357_v61 = vld [vmem:[%s14092_s3 + $0x34c] ss:$16 sps:$4 sm:$0xff]   ;;  %v10355_v19 = vld [vmem:[%s14092_s3 + $0x348] ss:$16 sps:$4 sm:$0xff]  }
 0x3db   :  { %10560 = vpow2.f32 %v5935_v20  ;;  %v5937_v26 = vmul.f32 1.442695, %v5930_v16  ;;  %v10360_v20 = vld [vmem:[%s14092_s3 + $0x32c] ss:$16 sps:$4 sm:$0xff]   ;;  %v10358_v16 = vld [vmem:[%s14092_s3 + $0x328] ss:$16 sps:$4 sm:$0xff]  }
 0x3dd   :  { %10562 = vpow2.f32 %v5937_v26  ;;  %v10393_v26 = vld [vmem:[%s14093_s5 + $0x1c4] ss:$16 sps:$4 sm:$0xff]  }
 0x3de   :  { %7741 = vmatprep.subr.bf16.mxu0 %v10393_v26 }
 0x3df   :  { %7742 = vmatpush2.bf16.msra.mxu0 %v10391_v34 }
 0x3e0   :  { %7743 = vmatprep.subr.bf16.mxu0 %v10396_v31 }
 0x3e3   :  { %7744 = vmatpush2.bf16.msra.mxu0 %v10394_v6 }
 0x3e4   :  { %7745 = vmatprep.subr.bf16.mxu0 %v10399_v39 }
 0x3e7   :  { %7746 = vmatpush2.bf16.msra.mxu0 %v10397_v46 }
 0x3e8   :  { %v10561_v27 = vpop.eup %10560  ;;  %7747 = vmatprep.subr.bf16.mxu0 %v10402_v40 }
 0x3e9   :  { %v8708_v33 = vadd.f32 -1.0, %v10561_v27  ;;  %v10403_v27 = vld [vmem:[%s14093_s5 + $0x140] ss:$16 sps:$4 sm:$0xff]  }
 0x3ea   :  { %v10563_v45 = vpop.eup %10562 }
 0x3eb   :  { %v8709_v43 = vadd.f32 -1.0, %v10563_v45  ;;  %v5945_v32 = vsel %vm5925_vm3, %v5917_v18, %v8708_v33  ;;  %v10346_v18 = vld [vmem:[%s14092_s3 + $0x3a8] ss:$16 sps:$4 sm:$0xff]   ;;  %7748 = vmatpush2.bf16.msra.mxu0 %v10400_v23  ;;  %v10406_v33 = vld [vmem:[%s14093_s5 + $0x120] ss:$16 sps:$4 sm:$0xff]  }
 0x3ec   :  { %v13601_v50 = vpack.c.bf16 %v5945_v32, %v5945_v32  ;;  %7749 = vmatprep.subr.bf16.mxu0 %v10405_v13  ;;  %v10411_v45 = vld [vmem:[%s14093_s5 + $0x104] ss:$16 sps:$4 sm:$0xff]  }
 0x3ed   :  { %v5946_v48 = vsel %vm5926_vm4, %v5919_v10, %v8709_v43  ;;  %v10352_v10 = vld [vmem:[%s14092_s3 + $0x368] ss:$16 sps:$4 sm:$0xff]   ;;  %v10409_v43 = vld [vmem:[%s14093_s5 + $0x100] ss:$16 sps:$4 sm:$0xff]   ;;  %v10414_v32 = vld [vmem:[%s14093_s5 + $0x2e4] ss:$16 sps:$4 sm:$0xff]  }
 0x3ee   :  { %v5950_v36 = vpack.c.bf16 %v5946_v48, %v5946_v48  ;;  %v10418_v48 = vld [vmem:[%s14093_s5 + $0x2c0] ss:$16 sps:$4 sm:$0xff]  }
 0x3ef   :  { %7750 = vmatpush2.bf16.msra.mxu0 %v10403_v27 }
 0x3f0   :  { %6814 = vmatprep.mubr.bf16.mxu1 %v5950_v36  ;;  %7751 = vmatprep.subr.bf16.mxu0 %v10408_v0 }
 0x3f1   :  { %6815 = vmatmul.mubr.bf16.vlgmr.msra.gmra.mxu1 %v13601_v50 }
 0x3f2   :  { %6865 = vmatpush1.bf16.msra.mxu1 %v10316_v41  ;;  %6896 = vmatprep.mubr.bf16.mxu1 %v5950_v36  ;;  %v10417_v41 = vld [vmem:[%s14093_s5 + $0xec] ss:$16 sps:$4 sm:$0xff]   ;;  %v10424_v36 = vld [vmem:[%s14093_s5 + $0x2a0] ss:$16 sps:$4 sm:$0xff]  }
 0x3f3   :  { %6866 = vmatprep.subr.bf16.mxu1 %v10321_v47  ;;  %7752 = vmatpush2.bf16.msra.mxu0 %v10406_v33  ;;  %v10420_v47 = vld [vmem:[%s14093_s5 + $0x2c4] ss:$16 sps:$4 sm:$0xff]  }
 0x3f4   :  { %7753 = vmatprep.subr.bf16.mxu0 %v10411_v45 }
 0x3f6   :  { %6867 = vmatpush1.bf16.msra.mxu1 %v10319_v54 }
 0x3f7   :  { %6868 = vmatprep.subr.bf16.mxu1 %v10324_v24  ;;  %7754 = vmatpush2.bf16.msra.mxu0 %v10409_v43  ;;  %v10432_v24 = vld [vmem:[%s14093_s5 + $0x284] ss:$16 sps:$4 sm:$0xff]  }
 0x3f8   :  { %7805 = vmatprep.subr.bf16.mxu0 %v10417_v41  ;;  %v10423_v41 = vld [vmem:[%s14093_s5 + $0xcc] ss:$16 sps:$4 sm:$0xff]  }
 0x3fa   :  { %6869 = vmatpush1.bf16.msra.mxu1 %v10322_v56  ;;  %v10436_v56 = vld [vmem:[%s14093_s5 + $0x260] ss:$16 sps:$4 sm:$0xff]  }
 0x3fb   :  { %6870 = vmatprep.subr.bf16.mxu1 %v10327_v14  ;;  %v10442_v14 = vld [vmem:[%s14093_s5 + $0x240] ss:$16 sps:$4 sm:$0xff]  }
 0x3fe   :  { %6871 = vmatpush1.bf16.msra.mxu1 %v10325_v58  ;;  %v10448_v58 = vld [vmem:[%s14093_s5 + $0x220] ss:$16 sps:$4 sm:$0xff]  }
 0x3ff   :  { %6872 = vmatprep.subr.bf16.mxu1 %v10330_v62  ;;  %v10450_v62 = vld [vmem:[%s14093_s5 + $0x224] ss:$16 sps:$4 sm:$0xff]  }
 0x402   :  { %6873 = vmatpush1.bf16.msra.mxu1 %v10328_v21  ;;  %v10454_v21 = vld [vmem:[%s14093_s5 + $0x200] ss:$16 sps:$4 sm:$0xff]  }
 0x403   :  { %6874 = vmatprep.subr.bf16.mxu1 %v10333_v29  ;;  %v10456_v29 = vld [vmem:[%s14093_s5 + $0x204] ss:$16 sps:$4 sm:$0xff]  }
 0x406   :  { %6875 = vmatpush1.bf16.msra.mxu1 %v10331_v4  ;;  %v10460_v4 = vld [vmem:[%s14093_s5 + $0x3e0] ss:$16 sps:$4 sm:$0xff]  }
 0x407   :  { %6876 = vmatprep.subr.bf16.mxu1 %v10336_v5  ;;  %v10462_v5 = vld [vmem:[%s14093_s5 + $0x3e4] ss:$16 sps:$4 sm:$0xff]  }
 0x40a   :  { %6877 = vmatpush1.bf16.msra.mxu1 %v10334_v7  ;;  %v10468_v7 = vld [vmem:[%s14093_s5 + $0x3c4] ss:$16 sps:$4 sm:$0xff]  }
 0x40b   :  { %6878 = vmatprep.subr.bf16.mxu1 %v10339_v2  ;;  %v10466_v2 = vld [vmem:[%s14093_s5 + $0x3c0] ss:$16 sps:$4 sm:$0xff]  }
 0x40e   :  { %6879 = vmatpush1.bf16.msra.mxu1 %v10337_v3  ;;  %v10474_v3 = vld [vmem:[%s14093_s5 + $0x3a4] ss:$16 sps:$4 sm:$0xff]  }
 0x40f   :  { %6880 = vmatprep.subr.bf16.mxu1 %v10342_v1  ;;  %v10472_v1 = vld [vmem:[%s14093_s5 + $0x3a0] ss:$16 sps:$4 sm:$0xff]  }
 0x412   :  { %6881 = vmatpush2.bf16.msra.mxu1 %v10340_v15  ;;  %v13667_v17 = vpop.f32.mrf.mxu0  ;;  %v10480_v15 = vld [vmem:[%s14093_s5 + $0x384] ss:$16 sps:$4 sm:$0xff]  }
 0x413   :  { %6882 = vmatprep.subr.bf16.mxu1 %v10345_v51  ;;  %v10478_v51 = vld [vmem:[%s14093_s5 + $0x380] ss:$16 sps:$4 sm:$0xff]  }
 0x414   :  { %v13675_v42 = vpop.f32.mrf.mxu0 }
 0x416   :  { %6883 = vmatpush2.bf16.msra.mxu1 %v10343_v35  ;;  %v6779_v30 = vpop.f32.mrf.mxu0  ;;  %v10486_v35 = vld [vmem:[%s14093_s5 + $0x364] ss:$16 sps:$4 sm:$0xff]  }
 0x417   :  { %6884 = vmatprep.subr.bf16.mxu1 %v10348_v8  ;;  %v10484_v8 = vld [vmem:[%s14093_s5 + $0x360] ss:$16 sps:$4 sm:$0xff]   ;;  %v10492_v30 = vld [vmem:[%s14093_s5 + $0x344] ss:$16 sps:$4 sm:$0xff]  }
 0x418   :  { %v6780_v37 = vpop.f32.mrf.mxu0 }
 0x419   :  { %v10496_v37 = vld [vmem:[%s14093_s5 + $0x320] ss:$16 sps:$4 sm:$0xff]  }
 0x41a   :  { %6885 = vmatpush2.bf16.msra.mxu1 %v10346_v18  ;;  %v10490_v18 = vld [vmem:[%s14093_s5 + $0x340] ss:$16 sps:$4 sm:$0xff]  }
 0x41b   :  { %6886 = vmatprep.subr.bf16.mxu1 %v10351_v60  ;;  %v10498_v60 = vld [vmem:[%s14093_s5 + $0x324] ss:$16 sps:$4 sm:$0xff]  }
 0x41e   :  { %6887 = vmatpush2.bf16.msra.mxu1 %v10349_v38  ;;  %v10504_v38 = vld [vmem:[%s14093_s5 + $0x304] ss:$16 sps:$4 sm:$0xff]  }
 0x41f   :  { %6888 = vmatprep.subr.bf16.mxu1 %v10354_v11  ;;  %v10502_v11 = vld [vmem:[%s14093_s5 + $0x300] ss:$16 sps:$4 sm:$0xff]  }
 0x422   :  { %6889 = vmatpush2.bf16.msra.mxu1 %v10352_v10  ;;  %v10510_v10 = vld [vmem:[%s14093_s5 + $0x2ec] ss:$16 sps:$4 sm:$0xff]  }
 0x423   :  { %6890 = vmatprep.subr.bf16.mxu1 %v10357_v61  ;;  %v13862_v61 = vld [vmem:[%s14094_s4] sm:$0xf] }
 0x426   :  { %6891 = vmatpush2.bf16.msra.mxu1 %v10355_v19  ;;  %v6084_v19 = vrot.slane %v13862_v61, %v11487_v59 }
 0x427   :  { %6892 = vmatprep.subr.bf16.mxu1 %v10360_v20  ;;  %v6088_v20 = vrot.slane %v13862_v61, %v11499_v63 }
 0x42a   :  { %6893 = vmatpush2.bf16.msra.mxu1 %v10358_v16  ;;  %v6776_v16 = vadd.f32 %v13667_v17, %v6084_v19  ;;  %v10487_v19 = vld [vmem:[%s14093_s5 + $0x168] ss:$16 sps:$4 sm:$0xff]  }
 0x42b   :  { %6894 = vmatprep.subr.bf16.mxu1 %v10363_v22 }
 0x42e   :  { %6895 = vmatpush2.bf16.msra.mxu1 %v10361_v28  ;;  %v6778_v28 = vadd.f32 %v13675_v42, %v6088_v20  ;;  %v10495_v20 = vld [vmem:[%s14093_s5 + $0x14c] ss:$16 sps:$4 sm:$0xff]  }
 0x42f   :  { %7764 = vmatprep.subr.bf16.mxu1 %v10414_v32 }
 0x431   :  { %6897 = vmatmul.mubr.bf16.vlgmr.msra.gmra.mxu1 %v13601_v50  ;;  %v10426_v50 = vld [vmem:[%s14093_s5 + $0x2a4] ss:$16 sps:$4 sm:$0xff]  }
 0x432   :  { %7765 = vmatpush1.bf16.msra.mxu1 %v10412_v12  ;;  %v10415_v12 = vld [vmem:[%s14093_s5 + $0xe8] ss:$16 sps:$4 sm:$0xff]  }
 0x433   :  { %7766 = vmatprep.subr.bf16.mxu1 %v10420_v47  ;;  %v10429_v47 = vld [vmem:[%s14093_s5 + $0xac] ss:$16 sps:$4 sm:$0xff]  }
 0x436   :  { %7767 = vmatpush1.bf16.msra.mxu1 %v10418_v48  ;;  %v10421_v48 = vld [vmem:[%s14093_s5 + $0xc8] ss:$16 sps:$4 sm:$0xff]  }
 0x437   :  { %7768 = vmatprep.subr.bf16.mxu1 %v10426_v50  ;;  %v10435_v50 = vld [vmem:[%s14093_s5 + $0x8c] ss:$16 sps:$4 sm:$0xff]  }
 0x43a   :  { %7769 = vmatpush1.bf16.msra.mxu1 %v10424_v36  ;;  %v10427_v36 = vld [vmem:[%s14093_s5 + $0xa8] ss:$16 sps:$4 sm:$0xff]  }
 0x43b   :  { %7770 = vmatprep.subr.bf16.mxu1 %v10432_v24  ;;  %v10439_v24 = vld [vmem:[%s14093_s5 + $0x68] ss:$16 sps:$4 sm:$0xff]  }
 0x43e   :  { %7771 = vmatpush1.bf16.msra.mxu1 %v10430_v53  ;;  %v10441_v53 = vld [vmem:[%s14093_s5 + $0x6c] ss:$16 sps:$4 sm:$0xff]  }
 0x43f   :  { %7772 = vmatprep.subr.bf16.mxu1 %v10438_v25  ;;  %v10453_v25 = vld [vmem:[%s14093_s5 + $0x2c] ss:$16 sps:$4 sm:$0xff]  }
 0x442   :  { %7773 = vmatpush1.bf16.msra.mxu1 %v10436_v56  ;;  %v10445_v56 = vld [vmem:[%s14093_s5 + $0x48] ss:$16 sps:$4 sm:$0xff]  }
 0x443   :  { %7774 = vmatprep.subr.bf16.mxu1 %v10444_v57  ;;  %v10459_v57 = vld [vmem:[%s14093_s5 + $0xc] ss:$16 sps:$4 sm:$0xff]  }
 0x446   :  { %7775 = vmatpush1.bf16.msra.mxu1 %v10442_v14  ;;  %v10451_v14 = vld [vmem:[%s14093_s5 + $0x28] ss:$16 sps:$4 sm:$0xff]  }
 0x447   :  { %7776 = vmatprep.subr.bf16.mxu1 %v10450_v62  ;;  %v10465_v62 = vld [vmem:[%s14093_s5 + $0x1ec] ss:$16 sps:$4 sm:$0xff]  }
 0x44a   :  { %7777 = vmatpush1.bf16.msra.mxu1 %v10448_v58  ;;  %v10457_v58 = vld [vmem:[%s14093_s5 + $0x8] ss:$16 sps:$4 sm:$0xff]  }
 0x44b   :  { %7778 = vmatprep.subr.bf16.mxu1 %v10456_v29  ;;  %v6092_v29 = vrot.slane %v13862_v61, %v12814_v44 }
 0x44e   :  { %7779 = vmatpush1.bf16.msra.mxu1 %v10454_v21  ;;  %v10463_v21 = vld [vmem:[%s14093_s5 + $0x1e8] ss:$16 sps:$4 sm:$0xff]  }
 0x44f   :  { %7780 = vmatprep.subr.bf16.mxu1 %v10462_v5  ;;  %v6096_v5 = vrot.slane %v13862_v61, %v12817_v49  ;;  %v10489_v61 = vld [vmem:[%s14093_s5 + $0x16c] ss:$16 sps:$4 sm:$0xff]  }
 0x452   :  { %v13768_v9 = vpop.f32.mrf.mxu0  ;;  %7781 = vmatpush2.bf16.msra.mxu1 %v10460_v4  ;;  %v10471_v4 = vld [vmem:[%s14093_s5 + $0x1cc] ss:$16 sps:$4 sm:$0xff]  }
 0x453   :  { %7782 = vmatprep.subr.bf16.mxu1 %v10468_v7  ;;  %v10469_v7 = vld [vmem:[%s14093_s5 + $0x1c8] ss:$16 sps:$4 sm:$0xff]  }
 0x454   :  { %v13776_v52 = vpop.f32.mrf.mxu0 }
 0x456   :  { %v6861_v54 = vpop.f32.mrf.mxu0  ;;  %7783 = vmatpush2.bf16.msra.mxu1 %v10466_v2  ;;  %v6858_v2 = vadd.f32 %v13768_v9, %v6092_v29  ;;  %v10483_v9 = vld [vmem:[%s14093_s5 + $0x18c] ss:$16 sps:$4 sm:$0xff]   ;;  %v10544_v29 = vld [vmem:[%s14093_s5 + $0x368] ss:$16 sps:$4 sm:$0xff]  }
 0x457   :  { %7784 = vmatprep.subr.bf16.mxu1 %v10474_v3  ;;  %v10433_v54 = vld [vmem:[%s14093_s5 + $0x88] ss:$16 sps:$4 sm:$0xff]   ;;  %v10477_v3 = vld [vmem:[%s14093_s5 + $0x1ac] ss:$16 sps:$4 sm:$0xff]  }
 0x458   :  { %v6862_v55 = vpop.f32.mrf.mxu0 }
 0x459   :  { %v10447_v55 = vld [vmem:[%s14093_s5 + $0x4c] ss:$16 sps:$4 sm:$0xff]  }
 0x45a   :  { %7785 = vmatpush2.bf16.msra.mxu1 %v10472_v1 }
 0x45b   :  { %7786 = vmatprep.subr.bf16.mxu1 %v10480_v15  ;;  %v6860_v15 = vadd.f32 %v13776_v52, %v6096_v5  ;;  %v10481_v52 = vld [vmem:[%s14093_s5 + $0x188] ss:$16 sps:$4 sm:$0xff]  }
 0x45c   :  { %v10547_v5 = vld [vmem:[%s14093_s5 + $0x348] ss:$16 sps:$4 sm:$0xff]  }
 0x45e   :  { %7787 = vmatpush2.bf16.msra.mxu1 %v10478_v51 }
 0x45f   :  { %7788 = vmatprep.subr.bf16.mxu1 %v10486_v35 }
 0x462   :  { %7789 = vmatpush2.bf16.msra.mxu1 %v10484_v8  ;;  %v10475_v8 = vld [vmem:[%s14093_s5 + $0x1a8] ss:$16 sps:$4 sm:$0xff]  }
 0x463   :  { %7790 = vmatprep.subr.bf16.mxu1 %v10492_v30 }
 0x466   :  { %7791 = vmatpush2.bf16.msra.mxu1 %v10490_v18 }
 0x467   :  { %7792 = vmatprep.subr.bf16.mxu1 %v10498_v60 }
 0x46a   :  { %7793 = vmatpush2.bf16.msra.mxu1 %v10496_v37 }
 0x46b   :  { %7794 = vmatprep.subr.bf16.mxu1 %v10504_v38 }
 0x46e   :  { %7795 = vmatpush2.bf16.msra.mxu1 %v10502_v11 }
 0x46f   :  { %7846 = vmatprep.subr.bf16.mxu1 %v10510_v10 }
 0x4b1   :  { %v6816_v22 = vpop.f32.mrf.mxu1 }
 0x4b2   :  { %v6817_v26 = vadd.f32 %v6816_v22, %v6776_v16  ;;  %v10493_v16 = vld [vmem:[%s14093_s5 + $0x148] ss:$16 sps:$4 sm:$0xff]   ;;  %v10501_v22 = vld [vmem:[%s14093_s5 + $0x12c] ss:$16 sps:$4 sm:$0xff]  }
 0x4b3   :  { %v6818_v34 = vpop.f32.mrf.mxu1 }
 0x4b4   :  { %v6909_v31 = vmin.f32 %v6817_v26, 0.0  ;;  %v6819_v6 = vadd.f32 %v6818_v34, %v6778_v28  ;;  %vm6905_vm5 = vcmp.gt.f32.partialorder %v6817_v26, 0.0  ;;  %v10499_v28 = vld [vmem:[%s14093_s5 + $0x128] ss:$16 sps:$4 sm:$0xff]  }
 0x4b5   :  { %v6820_v39 = vpop.f32.mrf.mxu1 }
 0x4b6   :  { %v6913_v46 = vmul.f32 1.442695, %v6909_v31  ;;  %v6910_v40 = vmin.f32 %v6819_v6, 0.0  ;;  %vm6906_vm6 = vcmp.gt.f32.partialorder %v6819_v6, 0.0  ;;  %v10505_v39 = vld [vmem:[%s14093_s5 + $0x108] ss:$16 sps:$4 sm:$0xff]  }
 0x4b7   :  { %v6821_v23 = vpop.f32.mrf.mxu1 }
 0x4b8   :  { %10564 = vpow2.f32 %v6913_v46  ;;  %v6915_v13 = vmul.f32 1.442695, %v6910_v40 }
 0x4ba   :  { %10566 = vpow2.f32 %v6915_v13 }
 0x4c5   :  { %v10565_v27 = vpop.eup %10564 }
 0x4c6   :  { %v8838_v0 = vadd.f32 -1.0, %v10565_v27  ;;  %v10508_v27 = vld [vmem:[%s14093_s5 + $0x2e8] ss:$16 sps:$4 sm:$0xff]  }
 0x4c7   :  { %v10567_v33 = vpop.eup %10566 }
 0x4c8   :  { %v8839_v45 = vadd.f32 -1.0, %v10567_v33  ;;  %v6925_v17 = vsel %vm6905_vm5, %v6817_v26, %v8838_v0  ;;  %v10507_v26 = vld [vmem:[%s14093_s5 + $0x10c] ss:$16 sps:$4 sm:$0xff]  }
 0x4c9   :  { %v13873_v32 = vpack.c.bf16 %v6925_v17, %v6925_v17  ;;  %v10513_v33 = vld [vmem:[%s14093_s5 + $0x2cc] ss:$16 sps:$4 sm:$0xff]  }
 0x4ca   :  { %v6926_v43 = vsel %vm6906_vm6, %v6819_v6, %v8839_v45  ;;  %v10511_v45 = vld [vmem:[%s14093_s5 + $0x2c8] ss:$16 sps:$4 sm:$0xff]   ;;  %v10516_v17 = vld [vmem:[%s14093_s5 + $0x2ac] ss:$16 sps:$4 sm:$0xff]  }
 0x4cb   :  { %v6930_v42 = vpack.c.bf16 %v6926_v43, %v6926_v43  ;;  %v10514_v43 = vld [vmem:[%s14093_s5 + $0x2a8] ss:$16 sps:$4 sm:$0xff]  }
 0x4cd   :  { %7755 = vmatprep.mubr.bf16.mxu0 %v6930_v42 }
 0x4ce   :  { %7756 = vmatmul.mubr.bf16.vlgmr.msra.gmra.mxu0 %v13873_v32 }
 0x4cf   :  { %7806 = vmatpush1.bf16.msra.mxu0 %v10415_v12  ;;  %7837 = vmatprep.mubr.bf16.mxu0 %v6930_v42  ;;  %v10519_v42 = vld [vmem:[%s14093_s5 + $0x28c] ss:$16 sps:$4 sm:$0xff]   ;;  %v10517_v12 = vld [vmem:[%s14093_s5 + $0x288] ss:$16 sps:$4 sm:$0xff]  }
 0x4d0   :  { %7807 = vmatprep.subr.bf16.mxu0 %v10423_v41  ;;  %v10520_v41 = vld [vmem:[%s14093_s5 + $0x268] ss:$16 sps:$4 sm:$0xff]  }
 0x4d3   :  { %7808 = vmatpush1.bf16.msra.mxu0 %v10421_v48  ;;  %v10525_v48 = vld [vmem:[%s14093_s5 + $0x24c] ss:$16 sps:$4 sm:$0xff]  }
 0x4d4   :  { %7809 = vmatprep.subr.bf16.mxu0 %v10429_v47  ;;  %v10523_v47 = vld [vmem:[%s14093_s5 + $0x248] ss:$16 sps:$4 sm:$0xff]  }
 0x4d7   :  { %7810 = vmatpush1.bf16.msra.mxu0 %v10427_v36  ;;  %v10528_v36 = vld [vmem:[%s14093_s5 + $0x22c] ss:$16 sps:$4 sm:$0xff]  }
 0x4d8   :  { %7811 = vmatprep.subr.bf16.mxu0 %v10435_v50  ;;  %v10526_v50 = vld [vmem:[%s14093_s5 + $0x228] ss:$16 sps:$4 sm:$0xff]  }
 0x4db   :  { %7812 = vmatpush1.bf16.msra.mxu0 %v10433_v54  ;;  %v10531_v54 = vld [vmem:[%s14093_s5 + $0x20c] ss:$16 sps:$4 sm:$0xff]  }
 0x4dc   :  { %7813 = vmatprep.subr.bf16.mxu0 %v10441_v53  ;;  %v10529_v53 = vld [vmem:[%s14093_s5 + $0x208] ss:$16 sps:$4 sm:$0xff]  }
 0x4df   :  { %7814 = vmatpush1.bf16.msra.mxu0 %v10439_v24  ;;  %v10534_v24 = vld [vmem:[%s14093_s5 + $0x3ec] ss:$16 sps:$4 sm:$0xff]  }
 0x4e0   :  { %7815 = vmatprep.subr.bf16.mxu0 %v10447_v55  ;;  %v10532_v55 = vld [vmem:[%s14093_s5 + $0x3e8] ss:$16 sps:$4 sm:$0xff]  }
 0x4e3   :  { %7816 = vmatpush1.bf16.msra.mxu0 %v10445_v56  ;;  %v10537_v56 = vld [vmem:[%s14093_s5 + $0x3cc] ss:$16 sps:$4 sm:$0xff]  }
 0x4e4   :  { %7817 = vmatprep.subr.bf16.mxu0 %v10453_v25  ;;  %v10535_v25 = vld [vmem:[%s14093_s5 + $0x3c8] ss:$16 sps:$4 sm:$0xff]  }
 0x4e7   :  { %7818 = vmatpush1.bf16.msra.mxu0 %v10451_v14  ;;  %v10540_v14 = vld [vmem:[%s14093_s5 + $0x3ac] ss:$16 sps:$4 sm:$0xff]  }
 0x4e8   :  { %7819 = vmatprep.subr.bf16.mxu0 %v10459_v57  ;;  %v10538_v57 = vld [vmem:[%s14093_s5 + $0x3a8] ss:$16 sps:$4 sm:$0xff]  }
 0x4eb   :  { %7820 = vmatpush1.bf16.msra.mxu0 %v10457_v58  ;;  %v10543_v58 = vld [vmem:[%s14093_s5 + $0x38c] ss:$16 sps:$4 sm:$0xff]  }
 0x4ec   :  { %7821 = vmatprep.subr.bf16.mxu0 %v10465_v62  ;;  %v10541_v62 = vld [vmem:[%s14093_s5 + $0x388] ss:$16 sps:$4 sm:$0xff]  }
 0x4ef   :  { %7822 = vmatpush2.bf16.msra.mxu0 %v10463_v21  ;;  %v10546_v21 = vld [vmem:[%s14093_s5 + $0x36c] ss:$16 sps:$4 sm:$0xff]  }
 0x4f0   :  { %7823 = vmatprep.subr.bf16.mxu0 %v10471_v4  ;;  %v10549_v4 = vld [vmem:[%s14093_s5 + $0x34c] ss:$16 sps:$4 sm:$0xff]  }
 0x4f1   :  { %v6898_v1 = vpop.f32.mrf.mxu1 }
 0x4f2   :  { %v6899_v51 = vadd.f32 %v6898_v1, %v6858_v2  ;;  %v10550_v2 = vld [vmem:[%s14093_s5 + $0x328] ss:$16 sps:$4 sm:$0xff]  }
 0x4f3   :  { %v6900_v35 = vpop.f32.mrf.mxu1  ;;  %7824 = vmatpush2.bf16.msra.mxu0 %v10469_v7  ;;  %v10552_v7 = vld [vmem:[%s14093_s5 + $0x32c] ss:$16 sps:$4 sm:$0xff]   ;;  %v10553_v1 = vld [vmem:[%s14093_s5 + $0x308] ss:$16 sps:$4 sm:$0xff]  }
 0x4f4   :  { %v6911_v30 = vmin.f32 %v6899_v51, 0.0  ;;  %v6901_v18 = vadd.f32 %v6900_v35, %v6860_v15  ;;  %7825 = vmatprep.subr.bf16.mxu0 %v10477_v3  ;;  %vm6907_vm7 = vcmp.gt.f32.partialorder %v6899_v51, 0.0  ;;  %v10555_v3 = vld [vmem:[%s14093_s5 + $0x30c] ss:$16 sps:$4 sm:$0xff]  }
 0x4f5   :  { %v6902_v60 = vpop.f32.mrf.mxu1 }
 0x4f6   :  { %v6917_v37 = vmul.f32 1.442695, %v6911_v30  ;;  %v6912_v38 = vmin.f32 %v6901_v18, 0.0  ;;  %vm6908_vm8 = vcmp.gt.f32.partialorder %v6901_v18, 0.0  ;;  %v7061_v30 = vld [vmem:[%s14095_s6] sm:$0xf] }
 0x4f7   :  { %v6903_v11 = vpop.f32.mrf.mxu1  ;;  %7826 = vmatpush2.bf16.msra.mxu0 %v10475_v8 }
 0x4f8   :  { %10568 = vpow2.f32 %v6917_v37  ;;  %v6919_v10 = vmul.f32 1.442695, %v6912_v38  ;;  %7827 = vmatprep.subr.bf16.mxu0 %v10483_v9  ;;  %v7070_v9 = vrot.slane %v7061_v30, %v11499_v63 }
 0x4fa   :  { %10570 = vpow2.f32 %v6919_v10 }
 0x4fb   :  { %7828 = vmatpush2.bf16.msra.mxu0 %v10481_v52 }
 0x4fc   :  { %7829 = vmatprep.subr.bf16.mxu0 %v10489_v61 }
 0x4ff   :  { %7830 = vmatpush2.bf16.msra.mxu0 %v10487_v19 }
 0x500   :  { %7831 = vmatprep.subr.bf16.mxu0 %v10495_v20 }
 0x503   :  { %7832 = vmatpush2.bf16.msra.mxu0 %v10493_v16 }
 0x504   :  { %7833 = vmatprep.subr.bf16.mxu0 %v10501_v22  ;;  %v7074_v22 = vrot.slane %v7061_v30, %v12814_v44 }
 0x505   :  { %v10569_v34 = vpop.eup %10568 }
 0x506   :  { %v8840_v31 = vadd.f32 -1.0, %v10569_v34 }
 0x507   :  { %v10571_v6 = vpop.eup %10570  ;;  %7834 = vmatpush2.bf16.msra.mxu0 %v10499_v28  ;;  %v7078_v28 = vrot.slane %v7061_v30, %v12817_v49 }
 0x508   :  { %7835 = vmatprep.subr.bf16.mxu0 %v10507_v26  ;;  %v8841_v46 = vadd.f32 -1.0, %v10571_v6  ;;  %v6927_v40 = vsel %vm6907_vm7, %v6899_v51, %v8840_v31 }
 0x509   :  { %v13975_v0 = vpack.c.bf16 %v6927_v40, %v6927_v40 }
 0x50a   :  { %v6928_v23 = vsel %vm6908_vm8, %v6901_v18, %v8841_v46  ;;  %v7066_v18 = vrot.slane %v7061_v30, %v11487_v59 }
 0x50b   :  { %7836 = vmatpush2.bf16.msra.mxu0 %v10505_v39  ;;  %v6932_v13 = vpack.c.bf16 %v6928_v23, %v6928_v23 }
 0x50d   :  { %7796 = vmatprep.mubr.bf16.mxu1 %v6932_v13 }
 0x50e   :  { %7797 = vmatmul.mubr.bf16.vlgmr.msra.gmra.mxu1 %v13975_v0  ;;  %7838 = vmatmul.mubr.bf16.vlgmr.msra.gmra.mxu0 %v13873_v32  ;;  %v10522_v32 = vld [vmem:[%s14093_s5 + $0x26c] ss:$16 sps:$4 sm:$0xff]  }
 0x50f   :  { %7847 = vmatpush1.bf16.msra.mxu1 %v10508_v27  ;;  %7878 = vmatprep.mubr.bf16.mxu1 %v6932_v13 }
 0x510   :  { %7848 = vmatprep.subr.bf16.mxu1 %v10513_v33 }
 0x513   :  { %7849 = vmatpush1.bf16.msra.mxu1 %v10511_v45 }
 0x514   :  { %7850 = vmatprep.subr.bf16.mxu1 %v10516_v17 }
 0x517   :  { %7851 = vmatpush1.bf16.msra.mxu1 %v10514_v43 }
 0x518   :  { %7852 = vmatprep.subr.bf16.mxu1 %v10519_v42 }
 0x51b   :  { %7853 = vmatpush1.bf16.msra.mxu1 %v10517_v12 }
 0x51c   :  { %7854 = vmatprep.subr.bf16.mxu1 %v10522_v32 }
 0x51f   :  { %7855 = vmatpush1.bf16.msra.mxu1 %v10520_v41 }
 0x520   :  { %7856 = vmatprep.subr.bf16.mxu1 %v10525_v48 }
 0x523   :  { %7857 = vmatpush1.bf16.msra.mxu1 %v10523_v47 }
 0x524   :  { %7858 = vmatprep.subr.bf16.mxu1 %v10528_v36 }
 0x527   :  { %7859 = vmatpush1.bf16.msra.mxu1 %v10526_v50 }
 0x528   :  { %7860 = vmatprep.subr.bf16.mxu1 %v10531_v54 }
 0x52b   :  { %7861 = vmatpush1.bf16.msra.mxu1 %v10529_v53 }
 0x52c   :  { %7862 = vmatprep.subr.bf16.mxu1 %v10534_v24 }
 0x52f   :  { %7863 = vmatpush2.bf16.msra.mxu1 %v10532_v55 }
 0x530   :  { %7864 = vmatprep.subr.bf16.mxu1 %v10537_v56 }
 0x533   :  { %7865 = vmatpush2.bf16.msra.mxu1 %v10535_v25 }
 0x534   :  { %7866 = vmatprep.subr.bf16.mxu1 %v10540_v14 }
 0x537   :  { %7867 = vmatpush2.bf16.msra.mxu1 %v10538_v57 }
 0x538   :  { %7868 = vmatprep.subr.bf16.mxu1 %v10543_v58 }
 0x53b   :  { %7869 = vmatpush2.bf16.msra.mxu1 %v10541_v62 }
 0x53c   :  { %7870 = vmatprep.subr.bf16.mxu1 %v10546_v21 }
 0x53f   :  { %7871 = vmatpush2.bf16.msra.mxu1 %v10544_v29 }
 0x540   :  { %7872 = vmatprep.subr.bf16.mxu1 %v10549_v4 }
 0x543   :  { %7873 = vmatpush2.bf16.msra.mxu1 %v10547_v5 }
 0x544   :  { %7874 = vmatprep.subr.bf16.mxu1 %v10552_v7 }
 0x547   :  { %7875 = vmatpush2.bf16.msra.mxu1 %v10550_v2 }
 0x548   :  { %7876 = vmatprep.subr.bf16.mxu1 %v10555_v3 }
 0x54b   :  { %7877 = vmatpush2.bf16.msra.mxu1 %v10553_v1 }
 0x54e   :  { %7879 = vmatmul.mubr.bf16.vlgmr.msra.gmra.mxu1 %v13975_v0 }
 0x58e   :  { %v7757_v15 = vpop.f32.mrf.mxu0 }
 0x58f   :  { %v7758_v60 = vadd.f32 %v7757_v15, %v7066_v18 }
 0x590   :  { %v7759_v51 = vpop.f32.mrf.mxu0 }
 0x591   :  { %v7760_v11 = vadd.f32 %v7759_v51, %v7070_v9 }
 0x592   :  { %v7761_v35 = vpop.f32.mrf.mxu0 }
 0x594   :  { %v7762_v8 = vpop.f32.mrf.mxu0 }
 0x5ce   :  { %v7798_v37 = vpop.f32.mrf.mxu1  ;;  %v7839_v38 = vpop.f32.mrf.mxu0 }
 0x5cf   :  { %v7799_v52 = vadd.f32 %v7798_v37, %v7758_v60  ;;  %v7840_v26 = vadd.f32 %v7839_v38, %v7074_v22 }
 0x5d0   :  { %v7800_v10 = vpop.f32.mrf.mxu1  ;;  %v7841_v61 = vpop.f32.mrf.mxu0 }
 0x5d1   :  { %7887 = vst [vmem:[%s14096_s7] sm:$0xff] %v7799_v52  ;;  %v7801_v19 = vadd.f32 %v7800_v10, %v7760_v11  ;;  %v7842_v31 = vadd.f32 %v7841_v61, %v7078_v28 }
 0x5d2   :  { %v7802_v20 = vpop.f32.mrf.mxu1  ;;  %v7843_v16 = vpop.f32.mrf.mxu0 }
 0x5d3   :  { %7888 = vst [vmem:[%s14096_s7 + $0x8] sm:$0xff] %v7801_v19 }
 0x5d4   :  { %v7803_v59 = vpop.f32.mrf.mxu1  ;;  %v7844_v63 = vpop.f32.mrf.mxu0 }
 0x60e   :  { %v7880_v34 = vpop.f32.mrf.mxu1 }
 0x60f   :  { %v7881_v6 = vadd.f32 %v7880_v34, %v7840_v26 }
 0x610   :  { %v7882_v39 = vpop.f32.mrf.mxu1 }
 0x611   :  { %7889 = vst [vmem:[%s14096_s7 + $0x10] sm:$0xff] %v7881_v6  ;;  %v7883_v46 = vadd.f32 %v7882_v39, %v7842_v31 }
 0x612   :  { %v7884_v40 = vpop.f32.mrf.mxu1 }
 0x613   :  { %7890 = vst [vmem:[%s14096_s7 + $0x18] sm:$0xff] %v7883_v46 }
 0x614   :  { %v7885_v23 = vpop.f32.mrf.mxu1 }

</bundles_post_ra>
